<compile_context>
chip_gen: v7x
topology: tpu7x:2x2x1
jax: 0.10.0
libtpu: 0.0.40
codegen_flags: <defaults>
</compile_context>

<pallas_src>
import functools

import jax
import jax.numpy as jnp
import numpy as np
from jax.experimental import pallas as pl
from jax.experimental.pallas import tpu as pltpu


# ----------------------------------------------------------------------------
# Kernels
# ----------------------------------------------------------------------------
def conv_stack_kernel(x_ref, w1_ref, b1_ref, w2_ref, b2_ref, w3_ref, b3_ref,
                      o_ref, pad_ref, *, H, W):
    """Fused conv(1->64)+ReLU -> conv(64->128)+ReLU -> conv(128->256)+ReLU.

    One sample per grid step (batch axis is the parallel grid axis).  Each 3x3
    'same' conv is 9 accumulated dots (one per tap) -- bf16 operands, f32
    accumulator -- reading shifted windows from a reusable padded VMEM scratch
    whose border is zero.  Output is the NHWC activation (H*W, 256) in bf16;
    FC1 weight rows are pre-permuted to match this flatten ordering.
    """
    # Re-zero the scratch every step: under megacore "parallel" sharding each
    # TensorCore has its own scratch and may never see program_id == 0, so a
    # one-time memset would be unsafe.  (1, H+2, W+2, 128) f32 is ~51 KiB.
    pad_ref[...] = jnp.zeros_like(pad_ref)

    def conv3x3_relu(h, w_ref, b_ref):
        """h: (1, H, W, cin) f32 -> (1, H, W, cout) f32."""
        cin = h.shape[-1]
        cout = w_ref.shape[-1]
        pad_ref[:, 1:H + 1, 1:W + 1, :cin] = h          # borders stay zero
        acc = jnp.zeros((H * W, cout), jnp.float32)
        for t in range(9):                               # 9 shifted taps
            kh, kw = t // 3, t % 3
            tap = pad_ref[:, kh:kh + H, kw:kw + W, :cin].reshape(H * W, cin)
            if cin == 1:
                # K=1 contraction: cheaper as a VPU broadcast multiply-add.
                acc = acc + tap * w_ref[t:t + 1, :].astype(jnp.float32)
            else:
                # bf16 x bf16 MXU matmul with f32 accumulation.
                acc = acc + jnp.dot(tap.astype(jnp.bfloat16),
                                    w_ref[t * cin:(t + 1) * cin, :],
                                    preferred_element_type=jnp.float32)
        acc = jnp.maximum(acc + b_ref[...], 0.0)
        return acc.reshape(1, H, W, cout)

    h = x_ref[...].astype(jnp.float32)          # (1, H, W, 1)
    h = conv3x3_relu(h, w1_ref, b1_ref)         # (1, H, W, 64)
    h = conv3x3_relu(h, w2_ref, b2_ref)         # (1, H, W, 128)
    h = conv3x3_relu(h, w3_ref, b3_ref)         # (1, H, W, 256)
    # NHWC flatten (lane-dense 256-wide output block).
    o_ref[...] = h.reshape(1, H * W, 256).astype(o_ref.dtype)


def fc_kernel(x_ref, w_ref, b_ref, o_ref, acc_ref, *, relu):
    """Tiled matmul: parallel N axis, reduction K axis (last), f32 accumulator."""
    k = pl.program_id(1)

    @pl.when(k == 0)
    def _():
        acc_ref[...] = jnp.zeros_like(acc_ref)

    acc_ref[...] += jnp.dot(x_ref[...], w_ref[...],
                            preferred_element_type=jnp.float32)

    @pl.when(k == pl.num_programs(1) - 1)
    def _():
        out = acc_ref[...] + b_ref[...]
        if relu:
            out = jnp.maximum(out, 0.0)
        o_ref[...] = out.astype(o_ref.dtype)


# ----------------------------------------------------------------------------
# Pallas wrappers
# ----------------------------------------------------------------------------
def conv_stack(x_nhwc, w1, b1, w2, b2, w3, b3):
    B, H, W, _ = x_nhwc.shape
    return pl.pallas_call(
        functools.partial(conv_stack_kernel, H=H, W=W),
        out_shape=jax.ShapeDtypeStruct((B, H * W, 256), jnp.bfloat16),
        grid=(B,),                                  # parallel over batch (v7x: 2 TCs)
        in_specs=[
            pl.BlockSpec((1, H, W, 1), lambda b: (b, 0, 0, 0)),
            pl.BlockSpec((9 * 1, 64), lambda b: (0, 0)),
            pl.BlockSpec((1, 64), lambda b: (0, 0)),
            pl.BlockSpec((9 * 64, 128), lambda b: (0, 0)),
            pl.BlockSpec((1, 128), lambda b: (0, 0)),
            pl.BlockSpec((9 * 128, 256), lambda b: (0, 0)),
            pl.BlockSpec((1, 256), lambda b: (0, 0)),
        ],
        out_specs=pl.BlockSpec((1, H * W, 256), lambda b: (b, 0, 0)),
        scratch_shapes=[pltpu.VMEM((1, H + 2, W + 2, 128), jnp.float32)],
        compiler_params=pltpu.CompilerParams(
            dimension_semantics=("parallel",)),
    )(x_nhwc, w1, b1, w2, b2, w3, b3)


def _pick_tile(dim, target, unit=128):
    """Largest multiple of `unit` <= target that divides `dim`; else full dim."""
    t = min(target, dim)
    t -= t % unit
    while t >= unit:
        if dim % t == 0:
            return t
        t -= unit
    return dim  # full-extent block is always legal


def linear(x, w, b, *, relu, out_dtype, tk_target=4096, tn_target=512):
    B, K = x.shape
    N = w.shape[1]
    tk = _pick_tile(K, tk_target)
    tn = _pick_tile(N, tn_target)
    b2 = b.reshape(1, N).astype(jnp.float32)
    return pl.pallas_call(
        functools.partial(fc_kernel, relu=relu),
        out_shape=jax.ShapeDtypeStruct((B, N), out_dtype),
        grid=(N // tn, K // tk),                      # reduction axis last
        in_specs=[
            pl.BlockSpec((B, tk), lambda n, k: (0, k)),
            pl.BlockSpec((tk, tn), lambda n, k: (k, n)),
            pl.BlockSpec((1, tn), lambda n, k: (0, n)),
        ],
        out_specs=pl.BlockSpec((B, tn), lambda n, k: (0, n)),
        scratch_shapes=[pltpu.VMEM((B, tn), jnp.float32)],
        compiler_params=pltpu.CompilerParams(
            dimension_semantics=("parallel", "arbitrary")),
    )(x, w, b2)


# ----------------------------------------------------------------------------
# Parameters: torch-layout init + kernel-layout preparation
# ----------------------------------------------------------------------------
def init_params(board_size, key):
    """'Torch layout': conv weights HWIO, fc1 rows in NCHW-flatten order, f32."""
    ks = jax.random.split(key, 10)
    s = 0.03
    return {
        "w1": jax.random.normal(ks[0], (3, 3, 1, 64), jnp.float32) * s,
        "b1": jax.random.normal(ks[1], (64,), jnp.float32) * s,
        "w2": jax.random.normal(ks[2], (3, 3, 64, 128), jnp.float32) * s,
        "b2": jax.random.normal(ks[3], (128,), jnp.float32) * s,
        "w3": jax.random.normal(ks[4], (3, 3, 128, 256), jnp.float32) * s,
        "b3": jax.random.normal(ks[5], (256,), jnp.float32) * s,
        "wf1": jax.random.normal(
            ks[6], (256 * board_size * board_size, 1024), jnp.float32) * s,
        "bf1": jax.random.normal(ks[7], (1024,), jnp.float32) * s,
        "wf2": jax.random.normal(
            ks[8], (1024, board_size * board_size), jnp.float32) * s,
        "bf2": jax.random.normal(ks[9], (board_size * board_size,), jnp.float32) * s,
    }


def prepare_params(params, board_size):
    """One-time conversion to kernel-ready layout:
       * conv weights reshaped to (9*Cin, Cout) im2col layout and cast to bf16
         (MXU is bf16-native); conv biases kept f32 as (1, Cout).
       * fc1 rows permuted NCHW-flatten -> NHWC-flatten (removes the runtime
         transpose); fc weights cast to bf16 (halves the dominant HBM stream).
       NOTE: on v5e/v6e wf1 could further be int8-quantized; on v7x (no int MXU
       path) fp8 or a VMEM-resident wf1 would be the equivalent win.
    """
    H = W = board_size
    C = 256
    # perm[k_nhwc] = k_nchw for the same (h, w, c)
    perm = np.arange(C * H * W).reshape(C, H, W).transpose(1, 2, 0).reshape(-1)
    return {
        "w1": params["w1"].reshape(9 * 1, 64).astype(jnp.bfloat16),
        "b1": params["b1"].reshape(1, 64),
        "w2": params["w2"].reshape(9 * 64, 128).astype(jnp.bfloat16),
        "b2": params["b2"].reshape(1, 128),
        "w3": params["w3"].reshape(9 * 128, 256).astype(jnp.bfloat16),
        "b3": params["b3"].reshape(1, 256),
        "wf1": params["wf1"][perm].astype(jnp.bfloat16),
        "bf1": params["bf1"],
        "wf2": params["wf2"].astype(jnp.bfloat16),
        "bf2": params["bf2"],
    }


# ----------------------------------------------------------------------------
# GoNetwork forward (Pallas)
# ----------------------------------------------------------------------------
def go_network_forward(x, kparams, board_size):
    B = x.shape[0]
    x4 = x[:, :, :, None].astype(jnp.float32)                  # (B, bs, bs, 1)
    h = conv_stack(x4,
                   kparams["w1"], kparams["b1"],
                   kparams["w2"], kparams["b2"],
                   kparams["w3"], kparams["b3"])               # (B, bs*bs, 256) bf16
    h = h.reshape(B, board_size * board_size * 256)            # NHWC flatten
    h = linear(h, kparams["wf1"], kparams["bf1"],
               relu=True, out_dtype=jnp.bfloat16)              # (B, 1024)
    # FC2 is tiny (128 KiB of weights): plain XLA matmul, no extra pallas_call
    # and no 64-wide masked-store kernel output.
    out = jnp.dot(h, kparams["wf2"],
                  preferred_element_type=jnp.float32) + kparams["bf2"]
    return out                                                  # (B, bs*bs) f32


# ----------------------------------------------------------------------------
# Pure-JAX reference (torch semantics, f32) — verification only
# ----------------------------------------------------------------------------
def go_network_ref(x, params, board_size):
    B = x.shape[0]
    h = x[:, :, :, None].astype(jnp.float32)

    def conv(h, w, b):
        y = jax.lax.conv_general_dilated(
            h, w, window_strides=(1, 1), padding="SAME",
            dimension_numbers=("NHWC", "HWIO", "NHWC"))
        return jax.nn.relu(y + b)

    h = conv(h, params["w1"], params["b1"])
    h = conv(h, params["w2"], params["b2"])
    h = conv(h, params["w3"], params["b3"])
    # torch nn.Flatten on NCHW tensors
    h = jnp.transpose(h, (0, 3, 1, 2)).reshape(B, 256 * board_size * board_size)
    h = jax.nn.relu(h @ params["wf1"] + params["bf1"])
    return h @ params["wf2"] + params["bf2"]


# ----------------------------------------------------------------------------
if __name__ == "__main__":
    board_size = 8
    batch = 2

    key = jax.random.PRNGKey(0)
    kx, kp = jax.random.split(key)
    x = jax.random.normal(kx, (batch, board_size, board_size), jnp.float32)

    params = init_params(board_size, kp)           # torch-layout (reference)
    kparams = prepare_params(params, board_size)   # kernel-layout (Pallas)

    fwd = jax.jit(functools.partial(go_network_forward, board_size=board_size))
    out = jax.block_until_ready(fwd(x, kparams))

    ref = go_network_ref(x, params, board_size)
    assert out.shape == (batch, board_size * board_size)
    err = float(jnp.max(jnp.abs(out.astype(jnp.float32) - ref)))
    ref_max = float(jnp.max(jnp.abs(ref)))
    # bf16 weights/activations vs f32 reference -> combined abs+rel tolerance.
    tol = 2e-2 + 2e-2 * ref_max
    assert err < tol, f"mismatch vs reference: err={err} tol={tol} ref_max={ref_max}"

    print("KERNEL_OK")
</pallas_src>

<mosaic_0001>
module attributes {stable_mosaic.version = 11 : i64} {
  func.func @conv_stack_kernel(%arg0: i32, %arg1: memref<1x8x8x1xf32, #tpu.memory_space<vmem>>, %arg2: memref<9x64xbf16, #tpu.memory_space<vmem>>, %arg3: memref<1x64xf32, #tpu.memory_space<vmem>>, %arg4: memref<576x128xbf16, #tpu.memory_space<vmem>>, %arg5: memref<1x128xf32, #tpu.memory_space<vmem>>, %arg6: memref<1152x256xbf16, #tpu.memory_space<vmem>>, %arg7: memref<1x256xf32, #tpu.memory_space<vmem>>, %arg8: memref<1x64x256xbf16, #tpu.memory_space<vmem>>, %arg9: memref<1x10x10x128xf32, #tpu.memory_space<vmem>>) attributes {dimension_semantics = [#tpu.dimension_semantics<parallel>], iteration_bounds = array<i64: 2>, scalar_prefetch = 0 : i64, scratch_operands = 1 : i64, tpu.core_type = #tpu.core_type<tc>, window_params = [{transform_indices = @transform_0, window_bounds = array<i64: 1, 8, 8, 1>}, {pipeline_mode = #tpu.pipeline_mode<synchronous>, transform_indices = @transform_1, window_bounds = array<i64: 9, 64>}, {pipeline_mode = #tpu.pipeline_mode<synchronous>, transform_indices = @transform_2, window_bounds = array<i64: 1, 64>}, {pipeline_mode = #tpu.pipeline_mode<synchronous>, transform_indices = @transform_3, window_bounds = array<i64: 576, 128>}, {pipeline_mode = #tpu.pipeline_mode<synchronous>, transform_indices = @transform_4, window_bounds = array<i64: 1, 128>}, {pipeline_mode = #tpu.pipeline_mode<synchronous>, transform_indices = @transform_5, window_bounds = array<i64: 1152, 256>}, {pipeline_mode = #tpu.pipeline_mode<synchronous>, transform_indices = @transform_6, window_bounds = array<i64: 1, 256>}, {transform_indices = @transform_7, window_bounds = array<i64: 1, 64, 256>}]} {
    %cst = arith.constant 0.000000e+00 : f32
    %0 = vector.broadcast %cst : f32 to vector<1x10x10x128xf32>
    %c0 = arith.constant 0 : index
    %c0_0 = arith.constant 0 : index
    %c0_1 = arith.constant 0 : index
    %c0_2 = arith.constant 0 : index
    %1 = vector.load %arg9[%c0, %c0_0, %c0_1, %c0_2] : memref<1x10x10x128xf32, #tpu.memory_space<vmem>>, vector<1x10x10x128xf32>
    tpu.vector_store %arg9[%c0, %c0_0, %c0_1, %c0_2], %0 {strides = array<i32>} : memref<1x10x10x128xf32, #tpu.memory_space<vmem>>, vector<1x10x10x128xf32>,
    %c0_3 = arith.constant 0 : index
    %c0_4 = arith.constant 0 : index
    %c0_5 = arith.constant 0 : index
    %c0_6 = arith.constant 0 : index
    %2 = vector.load %arg1[%c0_3, %c0_4, %c0_5, %c0_6] : memref<1x8x8x1xf32, #tpu.memory_space<vmem>>, vector<1x8x8x1xf32>
    %c0_7 = arith.constant 0 : index
    %c1 = arith.constant 1 : index
    %c1_8 = arith.constant 1 : index
    %c0_9 = arith.constant 0 : index
    %3 = vector.load %arg9[%c0_7, %c1, %c1_8, %c0_9] : memref<1x10x10x128xf32, #tpu.memory_space<vmem>>, vector<1x8x8x1xf32>
    tpu.vector_store %arg9[%c0_7, %c1, %c1_8, %c0_9], %2 {strides = array<i32>} : memref<1x10x10x128xf32, #tpu.memory_space<vmem>>, vector<1x8x8x1xf32>,
    %cst_10 = arith.constant 0.000000e+00 : f32
    %4 = vector.broadcast %cst_10 : f32 to vector<64x64xf32>
    %c0_11 = arith.constant 0 : index
    %c0_12 = arith.constant 0 : index
    %c0_13 = arith.constant 0 : index
    %c0_14 = arith.constant 0 : index
    %5 = vector.load %arg9[%c0_11, %c0_12, %c0_13, %c0_14] : memref<1x10x10x128xf32, #tpu.memory_space<vmem>>, vector<1x8x8x1xf32>
    %6 = vector.shape_cast %5 : vector<1x8x8x1xf32> to vector<64x1xf32>
    %c0_15 = arith.constant 0 : index
    %c0_16 = arith.constant 0 : index
    %7 = vector.load %arg2[%c0_15, %c0_16] : memref<9x64xbf16, #tpu.memory_space<vmem>>, vector<1x64xbf16>
    %8 = arith.extf %7 : vector<1x64xbf16> to vector<1x64xf32>
    %9 = vector.broadcast %6 : vector<64x1xf32> to vector<64x64xf32>
    %10 = vector.broadcast %8 : vector<1x64xf32> to vector<64x64xf32>
    %11 = arith.mulf %9, %10 : vector<64x64xf32>
    %12 = arith.addf %4, %11 : vector<64x64xf32>
    %c0_17 = arith.constant 0 : index
    %c0_18 = arith.constant 0 : index
    %c1_19 = arith.constant 1 : index
    %c0_20 = arith.constant 0 : index
    %13 = vector.load %arg9[%c0_17, %c0_18, %c1_19, %c0_20] : memref<1x10x10x128xf32, #tpu.memory_space<vmem>>, vector<1x8x8x1xf32>
    %14 = vector.shape_cast %13 : vector<1x8x8x1xf32> to vector<64x1xf32>
    %c1_21 = arith.constant 1 : index
    %c0_22 = arith.constant 0 : index
    %15 = vector.load %arg2[%c1_21, %c0_22] : memref<9x64xbf16, #tpu.memory_space<vmem>>, vector<1x64xbf16>
    %16 = arith.extf %15 : vector<1x64xbf16> to vector<1x64xf32>
    %17 = vector.broadcast %14 : vector<64x1xf32> to vector<64x64xf32>
    %18 = vector.broadcast %16 : vector<1x64xf32> to vector<64x64xf32>
    %19 = arith.mulf %17, %18 : vector<64x64xf32>
    %20 = arith.addf %12, %19 : vector<64x64xf32>
    %c0_23 = arith.constant 0 : index
    %c0_24 = arith.constant 0 : index
    %c2 = arith.constant 2 : index
    %c0_25 = arith.constant 0 : index
    %21 = vector.load %arg9[%c0_23, %c0_24, %c2, %c0_25] : memref<1x10x10x128xf32, #tpu.memory_space<vmem>>, vector<1x8x8x1xf32>
    %22 = vector.shape_cast %21 : vector<1x8x8x1xf32> to vector<64x1xf32>
    %c2_26 = arith.constant 2 : index
    %c0_27 = arith.constant 0 : index
    %23 = vector.load %arg2[%c2_26, %c0_27] : memref<9x64xbf16, #tpu.memory_space<vmem>>, vector<1x64xbf16>
    %24 = arith.extf %23 : vector<1x64xbf16> to vector<1x64xf32>
    %25 = vector.broadcast %22 : vector<64x1xf32> to vector<64x64xf32>
    %26 = vector.broadcast %24 : vector<1x64xf32> to vector<64x64xf32>
    %27 = arith.mulf %25, %26 : vector<64x64xf32>
    %28 = arith.addf %20, %27 : vector<64x64xf32>
    %c0_28 = arith.constant 0 : index
    %c1_29 = arith.constant 1 : index
    %c0_30 = arith.constant 0 : index
    %c0_31 = arith.constant 0 : index
    %29 = vector.load %arg9[%c0_28, %c1_29, %c0_30, %c0_31] : memref<1x10x10x128xf32, #tpu.memory_space<vmem>>, vector<1x8x8x1xf32>
    %30 = vector.shape_cast %29 : vector<1x8x8x1xf32> to vector<64x1xf32>
    %c3 = arith.constant 3 : index
    %c0_32 = arith.constant 0 : index
    %31 = vector.load %arg2[%c3, %c0_32] : memref<9x64xbf16, #tpu.memory_space<vmem>>, vector<1x64xbf16>
    %32 = arith.extf %31 : vector<1x64xbf16> to vector<1x64xf32>
    %33 = vector.broadcast %30 : vector<64x1xf32> to vector<64x64xf32>
    %34 = vector.broadcast %32 : vector<1x64xf32> to vector<64x64xf32>
    %35 = arith.mulf %33, %34 : vector<64x64xf32>
    %36 = arith.addf %28, %35 : vector<64x64xf32>
    %c0_33 = arith.constant 0 : index
    %c1_34 = arith.constant 1 : index
    %c1_35 = arith.constant 1 : index
    %c0_36 = arith.constant 0 : index
    %37 = vector.load %arg9[%c0_33, %c1_34, %c1_35, %c0_36] : memref<1x10x10x128xf32, #tpu.memory_space<vmem>>, vector<1x8x8x1xf32>
    %38 = vector.shape_cast %37 : vector<1x8x8x1xf32> to vector<64x1xf32>
    %c4 = arith.constant 4 : index
    %c0_37 = arith.constant 0 : index
    %39 = vector.load %arg2[%c4, %c0_37] : memref<9x64xbf16, #tpu.memory_space<vmem>>, vector<1x64xbf16>
    %40 = arith.extf %39 : vector<1x64xbf16> to vector<1x64xf32>
    %41 = vector.broadcast %38 : vector<64x1xf32> to vector<64x64xf32>
    %42 = vector.broadcast %40 : vector<1x64xf32> to vector<64x64xf32>
    %43 = arith.mulf %41, %42 : vector<64x64xf32>
    %44 = arith.addf %36, %43 : vector<64x64xf32>
    %c0_38 = arith.constant 0 : index
    %c1_39 = arith.constant 1 : index
    %c2_40 = arith.constant 2 : index
    %c0_41 = arith.constant 0 : index
    %45 = vector.load %arg9[%c0_38, %c1_39, %c2_40, %c0_41] : memref<1x10x10x128xf32, #tpu.memory_space<vmem>>, vector<1x8x8x1xf32>
    %46 = vector.shape_cast %45 : vector<1x8x8x1xf32> to vector<64x1xf32>
    %c5 = arith.constant 5 : index
    %c0_42 = arith.constant 0 : index
    %47 = vector.load %arg2[%c5, %c0_42] : memref<9x64xbf16, #tpu.memory_space<vmem>>, vector<1x64xbf16>
    %48 = arith.extf %47 : vector<1x64xbf16> to vector<1x64xf32>
    %49 = vector.broadcast %46 : vector<64x1xf32> to vector<64x64xf32>
    %50 = vector.broadcast %48 : vector<1x64xf32> to vector<64x64xf32>
    %51 = arith.mulf %49, %50 : vector<64x64xf32>
    %52 = arith.addf %44, %51 : vector<64x64xf32>
    %c0_43 = arith.constant 0 : index
    %c2_44 = arith.constant 2 : index
    %c0_45 = arith.constant 0 : index
    %c0_46 = arith.constant 0 : index
    %53 = vector.load %arg9[%c0_43, %c2_44, %c0_45, %c0_46] : memref<1x10x10x128xf32, #tpu.memory_space<vmem>>, vector<1x8x8x1xf32>
    %54 = vector.shape_cast %53 : vector<1x8x8x1xf32> to vector<64x1xf32>
    %c6 = arith.constant 6 : index
    %c0_47 = arith.constant 0 : index
    %55 = vector.load %arg2[%c6, %c0_47] : memref<9x64xbf16, #tpu.memory_space<vmem>>, vector<1x64xbf16>
    %56 = arith.extf %55 : vector<1x64xbf16> to vector<1x64xf32>
    %57 = vector.broadcast %54 : vector<64x1xf32> to vector<64x64xf32>
    %58 = vector.broadcast %56 : vector<1x64xf32> to vector<64x64xf32>
    %59 = arith.mulf %57, %58 : vector<64x64xf32>
    %60 = arith.addf %52, %59 : vector<64x64xf32>
    %c0_48 = arith.constant 0 : index
    %c2_49 = arith.constant 2 : index
    %c1_50 = arith.constant 1 : index
    %c0_51 = arith.constant 0 : index
    %61 = vector.load %arg9[%c0_48, %c2_49, %c1_50, %c0_51] : memref<1x10x10x128xf32, #tpu.memory_space<vmem>>, vector<1x8x8x1xf32>
    %62 = vector.shape_cast %61 : vector<1x8x8x1xf32> to vector<64x1xf32>
    %c7 = arith.constant 7 : index
    %c0_52 = arith.constant 0 : index
    %63 = vector.load %arg2[%c7, %c0_52] : memref<9x64xbf16, #tpu.memory_space<vmem>>, vector<1x64xbf16>
    %64 = arith.extf %63 : vector<1x64xbf16> to vector<1x64xf32>
    %65 = vector.broadcast %62 : vector<64x1xf32> to vector<64x64xf32>
    %66 = vector.broadcast %64 : vector<1x64xf32> to vector<64x64xf32>
    %67 = arith.mulf %65, %66 : vector<64x64xf32>
    %68 = arith.addf %60, %67 : vector<64x64xf32>
    %c0_53 = arith.constant 0 : index
    %c2_54 = arith.constant 2 : index
    %c2_55 = arith.constant 2 : index
    %c0_56 = arith.constant 0 : index
    %69 = vector.load %arg9[%c0_53, %c2_54, %c2_55, %c0_56] : memref<1x10x10x128xf32, #tpu.memory_space<vmem>>, vector<1x8x8x1xf32>
    %70 = vector.shape_cast %69 : vector<1x8x8x1xf32> to vector<64x1xf32>
    %c8 = arith.constant 8 : index
    %c0_57 = arith.constant 0 : index
    %71 = vector.load %arg2[%c8, %c0_57] : memref<9x64xbf16, #tpu.memory_space<vmem>>, vector<1x64xbf16>
    %72 = arith.extf %71 : vector<1x64xbf16> to vector<1x64xf32>
    %73 = vector.broadcast %70 : vector<64x1xf32> to vector<64x64xf32>
    %74 = vector.broadcast %72 : vector<1x64xf32> to vector<64x64xf32>
    %75 = arith.mulf %73, %74 : vector<64x64xf32>
    %76 = arith.addf %68, %75 : vector<64x64xf32>
    %c0_58 = arith.constant 0 : index
    %c0_59 = arith.constant 0 : index
    %77 = vector.load %arg3[%c0_58, %c0_59] : memref<1x64xf32, #tpu.memory_space<vmem>>, vector<1x64xf32>
    %78 = vector.broadcast %77 : vector<1x64xf32> to vector<64x64xf32>
    %79 = arith.addf %76, %78 : vector<64x64xf32>
    %cst_60 = arith.constant 0.000000e+00 : f32
    %80 = vector.broadcast %cst_60 : f32 to vector<64x64xf32>
    %81 = arith.maximumf %79, %80 : vector<64x64xf32>
    %82 = vector.shape_cast %81 : vector<64x64xf32> to vector<1x8x8x64xf32>
    %c0_61 = arith.constant 0 : index
    %c1_62 = arith.constant 1 : index
    %c1_63 = arith.constant 1 : index
    %c0_64 = arith.constant 0 : index
    %83 = vector.load %arg9[%c0_61, %c1_62, %c1_63, %c0_64] : memref<1x10x10x128xf32, #tpu.memory_space<vmem>>, vector<1x8x8x64xf32>
    tpu.vector_store %arg9[%c0_61, %c1_62, %c1_63, %c0_64], %82 {strides = array<i32>} : memref<1x10x10x128xf32, #tpu.memory_space<vmem>>, vector<1x8x8x64xf32>,
    %cst_65 = arith.constant 0.000000e+00 : f32
    %84 = vector.broadcast %cst_65 : f32 to vector<64x128xf32>
    %c0_66 = arith.constant 0 : index
    %c0_67 = arith.constant 0 : index
    %c0_68 = arith.constant 0 : index
    %c0_69 = arith.constant 0 : index
    %85 = vector.load %arg9[%c0_66, %c0_67, %c0_68, %c0_69] : memref<1x10x10x128xf32, #tpu.memory_space<vmem>>, vector<1x8x8x64xf32>
    %86 = vector.shape_cast %85 : vector<1x8x8x64xf32> to vector<64x64xf32>
    %87 = arith.truncf %86 : vector<64x64xf32> to vector<64x64xbf16>
    %c0_70 = arith.constant 0 : index
    %c0_71 = arith.constant 0 : index
    %88 = vector.load %arg4[%c0_70, %c0_71] : memref<576x128xbf16, #tpu.memory_space<vmem>>, vector<64x128xbf16>
    %cst_72 = arith.constant dense<0.000000e+00> : vector<64x128xf32>
    %89 = tpu.matmul %87, %88, %cst_72 {dimension_numbers = #tpu.dot_dimension_numbers<[1], [0], [0], [1], [0, 0, 1, 1], [], []>} : vector<64x64xbf16>, vector<64x128xbf16>, vector<64x128xf32> -> vector<64x128xf32>
    %90 = arith.addf %84, %89 : vector<64x128xf32>
    %c0_73 = arith.constant 0 : index
    %c0_74 = arith.constant 0 : index
    %c1_75 = arith.constant 1 : index
    %c0_76 = arith.constant 0 : index
    %91 = vector.load %arg9[%c0_73, %c0_74, %c1_75, %c0_76] : memref<1x10x10x128xf32, #tpu.memory_space<vmem>>, vector<1x8x8x64xf32>
    %92 = vector.shape_cast %91 : vector<1x8x8x64xf32> to vector<64x64xf32>
    %93 = arith.truncf %92 : vector<64x64xf32> to vector<64x64xbf16>
    %c64 = arith.constant 64 : index
    %c0_77 = arith.constant 0 : index
    %94 = vector.load %arg4[%c64, %c0_77] : memref<576x128xbf16, #tpu.memory_space<vmem>>, vector<64x128xbf16>
    %cst_78 = arith.constant dense<0.000000e+00> : vector<64x128xf32>
    %95 = tpu.matmul %93, %94, %cst_78 {dimension_numbers = #tpu.dot_dimension_numbers<[1], [0], [0], [1], [0, 0, 1, 1], [], []>} : vector<64x64xbf16>, vector<64x128xbf16>, vector<64x128xf32> -> vector<64x128xf32>
    %96 = arith.addf %90, %95 : vector<64x128xf32>
    %c0_79 = arith.constant 0 : index
    %c0_80 = arith.constant 0 : index
    %c2_81 = arith.constant 2 : index
    %c0_82 = arith.constant 0 : index
    %97 = vector.load %arg9[%c0_79, %c0_80, %c2_81, %c0_82] : memref<1x10x10x128xf32, #tpu.memory_space<vmem>>, vector<1x8x8x64xf32>
    %98 = vector.shape_cast %97 : vector<1x8x8x64xf32> to vector<64x64xf32>
    %99 = arith.truncf %98 : vector<64x64xf32> to vector<64x64xbf16>
    %c128 = arith.constant 128 : index
    %c0_83 = arith.constant 0 : index
    %100 = vector.load %arg4[%c128, %c0_83] : memref<576x128xbf16, #tpu.memory_space<vmem>>, vector<64x128xbf16>
    %cst_84 = arith.constant dense<0.000000e+00> : vector<64x128xf32>
    %101 = tpu.matmul %99, %100, %cst_84 {dimension_numbers = #tpu.dot_dimension_numbers<[1], [0], [0], [1], [0, 0, 1, 1], [], []>} : vector<64x64xbf16>, vector<64x128xbf16>, vector<64x128xf32> -> vector<64x128xf32>
    %102 = arith.addf %96, %101 : vector<64x128xf32>
    %c0_85 = arith.constant 0 : index
    %c1_86 = arith.constant 1 : index
    %c0_87 = arith.constant 0 : index
    %c0_88 = arith.constant 0 : index
    %103 = vector.load %arg9[%c0_85, %c1_86, %c0_87, %c0_88] : memref<1x10x10x128xf32, #tpu.memory_space<vmem>>, vector<1x8x8x64xf32>
    %104 = vector.shape_cast %103 : vector<1x8x8x64xf32> to vector<64x64xf32>
    %105 = arith.truncf %104 : vector<64x64xf32> to vector<64x64xbf16>
    %c192 = arith.constant 192 : index
    %c0_89 = arith.constant 0 : index
    %106 = vector.load %arg4[%c192, %c0_89] : memref<576x128xbf16, #tpu.memory_space<vmem>>, vector<64x128xbf16>
    %cst_90 = arith.constant dense<0.000000e+00> : vector<64x128xf32>
    %107 = tpu.matmul %105, %106, %cst_90 {dimension_numbers = #tpu.dot_dimension_numbers<[1], [0], [0], [1], [0, 0, 1, 1], [], []>} : vector<64x64xbf16>, vector<64x128xbf16>, vector<64x128xf32> -> vector<64x128xf32>
    %108 = arith.addf %102, %107 : vector<64x128xf32>
    %c0_91 = arith.constant 0 : index
    %c1_92 = arith.constant 1 : index
    %c1_93 = arith.constant 1 : index
    %c0_94 = arith.constant 0 : index
    %109 = vector.load %arg9[%c0_91, %c1_92, %c1_93, %c0_94] : memref<1x10x10x128xf32, #tpu.memory_space<vmem>>, vector<1x8x8x64xf32>
    %110 = vector.shape_cast %109 : vector<1x8x8x64xf32> to vector<64x64xf32>
    %111 = arith.truncf %110 : vector<64x64xf32> to vector<64x64xbf16>
    %c256 = arith.constant 256 : index
    %c0_95 = arith.constant 0 : index
    %112 = vector.load %arg4[%c256, %c0_95] : memref<576x128xbf16, #tpu.memory_space<vmem>>, vector<64x128xbf16>
    %cst_96 = arith.constant dense<0.000000e+00> : vector<64x128xf32>
    %113 = tpu.matmul %111, %112, %cst_96 {dimension_numbers = #tpu.dot_dimension_numbers<[1], [0], [0], [1], [0, 0, 1, 1], [], []>} : vector<64x64xbf16>, vector<64x128xbf16>, vector<64x128xf32> -> vector<64x128xf32>
    %114 = arith.addf %108, %113 : vector<64x128xf32>
    %c0_97 = arith.constant 0 : index
    %c1_98 = arith.constant 1 : index
    %c2_99 = arith.constant 2 : index
    %c0_100 = arith.constant 0 : index
    %115 = vector.load %arg9[%c0_97, %c1_98, %c2_99, %c0_100] : memref<1x10x10x128xf32, #tpu.memory_space<vmem>>, vector<1x8x8x64xf32>
    %116 = vector.shape_cast %115 : vector<1x8x8x64xf32> to vector<64x64xf32>
    %117 = arith.truncf %116 : vector<64x64xf32> to vector<64x64xbf16>
    %c320 = arith.constant 320 : index
    %c0_101 = arith.constant 0 : index
    %118 = vector.load %arg4[%c320, %c0_101] : memref<576x128xbf16, #tpu.memory_space<vmem>>, vector<64x128xbf16>
    %cst_102 = arith.constant dense<0.000000e+00> : vector<64x128xf32>
    %119 = tpu.matmul %117, %118, %cst_102 {dimension_numbers = #tpu.dot_dimension_numbers<[1], [0], [0], [1], [0, 0, 1, 1], [], []>} : vector<64x64xbf16>, vector<64x128xbf16>, vector<64x128xf32> -> vector<64x128xf32>
    %120 = arith.addf %114, %119 : vector<64x128xf32>
    %c0_103 = arith.constant 0 : index
    %c2_104 = arith.constant 2 : index
    %c0_105 = arith.constant 0 : index
    %c0_106 = arith.constant 0 : index
    %121 = vector.load %arg9[%c0_103, %c2_104, %c0_105, %c0_106] : memref<1x10x10x128xf32, #tpu.memory_space<vmem>>, vector<1x8x8x64xf32>
    %122 = vector.shape_cast %121 : vector<1x8x8x64xf32> to vector<64x64xf32>
    %123 = arith.truncf %122 : vector<64x64xf32> to vector<64x64xbf16>
    %c384 = arith.constant 384 : index
    %c0_107 = arith.constant 0 : index
    %124 = vector.load %arg4[%c384, %c0_107] : memref<576x128xbf16, #tpu.memory_space<vmem>>, vector<64x128xbf16>
    %cst_108 = arith.constant dense<0.000000e+00> : vector<64x128xf32>
    %125 = tpu.matmul %123, %124, %cst_108 {dimension_numbers = #tpu.dot_dimension_numbers<[1], [0], [0], [1], [0, 0, 1, 1], [], []>} : vector<64x64xbf16>, vector<64x128xbf16>, vector<64x128xf32> -> vector<64x128xf32>
    %126 = arith.addf %120, %125 : vector<64x128xf32>
    %c0_109 = arith.constant 0 : index
    %c2_110 = arith.constant 2 : index
    %c1_111 = arith.constant 1 : index
    %c0_112 = arith.constant 0 : index
    %127 = vector.load %arg9[%c0_109, %c2_110, %c1_111, %c0_112] : memref<1x10x10x128xf32, #tpu.memory_space<vmem>>, vector<1x8x8x64xf32>
    %128 = vector.shape_cast %127 : vector<1x8x8x64xf32> to vector<64x64xf32>
    %129 = arith.truncf %128 : vector<64x64xf32> to vector<64x64xbf16>
    %c448 = arith.constant 448 : index
    %c0_113 = arith.constant 0 : index
    %130 = vector.load %arg4[%c448, %c0_113] : memref<576x128xbf16, #tpu.memory_space<vmem>>, vector<64x128xbf16>
    %cst_114 = arith.constant dense<0.000000e+00> : vector<64x128xf32>
    %131 = tpu.matmul %129, %130, %cst_114 {dimension_numbers = #tpu.dot_dimension_numbers<[1], [0], [0], [1], [0, 0, 1, 1], [], []>} : vector<64x64xbf16>, vector<64x128xbf16>, vector<64x128xf32> -> vector<64x128xf32>
    %132 = arith.addf %126, %131 : vector<64x128xf32>
    %c0_115 = arith.constant 0 : index
    %c2_116 = arith.constant 2 : index
    %c2_117 = arith.constant 2 : index
    %c0_118 = arith.constant 0 : index
    %133 = vector.load %arg9[%c0_115, %c2_116, %c2_117, %c0_118] : memref<1x10x10x128xf32, #tpu.memory_space<vmem>>, vector<1x8x8x64xf32>
    %134 = vector.shape_cast %133 : vector<1x8x8x64xf32> to vector<64x64xf32>
    %135 = arith.truncf %134 : vector<64x64xf32> to vector<64x64xbf16>
    %c512 = arith.constant 512 : index
    %c0_119 = arith.constant 0 : index
    %136 = vector.load %arg4[%c512, %c0_119] : memref<576x128xbf16, #tpu.memory_space<vmem>>, vector<64x128xbf16>
    %cst_120 = arith.constant dense<0.000000e+00> : vector<64x128xf32>
    %137 = tpu.matmul %135, %136, %cst_120 {dimension_numbers = #tpu.dot_dimension_numbers<[1], [0], [0], [1], [0, 0, 1, 1], [], []>} : vector<64x64xbf16>, vector<64x128xbf16>, vector<64x128xf32> -> vector<64x128xf32>
    %138 = arith.addf %132, %137 : vector<64x128xf32>
    %c0_121 = arith.constant 0 : index
    %c0_122 = arith.constant 0 : index
    %139 = vector.load %arg5[%c0_121, %c0_122] : memref<1x128xf32, #tpu.memory_space<vmem>>, vector<1x128xf32>
    %140 = vector.broadcast %139 : vector<1x128xf32> to vector<64x128xf32>
    %141 = arith.addf %138, %140 : vector<64x128xf32>
    %cst_123 = arith.constant 0.000000e+00 : f32
    %142 = vector.broadcast %cst_123 : f32 to vector<64x128xf32>
    %143 = arith.maximumf %141, %142 : vector<64x128xf32>
    %144 = vector.shape_cast %143 : vector<64x128xf32> to vector<1x8x8x128xf32>
    %c0_124 = arith.constant 0 : index
    %c1_125 = arith.constant 1 : index
    %c1_126 = arith.constant 1 : index
    %c0_127 = arith.constant 0 : index
    %145 = vector.load %arg9[%c0_124, %c1_125, %c1_126, %c0_127] : memref<1x10x10x128xf32, #tpu.memory_space<vmem>>, vector<1x8x8x128xf32>
    tpu.vector_store %arg9[%c0_124, %c1_125, %c1_126, %c0_127], %144 {strides = array<i32>} : memref<1x10x10x128xf32, #tpu.memory_space<vmem>>, vector<1x8x8x128xf32>,
    %cst_128 = arith.constant 0.000000e+00 : f32
    %146 = vector.broadcast %cst_128 : f32 to vector<64x256xf32>
    %c0_129 = arith.constant 0 : index
    %c0_130 = arith.constant 0 : index
    %c0_131 = arith.constant 0 : index
    %c0_132 = arith.constant 0 : index
    %147 = vector.load %arg9[%c0_129, %c0_130, %c0_131, %c0_132] : memref<1x10x10x128xf32, #tpu.memory_space<vmem>>, vector<1x8x8x128xf32>
    %148 = vector.shape_cast %147 : vector<1x8x8x128xf32> to vector<64x128xf32>
    %149 = arith.truncf %148 : vector<64x128xf32> to vector<64x128xbf16>
    %c0_133 = arith.constant 0 : index
    %c0_134 = arith.constant 0 : index
    %150 = vector.load %arg6[%c0_133, %c0_134] : memref<1152x256xbf16, #tpu.memory_space<vmem>>, vector<128x256xbf16>
    %cst_135 = arith.constant dense<0.000000e+00> : vector<64x256xf32>
    %151 = tpu.matmul %149, %150, %cst_135 {dimension_numbers = #tpu.dot_dimension_numbers<[1], [0], [0], [1], [0, 0, 1, 1], [], []>} : vector<64x128xbf16>, vector<128x256xbf16>, vector<64x256xf32> -> vector<64x256xf32>
    %152 = arith.addf %146, %151 : vector<64x256xf32>
    %c0_136 = arith.constant 0 : index
    %c0_137 = arith.constant 0 : index
    %c1_138 = arith.constant 1 : index
    %c0_139 = arith.constant 0 : index
    %153 = vector.load %arg9[%c0_136, %c0_137, %c1_138, %c0_139] : memref<1x10x10x128xf32, #tpu.memory_space<vmem>>, vector<1x8x8x128xf32>
    %154 = vector.shape_cast %153 : vector<1x8x8x128xf32> to vector<64x128xf32>
    %155 = arith.truncf %154 : vector<64x128xf32> to vector<64x128xbf16>
    %c128_140 = arith.constant 128 : index
    %c0_141 = arith.constant 0 : index
    %156 = vector.load %arg6[%c128_140, %c0_141] : memref<1152x256xbf16, #tpu.memory_space<vmem>>, vector<128x256xbf16>
    %cst_142 = arith.constant dense<0.000000e+00> : vector<64x256xf32>
    %157 = tpu.matmul %155, %156, %cst_142 {dimension_numbers = #tpu.dot_dimension_numbers<[1], [0], [0], [1], [0, 0, 1, 1], [], []>} : vector<64x128xbf16>, vector<128x256xbf16>, vector<64x256xf32> -> vector<64x256xf32>
    %158 = arith.addf %152, %157 : vector<64x256xf32>
    %c0_143 = arith.constant 0 : index
    %c0_144 = arith.constant 0 : index
    %c2_145 = arith.constant 2 : index
    %c0_146 = arith.constant 0 : index
    %159 = vector.load %arg9[%c0_143, %c0_144, %c2_145, %c0_146] : memref<1x10x10x128xf32, #tpu.memory_space<vmem>>, vector<1x8x8x128xf32>
    %160 = vector.shape_cast %159 : vector<1x8x8x128xf32> to vector<64x128xf32>
    %161 = arith.truncf %160 : vector<64x128xf32> to vector<64x128xbf16>
    %c256_147 = arith.constant 256 : index
    %c0_148 = arith.constant 0 : index
    %162 = vector.load %arg6[%c256_147, %c0_148] : memref<1152x256xbf16, #tpu.memory_space<vmem>>, vector<128x256xbf16>
    %cst_149 = arith.constant dense<0.000000e+00> : vector<64x256xf32>
    %163 = tpu.matmul %161, %162, %cst_149 {dimension_numbers = #tpu.dot_dimension_numbers<[1], [0], [0], [1], [0, 0, 1, 1], [], []>} : vector<64x128xbf16>, vector<128x256xbf16>, vector<64x256xf32> -> vector<64x256xf32>
    %164 = arith.addf %158, %163 : vector<64x256xf32>
    %c0_150 = arith.constant 0 : index
    %c1_151 = arith.constant 1 : index
    %c0_152 = arith.constant 0 : index
    %c0_153 = arith.constant 0 : index
    %165 = vector.load %arg9[%c0_150, %c1_151, %c0_152, %c0_153] : memref<1x10x10x128xf32, #tpu.memory_space<vmem>>, vector<1x8x8x128xf32>
    %166 = vector.shape_cast %165 : vector<1x8x8x128xf32> to vector<64x128xf32>
    %167 = arith.truncf %166 : vector<64x128xf32> to vector<64x128xbf16>
    %c384_154 = arith.constant 384 : index
    %c0_155 = arith.constant 0 : index
    %168 = vector.load %arg6[%c384_154, %c0_155] : memref<1152x256xbf16, #tpu.memory_space<vmem>>, vector<128x256xbf16>
    %cst_156 = arith.constant dense<0.000000e+00> : vector<64x256xf32>
    %169 = tpu.matmul %167, %168, %cst_156 {dimension_numbers = #tpu.dot_dimension_numbers<[1], [0], [0], [1], [0, 0, 1, 1], [], []>} : vector<64x128xbf16>, vector<128x256xbf16>, vector<64x256xf32> -> vector<64x256xf32>
    %170 = arith.addf %164, %169 : vector<64x256xf32>
    %c0_157 = arith.constant 0 : index
    %c1_158 = arith.constant 1 : index
    %c1_159 = arith.constant 1 : index
    %c0_160 = arith.constant 0 : index
    %171 = vector.load %arg9[%c0_157, %c1_158, %c1_159, %c0_160] : memref<1x10x10x128xf32, #tpu.memory_space<vmem>>, vector<1x8x8x128xf32>
    %172 = vector.shape_cast %171 : vector<1x8x8x128xf32> to vector<64x128xf32>
    %173 = arith.truncf %172 : vector<64x128xf32> to vector<64x128xbf16>
    %c512_161 = arith.constant 512 : index
    %c0_162 = arith.constant 0 : index
    %174 = vector.load %arg6[%c512_161, %c0_162] : memref<1152x256xbf16, #tpu.memory_space<vmem>>, vector<128x256xbf16>
    %cst_163 = arith.constant dense<0.000000e+00> : vector<64x256xf32>
    %175 = tpu.matmul %173, %174, %cst_163 {dimension_numbers = #tpu.dot_dimension_numbers<[1], [0], [0], [1], [0, 0, 1, 1], [], []>} : vector<64x128xbf16>, vector<128x256xbf16>, vector<64x256xf32> -> vector<64x256xf32>
    %176 = arith.addf %170, %175 : vector<64x256xf32>
    %c0_164 = arith.constant 0 : index
    %c1_165 = arith.constant 1 : index
    %c2_166 = arith.constant 2 : index
    %c0_167 = arith.constant 0 : index
    %177 = vector.load %arg9[%c0_164, %c1_165, %c2_166, %c0_167] : memref<1x10x10x128xf32, #tpu.memory_space<vmem>>, vector<1x8x8x128xf32>
    %178 = vector.shape_cast %177 : vector<1x8x8x128xf32> to vector<64x128xf32>
    %179 = arith.truncf %178 : vector<64x128xf32> to vector<64x128xbf16>
    %c640 = arith.constant 640 : index
    %c0_168 = arith.constant 0 : index
    %180 = vector.load %arg6[%c640, %c0_168] : memref<1152x256xbf16, #tpu.memory_space<vmem>>, vector<128x256xbf16>
    %cst_169 = arith.constant dense<0.000000e+00> : vector<64x256xf32>
    %181 = tpu.matmul %179, %180, %cst_169 {dimension_numbers = #tpu.dot_dimension_numbers<[1], [0], [0], [1], [0, 0, 1, 1], [], []>} : vector<64x128xbf16>, vector<128x256xbf16>, vector<64x256xf32> -> vector<64x256xf32>
    %182 = arith.addf %176, %181 : vector<64x256xf32>
    %c0_170 = arith.constant 0 : index
    %c2_171 = arith.constant 2 : index
    %c0_172 = arith.constant 0 : index
    %c0_173 = arith.constant 0 : index
    %183 = vector.load %arg9[%c0_170, %c2_171, %c0_172, %c0_173] : memref<1x10x10x128xf32, #tpu.memory_space<vmem>>, vector<1x8x8x128xf32>
    %184 = vector.shape_cast %183 : vector<1x8x8x128xf32> to vector<64x128xf32>
    %185 = arith.truncf %184 : vector<64x128xf32> to vector<64x128xbf16>
    %c768 = arith.constant 768 : index
    %c0_174 = arith.constant 0 : index
    %186 = vector.load %arg6[%c768, %c0_174] : memref<1152x256xbf16, #tpu.memory_space<vmem>>, vector<128x256xbf16>
    %cst_175 = arith.constant dense<0.000000e+00> : vector<64x256xf32>
    %187 = tpu.matmul %185, %186, %cst_175 {dimension_numbers = #tpu.dot_dimension_numbers<[1], [0], [0], [1], [0, 0, 1, 1], [], []>} : vector<64x128xbf16>, vector<128x256xbf16>, vector<64x256xf32> -> vector<64x256xf32>
    %188 = arith.addf %182, %187 : vector<64x256xf32>
    %c0_176 = arith.constant 0 : index
    %c2_177 = arith.constant 2 : index
    %c1_178 = arith.constant 1 : index
    %c0_179 = arith.constant 0 : index
    %189 = vector.load %arg9[%c0_176, %c2_177, %c1_178, %c0_179] : memref<1x10x10x128xf32, #tpu.memory_space<vmem>>, vector<1x8x8x128xf32>
    %190 = vector.shape_cast %189 : vector<1x8x8x128xf32> to vector<64x128xf32>
    %191 = arith.truncf %190 : vector<64x128xf32> to vector<64x128xbf16>
    %c896 = arith.constant 896 : index
    %c0_180 = arith.constant 0 : index
    %192 = vector.load %arg6[%c896, %c0_180] : memref<1152x256xbf16, #tpu.memory_space<vmem>>, vector<128x256xbf16>
    %cst_181 = arith.constant dense<0.000000e+00> : vector<64x256xf32>
    %193 = tpu.matmul %191, %192, %cst_181 {dimension_numbers = #tpu.dot_dimension_numbers<[1], [0], [0], [1], [0, 0, 1, 1], [], []>} : vector<64x128xbf16>, vector<128x256xbf16>, vector<64x256xf32> -> vector<64x256xf32>
    %194 = arith.addf %188, %193 : vector<64x256xf32>
    %c0_182 = arith.constant 0 : index
    %c2_183 = arith.constant 2 : index
    %c2_184 = arith.constant 2 : index
    %c0_185 = arith.constant 0 : index
    %195 = vector.load %arg9[%c0_182, %c2_183, %c2_184, %c0_185] : memref<1x10x10x128xf32, #tpu.memory_space<vmem>>, vector<1x8x8x128xf32>
    %196 = vector.shape_cast %195 : vector<1x8x8x128xf32> to vector<64x128xf32>
    %197 = arith.truncf %196 : vector<64x128xf32> to vector<64x128xbf16>
    %c1024 = arith.constant 1024 : index
    %c0_186 = arith.constant 0 : index
    %198 = vector.load %arg6[%c1024, %c0_186] : memref<1152x256xbf16, #tpu.memory_space<vmem>>, vector<128x256xbf16>
    %cst_187 = arith.constant dense<0.000000e+00> : vector<64x256xf32>
    %199 = tpu.matmul %197, %198, %cst_187 {dimension_numbers = #tpu.dot_dimension_numbers<[1], [0], [0], [1], [0, 0, 1, 1], [], []>} : vector<64x128xbf16>, vector<128x256xbf16>, vector<64x256xf32> -> vector<64x256xf32>
    %200 = arith.addf %194, %199 : vector<64x256xf32>
    %c0_188 = arith.constant 0 : index
    %c0_189 = arith.constant 0 : index
    %201 = vector.load %arg7[%c0_188, %c0_189] : memref<1x256xf32, #tpu.memory_space<vmem>>, vector<1x256xf32>
    %202 = vector.broadcast %201 : vector<1x256xf32> to vector<64x256xf32>
    %203 = arith.addf %200, %202 : vector<64x256xf32>
    %cst_190 = arith.constant 0.000000e+00 : f32
    %204 = vector.broadcast %cst_190 : f32 to vector<64x256xf32>
    %205 = arith.maximumf %203, %204 : vector<64x256xf32>
    %206 = vector.shape_cast %205 : vector<64x256xf32> to vector<1x8x8x256xf32>
    %207 = vector.shape_cast %206 : vector<1x8x8x256xf32> to vector<1x64x256xf32>
    %208 = arith.truncf %207 : vector<1x64x256xf32> to vector<1x64x256xbf16>
    %c0_191 = arith.constant 0 : index
    %c0_192 = arith.constant 0 : index
    %c0_193 = arith.constant 0 : index
    %209 = vector.load %arg8[%c0_191, %c0_192, %c0_193] : memref<1x64x256xbf16, #tpu.memory_space<vmem>>, vector<1x64x256xbf16>
    tpu.vector_store %arg8[%c0_191, %c0_192, %c0_193], %208 {strides = array<i32>} : memref<1x64x256xbf16, #tpu.memory_space<vmem>>, vector<1x64x256xbf16>,
    return
  }
  func.func @transform_0(%arg0: i32) -> (i32, i32, i32, i32) {
    %c0_i32 = arith.constant 0 : i32
    %c0_i32_0 = arith.constant 0 : i32
    %c0_i32_1 = arith.constant 0 : i32
    %c0_i32_2 = arith.constant 0 : i32
    return %arg0, %c0_i32, %c0_i32_0, %c0_i32_1 : i32, i32, i32, i32
  }
  func.func @transform_1(%arg0: i32) -> (i32, i32) {
    %c0_i32 = arith.constant 0 : i32
    %c0_i32_0 = arith.constant 0 : i32
    %c0_i32_1 = arith.constant 0 : i32
    return %c0_i32, %c0_i32_0 : i32, i32
  }
  func.func @transform_2(%arg0: i32) -> (i32, i32) {
    %c0_i32 = arith.constant 0 : i32
    %c0_i32_0 = arith.constant 0 : i32
    %c0_i32_1 = arith.constant 0 : i32
    return %c0_i32, %c0_i32_0 : i32, i32
  }
  func.func @transform_3(%arg0: i32) -> (i32, i32) {
    %c0_i32 = arith.constant 0 : i32
    %c0_i32_0 = arith.constant 0 : i32
    %c0_i32_1 = arith.constant 0 : i32
    return %c0_i32, %c0_i32_0 : i32, i32
  }
  func.func @transform_4(%arg0: i32) -> (i32, i32) {
    %c0_i32 = arith.constant 0 : i32
    %c0_i32_0 = arith.constant 0 : i32
    %c0_i32_1 = arith.constant 0 : i32
    return %c0_i32, %c0_i32_0 : i32, i32
  }
  func.func @transform_5(%arg0: i32) -> (i32, i32) {
    %c0_i32 = arith.constant 0 : i32
    %c0_i32_0 = arith.constant 0 : i32
    %c0_i32_1 = arith.constant 0 : i32
    return %c0_i32, %c0_i32_0 : i32, i32
  }
  func.func @transform_6(%arg0: i32) -> (i32, i32) {
    %c0_i32 = arith.constant 0 : i32
    %c0_i32_0 = arith.constant 0 : i32
    %c0_i32_1 = arith.constant 0 : i32
    return %c0_i32, %c0_i32_0 : i32, i32
  }
  func.func @transform_7(%arg0: i32) -> (i32, i32, i32) {
    %c0_i32 = arith.constant 0 : i32
    %c0_i32_0 = arith.constant 0 : i32
    %c0_i32_1 = arith.constant 0 : i32
    return %arg0, %c0_i32, %c0_i32_0 : i32, i32, i32
  }
}

module attributes {stable_mosaic.version = 11 : i64} {
  func.func @fc_kernel(%arg0: i32, %arg1: i32, %arg2: memref<2x4096xbf16, #tpu.memory_space<vmem>>, %arg3: memref<4096x512xbf16, #tpu.memory_space<vmem>>, %arg4: memref<1x512xf32, #tpu.memory_space<vmem>>, %arg5: memref<2x512xbf16, #tpu.memory_space<vmem>>, %arg6: memref<2x512xf32, #tpu.memory_space<vmem>>) attributes {dimension_semantics = [#tpu.dimension_semantics<parallel>, #tpu.dimension_semantics<arbitrary>], iteration_bounds = array<i64: 2, 4>, scalar_prefetch = 0 : i64, scratch_operands = 1 : i64, tpu.core_type = #tpu.core_type<tc>, window_params = [{transform_indices = @transform_0, window_bounds = array<i64: 2, 4096>}, {transform_indices = @transform_1, window_bounds = array<i64: 4096, 512>}, {transform_indices = @transform_2, window_bounds = array<i64: 1, 512>}, {transform_indices = @transform_3, window_bounds = array<i64: 2, 512>}]} {
    %c0_i32 = arith.constant 0 : i32
    %0 = arith.cmpi eq, %arg1, %c0_i32 : i32
    %1 = arith.extui %0 : i1 to i32
    %c0_i32_0 = arith.constant 0 : i32
    %2 = arith.cmpi ne, %1, %c0_i32_0 : i32
    scf.if %2 {
      %cst_9 = arith.constant 0.000000e+00 : f32
      %12 = vector.broadcast %cst_9 : f32 to vector<2x512xf32>
      %c0_10 = arith.constant 0 : index
      %c0_11 = arith.constant 0 : index
      %13 = vector.load %arg6[%c0_10, %c0_11] : memref<2x512xf32, #tpu.memory_space<vmem>>, vector<2x512xf32>
      tpu.vector_store %arg6[%c0_10, %c0_11], %12 {strides = array<i32>} : memref<2x512xf32, #tpu.memory_space<vmem>>, vector<2x512xf32>,
    } else {
    }
    %c0 = arith.constant 0 : index
    %c0_1 = arith.constant 0 : index
    %3 = vector.load %arg6[%c0, %c0_1] : memref<2x512xf32, #tpu.memory_space<vmem>>, vector<2x512xf32>
    %c0_2 = arith.constant 0 : index
    %c0_3 = arith.constant 0 : index
    %4 = vector.load %arg2[%c0_2, %c0_3] : memref<2x4096xbf16, #tpu.memory_space<vmem>>, vector<2x4096xbf16>
    %c0_4 = arith.constant 0 : index
    %c0_5 = arith.constant 0 : index
    %5 = vector.load %arg3[%c0_4, %c0_5] : memref<4096x512xbf16, #tpu.memory_space<vmem>>, vector<4096x512xbf16>
    %cst = arith.constant dense<0.000000e+00> : vector<2x512xf32>
    %6 = tpu.matmul %4, %5, %cst {dimension_numbers = #tpu.dot_dimension_numbers<[1], [0], [0], [1], [0, 0, 1, 1], [], []>} : vector<2x4096xbf16>, vector<4096x512xbf16>, vector<2x512xf32> -> vector<2x512xf32>
    %7 = arith.addf %3, %6 : vector<2x512xf32>
    %c0_6 = arith.constant 0 : index
    %c0_7 = arith.constant 0 : index
    %8 = vector.load %arg6[%c0_6, %c0_7] : memref<2x512xf32, #tpu.memory_space<vmem>>, vector<2x512xf32>
    tpu.vector_store %arg6[%c0_6, %c0_7], %7 {strides = array<i32>} : memref<2x512xf32, #tpu.memory_space<vmem>>, vector<2x512xf32>,
    %c3_i32 = arith.constant 3 : i32
    %9 = arith.cmpi eq, %arg1, %c3_i32 : i32
    %10 = arith.extui %9 : i1 to i32
    %c0_i32_8 = arith.constant 0 : i32
    %11 = arith.cmpi ne, %10, %c0_i32_8 : i32
    scf.if %11 {
      %c0_9 = arith.constant 0 : index
      %c0_10 = arith.constant 0 : index
      %12 = vector.load %arg6[%c0_9, %c0_10] : memref<2x512xf32, #tpu.memory_space<vmem>>, vector<2x512xf32>
      %c0_11 = arith.constant 0 : index
      %c0_12 = arith.constant 0 : index
      %13 = vector.load %arg4[%c0_11, %c0_12] : memref<1x512xf32, #tpu.memory_space<vmem>>, vector<1x512xf32>
      %14 = vector.broadcast %13 : vector<1x512xf32> to vector<2x512xf32>
      %15 = arith.addf %12, %14 : vector<2x512xf32>
      %cst_13 = arith.constant 0.000000e+00 : f32
      %16 = vector.broadcast %cst_13 : f32 to vector<2x512xf32>
      %17 = arith.maximumf %15, %16 : vector<2x512xf32>
      %18 = arith.truncf %17 : vector<2x512xf32> to vector<2x512xbf16>
      %c0_14 = arith.constant 0 : index
      %c0_15 = arith.constant 0 : index
      %19 = vector.load %arg5[%c0_14, %c0_15] : memref<2x512xbf16, #tpu.memory_space<vmem>>, vector<2x512xbf16>
      tpu.vector_store %arg5[%c0_14, %c0_15], %18 {strides = array<i32>} : memref<2x512xbf16, #tpu.memory_space<vmem>>, vector<2x512xbf16>,
    } else {
    }
    return
  }
  func.func @transform_0(%arg0: i32, %arg1: i32) -> (i32, i32) {
    %c0_i32 = arith.constant 0 : i32
    %c0_i32_0 = arith.constant 0 : i32
    return %c0_i32, %arg1 : i32, i32
  }
  func.func @transform_1(%arg0: i32, %arg1: i32) -> (i32, i32) {
    %c0_i32 = arith.constant 0 : i32
    return %arg1, %arg0 : i32, i32
  }
  func.func @transform_2(%arg0: i32, %arg1: i32) -> (i32, i32) {
    %c0_i32 = arith.constant 0 : i32
    %c0_i32_0 = arith.constant 0 : i32
    return %c0_i32, %arg0 : i32, i32
  }
  func.func @transform_3(%arg0: i32, %arg1: i32) -> (i32, i32) {
    %c0_i32 = arith.constant 0 : i32
    %c0_i32_0 = arith.constant 0 : i32
    return %c0_i32, %arg0 : i32, i32
  }
}

</mosaic_0001>

<bundles_post_ra>
// kernel: go_network_forward.2
= control target key start
LH: loop header
LB: loop body
LE: loop exit
PB: predicated region body
PF: predicated region fallthrough
CT: control target
= control target key end

     0   :  { %12 = vsyncpa [#allocation4], 0  ;;  %s6303_s0 = inlined_call_operand.vmem [shape: f32[2,8,8,1], index: 0, kind: input, shape index: {}]   ;;  %s6304_s1 = inlined_call_operand.hbm [shape: bf16[9,64], index: 1, kind: input, shape index: {}]   ;;  %s6305_s2 = inlined_call_operand.hbm [shape: f32[1,64], index: 2, kind: input, shape index: {}]   ;;  %s6306_s3 = inlined_call_operand.hbm [shape: bf16[576,128], index: 3, kind: input, shape index: {}]   ;;  %s6307_s4 = inlined_call_operand.hbm [shape: f32[1,128], index: 4, kind: input, shape index: {}]   ;;  %s6308_s5 = inlined_call_operand.hbm [shape: bf16[1152,256], index: 5, kind: input, shape index: {}]   ;;  %s6309_s6 = inlined_call_operand.hbm [shape: f32[1,256], index: 6, kind: input, shape index: {}]   ;;  %s6310_s7 = inlined_call_operand.vmem [shape: bf16[2,64,256], index: 7, kind: output, shape index: {}]  }
   0x1   :  { %13 = vsyncpa [#allocation6], 0 }
   0x2   :  { %14 = vsyncpa [#allocation9], 0 }
   0x3   :  { %15 = vsyncpa [#allocation12], 0  ;;  %s5446_s24 = smov 0  }
   0x4 LB: > { %s5394_s25 = smov [#allocation5]   ;;  %s5452_s27 = sadd.s32 4294967295, %s5392_s24   ;;  %s5392_s24 = sphi %s5446_s24, %s21_s24  }
   0x5   : > { %s230_s26 = sshll.u32 %s5394_s25, 4  ;;  %p4189_p0 = scmp.ge.s32.totalorder %s5392_s24, 1  ;;  %s5457_s26 = int_to_ptr.vmem [resolvable:$true] %s230_s26 }
   0x6   : > { %p204_p1 = scmp.lt.s32.totalorder %s5392_s24, 3  ;;  %p6311_p2 = scmp.eq.s32.totalorder %s5452_s27, 0 }
   0x7   : > { %s5395_s29 = smov [#allocation8]   ;;  %s5396_s8 = smov [#allocation3]  }
   0x8   : > { %p5459_p3 = pnand %p4189_p0, %p204_p1  ;;  %s254_s30 = sshll.u32 %s5395_s29, 4  ;;  %s5465_s30 = int_to_ptr.vmem [resolvable:$true] %s254_s30 }
   0x9   : > { %s216_s9 = sshll.u32 %s5396_s8, 4  ;;  %s5397_s11 = smov [#allocation7]   ;;  %s5473_s9 = int_to_ptr.vmem [resolvable:$true] %s216_s9 }
   0xa   : > { %s6313_s28 = scalar_select %p5459_p3, 1, 0 }
   0xb   : > { %p4894_p4 = pneg %p5459_p3  ;;  %s5475_s12 = sshll.u32 %s5397_s11, 4  ;;  %s241_s12 = int_to_ptr.vmem [resolvable:$true] %s5475_s12 }
   0xc   : > { %s5202_s15 = scalar_lea.hbm %s6305_s2, 16 }
   0xd   : > { %p5469_p5 = pnand %p6311_p2, %p4894_p4  ;;  %p5203_p6 = scmp.ne.s32.totalorder %s6305_s2, %s5202_s15 }
   0xe   : > { %p5209_p10 = scmp.lt.u32.totalorder %s5202_s15, %s6305_s2 }
   0xf   : > { %p5485_p7 = pneg %p5469_p5 }
  0x11   : > { %p5205_p8 = pnand %p5485_p7, %p5203_p6 }
  0x13   : > { %p5206_p9 = pneg %p5205_p8 }
  0x15   : > { %p5211_p11 = pnand %p5209_p10, %p5206_p9 }
  0x17   : > { %5214 = shalt.err (!%p5211_p11)
}
  0x18   : > { %s5215_s21 = scalar_lea.vmem %s5457_s26, 16  ;;  %s5222_s22 = scalar_lea.vmem %s5457_s26, 32 }
  0x19   : > { %p5216_p12 = scmp.ne.s32.totalorder %s5457_s26, %s5215_s21  ;;  %p5223_p1 = scmp.lt.s32.totalorder %s5457_s26, %s5457_s26 }
  0x1a   : > { %p5224_p4 = scmp.lt.s32.totalorder %s5222_s22, %s5215_s21 }
  0x1b   : > { %p5218_p13 = pnand %p5216_p12, %p5485_p7 }
  0x1c   : > { %p5225_p6 = por %p5224_p4, %p5223_p1 }
  0x1d   : > { %p5219_p0 = pneg %p5218_p13 }
  0x1f   : > { %p5226_p8 = pnand %p5225_p6, %p5219_p0 }
  0x21   : > { %5229 = shalt.err (!%p5226_p8)
}
  0x22   : > { %4900 = dma.hbm_to_vmem [thread:$0]  (!%p5469_p5), %s6305_s2, 16, %s5457_s26, [#allocation6]  }
  0x23   : > { %s5230_s11 = scalar_lea.hbm %s6307_s4, 16 }
  0x24   : > { %p5231_p9 = scmp.ne.s32.totalorder %s6307_s4, %s5230_s11  ;;  %p5237_p12 = scmp.lt.u32.totalorder %s5230_s11, %s6307_s4 }
  0x26   : > { %p5233_p10 = pnand %p5231_p9, %p5485_p7 }
  0x28   : > { %p5234_p11 = pneg %p5233_p10 }
  0x2a   : > { %p5239_p13 = pnand %p5237_p12, %p5234_p11 }
  0x2c   : > { %5242 = shalt.err (!%p5239_p13)
}
  0x2d   : > { %s5243_s26 = scalar_lea.vmem %s5465_s30, 16  ;;  %s5250_s17 = scalar_lea.vmem %s5465_s30, 32 }
  0x2e   : > { %p5244_p0 = scmp.ne.s32.totalorder %s5465_s30, %s5243_s26  ;;  %p5251_p6 = scmp.lt.s32.totalorder %s5465_s30, %s5465_s30 }
  0x2f   : > { %p5252_p8 = scmp.lt.s32.totalorder %s5250_s17, %s5243_s26 }
  0x30   : > { %p5246_p1 = pnand %p5244_p0, %p5485_p7 }
  0x31   : > { %p5253_p9 = por %p5252_p8, %p5251_p6 }
  0x32   : > { %p5247_p4 = pneg %p5246_p1 }
  0x34   : > { %p5254_p10 = pnand %p5253_p9, %p5247_p4 }
  0x36   : > { %5257 = shalt.err (!%p5254_p10)
}
  0x37   : > { %4906 = dma.hbm_to_vmem [thread:$0]  (!%p5469_p5), %s6307_s4, 16, %s5465_s30, [#allocation9]  }
  0x38   : > { %s5258_s23 = scalar_lea.hbm %s6304_s1, 128 }
  0x39   : > { %p5259_p11 = scmp.ne.s32.totalorder %s6304_s1, %s5258_s23  ;;  %p5265_p0 = scmp.lt.u32.totalorder %s5258_s23, %s6304_s1 }
  0x3b   : > { %p5261_p12 = pnand %p5259_p11, %p5485_p7 }
  0x3d   : > { %p5262_p13 = pneg %p5261_p12 }
  0x3f   : > { %p5267_p1 = pnand %p5265_p0, %p5262_p13 }
  0x41   : > { %5270 = shalt.err (!%p5267_p1)
}
  0x42   : > { %s5271_s30 = scalar_lea.vmem %s5473_s9, 128  ;;  %p5279_p9 = scmp.lt.s32.totalorder %s5473_s9, %s5473_s9 }
  0x43   : > { %p5272_p4 = scmp.ne.s32.totalorder %s5473_s9, %s5271_s30  ;;  %p5280_p10 = scmp.lt.s32.totalorder %s5271_s30, %s5271_s30 }
  0x45   : > { %p5274_p6 = pnand %p5272_p4, %p5485_p7  ;;  %p5281_p11 = por %p5280_p10, %p5279_p9 }
  0x47   : > { %p5275_p8 = pneg %p5274_p6 }
  0x49   : > { %p5282_p12 = pnand %p5281_p11, %p5275_p8 }
  0x4b   : > { %5285 = shalt.err (!%p5282_p12)
}
  0x4c   : > { %s5398_s13 = smov 64   ;;  %s5399_s14 = smov 4  }
  0x4d   : > { %4897 = dma.hbm_to_vmem [thread:$0]  (!%p5469_p5), %s6304_s1, 128, %s5473_s9, [#allocation4], %s5398_s13, %s5398_s13, %s5399_s14  }
  0x4e   : > { %s5286_s19 = scalar_lea.hbm %s6306_s3, 4608 }
  0x4f   : > { %p5287_p13 = scmp.ne.s32.totalorder %s6306_s3, %s5286_s19  ;;  %p5293_p4 = scmp.lt.u32.totalorder %s5286_s19, %s6306_s3 }
  0x51   : > { %p5289_p0 = pnand %p5287_p13, %p5485_p7 }
  0x53   : > { %p5290_p1 = pneg %p5289_p0 }
  0x55   : > { %p5295_p6 = pnand %p5293_p4, %p5290_p1 }
  0x57   : > { %5298 = shalt.err (!%p5295_p6)
}
  0x58   : > { %s5299_s25 = scalar_lea.vmem %s241_s12, 4608  ;;  %p5307_p11 = scmp.lt.s32.totalorder %s241_s12, %s241_s12 }
  0x59   : > { %p5300_p8 = scmp.ne.s32.totalorder %s241_s12, %s5299_s25  ;;  %p5308_p12 = scmp.lt.s32.totalorder %s5299_s25, %s5299_s25 }
  0x5b   : > { %p5302_p9 = pnand %p5300_p8, %p5485_p7  ;;  %p5309_p2 = por %p5308_p12, %p5307_p11 }
  0x5d   : > { %p5303_p10 = pneg %p5302_p9 }
  0x5f   : > { %p5310_p3 = pnand %p5309_p2, %p5303_p10 }
  0x61   : > { %5313 = shalt.err (!%p5310_p3)
}
  0x62   : > { %4903 = dma.hbm_to_vmem [thread:$0]  (!%p5469_p5), %s6306_s3, 4608, %s241_s12, [#allocation6], %s5398_s13, %s5398_s13, %s5399_s14  }
  0x63   : > { %s5400_s8 = smov [#allocation10]   ;;  %s5314_s16 = scalar_lea.hbm %s6308_s5, 18432 }
  0x64   : > { %s264_s11 = sshll.u32 %s5400_s8, 4  ;;  %p5315_p13 = scmp.ne.s32.totalorder %s6308_s5, %s5314_s16  ;;  %s265_s11 = int_to_ptr.vmem [resolvable:$true] %s264_s11 }
  0x65   : > { %p5321_p0 = scmp.lt.u32.totalorder %s5314_s16, %s6308_s5 }
  0x66   : > { %p5317_p2 = pnand %p5315_p13, %p5485_p7 }
  0x68   : > { %p5318_p3 = pneg %p5317_p2 }
  0x6a   : > { %p5323_p1 = pnand %p5321_p0, %p5318_p3 }
  0x6c   : > { %5326 = shalt.err (!%p5323_p1)
}
  0x6d   : > { %s5327_s12 = scalar_lea.vmem %s265_s11, 18432  ;;  %p5335_p9 = scmp.lt.s32.totalorder %s265_s11, %s265_s11 }
  0x6e   : > { %p5328_p4 = scmp.ne.s32.totalorder %s265_s11, %s5327_s12  ;;  %p5336_p10 = scmp.lt.s32.totalorder %s5327_s12, %s5327_s12 }
  0x70   : > { %p5330_p6 = pnand %p5328_p4, %p5485_p7  ;;  %p5337_p11 = por %p5336_p10, %p5335_p9 }
  0x72   : > { %p5331_p8 = pneg %p5330_p6 }
  0x74   : > { %p5338_p12 = pnand %p5337_p11, %p5331_p8 }
  0x76   : > { %5341 = shalt.err (!%p5338_p12)
}
  0x77   : > { %s5401_s13 = smov 128   ;;  %s5402_s14 = smov 8  }
  0x78   : > { %4909 = dma.hbm_to_vmem [thread:$0]  (!%p5469_p5), %s6308_s5, 18432, %s265_s11, [#allocation9], %s5401_s13, %s5401_s13, %s5402_s14  }
  0x79   : > { %s5403_s23 = smov [#allocation11]   ;;  %s5342_s8 = scalar_lea.hbm %s6309_s6, 32 }
  0x7a   : > { %s278_s25 = sshll.u32 %s5403_s23, 4  ;;  %p5343_p13 = scmp.ne.s32.totalorder %s6309_s6, %s5342_s8  ;;  %s279_s25 = int_to_ptr.vmem [resolvable:$true] %s278_s25 }
  0x7b   : > { %p5349_p0 = scmp.lt.u32.totalorder %s5342_s8, %s6309_s6 }
  0x7c   : > { %p5345_p2 = pnand %p5343_p13, %p5485_p7 }
  0x7e   : > { %p5346_p3 = pneg %p5345_p2 }
  0x80   : > { %p5351_p1 = pnand %p5349_p0, %p5346_p3 }
  0x82   : > { %5354 = shalt.err (!%p5351_p1)
}
  0x83   : > { %s5355_s11 = scalar_lea.vmem %s279_s25, 32  ;;  %p5363_p9 = scmp.lt.s32.totalorder %s279_s25, %s279_s25 }
  0x84   : > { %p5356_p4 = scmp.ne.s32.totalorder %s279_s25, %s5355_s11  ;;  %p5364_p10 = scmp.lt.s32.totalorder %s5355_s11, %s5355_s11 }
  0x86   : > { %p5358_p6 = pnand %p5356_p4, %p5485_p7  ;;  %p5365_p11 = por %p5364_p10, %p5363_p9 }
  0x88   : > { %p5359_p8 = pneg %p5358_p6 }
  0x8a   : > { %p5366_p12 = pnand %p5365_p11, %p5359_p8 }
  0x8c   : > { %5369 = shalt.err (!%p5366_p12)
}
  0x8d   : > { %4912 = dma.hbm_to_vmem [thread:$0]  (!%p5469_p5), %s6309_s6, 32, %s279_s25, [#allocation12]  }
  0x8e   : > { %p6316_p13 = scmp.ne.s32.totalorder %s6313_s28, 0 }
  0x8f   : > { %p6317_p2 = scmp.eq.s32.totalorder (!%p6316_p13), %s5452_s27, 0 }
  0x90   : > { %299 = sbr.rel (%p6316_p13) target bundleno = 1226 (0x4ca), region = 48 }
  0x97   : > { %5375 = dma.done.wait (%p6317_p2), [#allocation4], 128   ;;  %p6318_p7 = pmov %p6317_p2 }
  0x98   : > { %p6319_p3 = pmov %p6317_p2 }
  0x99   : > { %5377 = vsyncadd (%p6318_p7), [#allocation4], 4294967168 }
  0x9a   : > { %5379 = dma.done.wait (%p6319_p3), [#allocation6], 4624   ;;  %p6320_p0 = pmov %p6317_p2 }
  0x9c   : > { %5381 = vsyncadd (%p6320_p0), [#allocation6], 4294962672  ;;  %p6321_p1 = pmov %p6320_p0 }
  0x9d   : > { %p6322_p5 = pmov %p6320_p0 }
  0x9e   : > { %5383 = dma.done.wait (%p6321_p1), [#allocation9], 18448  }
  0x9f   : > { %5385 = vsyncadd (%p6322_p5), [#allocation9], 4294948848  ;;  %p6323_p4 = pmov %p6320_p0 }
  0xa0   : > { %p6324_p6 = pmov %p6320_p0 }
  0xa1   : > { %5387 = dma.done.wait (%p6323_p4), [#allocation12], 32  }
  0xa2   : > { %5389 = vsyncadd (%p6324_p6), [#allocation12], 4294967264  ;;  %p351_p8 = scmp.lt.s32.totalorder %s5452_s27, 1  ;;  %v5404_v0 = vmov 0   ;;  %v5405_v1 = vmov 0.0   ;;  %vm391_vm0 = vcmask 7168   ;;  %v450_v39 = vlaneseq }
  0xa3   : > { %4945 = vset.pattern.permute.xlu0 %v5404_v0  ;;  %362 = vst [vmem:[#allocation2] sm:$0xff] %v5405_v1  ;;  %363 = vst [vmem:[#allocation2 + $0x8] sm:$0x3] %v5405_v1  ;;  %4946 = vset.pattern.permute.xlu1 %v5404_v0  ;;  %v4947_v33 = vld [vmem:[#allocation7 + $0x20] sm:$0xff]   ;;  %v4948_v34 = vld [vmem:[#allocation7 + $0x28] sm:$0xff]   ;;  %vm1046_vm1 = vcmask 523264  }
  0xa4   : > { %364 = vst [vmem:[#allocation2 + $0x10] sm:$0xff] %v5405_v1  ;;  %365 = vst [vmem:[#allocation2 + $0x18] sm:$0x3] %v5405_v1  ;;  %412 = vperm.xlu0 %4945, %v5405_v1   ;;  %s6326_s27 = smov (!%p351_p8, %s5452_s27), 1  ;;  %2733 = vmatprep.mubr.bf16.mxu1 %v5404_v0  ;;  %v4949_v36 = vld [vmem:[#allocation7 + $0x30] sm:$0xff]   ;;  %v4950_v37 = vld [vmem:[#allocation7 + $0x38] sm:$0xff]  }
  0xa5   : > { %366 = vst [vmem:[#allocation2 + $0x20] sm:$0xff] %v5405_v1  ;;  %367 = vst [vmem:[#allocation2 + $0x28] sm:$0x3] %v5405_v1  ;;  %s4436_s28 = sshll.u32 %s6326_s27, 6  ;;  %4518 = vmatprep.subr.bf16.mxu0 %v4947_v33  ;;  %v5678_v40 = vshrl.u32 %v450_v39, 7 }
  0xa6   : > { %368 = vst [vmem:[#allocation2 + $0x30] sm:$0xff] %v5405_v1  ;;  %369 = vst [vmem:[#allocation2 + $0x38] sm:$0x3] %v5405_v1  ;;  %s355_s20 = scalar_lea.vmem %s6303_s0, %s4436_s28  ;;  %4519 = vmatpush3.bf16.msra.mxu0 %v4947_v33  ;;  %v408_v41 = vld [vmem:[#allocation3] sm:$0x1]  ;;  %s6272_s14 = scalar_lea.vmem %s6310_s7, %s4436_s28 }
  0xa7   : > { %370 = vst [vmem:[#allocation2 + $0x40] sm:$0xff] %v5405_v1  ;;  %371 = vst [vmem:[#allocation2 + $0x48] sm:$0x3] %v5405_v1  ;;  %v382_v2 = vld [vmem:[%s355_s20] sm:$0xff]  ;;  %v383_v3 = vld [vmem:[%s355_s20 + $0x8] sm:$0xff]  ;;  %4520 = vmatprep.subr.bf16.mxu0 %v4948_v34  ;;  %v409_v43 = vunpack.c.l.bf16 %v408_v41  ;;  %v5682_v44 = vsub.s32 0, %v5678_v40 }
  0xa8   : > { %372 = vst [vmem:[#allocation2 + $0x50] sm:$0xff] %v5405_v1  ;;  %373 = vst [vmem:[#allocation2 + $0x58] sm:$0x3] %v5405_v1  ;;  %v384_v4 = vld [vmem:[%s355_s20 + $0x10] sm:$0xff]  ;;  %v385_v6 = vld [vmem:[%s355_s20 + $0x18] sm:$0xff]  ;;  %v520_v45 = vsub.s32 1, %v5678_v40 }
  0xa9   : > { %374 = vst [vmem:[#allocation2 + $0x60] sm:$0xff] %v5405_v1  ;;  %375 = vst [vmem:[#allocation2 + $0x68] sm:$0x3] %v5405_v1  ;;  %v386_v7 = vld [vmem:[%s355_s20 + $0x20] sm:$0xff]  ;;  %v387_v8 = vld [vmem:[%s355_s20 + $0x28] sm:$0xff]  ;;  %v5686_v48 = vrot.slane %v409_v43, %v5682_v44  ;;  %v590_v51 = vsub.s32 2, %v5678_v40 }
  0xaa   : > { %376 = vst [vmem:[#allocation2 + $0x70] sm:$0xff] %v5405_v1  ;;  %377 = vst [vmem:[#allocation2 + $0x78] sm:$0x3] %v5405_v1  ;;  %v5663_v5 = vld [vmem:[#allocation2 + $0x1] sm:$0xff]  ;;  %v388_v9 = vld [vmem:[%s355_s20 + $0x30] sm:$0xff]  ;;  %4521 = vmatpush3.bf16.msra.mxu0 %v4948_v34  ;;  %v5690_v49 = vrot.slane %v409_v43, %v520_v45 }
  0xab   : > { %378 = vst [vmem:[#allocation2 + $0x80] sm:$0xff] %v5405_v1  ;;  %379 = vst [vmem:[#allocation2 + $0x88] sm:$0x3] %v5405_v1  ;;  %480 = vperm.xlu0 %4945, %v5663_v5   ;;  %v538_v10 = vld [vmem:[#allocation2 + $0x2] sm:$0xff]  ;;  %v389_v11 = vld [vmem:[%s355_s20 + $0x38] sm:$0xff]  ;;  %4522 = vmatprep.subr.bf16.mxu0 %v4949_v36 }
  0xac   : > { %380 = vst [vmem:[#allocation2 + $0x90] sm:$0xff] %v5405_v1  ;;  %381 = vst [vmem:[#allocation2 + $0x98] sm:$0x3] %v5405_v1  ;;  %v546_v47 = vld [vmem:[#allocation3] sm:$0x2] }
  0xad   : > { %392 = vst.msk [vmem:[#allocation2 + $0x11] sm:$0xff] %vm391_vm0, %v382_v2  ;;  %393 = vst.msk [vmem:[#allocation2 + $0x21] sm:$0xff] %vm391_vm0, %v383_v3  ;;  %v547_v50 = vunpack.c.l.bf16 %v546_v47  ;;  %v5701_v2 = vld [vmem:[#allocation7] sm:$0xff]  }
  0xae   : > { %394 = vst.msk [vmem:[#allocation2 + $0x31] sm:$0xff] %vm391_vm0, %v384_v4  ;;  %395 = vst.msk [vmem:[#allocation2 + $0x41] sm:$0xff] %vm391_vm0, %v385_v6  ;;  %4523 = vmatpush3.bf16.msra.mxu0 %v4949_v36 }
  0xaf   : > { %396 = vst.msk [vmem:[#allocation2 + $0x51] sm:$0xff] %vm391_vm0, %v386_v7  ;;  %397 = vst.msk [vmem:[#allocation2 + $0x61] sm:$0xff] %vm391_vm0, %v387_v8  ;;  %550 = vperm.xlu0 %4945, %v538_v10   ;;  %4524 = vmatprep.subr.bf16.mxu0 %v4950_v37  ;;  %v5695_v55 = vrot.slane %v547_v50, %v590_v51  ;;  %v658_v8 = vsub.s32 3, %v5678_v40 }
  0xb0   : > { %398 = vst.msk [vmem:[#allocation2 + $0x71] sm:$0xff] %vm391_vm0, %v388_v9  ;;  %399 = vst.msk [vmem:[#allocation2 + $0x81] sm:$0xff] %vm391_vm0, %v389_v11 }
  0xb2   : > { %4525 = vmatpush3.bf16.msra.mxu0 %v4950_v37 }
  0xb3   : > { %v892_v59 = vld [vmem:[#allocation2 + $0x91] sm:$0xff]  ;;  %4534 = vmatprep.subr.bf16.mxu0 %v5701_v2 }
  0xb4   : > { %v401_v12 = vld [vmem:[#allocation2 + $0x10] sm:$0xff]  ;;  %v402_v14 = vld [vmem:[#allocation2 + $0x20] sm:$0xff] }
  0xb5   : > { %v471_v13 = vld [vmem:[#allocation2 + $0x11] sm:$0xff]  ;;  %417 = vperm.xlu1 %4946, %v401_v12   ;;  %v540_v15 = vld [vmem:[#allocation2 + $0x22] sm:$0xff] }
  0xb6   : > { %485 = vperm.xlu0 %4945, %v471_v13   ;;  %v472_v16 = vld [vmem:[#allocation2 + $0x21] sm:$0xff]  ;;  %v539_v17 = vld [vmem:[#allocation2 + $0x12] sm:$0xff] }
  0xb7   : > { %v678_v18 = vld [vmem:[#allocation2 + $0x31] sm:$0xff]  ;;  %v404_v20 = vld [vmem:[#allocation2 + $0x40] sm:$0xff] }
  0xb8   : > { %v610_v19 = vld [vmem:[#allocation2 + $0x30] sm:$0xff]  ;;  %v474_v21 = vld [vmem:[#allocation2 + $0x41] sm:$0xff] }
  0xb9   : > { %422 = vperm.xlu1 %4946, %v402_v14   ;;  %v405_v22 = vld [vmem:[#allocation2 + $0x50] sm:$0xff]  ;;  %v406_v24 = vld [vmem:[#allocation2 + $0x60] sm:$0xff] }
  0xba   : > { %560 = vperm.xlu0 %4945, %v540_v15   ;;  %v5674_v23 = vld [vmem:[#allocation2 + $0x51] sm:$0xff]  ;;  %v476_v26 = vld [vmem:[#allocation2 + $0x61] sm:$0xff] }
  0xbb   : > { %v541_v25 = vld [vmem:[#allocation2 + $0x32] sm:$0xff]  ;;  %v544_v27 = vld [vmem:[#allocation2 + $0x62] sm:$0xff] }
  0xbc   : > { %v542_v28 = vld [vmem:[#allocation2 + $0x42] sm:$0xff]  ;;  %v543_v29 = vld [vmem:[#allocation2 + $0x52] sm:$0xff] }
  0xbd   : > { %490 = vperm.xlu1 %4946, %v472_v16   ;;  %v614_v30 = vld [vmem:[#allocation2 + $0x70] sm:$0xff]  ;;  %v821_v35 = vld [vmem:[#allocation2 + $0x80] sm:$0xff] }
  0xbe   : > { %623 = vperm.xlu0 %4945, %v402_v14   ;;  %v682_v31 = vld [vmem:[#allocation2 + $0x71] sm:$0xff]  ;;  %v891_v38 = vld [vmem:[#allocation2 + $0x81] sm:$0xff] }
  0xbf   : > { %v752_v32 = vld [vmem:[#allocation2 + $0x72] sm:$0xff]  ;;  %v959_v42 = vld [vmem:[#allocation2 + $0x82] sm:$0xff] }
  0xc0   : > { %v960_v11 = vld [vmem:[#allocation2 + $0x92] sm:$0xff] }
  0xc1   : > { %555 = vperm.xlu1 %4946, %v539_v17  }
  0xc2   : > { %688 = vperm.xlu0 %4945, %v471_v13  }
  0xc5   : > { %618 = vperm.xlu1 %4946, %v401_v12   ;;  %v5711_v12 = vrot.slane %v547_v50, %v658_v8 }
  0xc6   : > { %698 = vperm.xlu0 %4945, %v678_v18  }
  0xc9   : > { %628 = vperm.xlu1 %4946, %v610_v19  }
  0xca   : > { %432 = vperm.xlu0 %4945, %v404_v20  }
  0xcd   : > { %693 = vperm.xlu1 %4946, %v472_v16  }
  0xce   : > { %500 = vperm.xlu0 %4945, %v474_v21  }
  0xd1   : > { %427 = vperm.xlu1 %4946, %v610_v19  }
  0xd2   : > { %437 = vperm.xlu0 %4945, %v405_v22  }
  0xd5   : > { %495 = vperm.xlu1 %4946, %v678_v18  }
  0xd6   : > { %505 = vperm.xlu0 %4945, %v5674_v23  }
  0xd9   : > { %756 = vperm.xlu1 %4946, %v539_v17  }
  0xda   : > { %761 = vperm.xlu0 %4945, %v540_v15  }
  0xdd   : > { %442 = vperm.xlu1 %4946, %v406_v24  }
  0xde   : > { %565 = vperm.xlu0 %4945, %v541_v25  }
  0xe1   : > { %510 = vperm.xlu1 %4946, %v476_v26  }
  0xe2   : > { %827 = vperm.xlu0 %4945, %v402_v14  }
  0xe5   : > { %766 = vperm.xlu1 %4946, %v541_v25  }
  0xe6   : > { %580 = vperm.xlu0 %4945, %v544_v27  }
  0xe9   : > { %570 = vperm.xlu1 %4946, %v542_v28  }
  0xea   : > { %837 = vperm.xlu0 %4945, %v404_v20  }
  0xed   : > { %575 = vperm.xlu1 %4946, %v543_v29  }
  0xee   : > { %638 = vperm.xlu0 %4945, %v405_v22  }
  0xf1   : > { %832 = vperm.xlu1 %4946, %v610_v19  }
  0xf2   : > { %643 = vperm.xlu0 %4945, %v406_v24  }
  0xf5   : > { %633 = vperm.xlu1 %4946, %v404_v20  }
  0xf6   : > { %900 = vperm.xlu0 %4945, %v678_v18  }
  0xf9   : > { %895 = vperm.xlu1 %4946, %v472_v16  }
  0xfa   : > { %703 = vperm.xlu0 %4945, %v474_v21  }
  0xfd   : > { %648 = vperm.xlu1 %4946, %v614_v30  }
  0xfe   : > { %965 = vperm.xlu0 %4945, %v540_v15  }
 0x101   : > { %905 = vperm.xlu1 %4946, %v474_v21  }
 0x102   : > { %718 = vperm.xlu0 %4945, %v682_v31  }
 0x105   : > { %708 = vperm.xlu1 %4946, %v5674_v23  }
 0x106   : > { %975 = vperm.xlu0 %4945, %v542_v28  }
 0x109   : > { %713 = vperm.xlu1 %4946, %v476_v26  }
 0x10a   : > { %776 = vperm.xlu0 %4945, %v543_v29  }
 0x10d   : > { %970 = vperm.xlu1 %4946, %v541_v25  }
 0x10e   : > { %786 = vperm.xlu0 %4945, %v752_v32  }
 0x111   : > { %771 = vperm.xlu1 %4946, %v542_v28  }
 0x112   : > { %847 = vperm.xlu0 %4945, %v406_v24  }
 0x115   : > { %781 = vperm.xlu1 %4946, %v544_v27  }
 0x116   : > { %857 = vperm.xlu0 %4945, %v821_v35  }
 0x119   : > { %842 = vperm.xlu1 %4946, %v405_v22  }
 0x11a   : > { %915 = vperm.xlu0 %4945, %v476_v26  }
 0x11d   : > { %852 = vperm.xlu1 %4946, %v614_v30  }
 0x11e   : > { %925 = vperm.xlu0 %4945, %v891_v38  }
 0x121   : > { %910 = vperm.xlu1 %4946, %v5674_v23  }
 0x122   : > { %985 = vperm.xlu0 %4945, %v544_v27  }
 0x123   : > { %v413_v46 = vpop.permute.xlu0 %412 }
 0x124   : > { %v454_v52 = vmul.f32 %v5686_v48, %v413_v46 }
 0x125   : > { %920 = vperm.xlu1 %4946, %v682_v31  }
 0x126   : > { %995 = vperm.xlu0 %4945, %v959_v42  }
 0x129   : > { %980 = vperm.xlu1 %4946, %v543_v29  }
 0x12a   : > { %515 = vperm.xlu0 %4945, %v682_v31   ;;  %v481_v53 = vpop.permute.xlu0 %480 }
 0x12b   : > { %v522_v54 = vmul.f32 %v5690_v49, %v481_v53 }
 0x12d   : > { %990 = vperm.xlu1 %4946, %v752_v32   ;;  %v530_v56 = vadd.f32 %v522_v54, %v454_v52  ;;  %v684_v52 = vld [vmem:[#allocation3] sm:$0x4]  ;;  %v823_v54 = vld [vmem:[#allocation3] sm:$0x8] }
 0x12e   : > { %653 = vperm.xlu0 %4945, %v821_v35   ;;  %v551_v57 = vpop.permute.xlu0 %550 }
 0x12f   : > { %v592_v58 = vmul.f32 %v5695_v55, %v551_v57  ;;  %v685_v57 = vunpack.c.l.bf16 %v684_v52 }
 0x131   : > { %447 = vperm.xlu1 %4946, %v614_v30   ;;  %v5698_v61 = vadd.f32 %v592_v58, %v530_v56  ;;  %v728_v58 = vsub.s32 4, %v5678_v40 }
 0x132   : > { %791 = vperm.xlu0 %4945, %v959_v42  }
 0x134   : > { %v418_v60 = vpop.permute.xlu1 %417 }
 0x135   : > { %v455_v62 = vmul.f32 %v5686_v48, %v418_v60  ;;  %585 = vperm.xlu1 %4946, %v752_v32   ;;  %v486_v63 = vpop.permute.xlu0 %485 }
 0x136   : > { %v523_v3 = vmul.f32 %v5690_v49, %v486_v63  ;;  %930 = vperm.xlu0 %4945, %v892_v59   ;;  %v796_v59 = vsub.s32 5, %v5678_v40  ;;  %v867_v63 = vsub.s32 6, %v5678_v40 }
 0x138   : > { %v5705_v4 = vpop.permute.xlu1 %422  ;;  %v531_v6 = vadd.f32 %v523_v3, %v455_v62  ;;  %v824_v62 = vunpack.c.l.bf16 %v823_v54 }
 0x139   : > { %723 = vperm.xlu1 %4946, %v891_v38   ;;  %v5707_v7 = vpop.permute.xlu0 %560 }
 0x13c   : > { %v491_v9 = vpop.permute.xlu1 %490 }
 0x13d   : > { %862 = vperm.xlu1 %4946, %v5405_v1   ;;  %v624_v10 = vpop.permute.xlu0 %623  ;;  %v524_v8 = vmul.f32 %v5690_v49, %v491_v9 }
 0x13e   : > { %v661_v17 = vmul.f32 %v5711_v12, %v624_v10  ;;  %v5756_v10 = vrot.slane %v685_v57, %v728_v58 }
 0x140   : > { %v556_v13 = vpop.permute.xlu1 %555 }
 0x141   : > { %v593_v14 = vmul.f32 %v5695_v55, %v556_v13  ;;  %1000 = vperm.xlu1 %4946, %v960_v11   ;;  %v689_v15 = vpop.permute.xlu0 %688  ;;  %v5758_v11 = vrot.slane %v685_v57, %v796_v59  ;;  %v935_v13 = vsub.s32 7, %v5678_v40 }
 0x142   : > { %v730_v9 = vmul.f32 %v5756_v10, %v689_v15 }
 0x143   : > { %v601_v16 = vadd.f32 %v593_v14, %v531_v6  ;;  %v961_v14 = vld [vmem:[#allocation3 + $0x4] sm:$0x1] }
 0x144   : > { %v619_v18 = vpop.permute.xlu1 %618 }
 0x145   : > { %v5715_v19 = vadd.f32 %v661_v17, %v601_v16  ;;  %v5717_v20 = vpop.permute.xlu0 %698  ;;  %v660_v60 = vmul.f32 %v5711_v12, %v619_v18  ;;  %v456_v16 = vmul.f32 %v5686_v48, %v5705_v4  ;;  %v5764_v18 = vrot.slane %v824_v62, %v867_v63 }
 0x147   : > { %v668_v17 = vadd.f32 %v660_v60, %v5698_v61  ;;  %v5786_v60 = vld [vmem:[#allocation5] ss:$0 sm:$0xff] }
 0x148   : > { %v629_v21 = vpop.permute.xlu1 %628 }
 0x149   : > { %v433_v22 = vpop.permute.xlu0 %432  ;;  %v662_v4 = vmul.f32 %v5711_v12, %v629_v21 }
 0x14a   : > { %v458_v24 = vmul.f32 %v5686_v48, %v433_v22 }
 0x14c   : > { %v5719_v1 = vpop.permute.xlu1 %693 }
 0x14d   : > { %v501_v23 = vpop.permute.xlu0 %500 }
 0x14e   : > { %v526_v25 = vmul.f32 %v5690_v49, %v501_v23 }
 0x150   : > { %v428_v26 = vpop.permute.xlu1 %427  ;;  %v5723_v27 = vadd.f32 %v526_v25, %v458_v24  ;;  %v532_v24 = vadd.f32 %v524_v8, %v456_v16 }
 0x151   : > { %v438_v28 = vpop.permute.xlu0 %437  ;;  %v457_v30 = vmul.f32 %v5686_v48, %v428_v26  ;;  %v962_v26 = vunpack.c.l.bf16 %v961_v14 }
 0x152   : > { %v459_v33 = vmul.f32 %v5686_v48, %v438_v28  ;;  %v5770_v28 = vrot.slane %v824_v62, %v935_v13 }
 0x154   : > { %v496_v29 = vpop.permute.xlu1 %495 }
 0x155   : > { %v525_v31 = vmul.f32 %v5690_v49, %v496_v29  ;;  %v506_v32 = vpop.permute.xlu0 %505  ;;  %v594_v29 = vmul.f32 %v5695_v55, %v5707_v7  ;;  %v732_v7 = vmul.f32 %v5756_v10, %v5717_v20  ;;  %v731_v20 = vmul.f32 %v5756_v10, %v5719_v1 }
 0x156   : > { %v527_v34 = vmul.f32 %v5690_v49, %v506_v32 }
 0x157   : > { %v5729_v35 = vadd.f32 %v525_v31, %v457_v30  ;;  %v738_v30 = vadd.f32 %v730_v9, %v668_v17 }
 0x158   : > { %v757_v36 = vpop.permute.xlu1 %756  ;;  %v5731_v37 = vadd.f32 %v527_v34, %v459_v33  ;;  %v602_v33 = vadd.f32 %v594_v29, %v532_v24 }
 0x159   : > { %v5733_v38 = vpop.permute.xlu0 %761  ;;  %v798_v25 = vmul.f32 %v5758_v11, %v757_v36  ;;  %v5780_v36 = vrot.slane %v962_v26, %v5682_v44 }
 0x15a   : > { %v670_v52 = vadd.f32 %v662_v4, %v602_v33  ;;  %v799_v26 = vmul.f32 %v5758_v11, %v5733_v38  ;;  %v739_v4 = vadd.f32 %v731_v20, %v5715_v19 }
 0x15b   : > { %v806_v34 = vadd.f32 %v798_v25, %v738_v30 }
 0x15c   : > { %v5735_v39 = vpop.permute.xlu1 %442  ;;  %v740_v62 = vadd.f32 %v732_v7, %v670_v52  ;;  %v807_v33 = vadd.f32 %v799_v26, %v739_v4 }
 0x15d   : > { %v5737_v41 = vpop.permute.xlu0 %565  ;;  %v460_v20 = vmul.f32 %v5686_v48, %v5735_v39 }
 0x160   : > { %v5739_v42 = vpop.permute.xlu1 %510 }
 0x161   : > { %v828_v43 = vpop.permute.xlu0 %827 }
 0x162   : > { %v869_v61 = vmul.f32 %v5764_v18, %v828_v43 }
 0x164   : > { %v767_v46 = vpop.permute.xlu1 %766  ;;  %v877_v54 = vadd.f32 %v869_v61, %v806_v34 }
 0x165   : > { %v5741_v47 = vpop.permute.xlu0 %580  ;;  %v800_v21 = vmul.f32 %v5758_v11, %v767_v46 }
 0x167   : > { %v808_v16 = vadd.f32 %v800_v21, %v740_v62 }
 0x168   : > { %v5743_v50 = vpop.permute.xlu1 %570 }
 0x169   : > { %v838_v51 = vpop.permute.xlu0 %837 }
 0x16a   : > { %v871_v63 = vmul.f32 %v5764_v18, %v838_v51 }
 0x16c   : > { %v5745_v53 = vpop.permute.xlu1 %575  ;;  %v879_v46 = vadd.f32 %v871_v63, %v808_v16 }
 0x16d   : > { %v5747_v56 = vpop.permute.xlu0 %638 }
 0x170   : > { %v833_v3 = vpop.permute.xlu1 %832 }
 0x171   : > { %v5753_v6 = vpop.permute.xlu0 %643  ;;  %v870_v61 = vmul.f32 %v5764_v18, %v833_v3 }
 0x173   : > { %v878_v38 = vadd.f32 %v870_v61, %v807_v33 }
 0x174   : > { %v5766_v22 = vpop.permute.xlu1 %633 }
 0x175   : > { %v901_v23 = vpop.permute.xlu0 %900 }
 0x176   : > { %v938_v34 = vmul.f32 %v5770_v28, %v901_v23 }
 0x178   : > { %v896_v31 = vpop.permute.xlu1 %895  ;;  %v946_v7 = vadd.f32 %v938_v34, %v878_v38  ;;  %v663_v34 = vmul.f32 %v5711_v12, %v5766_v22 }
 0x179   : > { %v5776_v32 = vpop.permute.xlu0 %703  ;;  %v937_v15 = vmul.f32 %v5770_v28, %v896_v31 }
 0x17a   : > { %v733_v22 = vmul.f32 %v5756_v10, %v5776_v32 }
 0x17b   : > { %v945_v43 = vadd.f32 %v937_v15, %v877_v54 }
 0x17c   : > { %v649_v57 = vpop.permute.xlu1 %648 }
 0x17d   : > { %v966_v58 = vpop.permute.xlu0 %965  ;;  %v666_v4 = vmul.f32 %v5711_v12, %v649_v57 }
 0x17e   : > { %v1007_v59 = vmul.f32 %v5780_v36, %v966_v58 }
 0x180   : > { %v906_v8 = vpop.permute.xlu1 %905  ;;  %v1015_v13 = vadd.f32 %v1007_v59, %v945_v43 }
 0x181   : > { %v719_v14 = vpop.permute.xlu0 %718  ;;  %v939_v17 = vmul.f32 %v5770_v28, %v906_v8 }
 0x182   : > { %v1030_v24 = vadd.f32 %v5786_v60, %v1015_v13  ;;  %v596_v13 = vmul.f32 %v5695_v55, %v5743_v50 }
 0x183   : > { %v947_v51 = vadd.f32 %v939_v17, %v879_v46 }
 0x184   : > { %v1038_v9 = vmax.f32 %v1030_v24, 0.0  ;;  %v709_v25 = vpop.permute.xlu1 %708  ;;  %v664_v24 = vmul.f32 %v5711_v12, %v5747_v56  ;;  %v604_v46 = vadd.f32 %v596_v13, %v5723_v27  ;;  %v595_v56 = vmul.f32 %v5695_v55, %v5737_v41  ;;  %v4952_v41 = vld [vmem:[#allocation7 + $0x8] sm:$0xff]  }
 0x185   : > { %v976_v29 = vpop.permute.xlu0 %975  ;;  %v734_v50 = vmul.f32 %v5756_v10, %v709_v25  ;;  %v736_v27 = vmul.f32 %v5756_v10, %v719_v14 }
 0x186   : > { %v1009_v30 = vmul.f32 %v5780_v36, %v976_v29  ;;  %1047 = vst.msk [vmem:[#allocation2 + $0x11] sm:$0xff] %vm1046_vm1, %v1038_v9  ;;  %v598_v9 = vmul.f32 %v5695_v55, %v5741_v47 }
 0x188   : > { %v5799_v31 = vpop.permute.xlu1 %713  ;;  %v1017_v1 = vadd.f32 %v1009_v30, %v947_v51  ;;  %v672_v30 = vadd.f32 %v664_v24, %v604_v46 }
 0x189   : > { %v777_v15 = vpop.permute.xlu0 %776 }
 0x18a   : > { %v1032_v52 = vadd.f32 %v5786_v60, %v1017_v1  ;;  %v742_v39 = vadd.f32 %v734_v50, %v672_v30 }
 0x18c   : > { %v1040_v54 = vmax.f32 %v1032_v52, 0.0  ;;  %v971_v58 = vpop.permute.xlu1 %970 }
 0x18d   : > { %v1008_v21 = vmul.f32 %v5780_v36, %v971_v58  ;;  %v787_v43 = vpop.permute.xlu0 %786  ;;  %v5804_v59 = vld [vmem:[#allocation2 + $0x11] sm:$0xff]  ;;  %v603_v58 = vadd.f32 %v595_v56, %v5729_v35  ;;  %v665_v35 = vmul.f32 %v5711_v12, %v5753_v6 }
 0x18e   : > { %v1083_v19 = vpack.c.bf16 %v5804_v59, %v5663_v5  ;;  %1049 = vst.msk [vmem:[#allocation2 + $0x31] sm:$0xff] %vm1046_vm1, %v1040_v54  ;;  %v528_v5 = vmul.f32 %v5690_v49, %v5739_v42  ;;  %v802_v42 = vmul.f32 %v5758_v11, %v777_v15  ;;  %v804_v14 = vmul.f32 %v5758_v11, %v787_v43 }
 0x18f   : > { %v1016_v3 = vadd.f32 %v1008_v21, %v946_v7  ;;  %v597_v7 = vmul.f32 %v5695_v55, %v5745_v53  ;;  %v671_v43 = vadd.f32 %v663_v34, %v603_v58 }
 0x190   : > { %v772_v62 = vpop.permute.xlu1 %771  ;;  %4526 = vmatprep.mubr.msk.bf16.mxu0 %vm1046_vm1, %v1083_v19  ;;  %v536_v51 = vadd.f32 %v528_v5, %v460_v20  ;;  %v810_v38 = vadd.f32 %v802_v42, %v742_v39  ;;  %v4954_v42 = vld [vmem:[#allocation7 + $0x18] sm:$0xff]  }
 0x191   : > { %v1031_v23 = vadd.f32 %v5786_v60, %v1016_v3  ;;  %v848_v63 = vpop.permute.xlu0 %847  ;;  %v741_v20 = vadd.f32 %v733_v22, %v671_v43 }
 0x192   : > { %v606_v61 = vadd.f32 %v598_v9, %v536_v51  ;;  %v873_v1 = vmul.f32 %v5764_v18, %v848_v63  ;;  %v801_v63 = vmul.f32 %v5758_v11, %v772_v62 }
 0x193   : > { %v1039_v8 = vmax.f32 %v1031_v23, 0.0 }
 0x194   : > { %v782_v16 = vpop.permute.xlu1 %781  ;;  %v674_v52 = vadd.f32 %v666_v4, %v606_v61  ;;  %v881_v19 = vadd.f32 %v873_v1, %v810_v38  ;;  %v5867_v38 = vld [vmem:[#allocation7 + $0x40] sm:$0xff]  }
 0x195   : > { %1048 = vst.msk [vmem:[#allocation2 + $0x21] sm:$0xff] %vm1046_vm1, %v1039_v8  ;;  %v858_v17 = vpop.permute.xlu0 %857  ;;  %v5832_v25 = vld [vmem:[#allocation2 + $0x31] sm:$0xff]  ;;  %v4953_v8 = vld [vmem:[#allocation7 + $0x10] sm:$0xff]   ;;  %v803_v51 = vmul.f32 %v5758_v11, %v782_v16 }
 0x196   : > { %v744_v21 = vadd.f32 %v736_v27, %v674_v52  ;;  %v875_v3 = vmul.f32 %v5764_v18, %v858_v17  ;;  %v605_v17 = vadd.f32 %v597_v7, %v5731_v37 }
 0x198   : > { %v843_v26 = vpop.permute.xlu1 %842  ;;  %v812_v32 = vadd.f32 %v804_v14, %v744_v21  ;;  %v673_v50 = vadd.f32 %v665_v35, %v605_v17 }
 0x199   : > { %v916_v29 = vpop.permute.xlu0 %915  ;;  %v872_v46 = vmul.f32 %v5764_v18, %v843_v26 }
 0x19a   : > { %v941_v54 = vmul.f32 %v5770_v28, %v916_v29  ;;  %v883_v6 = vadd.f32 %v875_v3, %v812_v32  ;;  %v809_v29 = vadd.f32 %v801_v63, %v741_v20 }
 0x19c   : > { %v853_v47 = vpop.permute.xlu1 %852  ;;  %v5830_v33 = vld [vmem:[#allocation2 + $0x21] sm:$0xff]  ;;  %v949_v13 = vadd.f32 %v941_v54, %v881_v19  ;;  %v880_v26 = vadd.f32 %v872_v46, %v809_v29 }
 0x19d   : > { %v5838_v57 = vpack.c.bf16 %v5832_v25, %v5830_v33  ;;  %v926_v15 = vpop.permute.xlu0 %925  ;;  %v874_v39 = vmul.f32 %v5764_v18, %v853_v47 }
 0x19e   : > { %v943_v5 = vmul.f32 %v5770_v28, %v926_v15 }
 0x19f   : > { %4527 = vmatmul.mubr.msk.bf16.vlgmr.msra.gmra.mrb[0].mxu0 %vm1046_vm1, %v5838_v57 }
 0x1a0   : > { %v911_v23 = vpop.permute.xlu1 %910  ;;  %4535 = vmatpush3.bf16.msra.mxu0 %v5701_v2  ;;  %v735_v2 = vmul.f32 %v5756_v10, %v5799_v31  ;;  %v951_v37 = vadd.f32 %v943_v5, %v883_v6 }
 0x1a1   : > { %v986_v53 = vpop.permute.xlu0 %985  ;;  %4536 = vmatprep.subr.bf16.mxu0 %v4952_v41  ;;  %v940_v30 = vmul.f32 %v5770_v28, %v911_v23 }
 0x1a2   : > { %v1011_v24 = vmul.f32 %v5780_v36, %v986_v53  ;;  %v743_v61 = vadd.f32 %v735_v2, %v673_v50 }
 0x1a3   : > { %v948_v16 = vadd.f32 %v940_v30, %v880_v26 }
 0x1a4   : > { %v921_v9 = vpop.permute.xlu1 %920  ;;  %v1019_v62 = vadd.f32 %v1011_v24, %v949_v13  ;;  %4537 = vmatpush3.bf16.msra.mxu0 %v4952_v41  ;;  %v811_v15 = vadd.f32 %v803_v51, %v743_v61 }
 0x1a5   : > { %v996_v4 = vpop.permute.xlu0 %995  ;;  %4538 = vmatprep.subr.bf16.mxu0 %v4953_v8  ;;  %v942_v41 = vmul.f32 %v5770_v28, %v921_v9 }
 0x1a6   : > { %v1034_v56 = vadd.f32 %v5786_v60, %v1019_v62  ;;  %v1013_v31 = vmul.f32 %v5780_v36, %v996_v4  ;;  %v882_v58 = vadd.f32 %v874_v39, %v811_v15  ;;  %v4983_v39 = vld [vmem:[#allocation10 + $0x104] ss:$8 sps:$4 sm:$0xff]  }
 0x1a7   : > { %2701 = vmatprep.subr.bf16.mxu1 %v4983_v39 }
 0x1a8   : > { %v1042_v27 = vmax.f32 %v1034_v56, 0.0  ;;  %v981_v1 = vpop.permute.xlu1 %980  ;;  %v1021_v34 = vadd.f32 %v1013_v31, %v951_v37  ;;  %4539 = vmatpush3.bf16.msra.mxu0 %v4953_v8  ;;  %v950_v21 = vadd.f32 %v942_v41, %v882_v58  ;;  %v4994_v41 = vld [vmem:[#allocation10 + $0x110] ss:$8 sps:$4 sm:$0xff]  }
 0x1a9   : > { %v1010_v52 = vmul.f32 %v5780_v36, %v981_v1  ;;  %4540 = vmatprep.subr.bf16.mxu0 %v4954_v42  ;;  %v516_v54 = vpop.permute.xlu0 %515  ;;  %v4989_v1 = vld [vmem:[#allocation10 + $0x114] ss:$8 sps:$4 sm:$0xff]  }
 0x1aa   : > { %1051 = vst.msk [vmem:[#allocation2 + $0x51] sm:$0xff] %vm1046_vm1, %v1042_v27  ;;  %v1036_v14 = vadd.f32 %v5786_v60, %v1021_v34  ;;  %v529_v13 = vmul.f32 %v5690_v49, %v516_v54  ;;  %v5918_v54 = vld [vmem:[#allocation2 + $0x30] sm:$0xff] }
 0x1ab   : > { %v1018_v47 = vadd.f32 %v1010_v52, %v948_v16  ;;  %v5914_v16 = vld [vmem:[#allocation2 + $0x20] sm:$0xff] }
 0x1ac   : > { %v1044_v7 = vmax.f32 %v1036_v14, 0.0  ;;  %v991_v22 = vpop.permute.xlu1 %990  ;;  %4541 = vmatpush3.bf16.msra.mxu0 %v4954_v42  ;;  %v4995_v14 = vld [vmem:[#allocation10 + $0x124] ss:$8 sps:$4 sm:$0xff]  }
 0x1ad   : > { %v1033_v19 = vadd.f32 %v5786_v60, %v1018_v47  ;;  %v1012_v3 = vmul.f32 %v5780_v36, %v991_v22  ;;  %4550 = vmatprep.subr.bf16.mxu0 %v5867_v38  ;;  %v654_v63 = vpop.permute.xlu0 %653  ;;  %v5923_v47 = vpack.c.bf16 %v5918_v54, %v5914_v16 }
 0x1ae   : > { %1053 = vst.msk [vmem:[#allocation2 + $0x71] sm:$0xff] %vm1046_vm1, %v1044_v7  ;;  %v667_v2 = vmul.f32 %v5711_v12, %v654_v63  ;;  %v5007_v63 = vld [vmem:[#allocation10 + $0x144] ss:$8 sps:$4 sm:$0xff]  }
 0x1af   : > { %v1041_v23 = vmax.f32 %v1033_v19, 0.0  ;;  %v1020_v43 = vadd.f32 %v1012_v3, %v950_v21  ;;  %v5000_v21 = vld [vmem:[#allocation10 + $0x120] ss:$8 sps:$4 sm:$0xff]   ;;  %v5001_v3 = vld [vmem:[#allocation10 + $0x134] ss:$8 sps:$4 sm:$0xff]  }
 0x1b0   : > { %v448_v35 = vpop.permute.xlu1 %447 }
 0x1b1   : > { %1050 = vst.msk [vmem:[#allocation2 + $0x41] sm:$0xff] %vm1046_vm1, %v1041_v23  ;;  %v1035_v53 = vadd.f32 %v5786_v60, %v1020_v43  ;;  %v461_v8 = vmul.f32 %v5686_v48, %v448_v35  ;;  %v792_v20 = vpop.permute.xlu0 %791  ;;  %v5884_v62 = vld [vmem:[#allocation2 + $0x51] sm:$0xff]  ;;  %v5006_v43 = vld [vmem:[#allocation10 + $0x130] ss:$8 sps:$4 sm:$0xff]  }
 0x1b2   : > { %v805_v29 = vmul.f32 %v5758_v11, %v792_v20  ;;  %v5905_v11 = vld [vmem:[#allocation2] sm:$0xff]  ;;  %v5925_v7 = vld [vmem:[#allocation2 + $0x50] sm:$0xff] }
 0x1b3   : > { %v1043_v32 = vmax.f32 %v1035_v53, 0.0  ;;  %v537_v24 = vadd.f32 %v529_v13, %v461_v8  ;;  %v5937_v35 = vld [vmem:[#allocation2 + $0x12] sm:$0xff] }
 0x1b4   : > { %v586_v5 = vpop.permute.xlu1 %585  ;;  %v5949_v20 = vld [vmem:[#allocation2 + $0x32] sm:$0xff] }
 0x1b5   : > { %1052 = vst.msk [vmem:[#allocation2 + $0x61] sm:$0xff] %vm1046_vm1, %v1043_v32  ;;  %v599_v17 = vmul.f32 %v5695_v55, %v586_v5  ;;  %v5894_v55 = vld [vmem:[#allocation2 + $0x10] sm:$0xff]  ;;  %v931_v12 = vpop.permute.xlu0 %930  ;;  %v5200_v32 = vld [vmem:[#allocation2 + $0x2] sm:$0xff] }
 0x1b6   : > { %v5898_v42 = vld [vmem:[#allocation2 + $0x71] sm:$0xff]  ;;  %v1063_v31 = vpack.c.bf16 %v5894_v55, %v5905_v11  ;;  %v944_v61 = vmul.f32 %v5770_v28, %v931_v12  ;;  %v1305_v13 = vpack.c.bf16 %v5937_v35, %v5200_v32 }
 0x1b7   : > { %v607_v46 = vadd.f32 %v599_v17, %v537_v24  ;;  %v1062_v53 = vld [vmem:[#allocation2 + $0x70] sm:$0xff]  ;;  %v5945_v24 = vld [vmem:[#allocation2 + $0x22] sm:$0xff] }
 0x1b8   : > { %v724_v6 = vpop.permute.xlu1 %723  ;;  %v5882_v9 = vld [vmem:[#allocation2 + $0x41] sm:$0xff]  ;;  %v4959_v5 = vld [vmem:[#allocation7 + $0x60] sm:$0xff]  }
 0x1b9   : > { %v675_v50 = vadd.f32 %v667_v2, %v607_v46  ;;  %v737_v48 = vmul.f32 %v5756_v10, %v724_v6  ;;  %v5889_v49 = vpack.c.bf16 %v5884_v62, %v5882_v9  ;;  %v5916_v28 = vld [vmem:[#allocation2 + $0x40] sm:$0xff]  ;;  %v5953_v2 = vpack.c.bf16 %v5949_v20, %v5945_v24  ;;  %v5955_v46 = vld [vmem:[#allocation2 + $0x52] sm:$0xff] }
 0x1ba   : > { %v5929_v22 = vpack.c.bf16 %v5925_v7, %v5916_v28  ;;  %v5947_v17 = vld [vmem:[#allocation2 + $0x42] sm:$0xff]  ;;  %v4960_v6 = vld [vmem:[#allocation7 + $0x68] sm:$0xff]  }
 0x1bb   : > { %v745_v51 = vadd.f32 %v737_v48, %v675_v50  ;;  %4530 = vmatprep.mubr.msk.bf16.mxu0 %vm1046_vm1, %v5889_v49  ;;  %v5959_v50 = vpack.c.bf16 %v5955_v46, %v5947_v17  ;;  %v4961_v48 = vld [vmem:[#allocation7 + $0x70] sm:$0xff]   ;;  %v4997_v32 = vld [vmem:[#allocation10 + $0xa0] ss:$8 sps:$4 sm:$0xff]  }
 0x1bc   : > { %v863_v30 = vpop.permute.xlu1 %862  ;;  %v5896_v4 = vld [vmem:[#allocation2 + $0x61] sm:$0xff] }
 0x1bd   : > { %v813_v37 = vadd.f32 %v805_v29, %v745_v51  ;;  %v876_v10 = vmul.f32 %v5764_v18, %v863_v30  ;;  %v5903_v56 = vpack.c.bf16 %v5898_v42, %v5896_v4  ;;  %v4988_v18 = vld [vmem:[#allocation10 + $0x100] ss:$8 sps:$4 sm:$0xff]   ;;  %v1061_v23 = vld [vmem:[#allocation2 + $0x60] sm:$0xff] }
 0x1be   : > { %2702 = vmatpush1.bf16.msra.mxu1 %v4988_v18  ;;  %v5939_v8 = vpack.c.bf16 %v1062_v53, %v1061_v23  ;;  %v1303_v29 = vld [vmem:[#allocation2 + $0x62] sm:$0xff]  ;;  %v5965_v51 = vld [vmem:[#allocation2 + $0x72] sm:$0xff] }
 0x1bf   : > { %v884_v26 = vadd.f32 %v876_v10, %v813_v37  ;;  %4531 = vmatmul.mubr.msk.bf16.gmra.mrb[4].mxu0 %vm1046_vm1, %v5903_v56  ;;  %2703 = vmatprep.subr.bf16.mxu1 %v4989_v1  ;;  %v5968_v12 = vpack.c.bf16 %v5965_v51, %v1303_v29  ;;  %v4962_v30 = vld [vmem:[#allocation7 + $0x78] sm:$0xff]   ;;  %v1434_v37 = vpack.c.bf16 %v5914_v16, %v5894_v55  ;;  %v4963_v10 = vld [vmem:[#allocation7 + $0x80] sm:$0xff]   ;;  %v4965_v55 = vld [vmem:[#allocation7 + $0x90] sm:$0xff]  }
 0x1c0   : > { %v1001_v27 = vpop.permute.xlu1 %1000  ;;  %4542 = vmatprep.mubr.msk.bf16.mxu0 %vm1046_vm1, %v1063_v31  ;;  %v1435_v31 = vpack.c.bf16 %v5916_v28, %v5918_v54  ;;  %v4966_v18 = vld [vmem:[#allocation7 + $0x98] sm:$0xff]   ;;  %v1563_v1 = vpack.c.bf16 %v5830_v33, %v5804_v59  ;;  %v4968_v16 = vld [vmem:[#allocation7 + $0xa8] sm:$0xff]   ;;  %v4969_v59 = vld [vmem:[#allocation7 + $0xb0] sm:$0xff]  }
 0x1c1   : > { %v952_v34 = vadd.f32 %v944_v61, %v884_v26  ;;  %v1014_v15 = vmul.f32 %v5780_v36, %v1001_v27  ;;  %v4956_v36 = vld [vmem:[#allocation7 + $0x48] sm:$0xff]   ;;  %v1436_v26 = vpack.c.bf16 %v1061_v23, %v5925_v7  ;;  %v4970_v28 = vld [vmem:[#allocation7 + $0xb8] sm:$0xff]   ;;  %v4981_v23 = vld [vmem:[#allocation7 + $0x110] sm:$0xff]  }
 0x1c2   : > { %2704 = vmatpush1.bf16.msra.mxu1 %v4994_v41  ;;  %v4964_v61 = vld [vmem:[#allocation7 + $0x88] sm:$0xff]   ;;  %v1565_v41 = vpack.c.bf16 %v5896_v4, %v5884_v62  ;;  %v1693_v62 = vpack.c.bf16 %v5947_v17, %v5949_v20  ;;  %v4974_v7 = vld [vmem:[#allocation7 + $0xd8] sm:$0xff]  }
 0x1c3   : > { %v1022_v52 = vadd.f32 %v1014_v15, %v952_v34  ;;  %2705 = vmatprep.subr.bf16.mxu1 %v4995_v14  ;;  %v4967_v34 = vld [vmem:[#allocation7 + $0xa0] sm:$0xff]   ;;  %v1564_v15 = vpack.c.bf16 %v5882_v9, %v5832_v25  ;;  %v1692_v25 = vpack.c.bf16 %v5945_v24, %v5937_v35  ;;  %v4972_v4 = vld [vmem:[#allocation7 + $0xc8] sm:$0xff]   ;;  %v1694_v14 = vpack.c.bf16 %v1303_v29, %v5955_v46  ;;  %v5003_v24 = vld [vmem:[#allocation10 + $0xb0] ss:$8 sps:$4 sm:$0xff]  }
 0x1c4   : > { %v4971_v9 = vld [vmem:[#allocation7 + $0xc0] sm:$0xff]   ;;  %v5015_v46 = vld [vmem:[#allocation10 + $0xd0] ss:$8 sps:$4 sm:$0xff]  }
 0x1c5   : > { %v1037_v58 = vadd.f32 %v5786_v60, %v1022_v52  ;;  %v4957_v60 = vld [vmem:[#allocation7 + $0x50] sm:$0xff]   ;;  %v5009_v20 = vld [vmem:[#allocation10 + $0xc0] ss:$8 sps:$4 sm:$0xff]  }
 0x1c6   : > { %2706 = vmatpush1.bf16.msra.mxu1 %v5000_v21  ;;  %v4976_v21 = vld [vmem:[#allocation7 + $0xe8] sm:$0xff]   ;;  %v5013_v29 = vld [vmem:[#allocation10 + $0x154] ss:$8 sps:$4 sm:$0xff]  }
 0x1c7   : > { %v1045_v19 = vmax.f32 %v1037_v58, 0.0  ;;  %4543 = vmatmul.mubr.msk.bf16.vlgmr.msra.gmra.mrb[0].mxu0 %vm1046_vm1, %v5923_v47  ;;  %2707 = vmatprep.subr.bf16.mxu1 %v5001_v3  ;;  %v5011_v17 = vld [vmem:[#allocation10 + $0xc4] ss:$8 sps:$4 sm:$0xff]  }
 0x1c8   : > { %4551 = vmatpush3.bf16.msra.mxu0 %v5867_v38  ;;  %4546 = vmatprep.mubr.msk.bf16.mxu0 %vm1046_vm1, %v5929_v22  ;;  %v4958_v38 = vld [vmem:[#allocation7 + $0x58] sm:$0xff]  }
 0x1c9   : > { %1054 = vst.msk [vmem:[#allocation2 + $0x81] sm:$0xff] %vm1046_vm1, %v1045_v19  ;;  %4552 = vmatprep.subr.bf16.mxu0 %v4956_v36  ;;  %v4977_v19 = vld [vmem:[#allocation7 + $0xf0] sm:$0xff]  }
 0x1ca   : > { %2708 = vmatpush1.bf16.msra.mxu1 %v5006_v43  ;;  %v1949_v43 = vld [vmem:[#allocation2 + $0x91] sm:$0xff] }
 0x1cb   : > { %2709 = vmatprep.subr.bf16.mxu1 %v5007_v63  ;;  %v4982_v63 = vld [vmem:[#allocation7 + $0x118] sm:$0xff]  }
 0x1cc   : > { %4553 = vmatpush3.bf16.msra.mxu0 %v4956_v36  ;;  %v4975_v36 = vld [vmem:[#allocation7 + $0xe0] sm:$0xff]  }
 0x1cd   : > { %4554 = vmatprep.subr.bf16.mxu0 %v4957_v60 }
 0x1cf   : > { %4547 = vmatmul.mubr.msk.bf16.gmra.mrb[4].mxu0 %vm1046_vm1, %v5939_v8 }
 0x1d0   : > { %4555 = vmatpush3.bf16.msra.mxu0 %v4957_v60  ;;  %4558 = vmatprep.mubr.msk.bf16.mxu0 %vm1046_vm1, %v1305_v13  ;;  %v5980_v39 = vld [vmem:[#allocation2 + $0x80] sm:$0xff]  ;;  %v4980_v60 = vld [vmem:[#allocation7 + $0x108] sm:$0xff]  }
 0x1d1   : > { %4556 = vmatprep.subr.bf16.mxu0 %v4958_v38  ;;  %v1437_v27 = vpack.c.bf16 %v5980_v39, %v1062_v53  ;;  %v1562_v33 = vld [vmem:[#allocation2 + $0x81] sm:$0xff]  ;;  %v1824_v3 = vpack.c.bf16 %v5905_v11, %v5980_v39  ;;  %v4281_v39 = vld [vmem:[#allocation8] ss:$0 sm:$0xff] }
 0x1d2   : > { %v1566_v52 = vpack.c.bf16 %v1562_v33, %v5898_v42  ;;  %v4973_v42 = vld [vmem:[#allocation7 + $0xd0] sm:$0xff]   ;;  %v1691_v54 = vld [vmem:[#allocation2 + $0x82] sm:$0xff]  ;;  %v1953_v35 = vpack.c.bf16 %v1949_v43, %v1562_v33 }
 0x1d3   : > { %v1695_v58 = vpack.c.bf16 %v1691_v54, %v5965_v51  ;;  %v4993_v53 = vld [vmem:[#allocation10 + $0x94] ss:$8 sps:$4 sm:$0xff]  }
 0x1d4   : > { %4557 = vmatpush3.bf16.msra.mxu0 %v4958_v38  ;;  %v2078_v38 = vld [vmem:[#allocation2 + $0x92] sm:$0xff]  ;;  %v5029_v51 = vld [vmem:[#allocation10 + $0xf4] ss:$8 sps:$4 sm:$0xff]  }
 0x1d5   : > { %4566 = vmatprep.subr.bf16.mxu0 %v4959_v5  ;;  %v2082_v13 = vpack.c.bf16 %v2078_v38, %v1691_v54  ;;  %v2259_v33 = vld [vmem:[#allocation2 + $0x1] sm:$0xff] }
 0x1d7   : > { %4559 = vmatmul.mubr.msk.bf16.vlgmr.msra.gmra.mrb[0].mxu0 %vm1046_vm1, %v5953_v2 }
 0x1d8   : > { %4567 = vmatpush3.bf16.msra.mxu0 %v4959_v5  ;;  %4562 = vmatprep.mubr.msk.bf16.mxu0 %vm1046_vm1, %v5959_v50  ;;  %v5005_v5 = vld [vmem:[#allocation10 + $0xb4] ss:$8 sps:$4 sm:$0xff]  }
 0x1d9   : > { %4568 = vmatprep.subr.bf16.mxu0 %v4960_v6 }
 0x1dc   : > { %4569 = vmatpush3.bf16.msra.mxu0 %v4960_v6  ;;  %v5023_v6 = vld [vmem:[#allocation10 + $0xe4] ss:$8 sps:$4 sm:$0xff]  }
 0x1dd   : > { %4570 = vmatprep.subr.bf16.mxu0 %v4961_v48 }
 0x1df   : > { %4563 = vmatmul.mubr.msk.bf16.gmra.mrb[4].mxu0 %vm1046_vm1, %v5968_v12 }
 0x1e0   : > { %4571 = vmatpush3.bf16.msra.mxu0 %v4961_v48  ;;  %4574 = vmatprep.mubr.msk.bf16.mxu0 %vm1046_vm1, %v1434_v37  ;;  %v5021_v48 = vld [vmem:[#allocation10 + $0xe0] ss:$8 sps:$4 sm:$0xff]   ;;  %v5019_v37 = vld [vmem:[#allocation10 + $0x164] ss:$8 sps:$4 sm:$0xff]  }
 0x1e1   : > { %4572 = vmatprep.subr.bf16.mxu0 %v4962_v30 }
 0x1e4   : > { %4573 = vmatpush3.bf16.msra.mxu0 %v4962_v30  ;;  %v5027_v30 = vld [vmem:[#allocation10 + $0xf0] ss:$8 sps:$4 sm:$0xff]  }
 0x1e5   : > { %4582 = vmatprep.subr.bf16.mxu0 %v4963_v10 }
 0x1e7   : > { %4575 = vmatmul.mubr.msk.bf16.vlgmr.msra.gmra.mrb[0].mxu0 %vm1046_vm1, %v1435_v31  ;;  %v5024_v31 = vld [vmem:[#allocation10 + $0x160] ss:$8 sps:$4 sm:$0xff]  }
 0x1e8   : > { %4583 = vmatpush3.bf16.msra.mxu0 %v4963_v10  ;;  %4578 = vmatprep.mubr.msk.bf16.mxu0 %vm1046_vm1, %v1436_v26  ;;  %v5036_v10 = vld [vmem:[#allocation10 + $0x4] ss:$8 sps:$4 sm:$0xff]   ;;  %v5030_v26 = vld [vmem:[#allocation10 + $0x170] ss:$8 sps:$4 sm:$0xff]  }
 0x1e9   : > { %4584 = vmatprep.subr.bf16.mxu0 %v4964_v61 }
 0x1ec   : > { %4585 = vmatpush3.bf16.msra.mxu0 %v4964_v61  ;;  %v5025_v61 = vld [vmem:[#allocation10 + $0x174] ss:$8 sps:$4 sm:$0xff]  }
 0x1ed   : > { %4586 = vmatprep.subr.bf16.mxu0 %v4965_v55 }
 0x1ef   : > { %4579 = vmatmul.mubr.msk.bf16.gmra.mrb[4].mxu0 %vm1046_vm1, %v1437_v27 }
 0x1f0   : > { %4587 = vmatpush3.bf16.msra.mxu0 %v4965_v55  ;;  %4590 = vmatprep.mubr.msk.bf16.mxu0 %vm1046_vm1, %v1563_v1  ;;  %v5033_v55 = vld [vmem:[#allocation10 + $0x184] ss:$8 sps:$4 sm:$0xff]  }
 0x1f1   : > { %4588 = vmatprep.subr.bf16.mxu0 %v4966_v18 }
 0x1f4   : > { %4589 = vmatpush3.bf16.msra.mxu0 %v4966_v18 }
 0x1f5   : > { %4598 = vmatprep.subr.bf16.mxu0 %v4967_v34 }
 0x1f7   : > { %4591 = vmatmul.mubr.msk.bf16.vlgmr.msra.gmra.mrb[0].mxu0 %vm1046_vm1, %v1564_v15 }
 0x1f8   : > { %4599 = vmatpush3.bf16.msra.mxu0 %v4967_v34  ;;  %4594 = vmatprep.mubr.msk.bf16.mxu0 %vm1046_vm1, %v1565_v41 }
 0x1f9   : > { %4600 = vmatprep.subr.bf16.mxu0 %v4968_v16 }
 0x1fc   : > { %4601 = vmatpush3.bf16.msra.mxu0 %v4968_v16 }
 0x1fd   : > { %4602 = vmatprep.subr.bf16.mxu0 %v4969_v59 }
 0x1ff   : > { %4595 = vmatmul.mubr.msk.bf16.gmra.mrb[4].mxu0 %vm1046_vm1, %v1566_v52 }
 0x200   : > { %4603 = vmatpush3.bf16.msra.mxu0 %v4969_v59  ;;  %4606 = vmatprep.mubr.msk.bf16.mxu0 %vm1046_vm1, %v1692_v25 }
 0x201   : > { %4604 = vmatprep.subr.bf16.mxu0 %v4970_v28 }
 0x204   : > { %4605 = vmatpush3.bf16.msra.mxu0 %v4970_v28 }
 0x205   : > { %4614 = vmatprep.subr.bf16.mxu0 %v4971_v9 }
 0x207   : > { %4607 = vmatmul.mubr.msk.bf16.vlgmr.msra.gmra.mrb[0].mxu0 %vm1046_vm1, %v1693_v62 }
 0x208   : > { %4615 = vmatpush3.bf16.msra.mxu0 %v4971_v9  ;;  %4610 = vmatprep.mubr.msk.bf16.mxu0 %vm1046_vm1, %v1694_v14  ;;  %v5034_v9 = vld [vmem:[#allocation10] ss:$8 sps:$4 sm:$0xff]   ;;  %v5042_v14 = vld [vmem:[#allocation10 + $0x14] ss:$8 sps:$4 sm:$0xff]  }
 0x209   : > { %4616 = vmatprep.subr.bf16.mxu0 %v4972_v4 }
 0x20c   : > { %4617 = vmatpush3.bf16.msra.mxu0 %v4972_v4 }
 0x20d   : > { %4618 = vmatprep.subr.bf16.mxu0 %v4973_v42 }
 0x20f   : > { %4611 = vmatmul.mubr.msk.bf16.gmra.mrb[4].mxu0 %vm1046_vm1, %v1695_v58 }
 0x210   : > { %4619 = vmatpush3.bf16.msra.mxu0 %v4973_v42  ;;  %4622 = vmatprep.mubr.msk.bf16.mxu0 %vm1046_vm1, %v5923_v47  ;;  %v4978_v47 = vld [vmem:[#allocation7 + $0xf8] sm:$0xff]  }
 0x211   : > { %4620 = vmatprep.subr.bf16.mxu0 %v4974_v7 }
 0x214   : > { %4621 = vmatpush3.bf16.msra.mxu0 %v4974_v7 }
 0x215   : > { %4630 = vmatprep.subr.bf16.mxu0 %v4975_v36 }
 0x217   : > { %4623 = vmatmul.mubr.msk.bf16.vlgmr.msra.gmra.mrb[0].mxu0 %vm1046_vm1, %v5929_v22  ;;  %v4979_v22 = vld [vmem:[#allocation7 + $0x100] sm:$0xff]  }
 0x218   : > { %4631 = vmatpush3.bf16.msra.mxu0 %v4975_v36  ;;  %4626 = vmatprep.mubr.msk.bf16.mxu0 %vm1046_vm1, %v5939_v8  ;;  %v4999_v8 = vld [vmem:[#allocation10 + $0xa4] ss:$8 sps:$4 sm:$0xff]  }
 0x219   : > { %4632 = vmatprep.subr.bf16.mxu0 %v4976_v21 }
 0x21c   : > { %4633 = vmatpush3.bf16.msra.mxu0 %v4976_v21 }
 0x21d   : > { %4634 = vmatprep.subr.bf16.mxu0 %v4977_v19 }
 0x21f   : > { %4627 = vmatmul.mubr.msk.bf16.gmra.mrb[4].mxu0 %vm1046_vm1, %v1824_v3 }
 0x220   : > { %4635 = vmatpush3.bf16.msra.mxu0 %v4977_v19  ;;  %4638 = vmatprep.mubr.msk.bf16.mxu0 %vm1046_vm1, %v5838_v57  ;;  %v4987_v57 = vld [vmem:[#allocation10 + $0x84] ss:$8 sps:$4 sm:$0xff]   ;;  %v5040_v19 = vld [vmem:[#allocation10 + $0x10] ss:$8 sps:$4 sm:$0xff]  }
 0x221   : > { %4636 = vmatprep.subr.bf16.mxu0 %v4978_v47 }
 0x224   : > { %4637 = vmatpush3.bf16.msra.mxu0 %v4978_v47 }
 0x225   : > { %4646 = vmatprep.subr.bf16.mxu0 %v4979_v22 }
 0x227   : > { %4639 = vmatmul.mubr.msk.bf16.vlgmr.msra.gmra.mrb[0].mxu0 %vm1046_vm1, %v5889_v49  ;;  %v4985_v49 = vld [vmem:[#allocation10 + $0x80] ss:$8 sps:$4 sm:$0xff]  }
 0x228   : > { %4647 = vmatpush3.bf16.msra.mxu0 %v4979_v22  ;;  %4642 = vmatprep.mubr.msk.bf16.mxu0 %vm1046_vm1, %v5903_v56  ;;  %v4991_v56 = vld [vmem:[#allocation10 + $0x90] ss:$8 sps:$4 sm:$0xff]   ;;  %v5048_v22 = vld [vmem:[#allocation10 + $0x24] ss:$8 sps:$4 sm:$0xff]  }
 0x229   : > { %4648 = vmatprep.subr.bf16.mxu0 %v4980_v60 }
 0x22c   : > { %4649 = vmatpush3.bf16.msra.mxu0 %v4980_v60 }
 0x22d   : > { %4650 = vmatprep.subr.bf16.mxu0 %v4981_v23 }
 0x22f   : > { %4643 = vmatmul.mubr.msk.bf16.gmra.mrb[4].mxu0 %vm1046_vm1, %v1953_v35  ;;  %v2593_v35 = vld [vmem:[#allocation2 + $0x2] sm:$0xff] }
 0x230   : > { %4651 = vmatpush3.bf16.msra.mxu0 %v4981_v23  ;;  %4654 = vmatprep.mubr.msk.bf16.mxu0 %vm1046_vm1, %v5953_v2  ;;  %v5017_v2 = vld [vmem:[#allocation10 + $0xd4] ss:$8 sps:$4 sm:$0xff]  }
 0x231   : > { %4652 = vmatprep.subr.bf16.mxu0 %v4982_v63 }
 0x234   : > { %4653 = vmatpush3.bf16.msra.mxu0 %v4982_v63 }
 0x235   : > { %2367 = vmatprep.subr.bf16.mxu0 %v4987_v57 }
 0x237   : > { %4655 = vmatmul.mubr.msk.bf16.vlgmr.msra.gmra.mrb[0].mxu0 %vm1046_vm1, %v5959_v50  ;;  %v5012_v50 = vld [vmem:[#allocation10 + $0x140] ss:$8 sps:$4 sm:$0xff]  }
 0x238   : > { %4658 = vmatprep.mubr.msk.bf16.mxu0 %vm1046_vm1, %v5968_v12  ;;  %2368 = vmatpush1.bf16.msra.mxu0 %v4985_v49  ;;  %v5018_v12 = vld [vmem:[#allocation10 + $0x150] ss:$8 sps:$4 sm:$0xff]  }
 0x239   : > { %2369 = vmatprep.subr.bf16.mxu0 %v4993_v53  ;;  %2710 = vmatpush1.bf16.msra.mxu1 %v5012_v50  ;;  %v5031_v53 = vld [vmem:[#allocation10 + $0x180] ss:$8 sps:$4 sm:$0xff]  }
 0x23a   : > { %2711 = vmatprep.subr.bf16.mxu1 %v5013_v29 }
 0x23c   : > { %2370 = vmatpush1.bf16.msra.mxu0 %v4991_v56 }
 0x23d   : > { %2371 = vmatprep.subr.bf16.mxu0 %v4999_v8  ;;  %2712 = vmatpush1.bf16.msra.mxu1 %v5018_v12  ;;  %v5046_v8 = vld [vmem:[#allocation10 + $0x20] ss:$8 sps:$4 sm:$0xff]   ;;  %v5045_v12 = vld [vmem:[#allocation10 + $0x1a4] ss:$8 sps:$4 sm:$0xff]  }
 0x23e   : > { %2713 = vmatprep.subr.bf16.mxu1 %v5019_v37  ;;  %v5060_v37 = vld [vmem:[#allocation10 + $0x44] ss:$8 sps:$4 sm:$0xff]  }
 0x23f   : > { %4659 = vmatmul.mubr.msk.bf16.gmra.mrb[4].mxu0 %vm1046_vm1, %v2082_v13  ;;  %v5039_v13 = vld [vmem:[#allocation10 + $0x194] ss:$8 sps:$4 sm:$0xff]  }
 0x240   : > { %2372 = vmatpush1.bf16.msra.mxu0 %v4997_v32  ;;  %2399 = vmatprep.mubr.bf16.mxu0 %v5404_v0 }
 0x241   : > { %2373 = vmatprep.subr.bf16.mxu0 %v5005_v5  ;;  %2714 = vmatpush1.bf16.msra.mxu1 %v5024_v31 }
 0x242   : > { %2715 = vmatprep.subr.bf16.mxu1 %v5025_v61  ;;  %v5051_v61 = vld [vmem:[#allocation10 + $0x1b4] ss:$8 sps:$4 sm:$0xff]  }
 0x244   : > { %2374 = vmatpush1.bf16.msra.mxu0 %v5003_v24 }
 0x245   : > { %2375 = vmatprep.subr.bf16.mxu0 %v5011_v17  ;;  %2716 = vmatpush1.bf16.msra.mxu1 %v5030_v26  ;;  %v5058_v26 = vld [vmem:[#allocation10 + $0x40] ss:$8 sps:$4 sm:$0xff]  }
 0x246   : > { %2898 = vmatprep.subr.bf16.mxu1 %v5033_v55  ;;  %v5066_v55 = vld [vmem:[#allocation10 + $0x54] ss:$8 sps:$4 sm:$0xff]  }
 0x248   : > { %2376 = vmatpush1.bf16.msra.mxu0 %v5009_v20 }
 0x249   : > { %2377 = vmatprep.subr.bf16.mxu0 %v5017_v2  ;;  %v5054_v2 = vld [vmem:[#allocation10 + $0x34] ss:$8 sps:$4 sm:$0xff]  }
 0x24c   : > { %2378 = vmatpush1.bf16.msra.mxu0 %v5015_v46 }
 0x24d   : > { %2379 = vmatprep.subr.bf16.mxu0 %v5023_v6 }
 0x250   : > { %2380 = vmatpush1.bf16.msra.mxu0 %v5021_v48  ;;  %v5037_v48 = vld [vmem:[#allocation10 + $0x190] ss:$8 sps:$4 sm:$0xff]  }
 0x251   : > { %2381 = vmatprep.subr.bf16.mxu0 %v5029_v51 }
 0x254   : > { %2382 = vmatpush1.bf16.msra.mxu0 %v5027_v30  ;;  %v5052_v30 = vld [vmem:[#allocation10 + $0x30] ss:$8 sps:$4 sm:$0xff]  }
 0x255   : > { %2520 = vmatprep.subr.bf16.mxu0 %v5036_v10  ;;  %v5043_v10 = vld [vmem:[#allocation10 + $0x1a0] ss:$8 sps:$4 sm:$0xff]  }
 0x30a   : > { %v4656_v27 = vpop.f32.mrb[0].mxu0 }
 0x30b   : > { %v2209_v18 = vadd.f32 %v4656_v27, %v4281_v39  ;;  %v2161_v1 = vpop.f32.mrb[1].mxu0 }
 0x30c   : > { %v2207_v34 = vadd.f32 %v4281_v39, %v2161_v1  ;;  %v4657_v15 = vpop.f32.mrb[2].mxu0 }
 0x30d   : > { %v6029_v16 = vmax.f32 %v2209_v18, 0.0  ;;  %v2210_v41 = vadd.f32 %v4657_v15, %v4281_v39  ;;  %v2164_v59 = vpop.f32.mrb[3].mxu0  ;;  %v5049_v18 = vld [vmem:[#allocation10 + $0x1b0] ss:$8 sps:$4 sm:$0xff]  }
 0x30e   : > { %v6031_v52 = vmax.f32 %v2207_v34, 0.0  ;;  %v2208_v28 = vadd.f32 %v4281_v39, %v2164_v59  ;;  %v5057_v34 = vld [vmem:[#allocation10 + $0x1c4] ss:$8 sps:$4 sm:$0xff]   ;;  %v5064_v15 = vld [vmem:[#allocation10 + $0x50] ss:$8 sps:$4 sm:$0xff]  }
 0x30f   : > { %2225 = vst [vmem:[#allocation2 + $0x31] sm:$0xff] %v6029_v16  ;;  %v6034_v25 = vmax.f32 %v2210_v41, 0.0  ;;  %v5072_v41 = vld [vmem:[#allocation10 + $0x64] ss:$8 sps:$4 sm:$0xff]   ;;  %v5055_v59 = vld [vmem:[#allocation10 + $0x1c0] ss:$8 sps:$4 sm:$0xff]  }
 0x310   : > { %2223 = vst [vmem:[#allocation2 + $0x11] sm:$0xff] %v6031_v52  ;;  %v6037_v62 = vmax.f32 %v2208_v28, 0.0  ;;  %v2267_v4 = vpack.c.bf16 %v6031_v52, %v2259_v33  ;;  %v5063_v28 = vld [vmem:[#allocation10 + $0x1d4] ss:$8 sps:$4 sm:$0xff]  }
 0x311   : > { %2226 = vst [vmem:[#allocation2 + $0x41] sm:$0xff] %v6034_v25  ;;  %v2996_v42 = vpack.c.bf16 %v6034_v25, %v6029_v16 }
 0x312   : > { %2224 = vst [vmem:[#allocation2 + $0x21] sm:$0xff] %v6037_v62  ;;  %v4660_v54 = vpop.f32.mrb[4].mxu0  ;;  %2400 = vmatmul.mubr.bf16.vlgmr.msra.gmra.mrb[8].mxu0 %v2267_v4  ;;  %v2268_v58 = vpack.c.bf16 %v6029_v16, %v6037_v62  ;;  %v2995_v7 = vpack.c.bf16 %v6037_v62, %v6031_v52  ;;  %v5078_v4 = vld [vmem:[#allocation10 + $0x74] ss:$8 sps:$4 sm:$0xff]   ;;  %v5141_v52 = vld [vmem:[#allocation10 + $0x2c4] ss:$8 sps:$4 sm:$0xff]  }
 0x313   : > { %v2213_v36 = vadd.f32 %v4660_v54, %v4281_v39  ;;  %v2177_v21 = vpop.f32.mrb[5].mxu0  ;;  %2521 = vmatpush1.bf16.msra.mxu0 %v5034_v9  ;;  %2409 = vmatprep.mubr.bf16.mxu0 %v5404_v0  ;;  %v5070_v9 = vld [vmem:[#allocation10 + $0x60] ss:$8 sps:$4 sm:$0xff]   ;;  %v5069_v54 = vld [vmem:[#allocation10 + $0x1e4] ss:$8 sps:$4 sm:$0xff]  }
 0x314   : > { %v2211_v3 = vadd.f32 %v4281_v39, %v2177_v21  ;;  %v4661_v47 = vpop.f32.mrb[6].mxu0  ;;  %2522 = vmatprep.subr.bf16.mxu0 %v5042_v14  ;;  %v5061_v14 = vld [vmem:[#allocation10 + $0x1d0] ss:$8 sps:$4 sm:$0xff]   ;;  %v5067_v21 = vld [vmem:[#allocation10 + $0x1e0] ss:$8 sps:$4 sm:$0xff]  }
 0x315   : > { %v6049_v60 = vmax.f32 %v2213_v36, 0.0  ;;  %v2214_v23 = vadd.f32 %v4661_v47, %v4281_v39  ;;  %v2180_v43 = vpop.f32.mrb[7].mxu0  ;;  %v6102_v36 = vld [vmem:[#allocation10 + $0x404] ss:$8 sps:$4 sm:$0xff]   ;;  %v5139_v62 = vld [vmem:[#allocation10 + $0x2c0] ss:$8 sps:$4 sm:$0xff]  }
 0x316   : > { %v6051_v63 = vmax.f32 %v2211_v3, 0.0  ;;  %v2212_v57 = vadd.f32 %v4281_v39, %v2180_v43  ;;  %v6060_v5 = vld [vmem:[#allocation2 + $0x32] sm:$0xff]  ;;  %v6115_v43 = vld [vmem:[#allocation10 + $0x414] ss:$8 sps:$4 sm:$0xff]  }
 0x317   : > { %2229 = vst [vmem:[#allocation2 + $0x71] sm:$0xff] %v6049_v60  ;;  %v2222_v49 = vmax.f32 %v2214_v23, 0.0  ;;  %v6054_v56 = vld [vmem:[#allocation2 + $0x12] sm:$0xff]  ;;  %2523 = vmatpush1.bf16.msra.mxu0 %v5040_v19 }
 0x318   : > { %2227 = vst [vmem:[#allocation2 + $0x51] sm:$0xff] %v6051_v63  ;;  %v6057_v38 = vmax.f32 %v2212_v57, 0.0  ;;  %v2601_v32 = vpack.c.bf16 %v6054_v56, %v2593_v35  ;;  %2524 = vmatprep.subr.bf16.mxu0 %v5048_v22  ;;  %v2269_v24 = vpack.c.bf16 %v6051_v63, %v6034_v25  ;;  %v6064_v17 = vld [vmem:[#allocation2 + $0x42] sm:$0xff]  ;;  %v2232_v3 = vld [vmem:[#allocation2 + $0x10] sm:$0xff] }
 0x319   : > { %2230 = vst [vmem:[#allocation2 + $0x81] sm:$0xff] %v2222_v49  ;;  %v6066_v20 = vld [vmem:[#allocation2 + $0x22] sm:$0xff]  ;;  %v6069_v46 = vpack.c.bf16 %v2222_v49, %v6049_v60  ;;  %v3193_v6 = vpack.c.bf16 %v6064_v17, %v6060_v5  ;;  %v2239_v23 = vpack.c.bf16 %v2232_v3, %v5905_v11  ;;  %v5081_v57 = vld [vmem:[#allocation10 + $0x204] ss:$8 sps:$4 sm:$0xff]   ;;  %v5079_v11 = vld [vmem:[#allocation10 + $0x200] ss:$8 sps:$4 sm:$0xff]  }
 0x31a   : > { %2228 = vst [vmem:[#allocation2 + $0x61] sm:$0xff] %v6057_v38  ;;  %2734 = vmatmul.mubr.bf16.vlgmr.msra.gmra.mrb[0].mxu1 %v2601_v32  ;;  %2410 = vmatmul.mubr.bf16.gmra.mrb[12].mxu0 %v2268_v58  ;;  %v2270_v50 = vpack.c.bf16 %v6049_v60, %v6057_v38  ;;  %v2997_v29 = vpack.c.bf16 %v6057_v38, %v6051_v63  ;;  %v5076_v58 = vld [vmem:[#allocation10 + $0x70] ss:$8 sps:$4 sm:$0xff]   ;;  %v5075_v22 = vld [vmem:[#allocation10 + $0x1f4] ss:$8 sps:$4 sm:$0xff]  }
 0x31b   : > { %2899 = vmatpush1.bf16.msra.mxu1 %v5031_v53  ;;  %2743 = vmatprep.mubr.bf16.mxu1 %v5404_v0  ;;  %v3192_v51 = vpack.c.bf16 %v6066_v20, %v6054_v56  ;;  %v6084_v31 = vpack.c.bf16 %v6060_v5, %v6066_v20  ;;  %v6110_v60 = vld [vmem:[#allocation10 + $0x400] ss:$8 sps:$4 sm:$0xff]   ;;  %v5073_v35 = vld [vmem:[#allocation10 + $0x1f0] ss:$8 sps:$4 sm:$0xff]   ;;  %v5147_v16 = vld [vmem:[#allocation10 + $0x2e4] ss:$8 sps:$4 sm:$0xff]  }
 0x31c   : > { %2900 = vmatprep.subr.bf16.mxu1 %v5039_v13  ;;  %2525 = vmatpush1.bf16.msra.mxu0 %v5046_v8  ;;  %v2791_v49 = vld [vmem:[#allocation2 + $0x20] sm:$0xff]  ;;  %v6123_v8 = vld [vmem:[#allocation10 + $0x424] ss:$8 sps:$4 sm:$0xff]   ;;  %v5145_v25 = vld [vmem:[#allocation10 + $0x2e0] ss:$8 sps:$4 sm:$0xff]  }
 0x31d   : > { %2526 = vmatprep.subr.bf16.mxu0 %v5054_v2  ;;  %2419 = vmatprep.mubr.bf16.mxu0 %v5404_v0  ;;  %v6119_v53 = vld [vmem:[#allocation10 + $0x410] ss:$8 sps:$4 sm:$0xff]   ;;  %v2798_v32 = vpack.c.bf16 %v2791_v49, %v2232_v3  ;;  %v5087_v13 = vld [vmem:[#allocation10 + $0x214] ss:$8 sps:$4 sm:$0xff]   ;;  %v6126_v2 = vld [vmem:[#allocation10 + $0x420] ss:$8 sps:$4 sm:$0xff]  }
 0x31e   : > { %v6104_v19 = vld [vmem:[#allocation2 + $0x72] sm:$0xff]  ;;  %v5111_v3 = vld [vmem:[#allocation10 + $0x254] ss:$8 sps:$4 sm:$0xff]  }
 0x31f   : > { %2901 = vmatpush1.bf16.msra.mxu1 %v5037_v48  ;;  %v6089_v27 = vld [vmem:[#allocation2 + $0x52] sm:$0xff]  ;;  %v6131_v48 = vld [vmem:[#allocation10 + $0x434] ss:$8 sps:$4 sm:$0xff]  }
 0x320   : > { %2902 = vmatprep.subr.bf16.mxu1 %v5045_v12  ;;  %2527 = vmatpush1.bf16.msra.mxu0 %v5052_v30  ;;  %v6097_v33 = vpack.c.bf16 %v6089_v27, %v6064_v17  ;;  %v5085_v12 = vld [vmem:[#allocation10 + $0x210] ss:$8 sps:$4 sm:$0xff]   ;;  %v5093_v30 = vld [vmem:[#allocation10 + $0x224] ss:$8 sps:$4 sm:$0xff]   ;;  %v5151_v63 = vld [vmem:[#allocation10 + $0x300] ss:$8 sps:$4 sm:$0xff]  }
 0x321   : > { %2528 = vmatprep.subr.bf16.mxu0 %v5060_v37  ;;  %v6086_v39 = vld [vmem:[#allocation2 + $0x62] sm:$0xff]  ;;  %v5165_v56 = vld [vmem:[#allocation10 + $0x344] ss:$8 sps:$4 sm:$0xff]   ;;  %v5163_v20 = vld [vmem:[#allocation10 + $0x340] ss:$8 sps:$4 sm:$0xff]  }
 0x322   : > { %2744 = vmatmul.mubr.bf16.gmra.mrb[4].mxu1 %v6084_v31  ;;  %2420 = vmatmul.mubr.bf16.gmra.mrb[16].mxu0 %v2269_v24  ;;  %v3194_v1 = vpack.c.bf16 %v6086_v39, %v6089_v27  ;;  %v6108_v47 = vpack.c.bf16 %v6104_v19, %v6086_v39  ;;  %v2234_v24 = vld [vmem:[#allocation2 + $0x30] sm:$0xff]  ;;  %v2793_v37 = vld [vmem:[#allocation2 + $0x40] sm:$0xff] }
 0x323   : > { %2903 = vmatpush1.bf16.msra.mxu1 %v5043_v10  ;;  %2753 = vmatprep.mubr.bf16.mxu1 %v5404_v0  ;;  %v6136_v10 = vld [vmem:[#allocation10 + $0x430] ss:$8 sps:$4 sm:$0xff]   ;;  %v5156_v38 = vld [vmem:[#allocation10 + $0x314] ss:$8 sps:$4 sm:$0xff]   ;;  %v5171_v5 = vld [vmem:[#allocation10 + $0x364] ss:$8 sps:$4 sm:$0xff]  }
 0x324   : > { %2904 = vmatprep.subr.bf16.mxu1 %v5051_v61  ;;  %2529 = vmatpush1.bf16.msra.mxu0 %v5058_v26  ;;  %v6140_v61 = vld [vmem:[#allocation10 + $0x444] ss:$8 sps:$4 sm:$0xff]   ;;  %v5091_v26 = vld [vmem:[#allocation10 + $0x220] ss:$8 sps:$4 sm:$0xff]   ;;  %v6206_v17 = vld [vmem:[#allocation2 + $0x82] sm:$0xff] }
 0x325   : > { %2530 = vmatprep.subr.bf16.mxu0 %v5066_v55  ;;  %2429 = vmatprep.mubr.bf16.mxu0 %v5404_v0  ;;  %v2236_v55 = vld [vmem:[#allocation2 + $0x50] sm:$0xff] }
 0x326   : > { %v5177_v39 = vld [vmem:[#allocation10 + $0x384] ss:$8 sps:$4 sm:$0xff]   ;;  %v5175_v27 = vld [vmem:[#allocation10 + $0x380] ss:$8 sps:$4 sm:$0xff]  }
 0x327   : > { %2905 = vmatpush1.bf16.msra.mxu1 %v5049_v18  ;;  %v2799_v18 = vpack.c.bf16 %v2793_v37, %v2234_v24 }
 0x328   : > { %2906 = vmatprep.subr.bf16.mxu1 %v5057_v34  ;;  %2531 = vmatpush1.bf16.msra.mxu0 %v5064_v15  ;;  %v5099_v34 = vld [vmem:[#allocation10 + $0x234] ss:$8 sps:$4 sm:$0xff]   ;;  %v6143_v15 = vld [vmem:[#allocation10 + $0x440] ss:$8 sps:$4 sm:$0xff]  }
 0x329   : > { %2532 = vmatprep.subr.bf16.mxu0 %v5072_v41  ;;  %v6145_v41 = vpack.c.bf16 %v2236_v55, %v2793_v37  ;;  %v5121_v37 = vld [vmem:[#allocation10 + $0x270] ss:$8 sps:$4 sm:$0xff]  }
 0x32a   : > { %2754 = vmatmul.mubr.bf16.gmra.mrb[8].mxu1 %v6097_v33  ;;  %2430 = vmatmul.mubr.bf16.gmra.mrb[20].mxu0 %v2270_v50  ;;  %v6128_v50 = vpack.c.bf16 %v2234_v24, %v2791_v49  ;;  %v5109_v49 = vld [vmem:[#allocation10 + $0x250] ss:$8 sps:$4 sm:$0xff]   ;;  %v5115_v24 = vld [vmem:[#allocation10 + $0x260] ss:$8 sps:$4 sm:$0xff]  }
 0x32b   : > { %2907 = vmatpush1.bf16.msra.mxu1 %v5055_v59  ;;  %2763 = vmatprep.mubr.bf16.mxu1 %v5404_v0  ;;  %v6148_v59 = vld [vmem:[#allocation10 + $0x454] ss:$8 sps:$4 sm:$0xff]  }
 0x32c   : > { %2908 = vmatprep.subr.bf16.mxu1 %v5063_v28  ;;  %2533 = vmatpush1.bf16.msra.mxu0 %v5070_v9  ;;  %v5097_v28 = vld [vmem:[#allocation10 + $0x230] ss:$8 sps:$4 sm:$0xff]   ;;  %v5105_v9 = vld [vmem:[#allocation10 + $0x244] ss:$8 sps:$4 sm:$0xff]  }
 0x32d   : > { %2534 = vmatprep.subr.bf16.mxu0 %v5078_v4  ;;  %2552 = vmatprep.mubr.bf16.mxu0 %v5404_v0  ;;  %v2795_v4 = vld [vmem:[#allocation2 + $0x60] sm:$0xff] }
 0x32f   : > { %2909 = vmatpush1.bf16.msra.mxu1 %v5061_v14  ;;  %v6153_v14 = vld [vmem:[#allocation10 + $0x450] ss:$8 sps:$4 sm:$0xff]  }
 0x330   : > { %2910 = vmatprep.subr.bf16.mxu1 %v5069_v54  ;;  %2535 = vmatpush1.bf16.msra.mxu0 %v5076_v58  ;;  %v6157_v54 = vld [vmem:[#allocation10 + $0x464] ss:$8 sps:$4 sm:$0xff]   ;;  %v5103_v58 = vld [vmem:[#allocation10 + $0x240] ss:$8 sps:$4 sm:$0xff]  }
 0x331   : > { %3883 = vmatprep.subr.bf16.mxu0 %v6102_v36 }
 0x332   : > { %2764 = vmatmul.mubr.bf16.gmra.mrb[12].mxu1 %v6108_v47 }
 0x333   : > { %2911 = vmatpush1.bf16.msra.mxu1 %v5067_v21  ;;  %2930 = vmatprep.mubr.bf16.mxu1 %v5404_v0  ;;  %v2800_v21 = vpack.c.bf16 %v2795_v4, %v2236_v55  ;;  %v5127_v55 = vld [vmem:[#allocation10 + $0x280] ss:$8 sps:$4 sm:$0xff]  }
 0x334   : > { %2912 = vmatprep.subr.bf16.mxu1 %v5075_v22  ;;  %2553 = vmatmul.mubr.bf16.vlgmr.msra.gmra.mrb[8].mxu0 %v2239_v23  ;;  %v2238_v22 = vld [vmem:[#allocation2 + $0x70] sm:$0xff] }
 0x335   : > { %3884 = vmatpush1.bf16.msra.mxu0 %v6110_v60  ;;  %2562 = vmatprep.mubr.bf16.mxu0 %v5404_v0  ;;  %v6160_v23 = vld [vmem:[#allocation10 + $0x460] ss:$8 sps:$4 sm:$0xff]  }
 0x336   : > { %3885 = vmatprep.subr.bf16.mxu0 %v6115_v43 }
 0x337   : > { %2913 = vmatpush1.bf16.msra.mxu1 %v5073_v35  ;;  %v6162_v35 = vpack.c.bf16 %v2238_v22, %v2795_v4  ;;  %v5138_v4 = vld [vmem:[#allocation10 + $0x2b4] ss:$8 sps:$4 sm:$0xff]  }
 0x338   : > { %3095 = vmatprep.subr.bf16.mxu1 %v5081_v57  ;;  %v6165_v57 = vld [vmem:[#allocation10 + $0x474] ss:$8 sps:$4 sm:$0xff]  }
 0x339   : > { %3886 = vmatpush1.bf16.msra.mxu0 %v6119_v53 }
 0x33a   : > { %2931 = vmatmul.mubr.bf16.vlgmr.msra.gmra.mrb[0].mxu1 %v2798_v32  ;;  %3887 = vmatprep.subr.bf16.mxu0 %v6123_v8  ;;  %v6169_v32 = vld [vmem:[#allocation2 + $0x80] sm:$0xff] }
 0x33b   : > { %3096 = vmatpush1.bf16.msra.mxu1 %v5079_v11  ;;  %2940 = vmatprep.mubr.bf16.mxu1 %v5404_v0  ;;  %v5117_v11 = vld [vmem:[#allocation10 + $0x264] ss:$8 sps:$4 sm:$0xff]  }
 0x33c   : > { %3097 = vmatprep.subr.bf16.mxu1 %v5087_v13  ;;  %2563 = vmatmul.mubr.bf16.gmra.mrb[12].mxu0 %v6128_v50  ;;  %v6172_v13 = vld [vmem:[#allocation10 + $0x470] ss:$8 sps:$4 sm:$0xff]  }
 0x33d   : > { %3888 = vmatpush1.bf16.msra.mxu0 %v6126_v2  ;;  %2572 = vmatprep.mubr.bf16.mxu0 %v5404_v0 }
 0x33e   : > { %3889 = vmatprep.subr.bf16.mxu0 %v6131_v48 }
 0x33f   : > { %3098 = vmatpush1.bf16.msra.mxu1 %v5085_v12  ;;  %v2801_v12 = vpack.c.bf16 %v6169_v32, %v2238_v22  ;;  %v5157_v22 = vld [vmem:[#allocation10 + $0x320] ss:$8 sps:$4 sm:$0xff]  }
 0x340   : > { %3099 = vmatprep.subr.bf16.mxu1 %v5093_v30  ;;  %v5123_v30 = vld [vmem:[#allocation10 + $0x274] ss:$8 sps:$4 sm:$0xff]  }
 0x341   : > { %3890 = vmatpush1.bf16.msra.mxu0 %v6136_v10 }
 0x342   : > { %2941 = vmatmul.mubr.bf16.gmra.mrb[4].mxu1 %v2799_v18  ;;  %3891 = vmatprep.subr.bf16.mxu0 %v6140_v61  ;;  %v5132_v18 = vld [vmem:[#allocation10 + $0x294] ss:$8 sps:$4 sm:$0xff]  }
 0x343   : > { %3100 = vmatpush1.bf16.msra.mxu1 %v5091_v26  ;;  %2950 = vmatprep.mubr.bf16.mxu1 %v5404_v0  ;;  %v5129_v26 = vld [vmem:[#allocation10 + $0x284] ss:$8 sps:$4 sm:$0xff]  }
 0x344   : > { %3101 = vmatprep.subr.bf16.mxu1 %v5099_v34  ;;  %2573 = vmatmul.mubr.bf16.gmra.mrb[16].mxu0 %v6145_v41  ;;  %v5130_v34 = vld [vmem:[#allocation10 + $0x290] ss:$8 sps:$4 sm:$0xff]  }
 0x345   : > { %3892 = vmatpush1.bf16.msra.mxu0 %v6143_v15  ;;  %2582 = vmatprep.mubr.bf16.mxu0 %v5404_v0 }
 0x346   : > { %3893 = vmatprep.subr.bf16.mxu0 %v6148_v59 }
 0x347   : > { %3102 = vmatpush1.bf16.msra.mxu1 %v5097_v28  ;;  %v5135_v28 = vld [vmem:[#allocation10 + $0x2a4] ss:$8 sps:$4 sm:$0xff]  }
 0x348   : > { %3103 = vmatprep.subr.bf16.mxu1 %v5105_v9  ;;  %v5133_v9 = vld [vmem:[#allocation10 + $0x2a0] ss:$8 sps:$4 sm:$0xff]  }
 0x349   : > { %3894 = vmatpush1.bf16.msra.mxu0 %v6153_v14 }
 0x34a   : > { %2951 = vmatmul.mubr.bf16.gmra.mrb[8].mxu1 %v2800_v21  ;;  %3895 = vmatprep.subr.bf16.mxu0 %v6157_v54  ;;  %v5148_v21 = vld [vmem:[#allocation10 + $0x2f0] ss:$8 sps:$4 sm:$0xff]  }
 0x34b   : > { %3104 = vmatpush1.bf16.msra.mxu1 %v5103_v58  ;;  %2960 = vmatprep.mubr.bf16.mxu1 %v5404_v0  ;;  %v5142_v58 = vld [vmem:[#allocation10 + $0x2d0] ss:$8 sps:$4 sm:$0xff]  }
 0x34c   : > { %3105 = vmatprep.subr.bf16.mxu1 %v5111_v3  ;;  %2583 = vmatmul.mubr.bf16.gmra.mrb[20].mxu0 %v6162_v35  ;;  %v5153_v3 = vld [vmem:[#allocation10 + $0x304] ss:$8 sps:$4 sm:$0xff]  }
 0x34d   : > { %3896 = vmatpush1.bf16.msra.mxu0 %v6160_v23  ;;  %3915 = vmatprep.mubr.bf16.mxu0 %v5404_v0 }
 0x34e   : > { %3897 = vmatprep.subr.bf16.mxu0 %v6165_v57 }
 0x34f   : > { %3106 = vmatpush1.bf16.msra.mxu1 %v5109_v49  ;;  %v5162_v49 = vld [vmem:[#allocation10 + $0x334] ss:$8 sps:$4 sm:$0xff]  }
 0x350   : > { %3107 = vmatprep.subr.bf16.mxu1 %v5117_v11  ;;  %v5160_v11 = vld [vmem:[#allocation10 + $0x330] ss:$8 sps:$4 sm:$0xff]  }
 0x351   : > { %3898 = vmatpush1.bf16.msra.mxu0 %v6172_v13 }
 0x352   : > { %2961 = vmatmul.mubr.bf16.gmra.mrb[12].mxu1 %v2801_v12  ;;  %v3195_v12 = vpack.c.bf16 %v6206_v17, %v6104_v19  ;;  %v5183_v19 = vld [vmem:[#allocation10 + $0x3a4] ss:$8 sps:$4 sm:$0xff]  }
 0x353   : > { %3108 = vmatpush1.bf16.msra.mxu1 %v5115_v24  ;;  %3127 = vmatprep.mubr.bf16.mxu1 %v5404_v0  ;;  %v5166_v24 = vld [vmem:[#allocation10 + $0x350] ss:$8 sps:$4 sm:$0xff]  }
 0x354   : > { %3109 = vmatprep.subr.bf16.mxu1 %v5123_v30  ;;  %3916 = vmatmul.mubr.bf16.vlgmr.msra.gmra.mrb[24].mxu0 %v6084_v31  ;;  %v5136_v31 = vld [vmem:[#allocation10 + $0x2b0] ss:$8 sps:$4 sm:$0xff]   ;;  %v5174_v30 = vld [vmem:[#allocation10 + $0x374] ss:$8 sps:$4 sm:$0xff]  }
 0x357   : > { %3110 = vmatpush1.bf16.msra.mxu1 %v5121_v37  ;;  %v5172_v37 = vld [vmem:[#allocation10 + $0x370] ss:$8 sps:$4 sm:$0xff]  }
 0x358   : > { %3292 = vmatprep.subr.bf16.mxu1 %v5129_v26  ;;  %v5178_v26 = vld [vmem:[#allocation10 + $0x390] ss:$8 sps:$4 sm:$0xff]  }
 0x35a   : > { %3128 = vmatmul.mubr.bf16.vlgmr.msra.gmra.mrb[0].mxu1 %v2995_v7  ;;  %v5144_v7 = vld [vmem:[#allocation10 + $0x2d4] ss:$8 sps:$4 sm:$0xff]  }
 0x35b   : > { %3293 = vmatpush1.bf16.msra.mxu1 %v5127_v55  ;;  %3137 = vmatprep.mubr.bf16.mxu1 %v5404_v0  ;;  %v5181_v55 = vld [vmem:[#allocation10 + $0x3a0] ss:$8 sps:$4 sm:$0xff]  }
 0x35c   : > { %3294 = vmatprep.subr.bf16.mxu1 %v5132_v18  ;;  %v5186_v18 = vld [vmem:[#allocation10 + $0x3b4] ss:$8 sps:$4 sm:$0xff]  }
 0x35f   : > { %3295 = vmatpush1.bf16.msra.mxu1 %v5130_v34  ;;  %v5184_v34 = vld [vmem:[#allocation10 + $0x3b0] ss:$8 sps:$4 sm:$0xff]  }
 0x360   : > { %3296 = vmatprep.subr.bf16.mxu1 %v5135_v28  ;;  %v5189_v28 = vld [vmem:[#allocation10 + $0x3c4] ss:$8 sps:$4 sm:$0xff]  }
 0x362   : > { %3138 = vmatmul.mubr.bf16.gmra.mrb[4].mxu1 %v2996_v42  ;;  %v5150_v42 = vld [vmem:[#allocation10 + $0x2f4] ss:$8 sps:$4 sm:$0xff]  }
 0x363   : > { %3297 = vmatpush1.bf16.msra.mxu1 %v5133_v9  ;;  %3147 = vmatprep.mubr.bf16.mxu1 %v5404_v0  ;;  %v5192_v9 = vld [vmem:[#allocation10 + $0x3d4] ss:$8 sps:$4 sm:$0xff]  }
 0x364   : > { %3298 = vmatprep.subr.bf16.mxu1 %v5138_v4  ;;  %v5190_v4 = vld [vmem:[#allocation10 + $0x3d0] ss:$8 sps:$4 sm:$0xff]  }
 0x367   : > { %3299 = vmatpush1.bf16.msra.mxu1 %v5136_v31  ;;  %v5195_v31 = vld [vmem:[#allocation10 + $0x3e4] ss:$8 sps:$4 sm:$0xff]  }
 0x368   : > { %3300 = vmatprep.subr.bf16.mxu1 %v5141_v52  ;;  %v5201_v52 = vld [vmem:[#allocation2] sm:$0xff] }
 0x36a   : > { %3148 = vmatmul.mubr.bf16.gmra.mrb[8].mxu1 %v2997_v29  ;;  %v5154_v29 = vld [vmem:[#allocation10 + $0x310] ss:$8 sps:$4 sm:$0xff]  }
 0x36b   : > { %3301 = vmatpush1.bf16.msra.mxu1 %v5139_v62  ;;  %3157 = vmatprep.mubr.bf16.mxu1 %v5404_v0  ;;  %v3392_v62 = vpack.c.bf16 %v5201_v52, %v6169_v32  ;;  %v3581_v32 = vld [vmem:[#allocation2 + $0x51] sm:$0xff] }
 0x36c   : > { %3302 = vmatprep.subr.bf16.mxu1 %v5144_v7  ;;  %v5198_v7 = vld [vmem:[#allocation10 + $0x3f4] ss:$8 sps:$4 sm:$0xff]  }
 0x36f   : > { %3303 = vmatpush1.bf16.msra.mxu1 %v5142_v58  ;;  %v5196_v58 = vld [vmem:[#allocation10 + $0x3f0] ss:$8 sps:$4 sm:$0xff]  }
 0x370   : > { %3304 = vmatprep.subr.bf16.mxu1 %v5147_v16  ;;  %v3579_v16 = vld [vmem:[#allocation2 + $0x31] sm:$0xff] }
 0x372   : > { %3158 = vmatmul.mubr.bf16.gmra.mrb[12].mxu1 %v6069_v46  ;;  %v5159_v46 = vld [vmem:[#allocation10 + $0x324] ss:$8 sps:$4 sm:$0xff]  }
 0x373   : > { %3305 = vmatpush1.bf16.msra.mxu1 %v5145_v25  ;;  %3324 = vmatprep.mubr.bf16.mxu1 %v5404_v0 }
 0x374   : > { %3306 = vmatprep.subr.bf16.mxu1 %v5150_v42  ;;  %v3580_v42 = vld [vmem:[#allocation2 + $0x41] sm:$0xff] }
 0x377   : > { %3307 = vmatpush1.bf16.msra.mxu1 %v5148_v21  ;;  %v3587_v21 = vpack.c.bf16 %v3581_v32, %v3580_v42 }
 0x378   : > { %3489 = vmatprep.subr.bf16.mxu1 %v5153_v3 }
 0x37a   : > { %3325 = vmatmul.mubr.bf16.vlgmr.msra.gmra.mrb[0].mxu1 %v3192_v51  ;;  %v5168_v51 = vld [vmem:[#allocation10 + $0x354] ss:$8 sps:$4 sm:$0xff]  }
 0x37b   : > { %3490 = vmatpush1.bf16.msra.mxu1 %v5151_v63  ;;  %3334 = vmatprep.mubr.bf16.mxu1 %v5404_v0 }
 0x37c   : > { %3491 = vmatprep.subr.bf16.mxu1 %v5156_v38 }
 0x37f   : > { %3492 = vmatpush1.bf16.msra.mxu1 %v5154_v29 }
 0x380   : > { %3493 = vmatprep.subr.bf16.mxu1 %v5159_v46 }
 0x382   : > { %3335 = vmatmul.mubr.bf16.gmra.mrb[4].mxu1 %v3193_v6  ;;  %v5169_v6 = vld [vmem:[#allocation10 + $0x360] ss:$8 sps:$4 sm:$0xff]  }
 0x383   : > { %3494 = vmatpush1.bf16.msra.mxu1 %v5157_v22  ;;  %3344 = vmatprep.mubr.bf16.mxu1 %v5404_v0 }
 0x384   : > { %3495 = vmatprep.subr.bf16.mxu1 %v5162_v49 }
 0x387   : > { %3496 = vmatpush1.bf16.msra.mxu1 %v5160_v11 }
 0x388   : > { %3497 = vmatprep.subr.bf16.mxu1 %v5165_v56 }
 0x38a   : > { %3345 = vmatmul.mubr.bf16.gmra.mrb[8].mxu1 %v3194_v1  ;;  %v5180_v1 = vld [vmem:[#allocation10 + $0x394] ss:$8 sps:$4 sm:$0xff]  }
 0x38b   : > { %3498 = vmatpush1.bf16.msra.mxu1 %v5163_v20  ;;  %3354 = vmatprep.mubr.bf16.mxu1 %v5404_v0  ;;  %v3972_v20 = vld [vmem:[#allocation11] sm:$0x3] }
 0x38c   : > { %3499 = vmatprep.subr.bf16.mxu1 %v5168_v51 }
 0x38f   : > { %3500 = vmatpush1.bf16.msra.mxu1 %v5166_v24 }
 0x390   : > { %3501 = vmatprep.subr.bf16.mxu1 %v5171_v5  ;;  %v6257_v5 = vrot.slane %v3972_v20, %v5682_v44 }
 0x392   : > { %3355 = vmatmul.mubr.bf16.gmra.mrb[12].mxu1 %v3195_v12  ;;  %v6261_v12 = vrot.slane %v3972_v20, %v520_v45 }
 0x393   : > { %3502 = vmatpush1.bf16.msra.mxu1 %v5169_v6  ;;  %3521 = vmatprep.mubr.bf16.mxu1 %v5404_v0 }
 0x394   : > { %3503 = vmatprep.subr.bf16.mxu1 %v5174_v30 }
 0x397   : > { %3504 = vmatpush1.bf16.msra.mxu1 %v5172_v37 }
 0x398   : > { %3686 = vmatprep.subr.bf16.mxu1 %v5177_v39 }
 0x39a   : > { %3522 = vmatmul.mubr.bf16.vlgmr.msra.gmra.mrb[0].mxu1 %v6128_v50  ;;  %v5187_v50 = vld [vmem:[#allocation10 + $0x3c0] ss:$8 sps:$4 sm:$0xff]  }
 0x39b   : > { %3687 = vmatpush1.bf16.msra.mxu1 %v5175_v27  ;;  %3531 = vmatprep.mubr.bf16.mxu1 %v5404_v0 }
 0x39c   : > { %3688 = vmatprep.subr.bf16.mxu1 %v5180_v1 }
 0x39f   : > { %3689 = vmatpush1.bf16.msra.mxu1 %v5178_v26 }
 0x3a0   : > { %3690 = vmatprep.subr.bf16.mxu1 %v5183_v19 }
 0x3a2   : > { %3532 = vmatmul.mubr.bf16.gmra.mrb[4].mxu1 %v6145_v41  ;;  %v5193_v41 = vld [vmem:[#allocation10 + $0x3e0] ss:$8 sps:$4 sm:$0xff]  }
 0x3a3   : > { %3691 = vmatpush1.bf16.msra.mxu1 %v5181_v55  ;;  %3541 = vmatprep.mubr.bf16.mxu1 %v5404_v0 }
 0x3a4   : > { %3692 = vmatprep.subr.bf16.mxu1 %v5186_v18 }
 0x3a7   : > { %3693 = vmatpush1.bf16.msra.mxu1 %v5184_v34 }
 0x3a8   : > { %3694 = vmatprep.subr.bf16.mxu1 %v5189_v28 }
 0x3aa   : > { %3542 = vmatmul.mubr.bf16.gmra.mrb[8].mxu1 %v6162_v35  ;;  %v3578_v35 = vld [vmem:[#allocation2 + $0x21] sm:$0xff] }
 0x3ab   : > { %3695 = vmatpush1.bf16.msra.mxu1 %v5187_v50  ;;  %3551 = vmatprep.mubr.bf16.mxu1 %v5404_v0  ;;  %v3586_v25 = vpack.c.bf16 %v3579_v16, %v3578_v35 }
 0x3ac   : > { %3696 = vmatprep.subr.bf16.mxu1 %v5192_v9 }
 0x3af   : > { %3697 = vmatpush1.bf16.msra.mxu1 %v5190_v4 }
 0x3b0   : > { %3698 = vmatprep.subr.bf16.mxu1 %v5195_v31 }
 0x3b2   : > { %3552 = vmatmul.mubr.bf16.gmra.mrb[12].mxu1 %v3392_v62 }
 0x3b3   : > { %3699 = vmatpush1.bf16.msra.mxu1 %v5193_v41  ;;  %3718 = vmatprep.mubr.bf16.mxu1 %v5404_v0 }
 0x3b4   : > { %3700 = vmatprep.subr.bf16.mxu1 %v5198_v7 }
 0x3b7   : > { %3701 = vmatpush1.bf16.msra.mxu1 %v5196_v58 }
 0x3b8   : > { %4662 = vmatprep.subr.bf16.mxu1 %v6102_v36  ;;  %v3582_v36 = vld [vmem:[#allocation2 + $0x61] sm:$0xff] }
 0x3ba   : > { %3719 = vmatmul.mubr.bf16.vlgmr.msra.gmra.mrb[0].mxu1 %v3586_v25 }
 0x3bb   : > { %4670 = vmatpush1.bf16.msra.mxu1 %v6110_v60  ;;  %3728 = vmatprep.mubr.bf16.mxu1 %v5404_v0  ;;  %v3583_v60 = vld [vmem:[#allocation2 + $0x71] sm:$0xff] }
 0x3bc   : > { %4663 = vmatprep.subr.bf16.mxu1 %v6115_v43  ;;  %v3588_v43 = vpack.c.bf16 %v3583_v60, %v3582_v36 }
 0x3bf   : > { %4671 = vmatpush1.bf16.msra.mxu1 %v6119_v53  ;;  %v3584_v53 = vld [vmem:[#allocation2 + $0x81] sm:$0xff] }
 0x3c0   : > { %4664 = vmatprep.subr.bf16.mxu1 %v6123_v8  ;;  %v3585_v8 = vld [vmem:[#allocation2 + $0x91] sm:$0xff] }
 0x3c2   : > { %3729 = vmatmul.mubr.bf16.gmra.mrb[4].mxu1 %v3587_v21 }
 0x3c3   : > { %4672 = vmatpush1.bf16.msra.mxu1 %v6126_v2  ;;  %3738 = vmatprep.mubr.bf16.mxu1 %v5404_v0  ;;  %v3589_v2 = vpack.c.bf16 %v3585_v8, %v3584_v53 }
 0x3c4   : > { %4665 = vmatprep.subr.bf16.mxu1 %v6131_v48  ;;  %v3782_v48 = vld [vmem:[#allocation2 + $0x92] sm:$0xff] }
 0x3c7   : > { %4673 = vmatpush1.bf16.msra.mxu1 %v6136_v10  ;;  %v3786_v10 = vpack.c.bf16 %v3782_v48, %v6206_v17 }
 0x3c8   : > { %4666 = vmatprep.subr.bf16.mxu1 %v6140_v61 }
 0x3ca   : > { %3739 = vmatmul.mubr.bf16.gmra.mrb[8].mxu1 %v3588_v43 }
 0x3cb   : > { %4674 = vmatpush1.bf16.msra.mxu1 %v6143_v15  ;;  %3748 = vmatprep.mubr.bf16.mxu1 %v5404_v0 }
 0x3cc   : > { %4667 = vmatprep.subr.bf16.mxu1 %v6148_v59 }
 0x3cf   : > { %4675 = vmatpush1.bf16.msra.mxu1 %v6153_v14 }
 0x3d0   : > { %4668 = vmatprep.subr.bf16.mxu1 %v6157_v54 }
 0x3d2   : > { %3749 = vmatmul.mubr.bf16.gmra.mrb[12].mxu1 %v3589_v2 }
 0x3d3   : > { %4676 = vmatpush1.bf16.msra.mxu1 %v6160_v23  ;;  %3925 = vmatprep.mubr.bf16.mxu1 %v5404_v0 }
 0x3d4   : > { %4669 = vmatprep.subr.bf16.mxu1 %v6165_v57 }
 0x3d7   : > { %4677 = vmatpush1.bf16.msra.mxu1 %v6172_v13 }
 0x3da   : > { %3926 = vmatmul.mubr.bf16.vlgmr.msra.gmra.mrb[4].mxu1 %v6097_v33 }
 0x3db   : > { %3935 = vmatprep.mubr.bf16.mxu1 %v5404_v0 }
 0x3e2   : > { %3936 = vmatmul.mubr.bf16.gmra.mrb[8].mxu1 %v6108_v47 }
 0x3e3   : > { %3945 = vmatprep.mubr.bf16.mxu1 %v5404_v0 }
 0x3ea   : > { %3946 = vmatmul.mubr.bf16.gmra.mrb[12].mxu1 %v3786_v10 }
 0x407   : > { %v2554_v61 = vpop.f32.mrb[8].mxu0 }
 0x408   : > { %v2556_v15 = vpop.f32.mrb[9].mxu0 }
 0x409   : > { %v2558_v59 = vpop.f32.mrb[10].mxu0 }
 0x40a   : > { %v2560_v14 = vpop.f32.mrb[11].mxu0 }
 0x40f   : > { %v2564_v54 = vpop.f32.mrb[12].mxu0 }
 0x410   : > { %v2566_v23 = vpop.f32.mrb[13].mxu0 }
 0x411   : > { %v2568_v57 = vpop.f32.mrb[14].mxu0 }
 0x412   : > { %v2570_v13 = vpop.f32.mrb[15].mxu0 }
 0x417   : > { %v2574_v3 = vpop.f32.mrb[16].mxu0 }
 0x418   : > { %v2576_v33 = vpop.f32.mrb[17].mxu0 }
 0x419   : > { %v6244_v63 = vpop.f32.mrb[18].mxu0 }
 0x41a   : > { %v6246_v38 = vpop.f32.mrb[19].mxu0 }
 0x41f   : > { %v6248_v47 = vpop.f32.mrb[20].mxu0 }
 0x420   : > { %v6250_v0 = vpop.f32.mrb[21].mxu0 }
 0x421   : > { %v6252_v29 = vpop.f32.mrb[22].mxu0 }
 0x422   : > { %v6254_v46 = vpop.f32.mrb[23].mxu0 }
 0x427   : > { %v3917_v22 = vpop.f32.mrb[24].mxu0 }
 0x428   : > { %v3919_v49 = vpop.f32.mrb[25].mxu0 }
 0x429   : > { %v3921_v11 = vpop.f32.mrb[26].mxu0 }
 0x42a   : > { %v3923_v56 = vpop.f32.mrb[27].mxu0 }
 0x48d   : > { %v3720_v51 = vpop.f32.mrb[0].mxu1 }
 0x48e   : > { %v4678_v24 = vadd.f32 %v3720_v51, %v2554_v61  ;;  %v3722_v17 = vpop.f32.mrb[1].mxu1 }
 0x48f   : > { %v4680_v6 = vadd.f32 %v3722_v17, %v2556_v15  ;;  %v3724_v30 = vpop.f32.mrb[2].mxu1 }
 0x490   : > { %v4679_v37 = vadd.f32 %v4678_v24, %v3917_v22  ;;  %v4682_v39 = vadd.f32 %v3724_v30, %v2558_v59  ;;  %v3726_v27 = vpop.f32.mrb[3].mxu1 }
 0x491   : > { %v4681_v1 = vadd.f32 %v4680_v6, %v3919_v49  ;;  %v4684_v26 = vadd.f32 %v3726_v27, %v2560_v14 }
 0x492   : > { %v3984_v19 = vadd.f32 %v4679_v37, %v6257_v5  ;;  %v4683_v55 = vadd.f32 %v4682_v39, %v3921_v11 }
 0x493   : > { %v3985_v18 = vadd.f32 %v4681_v1, %v6261_v12  ;;  %v4685_v44 = vadd.f32 %v4684_v26, %v3923_v56 }
 0x494   : > { %v4000_v34 = vmax.f32 %v3984_v19, 0.0  ;;  %v3986_v28 = vadd.f32 %v4683_v55, %v6257_v5 }
 0x495   : > { %v4001_v50 = vmax.f32 %v3985_v18, 0.0  ;;  %v3987_v40 = vadd.f32 %v4685_v44, %v6261_v12 }
 0x496   : > { %v4002_v45 = vmax.f32 %v3986_v28, 0.0 }
 0x497   : > { %v4438_v9 = vpack.c.bf16 %v4001_v50, %v4000_v34  ;;  %v4003_v4 = vmax.f32 %v3987_v40, 0.0 }
 0x499   : > { %4064 = vst [vmem:[%s6272_s14] sm:$0xff] %v4438_v9  ;;  %v4439_v31 = vpack.c.bf16 %v4003_v4, %v4002_v45 }
 0x49b   : > { %4065 = vst [vmem:[%s6272_s14 + $0x8] sm:$0xff] %v4439_v31 }
 0x4ad   : > { %v3927_v41 = vpop.f32.mrb[4].mxu1 }
 0x4ae   : > { %v4686_v52 = vadd.f32 %v3927_v41, %v2564_v54  ;;  %v3929_v62 = vpop.f32.mrb[5].mxu1 }
 0x4af   : > { %v4687_v7 = vadd.f32 %v3929_v62, %v2566_v23  ;;  %v3931_v58 = vpop.f32.mrb[6].mxu1 }
 0x4b0   : > { %v3988_v35 = vadd.f32 %v4686_v52, %v6257_v5  ;;  %v4688_v16 = vadd.f32 %v3931_v58, %v2568_v57  ;;  %v3933_v25 = vpop.f32.mrb[7].mxu1 }
 0x4b1   : > { %v3989_v32 = vadd.f32 %v4687_v7, %v6261_v12  ;;  %v4689_v42 = vadd.f32 %v3933_v25, %v2570_v13 }
 0x4b2   : > { %v4004_v21 = vmax.f32 %v3988_v35, 0.0  ;;  %v3990_v36 = vadd.f32 %v4688_v16, %v6257_v5 }
 0x4b3   : > { %v4005_v60 = vmax.f32 %v3989_v32, 0.0  ;;  %v3991_v43 = vadd.f32 %v4689_v42, %v6261_v12 }
 0x4b4   : > { %v4006_v53 = vmax.f32 %v3990_v36, 0.0 }
 0x4b5   : > { %v4440_v8 = vpack.c.bf16 %v4005_v60, %v4004_v21  ;;  %v4007_v2 = vmax.f32 %v3991_v43, 0.0  ;;  %v3937_v48 = vpop.f32.mrb[8].mxu1 }
 0x4b6   : > { %v4690_v10 = vadd.f32 %v3937_v48, %v2574_v3  ;;  %v3939_v61 = vpop.f32.mrb[9].mxu1 }
 0x4b7   : > { %4066 = vst [vmem:[%s6272_s14 + $0x10] sm:$0xff] %v4440_v8  ;;  %v4441_v15 = vpack.c.bf16 %v4007_v2, %v4006_v53  ;;  %v4691_v59 = vadd.f32 %v3939_v61, %v2576_v33  ;;  %v3941_v14 = vpop.f32.mrb[10].mxu1 }
 0x4b8   : > { %v3992_v54 = vadd.f32 %v4690_v10, %v6257_v5  ;;  %v4692_v23 = vadd.f32 %v3941_v14, %v6244_v63  ;;  %v3943_v57 = vpop.f32.mrb[11].mxu1 }
 0x4b9   : > { %4067 = vst [vmem:[%s6272_s14 + $0x18] sm:$0xff] %v4441_v15  ;;  %v3993_v13 = vadd.f32 %v4691_v59, %v6261_v12  ;;  %v4693_v22 = vadd.f32 %v3943_v57, %v6246_v38 }
 0x4ba   : > { %v4008_v49 = vmax.f32 %v3992_v54, 0.0  ;;  %v3994_v11 = vadd.f32 %v4692_v23, %v6257_v5 }
 0x4bb   : > { %v4009_v3 = vmax.f32 %v3993_v13, 0.0  ;;  %v3995_v56 = vadd.f32 %v4693_v22, %v6261_v12 }
 0x4bc   : > { %v4010_v33 = vmax.f32 %v3994_v11, 0.0 }
 0x4bd   : > { %v4442_v20 = vpack.c.bf16 %v4009_v3, %v4008_v49  ;;  %v4011_v51 = vmax.f32 %v3995_v56, 0.0  ;;  %v3947_v24 = vpop.f32.mrb[12].mxu1 }
 0x4be   : > { %v4694_v17 = vadd.f32 %v3947_v24, %v6248_v47  ;;  %v3949_v63 = vpop.f32.mrb[13].mxu1 }
 0x4bf   : > { %4068 = vst [vmem:[%s6272_s14 + $0x20] sm:$0xff] %v4442_v20  ;;  %v4443_v6 = vpack.c.bf16 %v4011_v51, %v4010_v33  ;;  %v4695_v30 = vadd.f32 %v3949_v63, %v6250_v0  ;;  %v3951_v38 = vpop.f32.mrb[14].mxu1 }
 0x4c0   : > { %v3996_v37 = vadd.f32 %v4694_v17, %v6257_v5  ;;  %v4696_v39 = vadd.f32 %v3951_v38, %v6252_v29  ;;  %v3953_v27 = vpop.f32.mrb[15].mxu1 }
 0x4c1   : > { %4069 = vst [vmem:[%s6272_s14 + $0x28] sm:$0xff] %v4443_v6  ;;  %v3997_v1 = vadd.f32 %v4695_v30, %v6261_v12  ;;  %v4697_v26 = vadd.f32 %v3953_v27, %v6254_v46 }
 0x4c2   : > { %v4012_v19 = vmax.f32 %v3996_v37, 0.0  ;;  %v3998_v47 = vadd.f32 %v4696_v39, %v6257_v5 }
 0x4c3   : > { %v4013_v55 = vmax.f32 %v3997_v1, 0.0  ;;  %v3999_v18 = vadd.f32 %v4697_v26, %v6261_v12 }
 0x4c4   : > { %v4014_v44 = vmax.f32 %v3998_v47, 0.0 }
 0x4c5   : > { %v4444_v0 = vpack.c.bf16 %v4013_v55, %v4012_v19  ;;  %v4015_v34 = vmax.f32 %v3999_v18, 0.0 }
 0x4c7   : > { %4070 = vst [vmem:[%s6272_s14 + $0x30] sm:$0xff] %v4444_v0  ;;  %v4445_v28 = vpack.c.bf16 %v4015_v34, %v4014_v44 }
 0x4c9   : > { %4071 = vst [vmem:[%s6272_s14 + $0x38] sm:$0xff] %v4445_v28 }
 0x4ca PF: > { %s21_s24 = sadd.s32 1, %s5392_s24  }
 0x4cb   : > { %p18_p9 = scmp.ge.s32.totalorder %s21_s24, 4  }
 0x4cd   :  { %20 = sbr.rel (!%p18_p9) target bundleno = 4 (0x4), region = 105 }
 0x4d4   :  { %4093 = vsyncpa [#allocation4], 1 }
 0x4d5   :  { %4095 = vsyncpa [#allocation4 + $0x1], 1 }
 0x4d6   :  { %4096 = vsyncpa [#allocation6], 1 }
 0x4d7   :  { %4097 = vsyncpa [#allocation9], 1 }
 0x4d8   :  { %4098 = vsyncpa [#allocation12], 1 }

// kernel: go_network_forward.3
= control target key start
LH: loop header
LB: loop body
LE: loop exit
PB: predicated region body
PF: predicated region fallthrough
CT: control target
= control target key end

     0   :  { %s12690_s0 = inlined_call_operand.vmem [shape: bf16[2,16384], index: 0, kind: input, shape index: {}]   ;;  %s12691_s1 = inlined_call_operand.hbm [shape: bf16[16384,1024], index: 1, kind: input, shape index: {}]   ;;  %s12692_s2 = inlined_call_operand.hbm [shape: f32[1,1024], index: 2, kind: input, shape index: {}]   ;;  %s12693_s3 = inlined_call_operand.vmem [shape: bf16[2,1024], index: 3, kind: output, shape index: {}]  }
   0x1   :  { %12699 = sst [smem:[#allocation10_spill]] %s12691_s1 }
   0x2   :  { %8 = vsyncpa [#allocation4], 0 }
   0x3   :  { %10 = vsyncpa [#allocation4 + $0x1], 0 }
   0x4   :  { %11 = vsyncpa [#allocation6], 0 }
   0x5   :  { %13 = vsyncpa [#allocation6 + $0x1], 0  ;;  %s11198_s12 = smov 0   ;;  %s11200_s13 = smov 0  }
   0x6   :  { %s11202_s14 = smov 0   ;;  %s11204_s15 = smov 0  }
   0x7   :  { %s11206_s16 = smov 0   ;;  %s11208_s17 = smov 0  }
   0x8   :  { %s11210_s18 = smov 0   ;;  %s11212_s19 = smov 0  }
   0x9   :  { %s11214_s20 = smov 0   ;;  %s11216_s21 = smov 0  }
   0xa   :  { %s11218_s22 = smov 0  }
   0xb LB: > { %s28_s23 = sadd.s32 1, %s11160_s20  ;;  %s66_s24 = sadd.s32 1, %s11148_s17  ;;  %s11168_s22 = sphi %s11218_s22, %s19_s22   ;;  %s11164_s21 = sphi %s11216_s21, %s12725_s21   ;;  %s11160_s20 = sphi %s11214_s20, %s12724_s20   ;;  %s11156_s19 = sphi %s11212_s19, %s12723_s19   ;;  %s11152_s18 = sphi %s11210_s18, %s12722_s18   ;;  %s11148_s17 = sphi %s11208_s17, %s12721_s17   ;;  %s11144_s16 = sphi %s11206_s16, %s12720_s16   ;;  %s11140_s15 = sphi %s11204_s15, %s12719_s15   ;;  %s11136_s14 = sphi %s11202_s14, %s12718_s14   ;;  %s11132_s13 = sphi %s11200_s13, %s12717_s13   ;;  %s11128_s12 = sphi %s11198_s12, %s12716_s12  }
   0xc   : > { %p11255_p0 = scmp.ge.s32.totalorder %s28_s23, 4  ;;  %p73_p1 = scmp.ne.s32.totalorder %s11148_s17, %s11144_s16 }
   0xd   : > { %p12695_p2 = scmp.eq.s32.totalorder %s11168_s22, 0  ;;  %p12694_p4 = scmp.lt.s32.totalorder %s11168_s22, 8 }
   0xe   : > { %s12727_s23 = smov (%p11255_p0, %s28_s23), 0  ;;  %s163_s27 = sand.u32 1, %s11148_s17  }
   0xf   : > { %p75_p3 = por %p12695_p2, %p73_p1  ;;  %s61_s26 = ssub.s32 %s11160_s20, %s12727_s23 }
  0x10   : > { %s8200_s28 = sshll.u32 %s163_s27, 13  ;;  %s8202_s29 = sshll.u32 %s11164_s21, 2 }
  0x11   : > { %s9244_s30 = sshll.u32 %s11160_s20, 12  ;;  %s167_s4 = scalar_lea.vmem [#allocation3], %s8200_s28 }
  0x12   : > { %s177_s5 = sshll.u32 %s167_s4, 4  ;;  %s174_s6 = sadd.s32 %s9244_s30, %s8202_s29  ;;  %s11274_s5 = int_to_ptr.vmem [resolvable:$true] %s177_s5 }
  0x13   : > { %s8204_s7 = sshll.u32 %s174_s6, 6  ;;  %p11278_p5 = pnand %p12694_p4, %p75_p3 }
  0x14   : > { %s12702_s1 = sld [smem:[#allocation10_spill]]  ;;  %s11288_s28 = scalar_lea.sflag [#allocation4], %s163_s27 }
  0x15   : > { %p11016_p8 = pneg %p11278_p5 }
  0x1a   : > { %s11285_s11 = scalar_lea.hbm %s12702_s1, %s8204_s7  ;;  %s11019_s6 = scalar_lea.hbm %s12702_s1, 1048576 }
  0x1b   : > { %s11014_s29 = scalar_lea.hbm %s11285_s11, 131072  ;;  %p11020_p11 = scmp.lt.u32.totalorder %s11285_s11, %s12702_s1 }
  0x1c   : > { %p11015_p7 = scmp.ne.s32.totalorder %s11285_s11, %s11014_s29  ;;  %p11021_p12 = scmp.lt.u32.totalorder %s11019_s6, %s11014_s29 }
  0x1d   : > { %p11023_p1 = scmp.lt.u32.totalorder %s11014_s29, %s11285_s11 }
  0x1e   : > { %p11017_p9 = pnand %p11016_p8, %p11015_p7  ;;  %p11022_p13 = por %p11021_p12, %p11020_p11 }
  0x20   : > { %p11018_p10 = pneg %p11017_p9  ;;  %p11024_p3 = por %p11023_p1, %p11022_p13 }
  0x22   : > { %p11025_p4 = pnand %p11024_p3, %p11018_p10 }
  0x24   : > { %11028 = shalt.err (!%p11025_p4)
}
  0x25   : > { %s11029_s27 = scalar_lea.vmem %s11274_s5, 131072  ;;  %s11170_s10 = smov [#allocation3]  }
  0x26   : > { %p11030_p7 = scmp.ne.s32.totalorder %s11274_s5, %s11029_s27  ;;  %s11034_s30 = sshll.u32 %s11170_s10, 4  ;;  %s11035_s30 = int_to_ptr.vmem [resolvable:$false] %s11034_s30 }
  0x27   : > { %s11036_s4 = scalar_lea.vmem %s11035_s30, 262144  ;;  %p11037_p6 = scmp.lt.s32.totalorder %s11274_s5, %s11035_s30 }
  0x28   : > { %p11032_p9 = pnand %p11030_p7, %p11016_p8  ;;  %p11038_p11 = scmp.lt.s32.totalorder %s11036_s4, %s11029_s27 }
  0x2a   : > { %p11033_p2 = pneg %p11032_p9  ;;  %p11039_p12 = por %p11038_p11, %p11037_p6 }
  0x2c   : > { %p11040_p13 = pnand %p11039_p12, %p11033_p2 }
  0x2e   : > { %11043 = shalt.err (!%p11040_p13)
}
  0x2f   : > { %s11171_s29 = smov 512   ;;  %s11172_s6 = smov 256  }
  0x30   : > { %s11173_s7 = smov 16   ;;  %p204_p2 = scmp.lt.s32.totalorder %s11168_s22, 9 }
  0x31   : > { %9373 = dma.hbm_to_vmem [thread:$0]  (!%p11278_p5), %s11285_s11, 131072, %s11274_s5, %s11288_s28, %s11171_s29, %s11172_s6, %s11173_s7  }
  0x32   : > { %p12703_p4 = scmp.ge.s32.totalorder %s11168_s22, 1  ;;  %s8196_s27 = sadd.s32 4294967295, %s11168_s22  }
  0x33   : > { %s31_s10 = sadd.s32 1, %s11164_s21  ;;  %p79_p8 = scmp.ne.s32.totalorder %s11144_s16, %s11140_s15 }
  0x34   : > { %p11319_p6 = pnand %p12703_p4, %p204_p2  ;;  %s12729_s10 = smov (!%p11255_p0, %s31_s10), %s11164_s21 }
  0x35   : > { %p11330_p10 = scmp.eq.s32.totalorder %s8196_s27, 0  ;;  %p33_p5 = scmp.ge.s32.totalorder %s12729_s10, 2 }
  0x36   : > { %s92_s5 = sadd.s32 1, %s11136_s14  ;;  %p99_p3 = scmp.ne.s32.totalorder %s11136_s14, %s11132_s13 }
  0x37   : > { %p11337_p1 = por %p11330_p10, %p79_p8  ;;  %s12731_s10 = smov (%p33_p5, %s12729_s10), 0 }
  0x38   : > { %12707 = sst [smem:[#allocation9_spill]] %s12731_s10  ;;  %p12708_p0 = scmp.eq.s32.totalorder %s11168_s22, 0 }
  0x39   : > { %s12706_s11 = scalar_select %p11337_p1, 1, 0 }
  0x3a   : > { %p11347_p7 = por %p99_p3, %p12708_p0  ;;  %p105_p9 = scmp.ne.s32.totalorder %s11132_s13, %s11128_s12 }
  0x3b   : > { %s62_s25 = ssub.s32 %s11164_s21, %s12731_s10  ;;  %s187_s28 = sand.u32 1, %s11136_s14  }
  0x3c   : > { %s63_s30 = sor.u32 %s62_s25, %s61_s26  ;;  %p90_p11 = scmp.eq.s32.totalorder %s62_s25, 0 }
  0x3d   : > { %p64_p12 = scmp.eq.s32.totalorder %s63_s30, 0  ;;  %p11361_p13 = por %p105_p9, %p11330_p10 }
  0x3e   : > { %s11366_s29 = scalar_select %p90_p11, %s11136_s14, %s92_s5  }
  0x3f   : > { %s12710_s4 = scalar_select %p11361_p13, 1, 0 }
  0x40   : > { %s11371_s6 = scalar_select %p64_p12, %s11148_s17, %s66_s24  }
  0x41   : > { %s8205_s7 = sshll.u32 %s187_s28, 2  ;;  %s9245_s27 = sshll.u32 %s11164_s21, 6 }
  0x42   : > { %s11377_s10 = scalar_lea.hbm %s12692_s2, %s9245_s27  ;;  %s191_s26 = scalar_lea.vmem [#allocation5], %s8205_s7 }
  0x43   : > { %s199_s8 = sshll.u32 %s191_s26, 4  ;;  %p12711_p2 = scmp.lt.s32.totalorder %s11168_s22, 8  ;;  %s11379_s8 = int_to_ptr.vmem [resolvable:$true] %s199_s8 }
  0x44   : > { %s188_s5 = scalar_lea.sflag [#allocation6], %s187_s28  ;;  %s11044_s1 = scalar_lea.hbm %s11377_s10, 64 }
  0x45   : > { %p11385_p4 = pnand %p12711_p2, %p11347_p7  ;;  %p11045_p8 = scmp.ne.s32.totalorder %s11377_s10, %s11044_s1 }
  0x46   : > { %s11049_s15 = scalar_lea.hbm %s12692_s2, 128  ;;  %p11050_p0 = scmp.lt.u32.totalorder %s11377_s10, %s12692_s2 }
  0x47   : > { %p11046_p10 = pneg %p11385_p4  ;;  %p11051_p7 = scmp.lt.u32.totalorder %s11049_s15, %s11044_s1 }
  0x48   : > { %p11053_p11 = scmp.lt.u32.totalorder %s11044_s1, %s11377_s10 }
  0x49   : > { %p11047_p5 = pnand %p11046_p10, %p11045_p8  ;;  %p11052_p9 = por %p11051_p7, %p11050_p0 }
  0x4b   : > { %p11048_p3 = pneg %p11047_p5  ;;  %p11054_p12 = por %p11053_p11, %p11052_p9 }
  0x4d   : > { %p11055_p2 = pnand %p11054_p12, %p11048_p3 }
  0x4f   : > { %11058 = shalt.err (!%p11055_p2)
}
  0x50   : > { %s11059_s28 = scalar_lea.vmem %s11379_s8, 64  ;;  %s11174_s12 = smov [#allocation5]  }
  0x51   : > { %p11060_p8 = scmp.ne.s32.totalorder %s11379_s8, %s11059_s28  ;;  %s11064_s26 = sshll.u32 %s11174_s12, 4  ;;  %s11065_s26 = int_to_ptr.vmem [resolvable:$false] %s11064_s26 }
  0x52   : > { %s11066_s25 = scalar_lea.vmem %s11065_s26, 128  ;;  %p11067_p1 = scmp.lt.s32.totalorder %s11379_s8, %s11065_s26 }
  0x53   : > { %p11062_p5 = pnand %p11060_p8, %p11046_p10  ;;  %p11068_p0 = scmp.lt.s32.totalorder %s11066_s25, %s11059_s28 }
  0x55   : > { %p11063_p13 = pneg %p11062_p5  ;;  %p11069_p7 = por %p11068_p0, %p11067_p1 }
  0x57   : > { %p11070_p9 = pnand %p11069_p7, %p11063_p13 }
  0x59   : > { %11073 = shalt.err (!%p11070_p9)
}
  0x5a   : > { %9376 = dma.hbm_to_vmem [thread:$0]  (!%p11385_p4), %s11377_s10, 64, %s11379_s8, %s188_s5  }
  0x5b   : > { %208 = sbr.rel (%p11319_p6) target bundleno = 1386 (0x56a), region = 32  ;;  %s210_s1 = sand.u32 (!%p11319_p6), 1, %s11144_s16  }
  0x5c   : > { %s8209_s30 = sshll.u32 (!%p11319_p6), %s210_s1, 13  ;;  %s211_s15 = scalar_lea.sflag (!%p11319_p6), [#allocation4], %s210_s1 }
  0x5d   : > { %s11417_s7 = scalar_lea.vmem (!%p11319_p6), [#allocation3], %s8209_s30  ;;  %p12713_p10 = scmp.ne.s32.totalorder (!%p11319_p6), %s12706_s11, 0 }
  0x62   : > { %11119 = dma.done.wait (%p12713_p10), %s211_s15, 131072  }
  0x63   : > { %11121 = vsyncadd (%p12713_p10), %s211_s15, 4294836224  ;;  %s219_s24 = sand.u32 1, %s11132_s13   ;;  %p12714_p6 = scmp.ne.s32.totalorder %s12710_s4, 0 }
  0x64   : > { %s11424_s27 = sshll.u32 %s219_s24, 2  ;;  %s220_s9 = scalar_lea.sflag [#allocation6], %s219_s24 }
  0x65   : > { %s223_s10 = scalar_lea.vmem [#allocation5], %s11424_s27 }
  0x66   : > { %11123 = dma.done.wait (%p12714_p6), %s220_s9, 64  }
  0x67   : > { %11125 = vsyncadd (%p12714_p6), %s220_s9, 4294967232  ;;  %s8211_s8 = sshll.u32 %s11152_s18, 5  ;;  %s8212_s5 = sshll.u32 %s11156_s19, 2 }
  0x68   : > { %p255_p1 = scmp.lt.s32.totalorder %s8211_s8, 127  ;;  %p263_p13 = scmp.lt.s32.totalorder %s8212_s5, 7 }
  0x69   : > { %p8213_p4 = scmp.ne.s32.totalorder %s11152_s18, 0 }
  0x6a   : > { %s12733_s8 = smov (!%p255_p1, %s8211_s8), 127  ;;  %s12735_s5 = smov (!%p263_p13, %s8212_s5), 7 }
  0x6b   : > { %s11438_s12 = scalar_lea.vmem %s12690_s0, %s12733_s8  ;;  %s265_s4 = scalar_lea.vmem %s12693_s3, %s12735_s5  ;;  %v11175_v0 = vmov (!%p8213_p4), 0.0  }
  0x6c   : > { %270 = sbr.rel (%p8213_p4) target bundleno = 115 (0x73), region = 44  ;;  %271 = vst [vmem:[#allocation2] sm:$0xff] (!%p8213_p4), %v11175_v0 }
  0x73 PF: > { %v9472_v1 = vld [vmem:[%s11417_s7 + $0x4] ss:$16 sps:$4 sm:$0xff]   ;;  %v9474_v2 = vld [vmem:[%s11417_s7 + $0xc] ss:$16 sps:$4 sm:$0xff]   ;;  %v9476_v3 = vld [vmem:[%s11417_s7] ss:$16 sps:$4 sm:$0xff]   ;;  %v1309_v39 = vlaneseq }
  0x74   : > { %6653 = vmatprep.subr.bf16.mxu0 %v9472_v1  ;;  %v9477_v4 = vld [vmem:[%s11417_s7 + $0x8] ss:$16 sps:$4 sm:$0xff]   ;;  %7309 = vmatprep.subr.bf16.mxu1 %v9474_v2  ;;  %v9478_v5 = vld [vmem:[%s11417_s7 + $0x24] ss:$16 sps:$4 sm:$0xff]   ;;  %v9480_v6 = vld [vmem:[%s11417_s7 + $0x2c] ss:$16 sps:$4 sm:$0xff]  }
  0x75   : > { %6654 = vmatpush1.bf16.msra.mxu0 %v9476_v3  ;;  %7310 = vmatpush1.bf16.msra.mxu1 %v9477_v4  ;;  %v9482_v7 = vld [vmem:[%s11417_s7 + $0x20] ss:$16 sps:$4 sm:$0xff]   ;;  %v9483_v8 = vld [vmem:[%s11417_s7 + $0x28] ss:$16 sps:$4 sm:$0xff]   ;;  %v9484_v9 = vld [vmem:[%s11417_s7 + $0x44] ss:$16 sps:$4 sm:$0xff]  }
  0x76   : > { %6655 = vmatprep.subr.bf16.mxu0 %v9478_v5  ;;  %7311 = vmatprep.subr.bf16.mxu1 %v9480_v6  ;;  %v9486_v10 = vld [vmem:[%s11417_s7 + $0x4c] ss:$16 sps:$4 sm:$0xff]   ;;  %v9488_v11 = vld [vmem:[%s11417_s7 + $0x40] ss:$16 sps:$4 sm:$0xff]   ;;  %v9489_v12 = vld [vmem:[%s11417_s7 + $0x48] ss:$16 sps:$4 sm:$0xff]  }
  0x77   : > { %v9490_v13 = vld [vmem:[%s11417_s7 + $0x64] ss:$16 sps:$4 sm:$0xff]   ;;  %v9492_v14 = vld [vmem:[%s11417_s7 + $0x6c] ss:$16 sps:$4 sm:$0xff]   ;;  %v9494_v15 = vld [vmem:[%s11417_s7 + $0x60] ss:$16 sps:$4 sm:$0xff]  }
  0x78   : > { %v9495_v16 = vld [vmem:[%s11417_s7 + $0x68] ss:$16 sps:$4 sm:$0xff]   ;;  %v9496_v17 = vld [vmem:[%s11417_s7 + $0x84] ss:$16 sps:$4 sm:$0xff]   ;;  %v9498_v18 = vld [vmem:[%s11417_s7 + $0x8c] ss:$16 sps:$4 sm:$0xff]  }
  0x79   : > { %6656 = vmatpush1.bf16.msra.mxu0 %v9482_v7  ;;  %7312 = vmatpush1.bf16.msra.mxu1 %v9483_v8  ;;  %v9500_v19 = vld [vmem:[%s11417_s7 + $0x80] ss:$16 sps:$4 sm:$0xff]   ;;  %v9501_v20 = vld [vmem:[%s11417_s7 + $0x88] ss:$16 sps:$4 sm:$0xff]   ;;  %v9502_v21 = vld [vmem:[%s11417_s7 + $0xa4] ss:$16 sps:$4 sm:$0xff]  }
  0x7a   : > { %6657 = vmatprep.subr.bf16.mxu0 %v9484_v9  ;;  %7313 = vmatprep.subr.bf16.mxu1 %v9486_v10  ;;  %v9504_v22 = vld [vmem:[%s11417_s7 + $0xac] ss:$16 sps:$4 sm:$0xff]   ;;  %v9506_v23 = vld [vmem:[%s11417_s7 + $0xa0] ss:$16 sps:$4 sm:$0xff]   ;;  %v9507_v24 = vld [vmem:[%s11417_s7 + $0xa8] ss:$16 sps:$4 sm:$0xff]  }
  0x7b   : > { %v9508_v25 = vld [vmem:[%s11417_s7 + $0xc4] ss:$16 sps:$4 sm:$0xff]   ;;  %v9510_v26 = vld [vmem:[%s11417_s7 + $0xcc] ss:$16 sps:$4 sm:$0xff]   ;;  %v9512_v27 = vld [vmem:[%s11417_s7 + $0xc0] ss:$16 sps:$4 sm:$0xff]  }
  0x7c   : > { %v9513_v28 = vld [vmem:[%s11417_s7 + $0xc8] ss:$16 sps:$4 sm:$0xff]   ;;  %v9514_v29 = vld [vmem:[%s11417_s7 + $0xe4] ss:$16 sps:$4 sm:$0xff]   ;;  %v9516_v30 = vld [vmem:[%s11417_s7 + $0xec] ss:$16 sps:$4 sm:$0xff]  }
  0x7d   : > { %6658 = vmatpush1.bf16.msra.mxu0 %v9488_v11  ;;  %7314 = vmatpush1.bf16.msra.mxu1 %v9489_v12  ;;  %v9518_v31 = vld [vmem:[%s11417_s7 + $0xe0] ss:$16 sps:$4 sm:$0xff]   ;;  %v9519_v32 = vld [vmem:[%s11417_s7 + $0xe8] ss:$16 sps:$4 sm:$0xff]   ;;  %v9520_v33 = vld [vmem:[%s11417_s7 + $0x104] ss:$16 sps:$4 sm:$0xff]  }
  0x7e   : > { %6659 = vmatprep.subr.bf16.mxu0 %v9490_v13  ;;  %7315 = vmatprep.subr.bf16.mxu1 %v9492_v14  ;;  %v9522_v34 = vld [vmem:[%s11417_s7 + $0x10c] ss:$16 sps:$4 sm:$0xff]   ;;  %v9524_v35 = vld [vmem:[%s11417_s7 + $0x100] ss:$16 sps:$4 sm:$0xff]   ;;  %v9525_v36 = vld [vmem:[%s11417_s7 + $0x108] ss:$16 sps:$4 sm:$0xff]  }
  0x7f   : > { %v11176_v37 = vmov 1966171168   ;;  %v9526_v40 = vld [vmem:[%s11417_s7 + $0x124] ss:$16 sps:$4 sm:$0xff]   ;;  %v9528_v41 = vld [vmem:[%s11417_s7 + $0x12c] ss:$16 sps:$4 sm:$0xff]  }
  0x80   : > { %v1307_v38 = vunpack.c.l.s4 %v11176_v37  ;;  %v9530_v42 = vld [vmem:[%s11417_s7 + $0x120] ss:$16 sps:$4 sm:$0xff]   ;;  %v11484_v44 = vshrl.u32 %v1309_v39, 7  ;;  %v9531_v45 = vld [vmem:[%s11417_s7 + $0x128] ss:$16 sps:$4 sm:$0xff]   ;;  %p9238_p3 = scmp.ne.s32.totalorder %s11152_s18, 3 }
  0x81   : > { %6660 = vmatpush1.bf16.msra.mxu0 %v9494_v15  ;;  %7316 = vmatpush1.bf16.msra.mxu1 %v9495_v16  ;;  %v9532_v46 = vld [vmem:[%s11417_s7 + $0x144] ss:$16 sps:$4 sm:$0xff]   ;;  %v9534_v47 = vld [vmem:[%s11417_s7 + $0x14c] ss:$16 sps:$4 sm:$0xff]   ;;  %v9536_v48 = vld [vmem:[%s11417_s7 + $0x140] ss:$16 sps:$4 sm:$0xff]  }
  0x82   : > { %6661 = vmatprep.subr.bf16.mxu0 %v9496_v17  ;;  %7317 = vmatprep.subr.bf16.mxu1 %v9498_v18  ;;  %v1308_v43 = vunpack.c.0.s8 %v1307_v38  ;;  %v9537_v49 = vld [vmem:[%s11417_s7 + $0x148] ss:$16 sps:$4 sm:$0xff]   ;;  %v9538_v51 = vld [vmem:[%s11417_s7 + $0x164] ss:$16 sps:$4 sm:$0xff]   ;;  %v9540_v52 = vld [vmem:[%s11417_s7 + $0x16c] ss:$16 sps:$4 sm:$0xff]  }
  0x83   : > { %v11497_v53 = vld [vmem:[%s11438_s12] sm:$0xff]  ;;  %v9542_v54 = vld [vmem:[%s11417_s7 + $0x160] ss:$16 sps:$4 sm:$0xff]   ;;  %v9544_v57 = vld [vmem:[%s11417_s7 + $0x184] ss:$16 sps:$4 sm:$0xff]  }
  0x84   : > { %v11492_v50 = vsub.s32 %v1308_v43, %v11484_v44  ;;  %v9543_v56 = vld [vmem:[%s11417_s7 + $0x168] ss:$16 sps:$4 sm:$0xff]   ;;  %v9546_v58 = vld [vmem:[%s11417_s7 + $0x18c] ss:$16 sps:$4 sm:$0xff]   ;;  %v9548_v60 = vld [vmem:[%s11417_s7 + $0x180] ss:$16 sps:$4 sm:$0xff]  }
  0x85   : > { %6662 = vmatpush1.bf16.msra.mxu0 %v9500_v19  ;;  %7318 = vmatpush1.bf16.msra.mxu1 %v9501_v20  ;;  %v9549_v62 = vld [vmem:[%s11417_s7 + $0x188] ss:$16 sps:$4 sm:$0xff]   ;;  %v9550_v63 = vld [vmem:[%s11417_s7 + $0x1a4] ss:$16 sps:$4 sm:$0xff]   ;;  %v9552_v0 = vld [vmem:[%s11417_s7 + $0x1ac] ss:$16 sps:$4 sm:$0xff]  }
  0x86   : > { %6663 = vmatprep.subr.bf16.mxu0 %v9502_v21  ;;  %7319 = vmatprep.subr.bf16.mxu1 %v9504_v22  ;;  %v1312_v55 = vrot.slane %v11497_v53, %v11492_v50  ;;  %v9554_v1 = vld [vmem:[%s11417_s7 + $0x1a0] ss:$16 sps:$4 sm:$0xff]   ;;  %v9555_v2 = vld [vmem:[%s11417_s7 + $0x1a8] ss:$16 sps:$4 sm:$0xff]   ;;  %v9556_v3 = vld [vmem:[%s11417_s7 + $0x1c4] ss:$16 sps:$4 sm:$0xff]  }
  0x87   : > { %v9558_v4 = vld [vmem:[%s11417_s7 + $0x1cc] ss:$16 sps:$4 sm:$0xff]   ;;  %v9560_v5 = vld [vmem:[%s11417_s7 + $0x1c0] ss:$16 sps:$4 sm:$0xff]   ;;  %v9561_v6 = vld [vmem:[%s11417_s7 + $0x1c8] ss:$16 sps:$4 sm:$0xff]  }
  0x88   : > { %v1320_v59 = vcombine.high %v1312_v55, %v1312_v55  ;;  %v9562_v7 = vld [vmem:[%s11417_s7 + $0x1e4] ss:$16 sps:$4 sm:$0xff]   ;;  %v9564_v8 = vld [vmem:[%s11417_s7 + $0x1ec] ss:$16 sps:$4 sm:$0xff]   ;;  %v9566_v9 = vld [vmem:[%s11417_s7 + $0x1e0] ss:$16 sps:$4 sm:$0xff]   ;;  %v11524_v14 = vrot.slane %v1312_v55, %v11492_v50 }
  0x89   : > { %6664 = vmatpush1.bf16.msra.mxu0 %v9506_v23  ;;  %7320 = vmatpush1.bf16.msra.mxu1 %v9507_v24  ;;  %v9567_v10 = vld [vmem:[%s11417_s7 + $0x1e8] ss:$16 sps:$4 sm:$0xff]   ;;  %v9570_v11 = vld [vmem:[%s11417_s7 + $0x204] ss:$16 sps:$4 sm:$0xff]   ;;  %v9573_v12 = vld [vmem:[%s11417_s7 + $0x20c] ss:$16 sps:$4 sm:$0xff]  }
  0x8a   : > { %6665 = vmatprep.subr.bf16.mxu0 %v9508_v25  ;;  %7321 = vmatprep.subr.bf16.mxu1 %v9510_v26  ;;  %v1342_v61 = vrot.slane %v1320_v59, %v11492_v50  ;;  %v9568_v13 = vld [vmem:[%s11417_s7 + $0x200] ss:$16 sps:$4 sm:$0xff]   ;;  %v9571_v15 = vld [vmem:[%s11417_s7 + $0x208] ss:$16 sps:$4 sm:$0xff]   ;;  %v9576_v16 = vld [vmem:[%s11417_s7 + $0x224] ss:$16 sps:$4 sm:$0xff]  }
  0x8b   : > { %v9579_v17 = vld [vmem:[%s11417_s7 + $0x22c] ss:$16 sps:$4 sm:$0xff]   ;;  %v9574_v19 = vld [vmem:[%s11417_s7 + $0x220] ss:$16 sps:$4 sm:$0xff]   ;;  %v9577_v20 = vld [vmem:[%s11417_s7 + $0x228] ss:$16 sps:$4 sm:$0xff]  }
  0x8c   : > { %6685 = vmatprep.mubr.bf16.mxu0 %v1342_v61  ;;  %7341 = vmatprep.mubr.bf16.mxu1 %v1342_v61  ;;  %v1352_v18 = vcombine.high %v1342_v61, %v1342_v61  ;;  %v9582_v21 = vld [vmem:[%s11417_s7 + $0x244] ss:$16 sps:$4 sm:$0xff]   ;;  %v9585_v22 = vld [vmem:[%s11417_s7 + $0x24c] ss:$16 sps:$4 sm:$0xff]   ;;  %v9580_v23 = vld [vmem:[%s11417_s7 + $0x240] ss:$16 sps:$4 sm:$0xff]  }
  0x8d   : > { %6666 = vmatpush1.bf16.msra.mxu0 %v9512_v27  ;;  %7322 = vmatpush1.bf16.msra.mxu1 %v9513_v28  ;;  %v9583_v24 = vld [vmem:[%s11417_s7 + $0x248] ss:$16 sps:$4 sm:$0xff]   ;;  %v9588_v25 = vld [vmem:[%s11417_s7 + $0x264] ss:$16 sps:$4 sm:$0xff]   ;;  %v9591_v26 = vld [vmem:[%s11417_s7 + $0x26c] ss:$16 sps:$4 sm:$0xff]  }
  0x8e   : > { %6667 = vmatprep.subr.bf16.mxu0 %v9514_v29  ;;  %7323 = vmatprep.subr.bf16.mxu1 %v9516_v30  ;;  %v9586_v27 = vld [vmem:[%s11417_s7 + $0x260] ss:$16 sps:$4 sm:$0xff]   ;;  %v9589_v28 = vld [vmem:[%s11417_s7 + $0x268] ss:$16 sps:$4 sm:$0xff]   ;;  %v9594_v29 = vld [vmem:[%s11417_s7 + $0x284] ss:$16 sps:$4 sm:$0xff]  }
  0x8f   : > { %v9597_v30 = vld [vmem:[%s11417_s7 + $0x28c] ss:$16 sps:$4 sm:$0xff]   ;;  %v9606_v37 = vld [vmem:[%s11417_s7 + $0x2c4] ss:$16 sps:$4 sm:$0xff]   ;;  %v9604_v39 = vld [vmem:[%s11417_s7 + $0x2c0] ss:$16 sps:$4 sm:$0xff]  }
  0x90   : > { %v9609_v38 = vld [vmem:[%s11417_s7 + $0x2cc] ss:$16 sps:$4 sm:$0xff]   ;;  %v9610_v43 = vld [vmem:[%s11417_s7 + $0x2e0] ss:$16 sps:$4 sm:$0xff]   ;;  %v9625_v55 = vld [vmem:[%s11417_s7 + $0x328] ss:$16 sps:$4 sm:$0xff]  }
  0x91   : > { %6668 = vmatpush1.bf16.msra.mxu0 %v9518_v31  ;;  %7324 = vmatpush1.bf16.msra.mxu1 %v9519_v32  ;;  %v9592_v31 = vld [vmem:[%s11417_s7 + $0x280] ss:$16 sps:$4 sm:$0xff]   ;;  %v9595_v32 = vld [vmem:[%s11417_s7 + $0x288] ss:$16 sps:$4 sm:$0xff]   ;;  %v9639_v61 = vld [vmem:[%s11417_s7 + $0x36c] ss:$16 sps:$4 sm:$0xff]  }
  0x92   : > { %6669 = vmatprep.subr.bf16.mxu0 %v9520_v33  ;;  %7325 = vmatprep.subr.bf16.mxu1 %v9522_v34  ;;  %v9600_v33 = vld [vmem:[%s11417_s7 + $0x2a4] ss:$16 sps:$4 sm:$0xff]   ;;  %v9603_v34 = vld [vmem:[%s11417_s7 + $0x2ac] ss:$16 sps:$4 sm:$0xff]   ;;  %v9631_v59 = vld [vmem:[%s11417_s7 + $0x348] ss:$16 sps:$4 sm:$0xff]  }
  0x95   : > { %6670 = vmatpush1.bf16.msra.mxu0 %v9524_v35  ;;  %7326 = vmatpush1.bf16.msra.mxu1 %v9525_v36  ;;  %v9598_v35 = vld [vmem:[%s11417_s7 + $0x2a0] ss:$16 sps:$4 sm:$0xff]   ;;  %v9601_v36 = vld [vmem:[%s11417_s7 + $0x2a8] ss:$16 sps:$4 sm:$0xff]  }
  0x96   : > { %6671 = vmatprep.subr.bf16.mxu0 %v9526_v40  ;;  %7327 = vmatprep.subr.bf16.mxu1 %v9528_v41  ;;  %v9607_v40 = vld [vmem:[%s11417_s7 + $0x2c8] ss:$16 sps:$4 sm:$0xff]   ;;  %v9612_v41 = vld [vmem:[%s11417_s7 + $0x2e4] ss:$16 sps:$4 sm:$0xff]  }
  0x99   : > { %6672 = vmatpush1.bf16.msra.mxu0 %v9530_v42  ;;  %7328 = vmatpush1.bf16.msra.mxu1 %v9531_v45  ;;  %v9615_v42 = vld [vmem:[%s11417_s7 + $0x2ec] ss:$16 sps:$4 sm:$0xff]   ;;  %v9613_v45 = vld [vmem:[%s11417_s7 + $0x2e8] ss:$16 sps:$4 sm:$0xff]  }
  0x9a   : > { %6673 = vmatprep.subr.bf16.mxu0 %v9532_v46  ;;  %7329 = vmatprep.subr.bf16.mxu1 %v9534_v47  ;;  %v9618_v46 = vld [vmem:[%s11417_s7 + $0x304] ss:$16 sps:$4 sm:$0xff]   ;;  %v9621_v47 = vld [vmem:[%s11417_s7 + $0x30c] ss:$16 sps:$4 sm:$0xff]  }
  0x9d   : > { %6674 = vmatpush1.bf16.msra.mxu0 %v9536_v48  ;;  %7330 = vmatpush1.bf16.msra.mxu1 %v9537_v49  ;;  %v9616_v48 = vld [vmem:[%s11417_s7 + $0x300] ss:$16 sps:$4 sm:$0xff]   ;;  %v9619_v49 = vld [vmem:[%s11417_s7 + $0x308] ss:$16 sps:$4 sm:$0xff]  }
  0x9e   : > { %6675 = vmatprep.subr.bf16.mxu0 %v9538_v51  ;;  %7331 = vmatprep.subr.bf16.mxu1 %v9540_v52  ;;  %v9624_v51 = vld [vmem:[%s11417_s7 + $0x324] ss:$16 sps:$4 sm:$0xff]   ;;  %v9627_v52 = vld [vmem:[%s11417_s7 + $0x32c] ss:$16 sps:$4 sm:$0xff]  }
  0xa1   : > { %6676 = vmatpush1.bf16.msra.mxu0 %v9542_v54  ;;  %7332 = vmatpush1.bf16.msra.mxu1 %v9543_v56  ;;  %v9622_v54 = vld [vmem:[%s11417_s7 + $0x320] ss:$16 sps:$4 sm:$0xff]   ;;  %v9630_v56 = vld [vmem:[%s11417_s7 + $0x344] ss:$16 sps:$4 sm:$0xff]  }
  0xa2   : > { %6677 = vmatprep.subr.bf16.mxu0 %v9544_v57  ;;  %7333 = vmatprep.subr.bf16.mxu1 %v9546_v58  ;;  %v9633_v57 = vld [vmem:[%s11417_s7 + $0x34c] ss:$16 sps:$4 sm:$0xff]   ;;  %v9628_v58 = vld [vmem:[%s11417_s7 + $0x340] ss:$16 sps:$4 sm:$0xff]  }
  0xa5   : > { %6678 = vmatpush1.bf16.msra.mxu0 %v9548_v60  ;;  %7334 = vmatpush1.bf16.msra.mxu1 %v9549_v62  ;;  %v9636_v60 = vld [vmem:[%s11417_s7 + $0x364] ss:$16 sps:$4 sm:$0xff]   ;;  %v9634_v62 = vld [vmem:[%s11417_s7 + $0x360] ss:$16 sps:$4 sm:$0xff]  }
  0xa6   : > { %6679 = vmatprep.subr.bf16.mxu0 %v9550_v63  ;;  %7335 = vmatprep.subr.bf16.mxu1 %v9552_v0  ;;  %v9637_v63 = vld [vmem:[%s11417_s7 + $0x368] ss:$16 sps:$4 sm:$0xff]   ;;  %v9642_v0 = vld [vmem:[%s11417_s7 + $0x384] ss:$16 sps:$4 sm:$0xff]  }
  0xa9   : > { %6680 = vmatpush1.bf16.msra.mxu0 %v9554_v1  ;;  %7336 = vmatpush1.bf16.msra.mxu1 %v9555_v2  ;;  %v9645_v1 = vld [vmem:[%s11417_s7 + $0x38c] ss:$16 sps:$4 sm:$0xff]   ;;  %v9640_v2 = vld [vmem:[%s11417_s7 + $0x380] ss:$16 sps:$4 sm:$0xff]  }
  0xaa   : > { %6681 = vmatprep.subr.bf16.mxu0 %v9556_v3  ;;  %7337 = vmatprep.subr.bf16.mxu1 %v9558_v4  ;;  %v9643_v3 = vld [vmem:[%s11417_s7 + $0x388] ss:$16 sps:$4 sm:$0xff]   ;;  %v9648_v4 = vld [vmem:[%s11417_s7 + $0x3a4] ss:$16 sps:$4 sm:$0xff]  }
  0xad   : > { %6682 = vmatpush1.bf16.msra.mxu0 %v9560_v5  ;;  %7338 = vmatpush1.bf16.msra.mxu1 %v9561_v6  ;;  %v9651_v5 = vld [vmem:[%s11417_s7 + $0x3ac] ss:$16 sps:$4 sm:$0xff]   ;;  %v9646_v6 = vld [vmem:[%s11417_s7 + $0x3a0] ss:$16 sps:$4 sm:$0xff]  }
  0xae   : > { %6683 = vmatprep.subr.bf16.mxu0 %v9562_v7  ;;  %7339 = vmatprep.subr.bf16.mxu1 %v9564_v8  ;;  %v9649_v7 = vld [vmem:[%s11417_s7 + $0x3a8] ss:$16 sps:$4 sm:$0xff]   ;;  %v9654_v8 = vld [vmem:[%s11417_s7 + $0x3c4] ss:$16 sps:$4 sm:$0xff]  }
  0xb1   : > { %6684 = vmatpush1.bf16.msra.mxu0 %v9566_v9  ;;  %7340 = vmatpush1.bf16.msra.mxu1 %v9567_v10  ;;  %v9657_v9 = vld [vmem:[%s11417_s7 + $0x3cc] ss:$16 sps:$4 sm:$0xff]   ;;  %v1305_v10 = vcombine.high %v11497_v53, %v11497_v53  ;;  %v9661_v53 = vld [vmem:[%s11417_s7 + $0x3e8] ss:$16 sps:$4 sm:$0xff]  }
  0xb2   : > { %6694 = vmatprep.subr.bf16.mxu0 %v9570_v11  ;;  %7350 = vmatprep.subr.bf16.mxu1 %v9573_v12  ;;  %v9652_v11 = vld [vmem:[%s11417_s7 + $0x3c0] ss:$16 sps:$4 sm:$0xff]   ;;  %v9655_v12 = vld [vmem:[%s11417_s7 + $0x3c8] ss:$16 sps:$4 sm:$0xff]  }
  0xb4   : > { %6686 = vmatmul.mubr.bf16.vlgmr.msra.gmra.mrb[0].mxu0 %v11524_v14  ;;  %7342 = vmatmul.mubr.bf16.vlgmr.msra.gmra.mrb[0].mxu1 %v11524_v14 }
  0xb5   : > { %6695 = vmatpush1.bf16.msra.mxu0 %v9568_v13  ;;  %7351 = vmatpush1.bf16.msra.mxu1 %v9571_v15  ;;  %v9660_v13 = vld [vmem:[%s11417_s7 + $0x3e4] ss:$16 sps:$4 sm:$0xff]   ;;  %v9663_v15 = vld [vmem:[%s11417_s7 + $0x3ec] ss:$16 sps:$4 sm:$0xff]  }
  0xb6   : > { %6696 = vmatprep.subr.bf16.mxu0 %v9576_v16  ;;  %7352 = vmatprep.subr.bf16.mxu1 %v9579_v17  ;;  %v11590_v16 = vrot.slane %v1305_v10, %v11492_v50  ;;  %v9658_v17 = vld [vmem:[%s11417_s7 + $0x3e0] ss:$16 sps:$4 sm:$0xff]   ;;  %v9739_v10 = vld [vmem:[%s11417_s7 + $0x588] ss:$16 sps:$4 sm:$0xff]  }
  0xb7   : > { %6726 = vmatprep.mubr.bf16.mxu0 %v1352_v18  ;;  %7382 = vmatprep.mubr.bf16.mxu1 %v1352_v18  ;;  %v9666_v18 = vld [vmem:[%s11417_s7 + $0x404] ss:$16 sps:$4 sm:$0xff]  }
  0xb9   : > { %6697 = vmatpush1.bf16.msra.mxu0 %v9574_v19  ;;  %7353 = vmatpush1.bf16.msra.mxu1 %v9577_v20  ;;  %v9669_v19 = vld [vmem:[%s11417_s7 + $0x40c] ss:$16 sps:$4 sm:$0xff]   ;;  %v1321_v20 = vcombine.high %v11590_v16, %v11590_v16 }
  0xba   : > { %6698 = vmatprep.subr.bf16.mxu0 %v9582_v21  ;;  %7354 = vmatprep.subr.bf16.mxu1 %v9585_v22  ;;  %v9664_v21 = vld [vmem:[%s11417_s7 + $0x400] ss:$16 sps:$4 sm:$0xff]   ;;  %v1350_v22 = vcombine.high %v11524_v14, %v11524_v14  ;;  %v9673_v14 = vld [vmem:[%s11417_s7 + $0x428] ss:$16 sps:$4 sm:$0xff]  }
  0xbd   : > { %6699 = vmatpush1.bf16.msra.mxu0 %v9580_v23  ;;  %7355 = vmatpush1.bf16.msra.mxu1 %v9583_v24  ;;  %v9667_v23 = vld [vmem:[%s11417_s7 + $0x408] ss:$16 sps:$4 sm:$0xff]   ;;  %v9672_v24 = vld [vmem:[%s11417_s7 + $0x424] ss:$16 sps:$4 sm:$0xff]  }
  0xbe   : > { %6700 = vmatprep.subr.bf16.mxu0 %v9588_v25  ;;  %7356 = vmatprep.subr.bf16.mxu1 %v9591_v26  ;;  %v9675_v25 = vld [vmem:[%s11417_s7 + $0x42c] ss:$16 sps:$4 sm:$0xff]   ;;  %v11605_v26 = vrot.slane %v1321_v20, %v11492_v50  ;;  %v9756_v20 = vld [vmem:[%s11417_s7 + $0x5e4] ss:$16 sps:$4 sm:$0xff]  }
  0xc1   : > { %6701 = vmatpush1.bf16.msra.mxu0 %v9586_v27  ;;  %7357 = vmatpush1.bf16.msra.mxu1 %v9589_v28  ;;  %v9670_v27 = vld [vmem:[%s11417_s7 + $0x420] ss:$16 sps:$4 sm:$0xff]   ;;  %v9678_v28 = vld [vmem:[%s11417_s7 + $0x444] ss:$16 sps:$4 sm:$0xff]  }
  0xc2   : > { %6702 = vmatprep.subr.bf16.mxu0 %v9594_v29  ;;  %7358 = vmatprep.subr.bf16.mxu1 %v9597_v30  ;;  %v9681_v29 = vld [vmem:[%s11417_s7 + $0x44c] ss:$16 sps:$4 sm:$0xff]   ;;  %v9676_v30 = vld [vmem:[%s11417_s7 + $0x440] ss:$16 sps:$4 sm:$0xff]  }
  0xc5   : > { %6703 = vmatpush1.bf16.msra.mxu0 %v9592_v31  ;;  %7359 = vmatpush1.bf16.msra.mxu1 %v9595_v32  ;;  %v9679_v31 = vld [vmem:[%s11417_s7 + $0x448] ss:$16 sps:$4 sm:$0xff]   ;;  %v9684_v32 = vld [vmem:[%s11417_s7 + $0x464] ss:$16 sps:$4 sm:$0xff]  }
  0xc6   : > { %6704 = vmatprep.subr.bf16.mxu0 %v9600_v33  ;;  %7360 = vmatprep.subr.bf16.mxu1 %v9603_v34  ;;  %v9687_v33 = vld [vmem:[%s11417_s7 + $0x46c] ss:$16 sps:$4 sm:$0xff]   ;;  %v9682_v34 = vld [vmem:[%s11417_s7 + $0x460] ss:$16 sps:$4 sm:$0xff]  }
  0xc9   : > { %6705 = vmatpush1.bf16.msra.mxu0 %v9598_v35  ;;  %7361 = vmatpush1.bf16.msra.mxu1 %v9601_v36  ;;  %v9685_v35 = vld [vmem:[%s11417_s7 + $0x468] ss:$16 sps:$4 sm:$0xff]   ;;  %v9690_v36 = vld [vmem:[%s11417_s7 + $0x484] ss:$16 sps:$4 sm:$0xff]  }
  0xca   : > { %6706 = vmatprep.subr.bf16.mxu0 %v9606_v37  ;;  %7362 = vmatprep.subr.bf16.mxu1 %v9609_v38  ;;  %v9693_v37 = vld [vmem:[%s11417_s7 + $0x48c] ss:$16 sps:$4 sm:$0xff]   ;;  %v9688_v38 = vld [vmem:[%s11417_s7 + $0x480] ss:$16 sps:$4 sm:$0xff]  }
  0xcd   : > { %6707 = vmatpush1.bf16.msra.mxu0 %v9604_v39  ;;  %7363 = vmatpush1.bf16.msra.mxu1 %v9607_v40  ;;  %v9691_v39 = vld [vmem:[%s11417_s7 + $0x488] ss:$16 sps:$4 sm:$0xff]   ;;  %v9696_v40 = vld [vmem:[%s11417_s7 + $0x4a4] ss:$16 sps:$4 sm:$0xff]  }
  0xce   : > { %6708 = vmatprep.subr.bf16.mxu0 %v9612_v41  ;;  %7364 = vmatprep.subr.bf16.mxu1 %v9615_v42  ;;  %v9699_v41 = vld [vmem:[%s11417_s7 + $0x4ac] ss:$16 sps:$4 sm:$0xff]   ;;  %v9694_v42 = vld [vmem:[%s11417_s7 + $0x4a0] ss:$16 sps:$4 sm:$0xff]  }
  0xd1   : > { %6709 = vmatpush1.bf16.msra.mxu0 %v9610_v43  ;;  %7365 = vmatpush1.bf16.msra.mxu1 %v9613_v45  ;;  %v9697_v43 = vld [vmem:[%s11417_s7 + $0x4a8] ss:$16 sps:$4 sm:$0xff]   ;;  %v9702_v45 = vld [vmem:[%s11417_s7 + $0x4c4] ss:$16 sps:$4 sm:$0xff]  }
  0xd2   : > { %6710 = vmatprep.subr.bf16.mxu0 %v9618_v46  ;;  %7366 = vmatprep.subr.bf16.mxu1 %v9621_v47  ;;  %v9705_v46 = vld [vmem:[%s11417_s7 + $0x4cc] ss:$16 sps:$4 sm:$0xff]   ;;  %v9700_v47 = vld [vmem:[%s11417_s7 + $0x4c0] ss:$16 sps:$4 sm:$0xff]  }
  0xd5   : > { %6711 = vmatpush1.bf16.msra.mxu0 %v9616_v48  ;;  %7367 = vmatpush1.bf16.msra.mxu1 %v9619_v49  ;;  %v9703_v48 = vld [vmem:[%s11417_s7 + $0x4c8] ss:$16 sps:$4 sm:$0xff]   ;;  %v9708_v49 = vld [vmem:[%s11417_s7 + $0x4e4] ss:$16 sps:$4 sm:$0xff]  }
  0xd6   : > { %6712 = vmatprep.subr.bf16.mxu0 %v9624_v51  ;;  %7368 = vmatprep.subr.bf16.mxu1 %v9627_v52  ;;  %v9711_v51 = vld [vmem:[%s11417_s7 + $0x4ec] ss:$16 sps:$4 sm:$0xff]   ;;  %v9706_v52 = vld [vmem:[%s11417_s7 + $0x4e0] ss:$16 sps:$4 sm:$0xff]  }
  0xd9   : > { %6713 = vmatpush1.bf16.msra.mxu0 %v9622_v54  ;;  %7369 = vmatpush1.bf16.msra.mxu1 %v9625_v55  ;;  %v9709_v54 = vld [vmem:[%s11417_s7 + $0x4e8] ss:$16 sps:$4 sm:$0xff]   ;;  %v9714_v55 = vld [vmem:[%s11417_s7 + $0x504] ss:$16 sps:$4 sm:$0xff]  }
  0xda   : > { %6714 = vmatprep.subr.bf16.mxu0 %v9630_v56  ;;  %7370 = vmatprep.subr.bf16.mxu1 %v9633_v57  ;;  %v9717_v56 = vld [vmem:[%s11417_s7 + $0x50c] ss:$16 sps:$4 sm:$0xff]   ;;  %v9712_v57 = vld [vmem:[%s11417_s7 + $0x500] ss:$16 sps:$4 sm:$0xff]  }
  0xdd   : > { %6715 = vmatpush1.bf16.msra.mxu0 %v9628_v58  ;;  %7371 = vmatpush1.bf16.msra.mxu1 %v9631_v59  ;;  %v9715_v58 = vld [vmem:[%s11417_s7 + $0x508] ss:$16 sps:$4 sm:$0xff]   ;;  %v9720_v59 = vld [vmem:[%s11417_s7 + $0x524] ss:$16 sps:$4 sm:$0xff]  }
  0xde   : > { %6716 = vmatprep.subr.bf16.mxu0 %v9636_v60  ;;  %7372 = vmatprep.subr.bf16.mxu1 %v9639_v61  ;;  %v9723_v60 = vld [vmem:[%s11417_s7 + $0x52c] ss:$16 sps:$4 sm:$0xff]   ;;  %v9718_v61 = vld [vmem:[%s11417_s7 + $0x520] ss:$16 sps:$4 sm:$0xff]  }
  0xe1   : > { %6717 = vmatpush1.bf16.msra.mxu0 %v9634_v62  ;;  %7373 = vmatpush1.bf16.msra.mxu1 %v9637_v63  ;;  %v9721_v62 = vld [vmem:[%s11417_s7 + $0x528] ss:$16 sps:$4 sm:$0xff]   ;;  %v9726_v63 = vld [vmem:[%s11417_s7 + $0x544] ss:$16 sps:$4 sm:$0xff]  }
  0xe2   : > { %6718 = vmatprep.subr.bf16.mxu0 %v9642_v0  ;;  %7374 = vmatprep.subr.bf16.mxu1 %v9645_v1  ;;  %v9729_v0 = vld [vmem:[%s11417_s7 + $0x54c] ss:$16 sps:$4 sm:$0xff]   ;;  %v9724_v1 = vld [vmem:[%s11417_s7 + $0x540] ss:$16 sps:$4 sm:$0xff]  }
  0xe5   : > { %6719 = vmatpush1.bf16.msra.mxu0 %v9640_v2  ;;  %7375 = vmatpush1.bf16.msra.mxu1 %v9643_v3  ;;  %v9727_v2 = vld [vmem:[%s11417_s7 + $0x548] ss:$16 sps:$4 sm:$0xff]   ;;  %v9732_v3 = vld [vmem:[%s11417_s7 + $0x564] ss:$16 sps:$4 sm:$0xff]  }
  0xe6   : > { %6720 = vmatprep.subr.bf16.mxu0 %v9648_v4  ;;  %7376 = vmatprep.subr.bf16.mxu1 %v9651_v5  ;;  %v9735_v4 = vld [vmem:[%s11417_s7 + $0x56c] ss:$16 sps:$4 sm:$0xff]   ;;  %v9730_v5 = vld [vmem:[%s11417_s7 + $0x560] ss:$16 sps:$4 sm:$0xff]  }
  0xe9   : > { %6721 = vmatpush1.bf16.msra.mxu0 %v9646_v6  ;;  %7377 = vmatpush1.bf16.msra.mxu1 %v9649_v7  ;;  %v9733_v6 = vld [vmem:[%s11417_s7 + $0x568] ss:$16 sps:$4 sm:$0xff]   ;;  %v9738_v7 = vld [vmem:[%s11417_s7 + $0x584] ss:$16 sps:$4 sm:$0xff]  }
  0xea   : > { %6722 = vmatprep.subr.bf16.mxu0 %v9654_v8  ;;  %7378 = vmatprep.subr.bf16.mxu1 %v9657_v9  ;;  %v9741_v8 = vld [vmem:[%s11417_s7 + $0x58c] ss:$16 sps:$4 sm:$0xff]   ;;  %v9736_v9 = vld [vmem:[%s11417_s7 + $0x580] ss:$16 sps:$4 sm:$0xff]  }
  0xed   : > { %6723 = vmatpush1.bf16.msra.mxu0 %v9652_v11  ;;  %7379 = vmatpush1.bf16.msra.mxu1 %v9655_v12  ;;  %v9744_v11 = vld [vmem:[%s11417_s7 + $0x5a4] ss:$16 sps:$4 sm:$0xff]   ;;  %v9747_v12 = vld [vmem:[%s11417_s7 + $0x5ac] ss:$16 sps:$4 sm:$0xff]  }
  0xee   : > { %6724 = vmatprep.subr.bf16.mxu0 %v9660_v13  ;;  %7380 = vmatprep.subr.bf16.mxu1 %v9663_v15  ;;  %v9742_v13 = vld [vmem:[%s11417_s7 + $0x5a0] ss:$16 sps:$4 sm:$0xff]   ;;  %v9745_v15 = vld [vmem:[%s11417_s7 + $0x5a8] ss:$16 sps:$4 sm:$0xff]  }
  0xf1   : > { %6725 = vmatpush1.bf16.msra.mxu0 %v9658_v17  ;;  %7381 = vmatpush1.bf16.msra.mxu1 %v9661_v53  ;;  %v9750_v17 = vld [vmem:[%s11417_s7 + $0x5c4] ss:$16 sps:$4 sm:$0xff]   ;;  %v9753_v53 = vld [vmem:[%s11417_s7 + $0x5cc] ss:$16 sps:$4 sm:$0xff]  }
  0xf2   : > { %6735 = vmatprep.subr.bf16.mxu0 %v9666_v18  ;;  %7391 = vmatprep.subr.bf16.mxu1 %v9669_v19  ;;  %v9748_v18 = vld [vmem:[%s11417_s7 + $0x5c0] ss:$16 sps:$4 sm:$0xff]   ;;  %v9751_v19 = vld [vmem:[%s11417_s7 + $0x5c8] ss:$16 sps:$4 sm:$0xff]  }
  0xf4   : > { %6727 = vmatmul.mubr.bf16.vlgmr.msra.gmra.mrb[0].mxu0 %v1350_v22  ;;  %7383 = vmatmul.mubr.bf16.vlgmr.msra.gmra.mrb[0].mxu1 %v1350_v22  ;;  %v9754_v22 = vld [vmem:[%s11417_s7 + $0x5e0] ss:$16 sps:$4 sm:$0xff]  }
  0xf5   : > { %6736 = vmatpush1.bf16.msra.mxu0 %v9664_v21  ;;  %7392 = vmatpush1.bf16.msra.mxu1 %v9667_v23  ;;  %v9759_v21 = vld [vmem:[%s11417_s7 + $0x5ec] ss:$16 sps:$4 sm:$0xff]   ;;  %v9757_v23 = vld [vmem:[%s11417_s7 + $0x5e8] ss:$16 sps:$4 sm:$0xff]  }
  0xf6   : > { %6737 = vmatprep.subr.bf16.mxu0 %v9672_v24  ;;  %7393 = vmatprep.subr.bf16.mxu1 %v9675_v25  ;;  %v9763_v24 = vld [vmem:[%s11417_s7 + $0x604] ss:$16 sps:$4 sm:$0xff]   ;;  %v9766_v25 = vld [vmem:[%s11417_s7 + $0x60c] ss:$16 sps:$4 sm:$0xff]  }
  0xf7   : > { %6767 = vmatprep.mubr.bf16.mxu0 %v11605_v26  ;;  %7423 = vmatprep.mubr.bf16.mxu1 %v11605_v26 }
  0xf9   : > { %6738 = vmatpush1.bf16.msra.mxu0 %v9670_v27  ;;  %7394 = vmatpush1.bf16.msra.mxu1 %v9673_v14  ;;  %v9761_v27 = vld [vmem:[%s11417_s7 + $0x600] ss:$16 sps:$4 sm:$0xff]   ;;  %v11672_v14 = vrot.slane %v11590_v16, %v11492_v50 }
  0xfa   : > { %6739 = vmatprep.subr.bf16.mxu0 %v9678_v28  ;;  %7395 = vmatprep.subr.bf16.mxu1 %v9681_v29  ;;  %v9764_v28 = vld [vmem:[%s11417_s7 + $0x608] ss:$16 sps:$4 sm:$0xff]   ;;  %v9769_v29 = vld [vmem:[%s11417_s7 + $0x624] ss:$16 sps:$4 sm:$0xff]   ;;  %v9767_v16 = vld [vmem:[%s11417_s7 + $0x620] ss:$16 sps:$4 sm:$0xff]  }
  0xfd   : > { %6740 = vmatpush1.bf16.msra.mxu0 %v9676_v30  ;;  %7396 = vmatpush1.bf16.msra.mxu1 %v9679_v31  ;;  %v9772_v30 = vld [vmem:[%s11417_s7 + $0x62c] ss:$16 sps:$4 sm:$0xff]   ;;  %v1353_v31 = vcombine.high %v11605_v26, %v11605_v26  ;;  %v9773_v26 = vld [vmem:[%s11417_s7 + $0x640] ss:$16 sps:$4 sm:$0xff]  }
  0xfe   : > { %6741 = vmatprep.subr.bf16.mxu0 %v9684_v32  ;;  %7397 = vmatprep.subr.bf16.mxu1 %v9687_v33  ;;  %v9770_v32 = vld [vmem:[%s11417_s7 + $0x628] ss:$16 sps:$4 sm:$0xff]   ;;  %v9775_v33 = vld [vmem:[%s11417_s7 + $0x644] ss:$16 sps:$4 sm:$0xff]  }
 0x101   : > { %6742 = vmatpush1.bf16.msra.mxu0 %v9682_v34  ;;  %7398 = vmatpush1.bf16.msra.mxu1 %v9685_v35  ;;  %v9778_v34 = vld [vmem:[%s11417_s7 + $0x64c] ss:$16 sps:$4 sm:$0xff]   ;;  %v9776_v35 = vld [vmem:[%s11417_s7 + $0x648] ss:$16 sps:$4 sm:$0xff]  }
 0x102   : > { %6743 = vmatprep.subr.bf16.mxu0 %v9690_v36  ;;  %7399 = vmatprep.subr.bf16.mxu1 %v9693_v37  ;;  %v9781_v36 = vld [vmem:[%s11417_s7 + $0x664] ss:$16 sps:$4 sm:$0xff]   ;;  %v9784_v37 = vld [vmem:[%s11417_s7 + $0x66c] ss:$16 sps:$4 sm:$0xff]  }
 0x105   : > { %6744 = vmatpush1.bf16.msra.mxu0 %v9688_v38  ;;  %7400 = vmatpush1.bf16.msra.mxu1 %v9691_v39  ;;  %v9779_v38 = vld [vmem:[%s11417_s7 + $0x660] ss:$16 sps:$4 sm:$0xff]   ;;  %v9782_v39 = vld [vmem:[%s11417_s7 + $0x668] ss:$16 sps:$4 sm:$0xff]  }
 0x106   : > { %6745 = vmatprep.subr.bf16.mxu0 %v9696_v40  ;;  %7401 = vmatprep.subr.bf16.mxu1 %v9699_v41  ;;  %v9787_v40 = vld [vmem:[%s11417_s7 + $0x684] ss:$16 sps:$4 sm:$0xff]   ;;  %v9790_v41 = vld [vmem:[%s11417_s7 + $0x68c] ss:$16 sps:$4 sm:$0xff]  }
 0x109   : > { %6746 = vmatpush1.bf16.msra.mxu0 %v9694_v42  ;;  %7402 = vmatpush1.bf16.msra.mxu1 %v9697_v43  ;;  %v9785_v42 = vld [vmem:[%s11417_s7 + $0x680] ss:$16 sps:$4 sm:$0xff]   ;;  %v9788_v43 = vld [vmem:[%s11417_s7 + $0x688] ss:$16 sps:$4 sm:$0xff]  }
 0x10a   : > { %6747 = vmatprep.subr.bf16.mxu0 %v9702_v45  ;;  %7403 = vmatprep.subr.bf16.mxu1 %v9705_v46  ;;  %v9793_v45 = vld [vmem:[%s11417_s7 + $0x6a4] ss:$16 sps:$4 sm:$0xff]   ;;  %v9796_v46 = vld [vmem:[%s11417_s7 + $0x6ac] ss:$16 sps:$4 sm:$0xff]  }
 0x10d   : > { %6748 = vmatpush1.bf16.msra.mxu0 %v9700_v47  ;;  %7404 = vmatpush1.bf16.msra.mxu1 %v9703_v48  ;;  %v9791_v47 = vld [vmem:[%s11417_s7 + $0x6a0] ss:$16 sps:$4 sm:$0xff]   ;;  %v9794_v48 = vld [vmem:[%s11417_s7 + $0x6a8] ss:$16 sps:$4 sm:$0xff]  }
 0x10e   : > { %6749 = vmatprep.subr.bf16.mxu0 %v9708_v49  ;;  %7405 = vmatprep.subr.bf16.mxu1 %v9711_v51  ;;  %v9799_v49 = vld [vmem:[%s11417_s7 + $0x6c4] ss:$16 sps:$4 sm:$0xff]   ;;  %v9802_v51 = vld [vmem:[%s11417_s7 + $0x6cc] ss:$16 sps:$4 sm:$0xff]  }
 0x111   : > { %6750 = vmatpush1.bf16.msra.mxu0 %v9706_v52  ;;  %7406 = vmatpush1.bf16.msra.mxu1 %v9709_v54  ;;  %v9797_v52 = vld [vmem:[%s11417_s7 + $0x6c0] ss:$16 sps:$4 sm:$0xff]   ;;  %v9800_v54 = vld [vmem:[%s11417_s7 + $0x6c8] ss:$16 sps:$4 sm:$0xff]  }
 0x112   : > { %6751 = vmatprep.subr.bf16.mxu0 %v9714_v55  ;;  %7407 = vmatprep.subr.bf16.mxu1 %v9717_v56  ;;  %v9805_v55 = vld [vmem:[%s11417_s7 + $0x6e4] ss:$16 sps:$4 sm:$0xff]   ;;  %v9808_v56 = vld [vmem:[%s11417_s7 + $0x6ec] ss:$16 sps:$4 sm:$0xff]  }
 0x115   : > { %6752 = vmatpush1.bf16.msra.mxu0 %v9712_v57  ;;  %7408 = vmatpush1.bf16.msra.mxu1 %v9715_v58  ;;  %v9803_v57 = vld [vmem:[%s11417_s7 + $0x6e0] ss:$16 sps:$4 sm:$0xff]   ;;  %v9806_v58 = vld [vmem:[%s11417_s7 + $0x6e8] ss:$16 sps:$4 sm:$0xff]  }
 0x116   : > { %6753 = vmatprep.subr.bf16.mxu0 %v9720_v59  ;;  %7409 = vmatprep.subr.bf16.mxu1 %v9723_v60  ;;  %v9811_v59 = vld [vmem:[%s11417_s7 + $0x704] ss:$16 sps:$4 sm:$0xff]   ;;  %v9814_v60 = vld [vmem:[%s11417_s7 + $0x70c] ss:$16 sps:$4 sm:$0xff]  }
 0x119   : > { %6754 = vmatpush1.bf16.msra.mxu0 %v9718_v61  ;;  %7410 = vmatpush1.bf16.msra.mxu1 %v9721_v62  ;;  %v9809_v61 = vld [vmem:[%s11417_s7 + $0x700] ss:$16 sps:$4 sm:$0xff]   ;;  %v9812_v62 = vld [vmem:[%s11417_s7 + $0x708] ss:$16 sps:$4 sm:$0xff]  }
 0x11a   : > { %6755 = vmatprep.subr.bf16.mxu0 %v9726_v63  ;;  %7411 = vmatprep.subr.bf16.mxu1 %v9729_v0  ;;  %v9817_v63 = vld [vmem:[%s11417_s7 + $0x724] ss:$16 sps:$4 sm:$0xff]   ;;  %v9820_v0 = vld [vmem:[%s11417_s7 + $0x72c] ss:$16 sps:$4 sm:$0xff]  }
 0x11d   : > { %6756 = vmatpush1.bf16.msra.mxu0 %v9724_v1  ;;  %7412 = vmatpush1.bf16.msra.mxu1 %v9727_v2  ;;  %v9815_v1 = vld [vmem:[%s11417_s7 + $0x720] ss:$16 sps:$4 sm:$0xff]   ;;  %v9818_v2 = vld [vmem:[%s11417_s7 + $0x728] ss:$16 sps:$4 sm:$0xff]  }
 0x11e   : > { %6757 = vmatprep.subr.bf16.mxu0 %v9732_v3  ;;  %7413 = vmatprep.subr.bf16.mxu1 %v9735_v4  ;;  %v9823_v3 = vld [vmem:[%s11417_s7 + $0x744] ss:$16 sps:$4 sm:$0xff]   ;;  %v9826_v4 = vld [vmem:[%s11417_s7 + $0x74c] ss:$16 sps:$4 sm:$0xff]  }
 0x121   : > { %6758 = vmatpush1.bf16.msra.mxu0 %v9730_v5  ;;  %7414 = vmatpush1.bf16.msra.mxu1 %v9733_v6  ;;  %v9821_v5 = vld [vmem:[%s11417_s7 + $0x740] ss:$16 sps:$4 sm:$0xff]   ;;  %v9824_v6 = vld [vmem:[%s11417_s7 + $0x748] ss:$16 sps:$4 sm:$0xff]  }
 0x122   : > { %6759 = vmatprep.subr.bf16.mxu0 %v9738_v7  ;;  %7415 = vmatprep.subr.bf16.mxu1 %v9741_v8  ;;  %v9829_v7 = vld [vmem:[%s11417_s7 + $0x764] ss:$16 sps:$4 sm:$0xff]   ;;  %v9832_v8 = vld [vmem:[%s11417_s7 + $0x76c] ss:$16 sps:$4 sm:$0xff]  }
 0x125   : > { %6760 = vmatpush1.bf16.msra.mxu0 %v9736_v9  ;;  %7416 = vmatpush1.bf16.msra.mxu1 %v9739_v10  ;;  %v9827_v9 = vld [vmem:[%s11417_s7 + $0x760] ss:$16 sps:$4 sm:$0xff]   ;;  %v9830_v10 = vld [vmem:[%s11417_s7 + $0x768] ss:$16 sps:$4 sm:$0xff]  }
 0x126   : > { %6761 = vmatprep.subr.bf16.mxu0 %v9744_v11  ;;  %7417 = vmatprep.subr.bf16.mxu1 %v9747_v12  ;;  %v9835_v11 = vld [vmem:[%s11417_s7 + $0x784] ss:$16 sps:$4 sm:$0xff]   ;;  %v9838_v12 = vld [vmem:[%s11417_s7 + $0x78c] ss:$16 sps:$4 sm:$0xff]  }
 0x129   : > { %6762 = vmatpush1.bf16.msra.mxu0 %v9742_v13  ;;  %7418 = vmatpush1.bf16.msra.mxu1 %v9745_v15  ;;  %v9833_v13 = vld [vmem:[%s11417_s7 + $0x780] ss:$16 sps:$4 sm:$0xff]   ;;  %v9836_v15 = vld [vmem:[%s11417_s7 + $0x788] ss:$16 sps:$4 sm:$0xff]  }
 0x12a   : > { %6763 = vmatprep.subr.bf16.mxu0 %v9750_v17  ;;  %7419 = vmatprep.subr.bf16.mxu1 %v9753_v53  ;;  %v9841_v17 = vld [vmem:[%s11417_s7 + $0x7a4] ss:$16 sps:$4 sm:$0xff]   ;;  %v9844_v53 = vld [vmem:[%s11417_s7 + $0x7ac] ss:$16 sps:$4 sm:$0xff]  }
 0x12d   : > { %6764 = vmatpush1.bf16.msra.mxu0 %v9748_v18  ;;  %7420 = vmatpush1.bf16.msra.mxu1 %v9751_v19  ;;  %v9839_v18 = vld [vmem:[%s11417_s7 + $0x7a0] ss:$16 sps:$4 sm:$0xff]   ;;  %v9842_v19 = vld [vmem:[%s11417_s7 + $0x7a8] ss:$16 sps:$4 sm:$0xff]  }
 0x12e   : > { %6765 = vmatprep.subr.bf16.mxu0 %v9756_v20  ;;  %7421 = vmatprep.subr.bf16.mxu1 %v9759_v21  ;;  %v9847_v20 = vld [vmem:[%s11417_s7 + $0x7c4] ss:$16 sps:$4 sm:$0xff]   ;;  %v9850_v21 = vld [vmem:[%s11417_s7 + $0x7cc] ss:$16 sps:$4 sm:$0xff]  }
 0x131   : > { %6766 = vmatpush1.bf16.msra.mxu0 %v9754_v22  ;;  %7422 = vmatpush1.bf16.msra.mxu1 %v9757_v23  ;;  %v11734_v22 = vld.sshfl [vmem:[%s11438_s12 + $0x8] sm:$0xff pattern:$0x75316420] }
 0x132   : > { %6776 = vmatprep.subr.bf16.mxu0 %v9763_v24  ;;  %7432 = vmatprep.subr.bf16.mxu1 %v9766_v25  ;;  %v9845_v23 = vld [vmem:[%s11417_s7 + $0x7c0] ss:$16 sps:$4 sm:$0xff]   ;;  %v9848_v24 = vld [vmem:[%s11417_s7 + $0x7c8] ss:$16 sps:$4 sm:$0xff]   ;;  %v9853_v25 = vld [vmem:[%s11417_s7 + $0x7e4] ss:$16 sps:$4 sm:$0xff]  }
 0x134   : > { %6768 = vmatmul.mubr.bf16.vlgmr.msra.gmra.mrb[0].mxu0 %v11672_v14  ;;  %7424 = vmatmul.mubr.bf16.vlgmr.msra.gmra.mrb[0].mxu1 %v11672_v14 }
 0x135   : > { %6777 = vmatpush1.bf16.msra.mxu0 %v9761_v27  ;;  %7433 = vmatpush1.bf16.msra.mxu1 %v9764_v28  ;;  %v9856_v27 = vld [vmem:[%s11417_s7 + $0x7ec] ss:$16 sps:$4 sm:$0xff]   ;;  %v9851_v28 = vld [vmem:[%s11417_s7 + $0x7e0] ss:$16 sps:$4 sm:$0xff]  }
 0x136   : > { %6778 = vmatprep.subr.bf16.mxu0 %v9769_v29  ;;  %7434 = vmatprep.subr.bf16.mxu1 %v9772_v30  ;;  %v9854_v29 = vld [vmem:[%s11417_s7 + $0x7e8] ss:$16 sps:$4 sm:$0xff]   ;;  %v9859_v30 = vld [vmem:[%s11417_s7 + $0x804] ss:$16 sps:$4 sm:$0xff]  }
 0x137   : > { %6808 = vmatprep.mubr.bf16.mxu0 %v1353_v31  ;;  %7464 = vmatprep.mubr.bf16.mxu1 %v1353_v31  ;;  %v9862_v31 = vld [vmem:[%s11417_s7 + $0x80c] ss:$16 sps:$4 sm:$0xff]  }
 0x139   : > { %6779 = vmatpush1.bf16.msra.mxu0 %v9767_v16  ;;  %7435 = vmatpush1.bf16.msra.mxu1 %v9770_v32  ;;  %v1369_v16 = vcombine.high %v11734_v22, %v11734_v22  ;;  %v1351_v32 = vcombine.high %v11672_v14, %v11672_v14  ;;  %v9863_v14 = vld [vmem:[%s11417_s7 + $0x820] ss:$16 sps:$4 sm:$0xff]  }
 0x13a   : > { %6780 = vmatprep.subr.bf16.mxu0 %v9775_v33  ;;  %7436 = vmatprep.subr.bf16.mxu1 %v9778_v34  ;;  %v9857_v33 = vld [vmem:[%s11417_s7 + $0x800] ss:$16 sps:$4 sm:$0xff]   ;;  %v9860_v34 = vld [vmem:[%s11417_s7 + $0x808] ss:$16 sps:$4 sm:$0xff]  }
 0x13d   : > { %6781 = vmatpush1.bf16.msra.mxu0 %v9773_v26  ;;  %7437 = vmatpush1.bf16.msra.mxu1 %v9776_v35  ;;  %v9865_v26 = vld [vmem:[%s11417_s7 + $0x824] ss:$16 sps:$4 sm:$0xff]   ;;  %v9868_v35 = vld [vmem:[%s11417_s7 + $0x82c] ss:$16 sps:$4 sm:$0xff]  }
 0x13e   : > { %6782 = vmatprep.subr.bf16.mxu0 %v9781_v36  ;;  %7438 = vmatprep.subr.bf16.mxu1 %v9784_v37  ;;  %v11753_v36 = vrot.slane %v1369_v16, %v11492_v50  ;;  %v9866_v37 = vld [vmem:[%s11417_s7 + $0x828] ss:$16 sps:$4 sm:$0xff]   ;;  %v9949_v16 = vld [vmem:[%s11417_s7 + $0x9e4] ss:$16 sps:$4 sm:$0xff]  }
 0x141   : > { %6783 = vmatpush1.bf16.msra.mxu0 %v9779_v38  ;;  %7439 = vmatpush1.bf16.msra.mxu1 %v9782_v39  ;;  %v9871_v38 = vld [vmem:[%s11417_s7 + $0x844] ss:$16 sps:$4 sm:$0xff]   ;;  %v9874_v39 = vld [vmem:[%s11417_s7 + $0x84c] ss:$16 sps:$4 sm:$0xff]  }
 0x142   : > { %6784 = vmatprep.subr.bf16.mxu0 %v9787_v40  ;;  %7440 = vmatprep.subr.bf16.mxu1 %v9790_v41  ;;  %v9869_v40 = vld [vmem:[%s11417_s7 + $0x840] ss:$16 sps:$4 sm:$0xff]   ;;  %v9872_v41 = vld [vmem:[%s11417_s7 + $0x848] ss:$16 sps:$4 sm:$0xff]  }
 0x145   : > { %6785 = vmatpush1.bf16.msra.mxu0 %v9785_v42  ;;  %7441 = vmatpush1.bf16.msra.mxu1 %v9788_v43  ;;  %v9877_v42 = vld [vmem:[%s11417_s7 + $0x864] ss:$16 sps:$4 sm:$0xff]   ;;  %v9880_v43 = vld [vmem:[%s11417_s7 + $0x86c] ss:$16 sps:$4 sm:$0xff]  }
 0x146   : > { %6786 = vmatprep.subr.bf16.mxu0 %v9793_v45  ;;  %7442 = vmatprep.subr.bf16.mxu1 %v9796_v46  ;;  %v9875_v45 = vld [vmem:[%s11417_s7 + $0x860] ss:$16 sps:$4 sm:$0xff]   ;;  %v9878_v46 = vld [vmem:[%s11417_s7 + $0x868] ss:$16 sps:$4 sm:$0xff]  }
 0x149   : > { %6787 = vmatpush1.bf16.msra.mxu0 %v9791_v47  ;;  %7443 = vmatpush1.bf16.msra.mxu1 %v9794_v48  ;;  %v9883_v47 = vld [vmem:[%s11417_s7 + $0x884] ss:$16 sps:$4 sm:$0xff]   ;;  %v9886_v48 = vld [vmem:[%s11417_s7 + $0x88c] ss:$16 sps:$4 sm:$0xff]  }
 0x14a   : > { %6788 = vmatprep.subr.bf16.mxu0 %v9799_v49  ;;  %7444 = vmatprep.subr.bf16.mxu1 %v9802_v51  ;;  %v9881_v49 = vld [vmem:[%s11417_s7 + $0x880] ss:$16 sps:$4 sm:$0xff]   ;;  %v9884_v51 = vld [vmem:[%s11417_s7 + $0x888] ss:$16 sps:$4 sm:$0xff]  }
 0x14d   : > { %6789 = vmatpush1.bf16.msra.mxu0 %v9797_v52  ;;  %7445 = vmatpush1.bf16.msra.mxu1 %v9800_v54  ;;  %v9889_v52 = vld [vmem:[%s11417_s7 + $0x8a4] ss:$16 sps:$4 sm:$0xff]   ;;  %v9892_v54 = vld [vmem:[%s11417_s7 + $0x8ac] ss:$16 sps:$4 sm:$0xff]  }
 0x14e   : > { %6790 = vmatprep.subr.bf16.mxu0 %v9805_v55  ;;  %7446 = vmatprep.subr.bf16.mxu1 %v9808_v56  ;;  %v9887_v55 = vld [vmem:[%s11417_s7 + $0x8a0] ss:$16 sps:$4 sm:$0xff]   ;;  %v9890_v56 = vld [vmem:[%s11417_s7 + $0x8a8] ss:$16 sps:$4 sm:$0xff]  }
 0x151   : > { %6791 = vmatpush1.bf16.msra.mxu0 %v9803_v57  ;;  %7447 = vmatpush1.bf16.msra.mxu1 %v9806_v58  ;;  %v9895_v57 = vld [vmem:[%s11417_s7 + $0x8c4] ss:$16 sps:$4 sm:$0xff]   ;;  %v9898_v58 = vld [vmem:[%s11417_s7 + $0x8cc] ss:$16 sps:$4 sm:$0xff]  }
 0x152   : > { %6792 = vmatprep.subr.bf16.mxu0 %v9811_v59  ;;  %7448 = vmatprep.subr.bf16.mxu1 %v9814_v60  ;;  %v9893_v59 = vld [vmem:[%s11417_s7 + $0x8c0] ss:$16 sps:$4 sm:$0xff]   ;;  %v9896_v60 = vld [vmem:[%s11417_s7 + $0x8c8] ss:$16 sps:$4 sm:$0xff]  }
 0x155   : > { %6793 = vmatpush1.bf16.msra.mxu0 %v9809_v61  ;;  %7449 = vmatpush1.bf16.msra.mxu1 %v9812_v62  ;;  %v9901_v61 = vld [vmem:[%s11417_s7 + $0x8e4] ss:$16 sps:$4 sm:$0xff]   ;;  %v9904_v62 = vld [vmem:[%s11417_s7 + $0x8ec] ss:$16 sps:$4 sm:$0xff]  }
 0x156   : > { %6794 = vmatprep.subr.bf16.mxu0 %v9817_v63  ;;  %7450 = vmatprep.subr.bf16.mxu1 %v9820_v0  ;;  %v9899_v63 = vld [vmem:[%s11417_s7 + $0x8e0] ss:$16 sps:$4 sm:$0xff]   ;;  %v9902_v0 = vld [vmem:[%s11417_s7 + $0x8e8] ss:$16 sps:$4 sm:$0xff]  }
 0x159   : > { %6795 = vmatpush1.bf16.msra.mxu0 %v9815_v1  ;;  %7451 = vmatpush1.bf16.msra.mxu1 %v9818_v2  ;;  %v9907_v1 = vld [vmem:[%s11417_s7 + $0x904] ss:$16 sps:$4 sm:$0xff]   ;;  %v9910_v2 = vld [vmem:[%s11417_s7 + $0x90c] ss:$16 sps:$4 sm:$0xff]  }
 0x15a   : > { %6796 = vmatprep.subr.bf16.mxu0 %v9823_v3  ;;  %7452 = vmatprep.subr.bf16.mxu1 %v9826_v4  ;;  %v9905_v3 = vld [vmem:[%s11417_s7 + $0x900] ss:$16 sps:$4 sm:$0xff]   ;;  %v9908_v4 = vld [vmem:[%s11417_s7 + $0x908] ss:$16 sps:$4 sm:$0xff]  }
 0x15d   : > { %6797 = vmatpush1.bf16.msra.mxu0 %v9821_v5  ;;  %7453 = vmatpush1.bf16.msra.mxu1 %v9824_v6  ;;  %v9913_v5 = vld [vmem:[%s11417_s7 + $0x924] ss:$16 sps:$4 sm:$0xff]   ;;  %v9916_v6 = vld [vmem:[%s11417_s7 + $0x92c] ss:$16 sps:$4 sm:$0xff]  }
 0x15e   : > { %6798 = vmatprep.subr.bf16.mxu0 %v9829_v7  ;;  %7454 = vmatprep.subr.bf16.mxu1 %v9832_v8  ;;  %v9911_v7 = vld [vmem:[%s11417_s7 + $0x920] ss:$16 sps:$4 sm:$0xff]   ;;  %v9914_v8 = vld [vmem:[%s11417_s7 + $0x928] ss:$16 sps:$4 sm:$0xff]  }
 0x161   : > { %6799 = vmatpush1.bf16.msra.mxu0 %v9827_v9  ;;  %7455 = vmatpush1.bf16.msra.mxu1 %v9830_v10  ;;  %v9919_v9 = vld [vmem:[%s11417_s7 + $0x944] ss:$16 sps:$4 sm:$0xff]   ;;  %v9922_v10 = vld [vmem:[%s11417_s7 + $0x94c] ss:$16 sps:$4 sm:$0xff]  }
 0x162   : > { %6800 = vmatprep.subr.bf16.mxu0 %v9835_v11  ;;  %7456 = vmatprep.subr.bf16.mxu1 %v9838_v12  ;;  %v9917_v11 = vld [vmem:[%s11417_s7 + $0x940] ss:$16 sps:$4 sm:$0xff]   ;;  %v9920_v12 = vld [vmem:[%s11417_s7 + $0x948] ss:$16 sps:$4 sm:$0xff]  }
 0x165   : > { %6801 = vmatpush1.bf16.msra.mxu0 %v9833_v13  ;;  %7457 = vmatpush1.bf16.msra.mxu1 %v9836_v15  ;;  %v9925_v13 = vld [vmem:[%s11417_s7 + $0x964] ss:$16 sps:$4 sm:$0xff]   ;;  %v9928_v15 = vld [vmem:[%s11417_s7 + $0x96c] ss:$16 sps:$4 sm:$0xff]  }
 0x166   : > { %6802 = vmatprep.subr.bf16.mxu0 %v9841_v17  ;;  %7458 = vmatprep.subr.bf16.mxu1 %v9844_v53  ;;  %v9923_v17 = vld [vmem:[%s11417_s7 + $0x960] ss:$16 sps:$4 sm:$0xff]   ;;  %v9926_v53 = vld [vmem:[%s11417_s7 + $0x968] ss:$16 sps:$4 sm:$0xff]  }
 0x169   : > { %6803 = vmatpush1.bf16.msra.mxu0 %v9839_v18  ;;  %7459 = vmatpush1.bf16.msra.mxu1 %v9842_v19  ;;  %v9931_v18 = vld [vmem:[%s11417_s7 + $0x984] ss:$16 sps:$4 sm:$0xff]   ;;  %v9934_v19 = vld [vmem:[%s11417_s7 + $0x98c] ss:$16 sps:$4 sm:$0xff]  }
 0x16a   : > { %6804 = vmatprep.subr.bf16.mxu0 %v9847_v20  ;;  %7460 = vmatprep.subr.bf16.mxu1 %v9850_v21  ;;  %v9929_v20 = vld [vmem:[%s11417_s7 + $0x980] ss:$16 sps:$4 sm:$0xff]   ;;  %v9932_v21 = vld [vmem:[%s11417_s7 + $0x988] ss:$16 sps:$4 sm:$0xff]  }
 0x16d   : > { %6805 = vmatpush1.bf16.msra.mxu0 %v9845_v23  ;;  %7461 = vmatpush1.bf16.msra.mxu1 %v9848_v24  ;;  %v9937_v23 = vld [vmem:[%s11417_s7 + $0x9a4] ss:$16 sps:$4 sm:$0xff]   ;;  %v9940_v24 = vld [vmem:[%s11417_s7 + $0x9ac] ss:$16 sps:$4 sm:$0xff]  }
 0x16e   : > { %6806 = vmatprep.subr.bf16.mxu0 %v9853_v25  ;;  %7462 = vmatprep.subr.bf16.mxu1 %v9856_v27  ;;  %v9935_v25 = vld [vmem:[%s11417_s7 + $0x9a0] ss:$16 sps:$4 sm:$0xff]   ;;  %v9938_v27 = vld [vmem:[%s11417_s7 + $0x9a8] ss:$16 sps:$4 sm:$0xff]  }
 0x171   : > { %6807 = vmatpush1.bf16.msra.mxu0 %v9851_v28  ;;  %7463 = vmatpush1.bf16.msra.mxu1 %v9854_v29  ;;  %v9943_v28 = vld [vmem:[%s11417_s7 + $0x9c4] ss:$16 sps:$4 sm:$0xff]   ;;  %v9946_v29 = vld [vmem:[%s11417_s7 + $0x9cc] ss:$16 sps:$4 sm:$0xff]  }
 0x172   : > { %6817 = vmatprep.subr.bf16.mxu0 %v9859_v30  ;;  %7473 = vmatprep.subr.bf16.mxu1 %v9862_v31  ;;  %v9941_v30 = vld [vmem:[%s11417_s7 + $0x9c0] ss:$16 sps:$4 sm:$0xff]   ;;  %v9944_v31 = vld [vmem:[%s11417_s7 + $0x9c8] ss:$16 sps:$4 sm:$0xff]  }
 0x174   : > { %6809 = vmatmul.mubr.bf16.vlgmr.msra.gmra.mrb[0].mxu0 %v1351_v32  ;;  %7465 = vmatmul.mubr.bf16.vlgmr.msra.gmra.mrb[0].mxu1 %v1351_v32  ;;  %v9952_v32 = vld [vmem:[%s11417_s7 + $0x9ec] ss:$16 sps:$4 sm:$0xff]  }
 0x175   : > { %6818 = vmatpush1.bf16.msra.mxu0 %v9857_v33  ;;  %7474 = vmatpush1.bf16.msra.mxu1 %v9860_v34  ;;  %v9947_v33 = vld [vmem:[%s11417_s7 + $0x9e0] ss:$16 sps:$4 sm:$0xff]   ;;  %v9950_v34 = vld [vmem:[%s11417_s7 + $0x9e8] ss:$16 sps:$4 sm:$0xff]  }
 0x176   : > { %6819 = vmatprep.subr.bf16.mxu0 %v9865_v26  ;;  %7475 = vmatprep.subr.bf16.mxu1 %v9868_v35  ;;  %v9955_v26 = vld [vmem:[%s11417_s7 + $0xa04] ss:$16 sps:$4 sm:$0xff]   ;;  %v9958_v35 = vld [vmem:[%s11417_s7 + $0xa0c] ss:$16 sps:$4 sm:$0xff]  }
 0x177   : > { %6849 = vmatprep.mubr.bf16.mxu0 %v11753_v36  ;;  %7505 = vmatprep.mubr.bf16.mxu1 %v11753_v36 }
 0x179   : > { %6820 = vmatpush1.bf16.msra.mxu0 %v9863_v14  ;;  %7476 = vmatpush1.bf16.msra.mxu1 %v9866_v37  ;;  %v11819_v14 = vrot.slane %v11734_v22, %v11492_v50  ;;  %v9953_v37 = vld [vmem:[%s11417_s7 + $0xa00] ss:$16 sps:$4 sm:$0xff]  }
 0x17a   : > { %6821 = vmatprep.subr.bf16.mxu0 %v9871_v38  ;;  %7477 = vmatprep.subr.bf16.mxu1 %v9874_v39  ;;  %v9956_v38 = vld [vmem:[%s11417_s7 + $0xa08] ss:$16 sps:$4 sm:$0xff]   ;;  %v9961_v39 = vld [vmem:[%s11417_s7 + $0xa24] ss:$16 sps:$4 sm:$0xff]   ;;  %v9959_v22 = vld [vmem:[%s11417_s7 + $0xa20] ss:$16 sps:$4 sm:$0xff]  }
 0x17d   : > { %6822 = vmatpush1.bf16.msra.mxu0 %v9869_v40  ;;  %7478 = vmatpush1.bf16.msra.mxu1 %v9872_v41  ;;  %v9964_v40 = vld [vmem:[%s11417_s7 + $0xa2c] ss:$16 sps:$4 sm:$0xff]   ;;  %v1401_v41 = vcombine.high %v11753_v36, %v11753_v36  ;;  %v9965_v36 = vld [vmem:[%s11417_s7 + $0xa40] ss:$16 sps:$4 sm:$0xff]  }
 0x17e   : > { %6823 = vmatprep.subr.bf16.mxu0 %v9877_v42  ;;  %7479 = vmatprep.subr.bf16.mxu1 %v9880_v43  ;;  %v9962_v42 = vld [vmem:[%s11417_s7 + $0xa28] ss:$16 sps:$4 sm:$0xff]   ;;  %v9967_v43 = vld [vmem:[%s11417_s7 + $0xa44] ss:$16 sps:$4 sm:$0xff]  }
 0x181   : > { %6824 = vmatpush1.bf16.msra.mxu0 %v9875_v45  ;;  %7480 = vmatpush1.bf16.msra.mxu1 %v9878_v46  ;;  %v9970_v45 = vld [vmem:[%s11417_s7 + $0xa4c] ss:$16 sps:$4 sm:$0xff]   ;;  %v9968_v46 = vld [vmem:[%s11417_s7 + $0xa48] ss:$16 sps:$4 sm:$0xff]  }
 0x182   : > { %6825 = vmatprep.subr.bf16.mxu0 %v9883_v47  ;;  %7481 = vmatprep.subr.bf16.mxu1 %v9886_v48  ;;  %v9973_v47 = vld [vmem:[%s11417_s7 + $0xa64] ss:$16 sps:$4 sm:$0xff]   ;;  %v9976_v48 = vld [vmem:[%s11417_s7 + $0xa6c] ss:$16 sps:$4 sm:$0xff]  }
 0x185   : > { %6826 = vmatpush1.bf16.msra.mxu0 %v9881_v49  ;;  %7482 = vmatpush1.bf16.msra.mxu1 %v9884_v51  ;;  %v9971_v49 = vld [vmem:[%s11417_s7 + $0xa60] ss:$16 sps:$4 sm:$0xff]   ;;  %v9974_v51 = vld [vmem:[%s11417_s7 + $0xa68] ss:$16 sps:$4 sm:$0xff]  }
 0x186   : > { %6827 = vmatprep.subr.bf16.mxu0 %v9889_v52  ;;  %7483 = vmatprep.subr.bf16.mxu1 %v9892_v54  ;;  %v9979_v52 = vld [vmem:[%s11417_s7 + $0xa84] ss:$16 sps:$4 sm:$0xff]   ;;  %v9982_v54 = vld [vmem:[%s11417_s7 + $0xa8c] ss:$16 sps:$4 sm:$0xff]  }
 0x189   : > { %6828 = vmatpush1.bf16.msra.mxu0 %v9887_v55  ;;  %7484 = vmatpush1.bf16.msra.mxu1 %v9890_v56  ;;  %v9977_v55 = vld [vmem:[%s11417_s7 + $0xa80] ss:$16 sps:$4 sm:$0xff]   ;;  %v9980_v56 = vld [vmem:[%s11417_s7 + $0xa88] ss:$16 sps:$4 sm:$0xff]  }
 0x18a   : > { %6829 = vmatprep.subr.bf16.mxu0 %v9895_v57  ;;  %7485 = vmatprep.subr.bf16.mxu1 %v9898_v58  ;;  %v9985_v57 = vld [vmem:[%s11417_s7 + $0xaa4] ss:$16 sps:$4 sm:$0xff]   ;;  %v9988_v58 = vld [vmem:[%s11417_s7 + $0xaac] ss:$16 sps:$4 sm:$0xff]  }
 0x18d   : > { %6830 = vmatpush1.bf16.msra.mxu0 %v9893_v59  ;;  %7486 = vmatpush1.bf16.msra.mxu1 %v9896_v60  ;;  %v9983_v59 = vld [vmem:[%s11417_s7 + $0xaa0] ss:$16 sps:$4 sm:$0xff]   ;;  %v9986_v60 = vld [vmem:[%s11417_s7 + $0xaa8] ss:$16 sps:$4 sm:$0xff]  }
 0x18e   : > { %6831 = vmatprep.subr.bf16.mxu0 %v9901_v61  ;;  %7487 = vmatprep.subr.bf16.mxu1 %v9904_v62  ;;  %v9991_v61 = vld [vmem:[%s11417_s7 + $0xac4] ss:$16 sps:$4 sm:$0xff]   ;;  %v9994_v62 = vld [vmem:[%s11417_s7 + $0xacc] ss:$16 sps:$4 sm:$0xff]  }
 0x191   : > { %6832 = vmatpush1.bf16.msra.mxu0 %v9899_v63  ;;  %7488 = vmatpush1.bf16.msra.mxu1 %v9902_v0  ;;  %v9989_v63 = vld [vmem:[%s11417_s7 + $0xac0] ss:$16 sps:$4 sm:$0xff]   ;;  %v9992_v0 = vld [vmem:[%s11417_s7 + $0xac8] ss:$16 sps:$4 sm:$0xff]  }
 0x192   : > { %6833 = vmatprep.subr.bf16.mxu0 %v9907_v1  ;;  %7489 = vmatprep.subr.bf16.mxu1 %v9910_v2  ;;  %v9997_v1 = vld [vmem:[%s11417_s7 + $0xae4] ss:$16 sps:$4 sm:$0xff]   ;;  %v10000_v2 = vld [vmem:[%s11417_s7 + $0xaec] ss:$16 sps:$4 sm:$0xff]  }
 0x195   : > { %6834 = vmatpush1.bf16.msra.mxu0 %v9905_v3  ;;  %7490 = vmatpush1.bf16.msra.mxu1 %v9908_v4  ;;  %v9995_v3 = vld [vmem:[%s11417_s7 + $0xae0] ss:$16 sps:$4 sm:$0xff]   ;;  %v9998_v4 = vld [vmem:[%s11417_s7 + $0xae8] ss:$16 sps:$4 sm:$0xff]  }
 0x196   : > { %6835 = vmatprep.subr.bf16.mxu0 %v9913_v5  ;;  %7491 = vmatprep.subr.bf16.mxu1 %v9916_v6  ;;  %v10003_v5 = vld [vmem:[%s11417_s7 + $0xb04] ss:$16 sps:$4 sm:$0xff]   ;;  %v10006_v6 = vld [vmem:[%s11417_s7 + $0xb0c] ss:$16 sps:$4 sm:$0xff]  }
 0x199   : > { %6836 = vmatpush1.bf16.msra.mxu0 %v9911_v7  ;;  %7492 = vmatpush1.bf16.msra.mxu1 %v9914_v8  ;;  %v10001_v7 = vld [vmem:[%s11417_s7 + $0xb00] ss:$16 sps:$4 sm:$0xff]   ;;  %v10004_v8 = vld [vmem:[%s11417_s7 + $0xb08] ss:$16 sps:$4 sm:$0xff]  }
 0x19a   : > { %6837 = vmatprep.subr.bf16.mxu0 %v9919_v9  ;;  %7493 = vmatprep.subr.bf16.mxu1 %v9922_v10  ;;  %v10009_v9 = vld [vmem:[%s11417_s7 + $0xb24] ss:$16 sps:$4 sm:$0xff]   ;;  %v10012_v10 = vld [vmem:[%s11417_s7 + $0xb2c] ss:$16 sps:$4 sm:$0xff]  }
 0x19d   : > { %6838 = vmatpush1.bf16.msra.mxu0 %v9917_v11  ;;  %7494 = vmatpush1.bf16.msra.mxu1 %v9920_v12  ;;  %v10007_v11 = vld [vmem:[%s11417_s7 + $0xb20] ss:$16 sps:$4 sm:$0xff]   ;;  %v10010_v12 = vld [vmem:[%s11417_s7 + $0xb28] ss:$16 sps:$4 sm:$0xff]  }
 0x19e   : > { %6839 = vmatprep.subr.bf16.mxu0 %v9925_v13  ;;  %7495 = vmatprep.subr.bf16.mxu1 %v9928_v15  ;;  %v10015_v13 = vld [vmem:[%s11417_s7 + $0xb44] ss:$16 sps:$4 sm:$0xff]   ;;  %v10018_v15 = vld [vmem:[%s11417_s7 + $0xb4c] ss:$16 sps:$4 sm:$0xff]  }
 0x1a1   : > { %6840 = vmatpush1.bf16.msra.mxu0 %v9923_v17  ;;  %7496 = vmatpush1.bf16.msra.mxu1 %v9926_v53  ;;  %v10013_v17 = vld [vmem:[%s11417_s7 + $0xb40] ss:$16 sps:$4 sm:$0xff]   ;;  %v10016_v53 = vld [vmem:[%s11417_s7 + $0xb48] ss:$16 sps:$4 sm:$0xff]  }
 0x1a2   : > { %6841 = vmatprep.subr.bf16.mxu0 %v9931_v18  ;;  %7497 = vmatprep.subr.bf16.mxu1 %v9934_v19  ;;  %v10021_v18 = vld [vmem:[%s11417_s7 + $0xb64] ss:$16 sps:$4 sm:$0xff]   ;;  %v10024_v19 = vld [vmem:[%s11417_s7 + $0xb6c] ss:$16 sps:$4 sm:$0xff]  }
 0x1a5   : > { %6842 = vmatpush1.bf16.msra.mxu0 %v9929_v20  ;;  %7498 = vmatpush1.bf16.msra.mxu1 %v9932_v21  ;;  %v10019_v20 = vld [vmem:[%s11417_s7 + $0xb60] ss:$16 sps:$4 sm:$0xff]   ;;  %v10022_v21 = vld [vmem:[%s11417_s7 + $0xb68] ss:$16 sps:$4 sm:$0xff]  }
 0x1a6   : > { %6843 = vmatprep.subr.bf16.mxu0 %v9937_v23  ;;  %7499 = vmatprep.subr.bf16.mxu1 %v9940_v24  ;;  %v10027_v23 = vld [vmem:[%s11417_s7 + $0xb84] ss:$16 sps:$4 sm:$0xff]   ;;  %v10030_v24 = vld [vmem:[%s11417_s7 + $0xb8c] ss:$16 sps:$4 sm:$0xff]  }
 0x1a9   : > { %6844 = vmatpush1.bf16.msra.mxu0 %v9935_v25  ;;  %7500 = vmatpush1.bf16.msra.mxu1 %v9938_v27  ;;  %v10025_v25 = vld [vmem:[%s11417_s7 + $0xb80] ss:$16 sps:$4 sm:$0xff]   ;;  %v10028_v27 = vld [vmem:[%s11417_s7 + $0xb88] ss:$16 sps:$4 sm:$0xff]  }
 0x1aa   : > { %6845 = vmatprep.subr.bf16.mxu0 %v9943_v28  ;;  %7501 = vmatprep.subr.bf16.mxu1 %v9946_v29  ;;  %v10033_v28 = vld [vmem:[%s11417_s7 + $0xba4] ss:$16 sps:$4 sm:$0xff]   ;;  %v10036_v29 = vld [vmem:[%s11417_s7 + $0xbac] ss:$16 sps:$4 sm:$0xff]  }
 0x1ad   : > { %6846 = vmatpush1.bf16.msra.mxu0 %v9941_v30  ;;  %7502 = vmatpush1.bf16.msra.mxu1 %v9944_v31  ;;  %v10031_v30 = vld [vmem:[%s11417_s7 + $0xba0] ss:$16 sps:$4 sm:$0xff]   ;;  %v10034_v31 = vld [vmem:[%s11417_s7 + $0xba8] ss:$16 sps:$4 sm:$0xff]  }
 0x1ae   : > { %6847 = vmatprep.subr.bf16.mxu0 %v9949_v16  ;;  %7503 = vmatprep.subr.bf16.mxu1 %v9952_v32  ;;  %v10039_v16 = vld [vmem:[%s11417_s7 + $0xbc4] ss:$16 sps:$4 sm:$0xff]   ;;  %v10042_v32 = vld [vmem:[%s11417_s7 + $0xbcc] ss:$16 sps:$4 sm:$0xff]  }
 0x1b1   : > { %6848 = vmatpush1.bf16.msra.mxu0 %v9947_v33  ;;  %7504 = vmatpush1.bf16.msra.mxu1 %v9950_v34  ;;  %v11012_v33 = vld [vmem:[%s11438_s12 + $0x8] sm:$0xff] }
 0x1b2   : > { %6858 = vmatprep.subr.bf16.mxu0 %v9955_v26  ;;  %7514 = vmatprep.subr.bf16.mxu1 %v9958_v35  ;;  %v1354_v34 = vcombine.high %v11012_v33, %v11012_v33  ;;  %v10037_v26 = vld [vmem:[%s11417_s7 + $0xbc0] ss:$16 sps:$4 sm:$0xff]   ;;  %v10040_v35 = vld [vmem:[%s11417_s7 + $0xbc8] ss:$16 sps:$4 sm:$0xff]  }
 0x1b3   : > { %v10121_v33 = vld [vmem:[%s11417_s7 + $0xd80] ss:$16 sps:$4 sm:$0xff]  }
 0x1b4   : > { %6850 = vmatmul.mubr.bf16.vlgmr.msra.gmra.mrb[0].mxu0 %v11819_v14  ;;  %7506 = vmatmul.mubr.bf16.vlgmr.msra.gmra.mrb[0].mxu1 %v11819_v14 }
 0x1b5   : > { %6859 = vmatpush1.bf16.msra.mxu0 %v9953_v37  ;;  %7515 = vmatpush1.bf16.msra.mxu1 %v9956_v38  ;;  %v10045_v37 = vld [vmem:[%s11417_s7 + $0xbe4] ss:$16 sps:$4 sm:$0xff]   ;;  %v10048_v38 = vld [vmem:[%s11417_s7 + $0xbec] ss:$16 sps:$4 sm:$0xff]  }
 0x1b6   : > { %6860 = vmatprep.subr.bf16.mxu0 %v9961_v39  ;;  %7516 = vmatprep.subr.bf16.mxu1 %v9964_v40  ;;  %v11887_v39 = vrot.slane %v1354_v34, %v11492_v50  ;;  %v10043_v40 = vld [vmem:[%s11417_s7 + $0xbe0] ss:$16 sps:$4 sm:$0xff]   ;;  %v10124_v34 = vld [vmem:[%s11417_s7 + $0xd88] ss:$16 sps:$4 sm:$0xff]  }
 0x1b7   : > { %6890 = vmatprep.mubr.bf16.mxu0 %v1401_v41  ;;  %7546 = vmatprep.mubr.bf16.mxu1 %v1401_v41  ;;  %v10046_v41 = vld [vmem:[%s11417_s7 + $0xbe8] ss:$16 sps:$4 sm:$0xff]  }
 0x1b9   : > { %6861 = vmatpush1.bf16.msra.mxu0 %v9959_v22  ;;  %7517 = vmatpush1.bf16.msra.mxu1 %v9962_v42  ;;  %v10051_v22 = vld [vmem:[%s11417_s7 + $0xc04] ss:$16 sps:$4 sm:$0xff]   ;;  %v10054_v42 = vld [vmem:[%s11417_s7 + $0xc0c] ss:$16 sps:$4 sm:$0xff]  }
 0x1ba   : > { %6862 = vmatprep.subr.bf16.mxu0 %v9967_v43  ;;  %7518 = vmatprep.subr.bf16.mxu1 %v9970_v45  ;;  %v1370_v43 = vcombine.high %v11887_v39, %v11887_v39  ;;  %v1399_v45 = vcombine.high %v11819_v14, %v11819_v14  ;;  %v10055_v14 = vld [vmem:[%s11417_s7 + $0xc20] ss:$16 sps:$4 sm:$0xff]  }
 0x1bd   : > { %6863 = vmatpush1.bf16.msra.mxu0 %v9965_v36  ;;  %7519 = vmatpush1.bf16.msra.mxu1 %v9968_v46  ;;  %v10049_v36 = vld [vmem:[%s11417_s7 + $0xc00] ss:$16 sps:$4 sm:$0xff]   ;;  %v10052_v46 = vld [vmem:[%s11417_s7 + $0xc08] ss:$16 sps:$4 sm:$0xff]  }
 0x1be   : > { %6864 = vmatprep.subr.bf16.mxu0 %v9973_v47  ;;  %7520 = vmatprep.subr.bf16.mxu1 %v9976_v48  ;;  %v10057_v47 = vld [vmem:[%s11417_s7 + $0xc24] ss:$16 sps:$4 sm:$0xff]   ;;  %v10060_v48 = vld [vmem:[%s11417_s7 + $0xc2c] ss:$16 sps:$4 sm:$0xff]  }
 0x1c1   : > { %6865 = vmatpush1.bf16.msra.mxu0 %v9971_v49  ;;  %7521 = vmatpush1.bf16.msra.mxu1 %v9974_v51  ;;  %v11902_v49 = vrot.slane %v1370_v43, %v11492_v50  ;;  %v10058_v51 = vld [vmem:[%s11417_s7 + $0xc28] ss:$16 sps:$4 sm:$0xff]   ;;  %v10141_v43 = vld [vmem:[%s11417_s7 + $0xde4] ss:$16 sps:$4 sm:$0xff]  }
 0x1c2   : > { %6866 = vmatprep.subr.bf16.mxu0 %v9979_v52  ;;  %7522 = vmatprep.subr.bf16.mxu1 %v9982_v54  ;;  %v10063_v52 = vld [vmem:[%s11417_s7 + $0xc44] ss:$16 sps:$4 sm:$0xff]   ;;  %v10066_v54 = vld [vmem:[%s11417_s7 + $0xc4c] ss:$16 sps:$4 sm:$0xff]  }
 0x1c5   : > { %6867 = vmatpush1.bf16.msra.mxu0 %v9977_v55  ;;  %7523 = vmatpush1.bf16.msra.mxu1 %v9980_v56  ;;  %v10061_v55 = vld [vmem:[%s11417_s7 + $0xc40] ss:$16 sps:$4 sm:$0xff]   ;;  %v10064_v56 = vld [vmem:[%s11417_s7 + $0xc48] ss:$16 sps:$4 sm:$0xff]  }
 0x1c6   : > { %6868 = vmatprep.subr.bf16.mxu0 %v9985_v57  ;;  %7524 = vmatprep.subr.bf16.mxu1 %v9988_v58  ;;  %v10069_v57 = vld [vmem:[%s11417_s7 + $0xc64] ss:$16 sps:$4 sm:$0xff]   ;;  %v10072_v58 = vld [vmem:[%s11417_s7 + $0xc6c] ss:$16 sps:$4 sm:$0xff]  }
 0x1c9   : > { %6869 = vmatpush1.bf16.msra.mxu0 %v9983_v59  ;;  %7525 = vmatpush1.bf16.msra.mxu1 %v9986_v60  ;;  %v10067_v59 = vld [vmem:[%s11417_s7 + $0xc60] ss:$16 sps:$4 sm:$0xff]   ;;  %v10070_v60 = vld [vmem:[%s11417_s7 + $0xc68] ss:$16 sps:$4 sm:$0xff]  }
 0x1ca   : > { %6870 = vmatprep.subr.bf16.mxu0 %v9991_v61  ;;  %7526 = vmatprep.subr.bf16.mxu1 %v9994_v62  ;;  %v10075_v61 = vld [vmem:[%s11417_s7 + $0xc84] ss:$16 sps:$4 sm:$0xff]   ;;  %v10078_v62 = vld [vmem:[%s11417_s7 + $0xc8c] ss:$16 sps:$4 sm:$0xff]  }
 0x1cd   : > { %6871 = vmatpush1.bf16.msra.mxu0 %v9989_v63  ;;  %7527 = vmatpush1.bf16.msra.mxu1 %v9992_v0  ;;  %v10073_v63 = vld [vmem:[%s11417_s7 + $0xc80] ss:$16 sps:$4 sm:$0xff]   ;;  %v10076_v0 = vld [vmem:[%s11417_s7 + $0xc88] ss:$16 sps:$4 sm:$0xff]  }
 0x1ce   : > { %6872 = vmatprep.subr.bf16.mxu0 %v9997_v1  ;;  %7528 = vmatprep.subr.bf16.mxu1 %v10000_v2  ;;  %v10081_v1 = vld [vmem:[%s11417_s7 + $0xca4] ss:$16 sps:$4 sm:$0xff]   ;;  %v10084_v2 = vld [vmem:[%s11417_s7 + $0xcac] ss:$16 sps:$4 sm:$0xff]  }
 0x1d1   : > { %6873 = vmatpush1.bf16.msra.mxu0 %v9995_v3  ;;  %7529 = vmatpush1.bf16.msra.mxu1 %v9998_v4  ;;  %v10079_v3 = vld [vmem:[%s11417_s7 + $0xca0] ss:$16 sps:$4 sm:$0xff]   ;;  %v10082_v4 = vld [vmem:[%s11417_s7 + $0xca8] ss:$16 sps:$4 sm:$0xff]  }
 0x1d2   : > { %6874 = vmatprep.subr.bf16.mxu0 %v10003_v5  ;;  %7530 = vmatprep.subr.bf16.mxu1 %v10006_v6  ;;  %v10087_v5 = vld [vmem:[%s11417_s7 + $0xcc4] ss:$16 sps:$4 sm:$0xff]   ;;  %v10090_v6 = vld [vmem:[%s11417_s7 + $0xccc] ss:$16 sps:$4 sm:$0xff]  }
 0x1d5   : > { %6875 = vmatpush1.bf16.msra.mxu0 %v10001_v7  ;;  %7531 = vmatpush1.bf16.msra.mxu1 %v10004_v8  ;;  %v10085_v7 = vld [vmem:[%s11417_s7 + $0xcc0] ss:$16 sps:$4 sm:$0xff]   ;;  %v10088_v8 = vld [vmem:[%s11417_s7 + $0xcc8] ss:$16 sps:$4 sm:$0xff]  }
 0x1d6   : > { %6876 = vmatprep.subr.bf16.mxu0 %v10009_v9  ;;  %7532 = vmatprep.subr.bf16.mxu1 %v10012_v10  ;;  %v10093_v9 = vld [vmem:[%s11417_s7 + $0xce4] ss:$16 sps:$4 sm:$0xff]   ;;  %v10096_v10 = vld [vmem:[%s11417_s7 + $0xcec] ss:$16 sps:$4 sm:$0xff]  }
 0x1d9   : > { %6877 = vmatpush1.bf16.msra.mxu0 %v10007_v11  ;;  %7533 = vmatpush1.bf16.msra.mxu1 %v10010_v12  ;;  %v10091_v11 = vld [vmem:[%s11417_s7 + $0xce0] ss:$16 sps:$4 sm:$0xff]   ;;  %v10094_v12 = vld [vmem:[%s11417_s7 + $0xce8] ss:$16 sps:$4 sm:$0xff]  }
 0x1da   : > { %6878 = vmatprep.subr.bf16.mxu0 %v10015_v13  ;;  %7534 = vmatprep.subr.bf16.mxu1 %v10018_v15  ;;  %v10099_v13 = vld [vmem:[%s11417_s7 + $0xd04] ss:$16 sps:$4 sm:$0xff]   ;;  %v10102_v15 = vld [vmem:[%s11417_s7 + $0xd0c] ss:$16 sps:$4 sm:$0xff]  }
 0x1dd   : > { %6879 = vmatpush1.bf16.msra.mxu0 %v10013_v17  ;;  %7535 = vmatpush1.bf16.msra.mxu1 %v10016_v53  ;;  %v10097_v17 = vld [vmem:[%s11417_s7 + $0xd00] ss:$16 sps:$4 sm:$0xff]   ;;  %v10100_v53 = vld [vmem:[%s11417_s7 + $0xd08] ss:$16 sps:$4 sm:$0xff]  }
 0x1de   : > { %6880 = vmatprep.subr.bf16.mxu0 %v10021_v18  ;;  %7536 = vmatprep.subr.bf16.mxu1 %v10024_v19  ;;  %v10105_v18 = vld [vmem:[%s11417_s7 + $0xd24] ss:$16 sps:$4 sm:$0xff]   ;;  %v10108_v19 = vld [vmem:[%s11417_s7 + $0xd2c] ss:$16 sps:$4 sm:$0xff]  }
 0x1e1   : > { %6881 = vmatpush1.bf16.msra.mxu0 %v10019_v20  ;;  %7537 = vmatpush1.bf16.msra.mxu1 %v10022_v21  ;;  %v10103_v20 = vld [vmem:[%s11417_s7 + $0xd20] ss:$16 sps:$4 sm:$0xff]   ;;  %v10106_v21 = vld [vmem:[%s11417_s7 + $0xd28] ss:$16 sps:$4 sm:$0xff]  }
 0x1e2   : > { %6882 = vmatprep.subr.bf16.mxu0 %v10027_v23  ;;  %7538 = vmatprep.subr.bf16.mxu1 %v10030_v24  ;;  %v10111_v23 = vld [vmem:[%s11417_s7 + $0xd44] ss:$16 sps:$4 sm:$0xff]   ;;  %v10114_v24 = vld [vmem:[%s11417_s7 + $0xd4c] ss:$16 sps:$4 sm:$0xff]  }
 0x1e5   : > { %6883 = vmatpush1.bf16.msra.mxu0 %v10025_v25  ;;  %7539 = vmatpush1.bf16.msra.mxu1 %v10028_v27  ;;  %v10109_v25 = vld [vmem:[%s11417_s7 + $0xd40] ss:$16 sps:$4 sm:$0xff]   ;;  %v10112_v27 = vld [vmem:[%s11417_s7 + $0xd48] ss:$16 sps:$4 sm:$0xff]  }
 0x1e6   : > { %6884 = vmatprep.subr.bf16.mxu0 %v10033_v28  ;;  %7540 = vmatprep.subr.bf16.mxu1 %v10036_v29  ;;  %v10117_v28 = vld [vmem:[%s11417_s7 + $0xd64] ss:$16 sps:$4 sm:$0xff]   ;;  %v10120_v29 = vld [vmem:[%s11417_s7 + $0xd6c] ss:$16 sps:$4 sm:$0xff]  }
 0x1e9   : > { %6885 = vmatpush1.bf16.msra.mxu0 %v10031_v30  ;;  %7541 = vmatpush1.bf16.msra.mxu1 %v10034_v31  ;;  %v10115_v30 = vld [vmem:[%s11417_s7 + $0xd60] ss:$16 sps:$4 sm:$0xff]   ;;  %v10118_v31 = vld [vmem:[%s11417_s7 + $0xd68] ss:$16 sps:$4 sm:$0xff]  }
 0x1ea   : > { %6886 = vmatprep.subr.bf16.mxu0 %v10039_v16  ;;  %7542 = vmatprep.subr.bf16.mxu1 %v10042_v32  ;;  %v10123_v16 = vld [vmem:[%s11417_s7 + $0xd84] ss:$16 sps:$4 sm:$0xff]   ;;  %v10126_v32 = vld [vmem:[%s11417_s7 + $0xd8c] ss:$16 sps:$4 sm:$0xff]  }
 0x1ed   : > { %6887 = vmatpush1.bf16.msra.mxu0 %v10037_v26  ;;  %7543 = vmatpush1.bf16.msra.mxu1 %v10040_v35  ;;  %v10129_v26 = vld [vmem:[%s11417_s7 + $0xda4] ss:$16 sps:$4 sm:$0xff]   ;;  %v10132_v35 = vld [vmem:[%s11417_s7 + $0xdac] ss:$16 sps:$4 sm:$0xff]  }
 0x1ee   : > { %6888 = vmatprep.subr.bf16.mxu0 %v10045_v37  ;;  %7544 = vmatprep.subr.bf16.mxu1 %v10048_v38  ;;  %v10127_v37 = vld [vmem:[%s11417_s7 + $0xda0] ss:$16 sps:$4 sm:$0xff]   ;;  %v10130_v38 = vld [vmem:[%s11417_s7 + $0xda8] ss:$16 sps:$4 sm:$0xff]  }
 0x1f1   : > { %6889 = vmatpush1.bf16.msra.mxu0 %v10043_v40  ;;  %7545 = vmatpush1.bf16.msra.mxu1 %v10046_v41  ;;  %v10135_v40 = vld [vmem:[%s11417_s7 + $0xdc4] ss:$16 sps:$4 sm:$0xff]   ;;  %v10138_v41 = vld [vmem:[%s11417_s7 + $0xdcc] ss:$16 sps:$4 sm:$0xff]  }
 0x1f2   : > { %6899 = vmatprep.subr.bf16.mxu0 %v10051_v22  ;;  %7555 = vmatprep.subr.bf16.mxu1 %v10054_v42  ;;  %v10133_v22 = vld [vmem:[%s11417_s7 + $0xdc0] ss:$16 sps:$4 sm:$0xff]   ;;  %v10136_v42 = vld [vmem:[%s11417_s7 + $0xdc8] ss:$16 sps:$4 sm:$0xff]  }
 0x1f4   : > { %6891 = vmatmul.mubr.bf16.vlgmr.msra.gmra.mrb[0].mxu0 %v1399_v45  ;;  %7547 = vmatmul.mubr.bf16.vlgmr.msra.gmra.mrb[0].mxu1 %v1399_v45  ;;  %v10144_v45 = vld [vmem:[%s11417_s7 + $0xdec] ss:$16 sps:$4 sm:$0xff]  }
 0x1f5   : > { %6900 = vmatpush1.bf16.msra.mxu0 %v10049_v36  ;;  %7556 = vmatpush1.bf16.msra.mxu1 %v10052_v46  ;;  %v10139_v36 = vld [vmem:[%s11417_s7 + $0xde0] ss:$16 sps:$4 sm:$0xff]   ;;  %v10142_v46 = vld [vmem:[%s11417_s7 + $0xde8] ss:$16 sps:$4 sm:$0xff]  }
 0x1f6   : > { %6901 = vmatprep.subr.bf16.mxu0 %v10057_v47  ;;  %7557 = vmatprep.subr.bf16.mxu1 %v10060_v48  ;;  %v10148_v47 = vld [vmem:[%s11417_s7 + $0xe04] ss:$16 sps:$4 sm:$0xff]   ;;  %v10151_v48 = vld [vmem:[%s11417_s7 + $0xe0c] ss:$16 sps:$4 sm:$0xff]  }
 0x1f7   : > { %6931 = vmatprep.mubr.bf16.mxu0 %v11902_v49  ;;  %7587 = vmatprep.mubr.bf16.mxu1 %v11902_v49 }
 0x1f9   : > { %6902 = vmatpush1.bf16.msra.mxu0 %v10055_v14  ;;  %7558 = vmatpush1.bf16.msra.mxu1 %v10058_v51  ;;  %v11968_v14 = vrot.slane %v11887_v39, %v11492_v50  ;;  %v10146_v51 = vld [vmem:[%s11417_s7 + $0xe00] ss:$16 sps:$4 sm:$0xff]  }
 0x1fa   : > { %6903 = vmatprep.subr.bf16.mxu0 %v10063_v52  ;;  %7559 = vmatprep.subr.bf16.mxu1 %v10066_v54  ;;  %v10149_v52 = vld [vmem:[%s11417_s7 + $0xe08] ss:$16 sps:$4 sm:$0xff]   ;;  %v10154_v54 = vld [vmem:[%s11417_s7 + $0xe24] ss:$16 sps:$4 sm:$0xff]   ;;  %v10152_v39 = vld [vmem:[%s11417_s7 + $0xe20] ss:$16 sps:$4 sm:$0xff]  }
 0x1fd   : > { %6904 = vmatpush1.bf16.msra.mxu0 %v10061_v55  ;;  %7560 = vmatpush1.bf16.msra.mxu1 %v10064_v56  ;;  %v10157_v55 = vld [vmem:[%s11417_s7 + $0xe2c] ss:$16 sps:$4 sm:$0xff]   ;;  %v1402_v56 = vcombine.high %v11902_v49, %v11902_v49  ;;  %v10158_v49 = vld [vmem:[%s11417_s7 + $0xe40] ss:$16 sps:$4 sm:$0xff]  }
 0x1fe   : > { %6905 = vmatprep.subr.bf16.mxu0 %v10069_v57  ;;  %7561 = vmatprep.subr.bf16.mxu1 %v10072_v58  ;;  %v10155_v57 = vld [vmem:[%s11417_s7 + $0xe28] ss:$16 sps:$4 sm:$0xff]   ;;  %v10160_v58 = vld [vmem:[%s11417_s7 + $0xe44] ss:$16 sps:$4 sm:$0xff]  }
 0x201   : > { %6906 = vmatpush1.bf16.msra.mxu0 %v10067_v59  ;;  %7562 = vmatpush1.bf16.msra.mxu1 %v10070_v60  ;;  %v10163_v59 = vld [vmem:[%s11417_s7 + $0xe4c] ss:$16 sps:$4 sm:$0xff]   ;;  %v10161_v60 = vld [vmem:[%s11417_s7 + $0xe48] ss:$16 sps:$4 sm:$0xff]  }
 0x202   : > { %6907 = vmatprep.subr.bf16.mxu0 %v10075_v61  ;;  %7563 = vmatprep.subr.bf16.mxu1 %v10078_v62  ;;  %v10166_v61 = vld [vmem:[%s11417_s7 + $0xe64] ss:$16 sps:$4 sm:$0xff]   ;;  %v10169_v62 = vld [vmem:[%s11417_s7 + $0xe6c] ss:$16 sps:$4 sm:$0xff]  }
 0x205   : > { %6908 = vmatpush1.bf16.msra.mxu0 %v10073_v63  ;;  %7564 = vmatpush1.bf16.msra.mxu1 %v10076_v0  ;;  %v10164_v63 = vld [vmem:[%s11417_s7 + $0xe60] ss:$16 sps:$4 sm:$0xff]   ;;  %v10167_v0 = vld [vmem:[%s11417_s7 + $0xe68] ss:$16 sps:$4 sm:$0xff]  }
 0x206   : > { %6909 = vmatprep.subr.bf16.mxu0 %v10081_v1  ;;  %7565 = vmatprep.subr.bf16.mxu1 %v10084_v2  ;;  %v10172_v1 = vld [vmem:[%s11417_s7 + $0xe84] ss:$16 sps:$4 sm:$0xff]   ;;  %v10175_v2 = vld [vmem:[%s11417_s7 + $0xe8c] ss:$16 sps:$4 sm:$0xff]  }
 0x209   : > { %6910 = vmatpush1.bf16.msra.mxu0 %v10079_v3  ;;  %7566 = vmatpush1.bf16.msra.mxu1 %v10082_v4  ;;  %v10170_v3 = vld [vmem:[%s11417_s7 + $0xe80] ss:$16 sps:$4 sm:$0xff]   ;;  %v10173_v4 = vld [vmem:[%s11417_s7 + $0xe88] ss:$16 sps:$4 sm:$0xff]  }
 0x20a   : > { %6911 = vmatprep.subr.bf16.mxu0 %v10087_v5  ;;  %7567 = vmatprep.subr.bf16.mxu1 %v10090_v6  ;;  %v10178_v5 = vld [vmem:[%s11417_s7 + $0xea4] ss:$16 sps:$4 sm:$0xff]   ;;  %v10181_v6 = vld [vmem:[%s11417_s7 + $0xeac] ss:$16 sps:$4 sm:$0xff]  }
 0x20d   : > { %6912 = vmatpush1.bf16.msra.mxu0 %v10085_v7  ;;  %7568 = vmatpush1.bf16.msra.mxu1 %v10088_v8  ;;  %v10176_v7 = vld [vmem:[%s11417_s7 + $0xea0] ss:$16 sps:$4 sm:$0xff]   ;;  %v10179_v8 = vld [vmem:[%s11417_s7 + $0xea8] ss:$16 sps:$4 sm:$0xff]  }
 0x20e   : > { %6913 = vmatprep.subr.bf16.mxu0 %v10093_v9  ;;  %7569 = vmatprep.subr.bf16.mxu1 %v10096_v10  ;;  %v10184_v9 = vld [vmem:[%s11417_s7 + $0xec4] ss:$16 sps:$4 sm:$0xff]   ;;  %v10187_v10 = vld [vmem:[%s11417_s7 + $0xecc] ss:$16 sps:$4 sm:$0xff]  }
 0x211   : > { %6914 = vmatpush1.bf16.msra.mxu0 %v10091_v11  ;;  %7570 = vmatpush1.bf16.msra.mxu1 %v10094_v12  ;;  %v10182_v11 = vld [vmem:[%s11417_s7 + $0xec0] ss:$16 sps:$4 sm:$0xff]   ;;  %v10185_v12 = vld [vmem:[%s11417_s7 + $0xec8] ss:$16 sps:$4 sm:$0xff]  }
 0x212   : > { %6915 = vmatprep.subr.bf16.mxu0 %v10099_v13  ;;  %7571 = vmatprep.subr.bf16.mxu1 %v10102_v15  ;;  %v10190_v13 = vld [vmem:[%s11417_s7 + $0xee4] ss:$16 sps:$4 sm:$0xff]   ;;  %v10193_v15 = vld [vmem:[%s11417_s7 + $0xeec] ss:$16 sps:$4 sm:$0xff]  }
 0x215   : > { %6916 = vmatpush1.bf16.msra.mxu0 %v10097_v17  ;;  %7572 = vmatpush1.bf16.msra.mxu1 %v10100_v53  ;;  %v10188_v17 = vld [vmem:[%s11417_s7 + $0xee0] ss:$16 sps:$4 sm:$0xff]   ;;  %v10191_v53 = vld [vmem:[%s11417_s7 + $0xee8] ss:$16 sps:$4 sm:$0xff]  }
 0x216   : > { %6917 = vmatprep.subr.bf16.mxu0 %v10105_v18  ;;  %7573 = vmatprep.subr.bf16.mxu1 %v10108_v19  ;;  %v10196_v18 = vld [vmem:[%s11417_s7 + $0xf04] ss:$16 sps:$4 sm:$0xff]   ;;  %v10199_v19 = vld [vmem:[%s11417_s7 + $0xf0c] ss:$16 sps:$4 sm:$0xff]  }
 0x219   : > { %6918 = vmatpush1.bf16.msra.mxu0 %v10103_v20  ;;  %7574 = vmatpush1.bf16.msra.mxu1 %v10106_v21  ;;  %v10194_v20 = vld [vmem:[%s11417_s7 + $0xf00] ss:$16 sps:$4 sm:$0xff]   ;;  %v10197_v21 = vld [vmem:[%s11417_s7 + $0xf08] ss:$16 sps:$4 sm:$0xff]  }
 0x21a   : > { %6919 = vmatprep.subr.bf16.mxu0 %v10111_v23  ;;  %7575 = vmatprep.subr.bf16.mxu1 %v10114_v24  ;;  %v10202_v23 = vld [vmem:[%s11417_s7 + $0xf24] ss:$16 sps:$4 sm:$0xff]   ;;  %v10205_v24 = vld [vmem:[%s11417_s7 + $0xf2c] ss:$16 sps:$4 sm:$0xff]  }
 0x21d   : > { %6920 = vmatpush1.bf16.msra.mxu0 %v10109_v25  ;;  %7576 = vmatpush1.bf16.msra.mxu1 %v10112_v27  ;;  %v10200_v25 = vld [vmem:[%s11417_s7 + $0xf20] ss:$16 sps:$4 sm:$0xff]   ;;  %v10203_v27 = vld [vmem:[%s11417_s7 + $0xf28] ss:$16 sps:$4 sm:$0xff]  }
 0x21e   : > { %6921 = vmatprep.subr.bf16.mxu0 %v10117_v28  ;;  %7577 = vmatprep.subr.bf16.mxu1 %v10120_v29  ;;  %v10208_v28 = vld [vmem:[%s11417_s7 + $0xf44] ss:$16 sps:$4 sm:$0xff]   ;;  %v10211_v29 = vld [vmem:[%s11417_s7 + $0xf4c] ss:$16 sps:$4 sm:$0xff]  }
 0x221   : > { %6922 = vmatpush1.bf16.msra.mxu0 %v10115_v30  ;;  %7578 = vmatpush1.bf16.msra.mxu1 %v10118_v31  ;;  %v10206_v30 = vld [vmem:[%s11417_s7 + $0xf40] ss:$16 sps:$4 sm:$0xff]   ;;  %v10209_v31 = vld [vmem:[%s11417_s7 + $0xf48] ss:$16 sps:$4 sm:$0xff]  }
 0x222   : > { %6923 = vmatprep.subr.bf16.mxu0 %v10123_v16  ;;  %7579 = vmatprep.subr.bf16.mxu1 %v10126_v32  ;;  %v10214_v16 = vld [vmem:[%s11417_s7 + $0xf64] ss:$16 sps:$4 sm:$0xff]   ;;  %v10217_v32 = vld [vmem:[%s11417_s7 + $0xf6c] ss:$16 sps:$4 sm:$0xff]  }
 0x225   : > { %6924 = vmatpush1.bf16.msra.mxu0 %v10121_v33  ;;  %7580 = vmatpush1.bf16.msra.mxu1 %v10124_v34  ;;  %v10212_v33 = vld [vmem:[%s11417_s7 + $0xf60] ss:$16 sps:$4 sm:$0xff]   ;;  %v10215_v34 = vld [vmem:[%s11417_s7 + $0xf68] ss:$16 sps:$4 sm:$0xff]  }
 0x226   : > { %6925 = vmatprep.subr.bf16.mxu0 %v10129_v26  ;;  %7581 = vmatprep.subr.bf16.mxu1 %v10132_v35  ;;  %v10220_v26 = vld [vmem:[%s11417_s7 + $0xf84] ss:$16 sps:$4 sm:$0xff]   ;;  %v10223_v35 = vld [vmem:[%s11417_s7 + $0xf8c] ss:$16 sps:$4 sm:$0xff]  }
 0x229   : > { %6926 = vmatpush1.bf16.msra.mxu0 %v10127_v37  ;;  %7582 = vmatpush1.bf16.msra.mxu1 %v10130_v38  ;;  %v10218_v37 = vld [vmem:[%s11417_s7 + $0xf80] ss:$16 sps:$4 sm:$0xff]   ;;  %v10221_v38 = vld [vmem:[%s11417_s7 + $0xf88] ss:$16 sps:$4 sm:$0xff]  }
 0x22a   : > { %6927 = vmatprep.subr.bf16.mxu0 %v10135_v40  ;;  %7583 = vmatprep.subr.bf16.mxu1 %v10138_v41  ;;  %v10226_v40 = vld [vmem:[%s11417_s7 + $0xfa4] ss:$16 sps:$4 sm:$0xff]   ;;  %v10229_v41 = vld [vmem:[%s11417_s7 + $0xfac] ss:$16 sps:$4 sm:$0xff]  }
 0x22d   : > { %6928 = vmatpush1.bf16.msra.mxu0 %v10133_v22  ;;  %7584 = vmatpush1.bf16.msra.mxu1 %v10136_v42  ;;  %v10224_v22 = vld [vmem:[%s11417_s7 + $0xfa0] ss:$16 sps:$4 sm:$0xff]   ;;  %v10227_v42 = vld [vmem:[%s11417_s7 + $0xfa8] ss:$16 sps:$4 sm:$0xff]  }
 0x22e   : > { %6929 = vmatprep.subr.bf16.mxu0 %v10141_v43  ;;  %7585 = vmatprep.subr.bf16.mxu1 %v10144_v45  ;;  %v10232_v43 = vld [vmem:[%s11417_s7 + $0xfc4] ss:$16 sps:$4 sm:$0xff]   ;;  %v10235_v45 = vld [vmem:[%s11417_s7 + $0xfcc] ss:$16 sps:$4 sm:$0xff]  }
 0x231   : > { %6930 = vmatpush1.bf16.msra.mxu0 %v10139_v36  ;;  %7586 = vmatpush1.bf16.msra.mxu1 %v10142_v46  ;;  %v12031_v36 = vld [vmem:[%s11438_s12 + $0x10] sm:$0xff]  ;;  %v10230_v46 = vld [vmem:[%s11417_s7 + $0xfc0] ss:$16 sps:$4 sm:$0xff]  }
 0x232   : > { %6940 = vmatprep.subr.bf16.mxu0 %v10148_v47  ;;  %7596 = vmatprep.subr.bf16.mxu1 %v10151_v48  ;;  %v10233_v47 = vld [vmem:[%s11417_s7 + $0xfc8] ss:$16 sps:$4 sm:$0xff]   ;;  %v10238_v48 = vld [vmem:[%s11417_s7 + $0xfe4] ss:$16 sps:$4 sm:$0xff]  }
 0x234   : > { %6932 = vmatmul.mubr.bf16.vlgmr.msra.gmra.mrb[0].mxu0 %v11968_v14  ;;  %7588 = vmatmul.mubr.bf16.vlgmr.msra.gmra.mrb[0].mxu1 %v11968_v14 }
 0x235   : > { %6941 = vmatpush1.bf16.msra.mxu0 %v10146_v51  ;;  %7597 = vmatpush1.bf16.msra.mxu1 %v10149_v52  ;;  %v10241_v51 = vld [vmem:[%s11417_s7 + $0xfec] ss:$16 sps:$4 sm:$0xff]   ;;  %v12039_v52 = vrot.slane %v12031_v36, %v11492_v50 }
 0x236   : > { %6942 = vmatprep.subr.bf16.mxu0 %v10154_v54  ;;  %7598 = vmatprep.subr.bf16.mxu1 %v10157_v55  ;;  %v10236_v54 = vld [vmem:[%s11417_s7 + $0xfe0] ss:$16 sps:$4 sm:$0xff]   ;;  %v10239_v55 = vld [vmem:[%s11417_s7 + $0xfe8] ss:$16 sps:$4 sm:$0xff]  }
 0x237   : > { %6972 = vmatprep.mubr.bf16.mxu0 %v1402_v56  ;;  %7628 = vmatprep.mubr.bf16.mxu1 %v1402_v56  ;;  %v10244_v56 = vld [vmem:[%s11417_s7 + $0x1004] ss:$16 sps:$4 sm:$0xff]  }
 0x239   : > { %6943 = vmatpush1.bf16.msra.mxu0 %v10152_v39  ;;  %7599 = vmatpush1.bf16.msra.mxu1 %v10155_v57  ;;  %v10247_v39 = vld [vmem:[%s11417_s7 + $0x100c] ss:$16 sps:$4 sm:$0xff]   ;;  %v1418_v57 = vcombine.high %v12039_v52, %v12039_v52 }
 0x23a   : > { %6944 = vmatprep.subr.bf16.mxu0 %v10160_v58  ;;  %7600 = vmatprep.subr.bf16.mxu1 %v10163_v59  ;;  %v1400_v58 = vcombine.high %v11968_v14, %v11968_v14  ;;  %v10242_v59 = vld [vmem:[%s11417_s7 + $0x1000] ss:$16 sps:$4 sm:$0xff]  }
 0x23b   : > { %v10248_v14 = vld [vmem:[%s11417_s7 + $0x1020] ss:$16 sps:$4 sm:$0xff]  }
 0x23d   : > { %6945 = vmatpush1.bf16.msra.mxu0 %v10158_v49  ;;  %7601 = vmatpush1.bf16.msra.mxu1 %v10161_v60  ;;  %v10245_v49 = vld [vmem:[%s11417_s7 + $0x1008] ss:$16 sps:$4 sm:$0xff]   ;;  %v10250_v60 = vld [vmem:[%s11417_s7 + $0x1024] ss:$16 sps:$4 sm:$0xff]  }
 0x23e   : > { %6946 = vmatprep.subr.bf16.mxu0 %v10166_v61  ;;  %7602 = vmatprep.subr.bf16.mxu1 %v10169_v62  ;;  %v10253_v61 = vld [vmem:[%s11417_s7 + $0x102c] ss:$16 sps:$4 sm:$0xff]   ;;  %v12054_v62 = vrot.slane %v1418_v57, %v11492_v50  ;;  %v10329_v57 = vld [vmem:[%s11417_s7 + $0x11c8] ss:$16 sps:$4 sm:$0xff]  }
 0x241   : > { %6947 = vmatpush1.bf16.msra.mxu0 %v10164_v63  ;;  %7603 = vmatpush1.bf16.msra.mxu1 %v10167_v0  ;;  %v10251_v63 = vld [vmem:[%s11417_s7 + $0x1028] ss:$16 sps:$4 sm:$0xff]   ;;  %v10256_v0 = vld [vmem:[%s11417_s7 + $0x1044] ss:$16 sps:$4 sm:$0xff]  }
 0x242   : > { %6948 = vmatprep.subr.bf16.mxu0 %v10172_v1  ;;  %7604 = vmatprep.subr.bf16.mxu1 %v10175_v2  ;;  %v10259_v1 = vld [vmem:[%s11417_s7 + $0x104c] ss:$16 sps:$4 sm:$0xff]   ;;  %v10254_v2 = vld [vmem:[%s11417_s7 + $0x1040] ss:$16 sps:$4 sm:$0xff]  }
 0x245   : > { %6949 = vmatpush1.bf16.msra.mxu0 %v10170_v3  ;;  %7605 = vmatpush1.bf16.msra.mxu1 %v10173_v4  ;;  %v10257_v3 = vld [vmem:[%s11417_s7 + $0x1048] ss:$16 sps:$4 sm:$0xff]   ;;  %v10262_v4 = vld [vmem:[%s11417_s7 + $0x1064] ss:$16 sps:$4 sm:$0xff]  }
 0x246   : > { %6950 = vmatprep.subr.bf16.mxu0 %v10178_v5  ;;  %7606 = vmatprep.subr.bf16.mxu1 %v10181_v6  ;;  %v10265_v5 = vld [vmem:[%s11417_s7 + $0x106c] ss:$16 sps:$4 sm:$0xff]   ;;  %v10260_v6 = vld [vmem:[%s11417_s7 + $0x1060] ss:$16 sps:$4 sm:$0xff]  }
 0x249   : > { %6951 = vmatpush1.bf16.msra.mxu0 %v10176_v7  ;;  %7607 = vmatpush1.bf16.msra.mxu1 %v10179_v8  ;;  %v10263_v7 = vld [vmem:[%s11417_s7 + $0x1068] ss:$16 sps:$4 sm:$0xff]   ;;  %v10268_v8 = vld [vmem:[%s11417_s7 + $0x1084] ss:$16 sps:$4 sm:$0xff]  }
 0x24a   : > { %6952 = vmatprep.subr.bf16.mxu0 %v10184_v9  ;;  %7608 = vmatprep.subr.bf16.mxu1 %v10187_v10  ;;  %v10271_v9 = vld [vmem:[%s11417_s7 + $0x108c] ss:$16 sps:$4 sm:$0xff]   ;;  %v10266_v10 = vld [vmem:[%s11417_s7 + $0x1080] ss:$16 sps:$4 sm:$0xff]  }
 0x24d   : > { %6953 = vmatpush1.bf16.msra.mxu0 %v10182_v11  ;;  %7609 = vmatpush1.bf16.msra.mxu1 %v10185_v12  ;;  %v10269_v11 = vld [vmem:[%s11417_s7 + $0x1088] ss:$16 sps:$4 sm:$0xff]   ;;  %v10274_v12 = vld [vmem:[%s11417_s7 + $0x10a4] ss:$16 sps:$4 sm:$0xff]  }
 0x24e   : > { %6954 = vmatprep.subr.bf16.mxu0 %v10190_v13  ;;  %7610 = vmatprep.subr.bf16.mxu1 %v10193_v15  ;;  %v10277_v13 = vld [vmem:[%s11417_s7 + $0x10ac] ss:$16 sps:$4 sm:$0xff]   ;;  %v10272_v15 = vld [vmem:[%s11417_s7 + $0x10a0] ss:$16 sps:$4 sm:$0xff]  }
 0x251   : > { %6955 = vmatpush1.bf16.msra.mxu0 %v10188_v17  ;;  %7611 = vmatpush1.bf16.msra.mxu1 %v10191_v53  ;;  %v10275_v17 = vld [vmem:[%s11417_s7 + $0x10a8] ss:$16 sps:$4 sm:$0xff]   ;;  %v10280_v53 = vld [vmem:[%s11417_s7 + $0x10c4] ss:$16 sps:$4 sm:$0xff]  }
 0x252   : > { %6956 = vmatprep.subr.bf16.mxu0 %v10196_v18  ;;  %7612 = vmatprep.subr.bf16.mxu1 %v10199_v19  ;;  %v10283_v18 = vld [vmem:[%s11417_s7 + $0x10cc] ss:$16 sps:$4 sm:$0xff]   ;;  %v10278_v19 = vld [vmem:[%s11417_s7 + $0x10c0] ss:$16 sps:$4 sm:$0xff]  }
 0x255   : > { %6957 = vmatpush1.bf16.msra.mxu0 %v10194_v20  ;;  %7613 = vmatpush1.bf16.msra.mxu1 %v10197_v21  ;;  %v10281_v20 = vld [vmem:[%s11417_s7 + $0x10c8] ss:$16 sps:$4 sm:$0xff]   ;;  %v10286_v21 = vld [vmem:[%s11417_s7 + $0x10e4] ss:$16 sps:$4 sm:$0xff]  }
 0x256   : > { %6958 = vmatprep.subr.bf16.mxu0 %v10202_v23  ;;  %7614 = vmatprep.subr.bf16.mxu1 %v10205_v24  ;;  %v10289_v23 = vld [vmem:[%s11417_s7 + $0x10ec] ss:$16 sps:$4 sm:$0xff]   ;;  %v10284_v24 = vld [vmem:[%s11417_s7 + $0x10e0] ss:$16 sps:$4 sm:$0xff]  }
 0x259   : > { %6959 = vmatpush1.bf16.msra.mxu0 %v10200_v25  ;;  %7615 = vmatpush1.bf16.msra.mxu1 %v10203_v27  ;;  %v10287_v25 = vld [vmem:[%s11417_s7 + $0x10e8] ss:$16 sps:$4 sm:$0xff]   ;;  %v10292_v27 = vld [vmem:[%s11417_s7 + $0x1104] ss:$16 sps:$4 sm:$0xff]  }
 0x25a   : > { %6960 = vmatprep.subr.bf16.mxu0 %v10208_v28  ;;  %7616 = vmatprep.subr.bf16.mxu1 %v10211_v29  ;;  %v10295_v28 = vld [vmem:[%s11417_s7 + $0x110c] ss:$16 sps:$4 sm:$0xff]   ;;  %v10290_v29 = vld [vmem:[%s11417_s7 + $0x1100] ss:$16 sps:$4 sm:$0xff]  }
 0x25d   : > { %6961 = vmatpush1.bf16.msra.mxu0 %v10206_v30  ;;  %7617 = vmatpush1.bf16.msra.mxu1 %v10209_v31  ;;  %v10293_v30 = vld [vmem:[%s11417_s7 + $0x1108] ss:$16 sps:$4 sm:$0xff]   ;;  %v10298_v31 = vld [vmem:[%s11417_s7 + $0x1124] ss:$16 sps:$4 sm:$0xff]  }
 0x25e   : > { %6962 = vmatprep.subr.bf16.mxu0 %v10214_v16  ;;  %7618 = vmatprep.subr.bf16.mxu1 %v10217_v32  ;;  %v10301_v16 = vld [vmem:[%s11417_s7 + $0x112c] ss:$16 sps:$4 sm:$0xff]   ;;  %v10296_v32 = vld [vmem:[%s11417_s7 + $0x1120] ss:$16 sps:$4 sm:$0xff]  }
 0x261   : > { %6963 = vmatpush1.bf16.msra.mxu0 %v10212_v33  ;;  %7619 = vmatpush1.bf16.msra.mxu1 %v10215_v34  ;;  %v10299_v33 = vld [vmem:[%s11417_s7 + $0x1128] ss:$16 sps:$4 sm:$0xff]   ;;  %v10304_v34 = vld [vmem:[%s11417_s7 + $0x1144] ss:$16 sps:$4 sm:$0xff]  }
 0x262   : > { %6964 = vmatprep.subr.bf16.mxu0 %v10220_v26  ;;  %7620 = vmatprep.subr.bf16.mxu1 %v10223_v35  ;;  %v10307_v26 = vld [vmem:[%s11417_s7 + $0x114c] ss:$16 sps:$4 sm:$0xff]   ;;  %v10302_v35 = vld [vmem:[%s11417_s7 + $0x1140] ss:$16 sps:$4 sm:$0xff]  }
 0x265   : > { %6965 = vmatpush1.bf16.msra.mxu0 %v10218_v37  ;;  %7621 = vmatpush1.bf16.msra.mxu1 %v10221_v38  ;;  %v10305_v37 = vld [vmem:[%s11417_s7 + $0x1148] ss:$16 sps:$4 sm:$0xff]   ;;  %v10310_v38 = vld [vmem:[%s11417_s7 + $0x1164] ss:$16 sps:$4 sm:$0xff]  }
 0x266   : > { %6966 = vmatprep.subr.bf16.mxu0 %v10226_v40  ;;  %7622 = vmatprep.subr.bf16.mxu1 %v10229_v41  ;;  %v10313_v40 = vld [vmem:[%s11417_s7 + $0x116c] ss:$16 sps:$4 sm:$0xff]   ;;  %v10308_v41 = vld [vmem:[%s11417_s7 + $0x1160] ss:$16 sps:$4 sm:$0xff]  }
 0x269   : > { %6967 = vmatpush1.bf16.msra.mxu0 %v10224_v22  ;;  %7623 = vmatpush1.bf16.msra.mxu1 %v10227_v42  ;;  %v10311_v22 = vld [vmem:[%s11417_s7 + $0x1168] ss:$16 sps:$4 sm:$0xff]   ;;  %v10316_v42 = vld [vmem:[%s11417_s7 + $0x1184] ss:$16 sps:$4 sm:$0xff]  }
 0x26a   : > { %6968 = vmatprep.subr.bf16.mxu0 %v10232_v43  ;;  %7624 = vmatprep.subr.bf16.mxu1 %v10235_v45  ;;  %v10319_v43 = vld [vmem:[%s11417_s7 + $0x118c] ss:$16 sps:$4 sm:$0xff]   ;;  %v10314_v45 = vld [vmem:[%s11417_s7 + $0x1180] ss:$16 sps:$4 sm:$0xff]  }
 0x26d   : > { %6969 = vmatpush1.bf16.msra.mxu0 %v10230_v46  ;;  %7625 = vmatpush1.bf16.msra.mxu1 %v10233_v47  ;;  %v10317_v46 = vld [vmem:[%s11417_s7 + $0x1188] ss:$16 sps:$4 sm:$0xff]   ;;  %v10322_v47 = vld [vmem:[%s11417_s7 + $0x11a4] ss:$16 sps:$4 sm:$0xff]  }
 0x26e   : > { %6970 = vmatprep.subr.bf16.mxu0 %v10238_v48  ;;  %7626 = vmatprep.subr.bf16.mxu1 %v10241_v51  ;;  %v10325_v48 = vld [vmem:[%s11417_s7 + $0x11ac] ss:$16 sps:$4 sm:$0xff]   ;;  %v10320_v51 = vld [vmem:[%s11417_s7 + $0x11a0] ss:$16 sps:$4 sm:$0xff]  }
 0x271   : > { %6971 = vmatpush1.bf16.msra.mxu0 %v10236_v54  ;;  %7627 = vmatpush1.bf16.msra.mxu1 %v10239_v55  ;;  %v10323_v54 = vld [vmem:[%s11417_s7 + $0x11a8] ss:$16 sps:$4 sm:$0xff]   ;;  %v10328_v55 = vld [vmem:[%s11417_s7 + $0x11c4] ss:$16 sps:$4 sm:$0xff]  }
 0x272   : > { %6981 = vmatprep.subr.bf16.mxu0 %v10244_v56  ;;  %7637 = vmatprep.subr.bf16.mxu1 %v10247_v39  ;;  %v10331_v56 = vld [vmem:[%s11417_s7 + $0x11cc] ss:$16 sps:$4 sm:$0xff]   ;;  %v10326_v39 = vld [vmem:[%s11417_s7 + $0x11c0] ss:$16 sps:$4 sm:$0xff]  }
 0x274   : > { %6973 = vmatmul.mubr.bf16.vlgmr.msra.gmra.mrb[0].mxu0 %v1400_v58  ;;  %7629 = vmatmul.mubr.bf16.vlgmr.msra.gmra.mrb[0].mxu1 %v1400_v58  ;;  %v10334_v58 = vld [vmem:[%s11417_s7 + $0x11e4] ss:$16 sps:$4 sm:$0xff]  }
 0x275   : > { %6982 = vmatpush1.bf16.msra.mxu0 %v10242_v59  ;;  %7638 = vmatpush1.bf16.msra.mxu1 %v10245_v49  ;;  %v10337_v59 = vld [vmem:[%s11417_s7 + $0x11ec] ss:$16 sps:$4 sm:$0xff]   ;;  %v10332_v49 = vld [vmem:[%s11417_s7 + $0x11e0] ss:$16 sps:$4 sm:$0xff]  }
 0x276   : > { %6983 = vmatprep.subr.bf16.mxu0 %v10250_v60  ;;  %7639 = vmatprep.subr.bf16.mxu1 %v10253_v61  ;;  %v10335_v60 = vld [vmem:[%s11417_s7 + $0x11e8] ss:$16 sps:$4 sm:$0xff]   ;;  %v10340_v61 = vld [vmem:[%s11417_s7 + $0x1204] ss:$16 sps:$4 sm:$0xff]  }
 0x277   : > { %7013 = vmatprep.mubr.bf16.mxu0 %v12054_v62  ;;  %7669 = vmatprep.mubr.bf16.mxu1 %v12054_v62 }
 0x279   : > { %6984 = vmatpush1.bf16.msra.mxu0 %v10248_v14  ;;  %7640 = vmatpush1.bf16.msra.mxu1 %v10251_v63  ;;  %v10343_v14 = vld [vmem:[%s11417_s7 + $0x120c] ss:$16 sps:$4 sm:$0xff]   ;;  %v12120_v63 = vrot.slane %v12039_v52, %v11492_v50  ;;  %v10344_v52 = vld [vmem:[%s11417_s7 + $0x1220] ss:$16 sps:$4 sm:$0xff]  }
 0x27a   : > { %6985 = vmatprep.subr.bf16.mxu0 %v10256_v0  ;;  %7641 = vmatprep.subr.bf16.mxu1 %v10259_v1  ;;  %v10338_v0 = vld [vmem:[%s11417_s7 + $0x1200] ss:$16 sps:$4 sm:$0xff]   ;;  %v10341_v1 = vld [vmem:[%s11417_s7 + $0x1208] ss:$16 sps:$4 sm:$0xff]  }
 0x27d   : > { %6986 = vmatpush1.bf16.msra.mxu0 %v10254_v2  ;;  %7642 = vmatpush1.bf16.msra.mxu1 %v10257_v3  ;;  %v10346_v2 = vld [vmem:[%s11417_s7 + $0x1224] ss:$16 sps:$4 sm:$0xff]   ;;  %v10349_v3 = vld [vmem:[%s11417_s7 + $0x122c] ss:$16 sps:$4 sm:$0xff]  }
 0x27e   : > { %6987 = vmatprep.subr.bf16.mxu0 %v10262_v4  ;;  %7643 = vmatprep.subr.bf16.mxu1 %v10265_v5  ;;  %v1450_v4 = vcombine.high %v12054_v62, %v12054_v62  ;;  %v10347_v5 = vld [vmem:[%s11417_s7 + $0x1228] ss:$16 sps:$4 sm:$0xff]   ;;  %v10350_v62 = vld [vmem:[%s11417_s7 + $0x1240] ss:$16 sps:$4 sm:$0xff]  }
 0x281   : > { %6988 = vmatpush1.bf16.msra.mxu0 %v10260_v6  ;;  %7644 = vmatpush1.bf16.msra.mxu1 %v10263_v7  ;;  %v10352_v6 = vld [vmem:[%s11417_s7 + $0x1244] ss:$16 sps:$4 sm:$0xff]   ;;  %v10355_v7 = vld [vmem:[%s11417_s7 + $0x124c] ss:$16 sps:$4 sm:$0xff]  }
 0x282   : > { %6989 = vmatprep.subr.bf16.mxu0 %v10268_v8  ;;  %7645 = vmatprep.subr.bf16.mxu1 %v10271_v9  ;;  %v10353_v8 = vld [vmem:[%s11417_s7 + $0x1248] ss:$16 sps:$4 sm:$0xff]   ;;  %v10358_v9 = vld [vmem:[%s11417_s7 + $0x1264] ss:$16 sps:$4 sm:$0xff]  }
 0x285   : > { %6990 = vmatpush1.bf16.msra.mxu0 %v10266_v10  ;;  %7646 = vmatpush1.bf16.msra.mxu1 %v10269_v11  ;;  %v10361_v10 = vld [vmem:[%s11417_s7 + $0x126c] ss:$16 sps:$4 sm:$0xff]   ;;  %v10356_v11 = vld [vmem:[%s11417_s7 + $0x1260] ss:$16 sps:$4 sm:$0xff]  }
 0x286   : > { %6991 = vmatprep.subr.bf16.mxu0 %v10274_v12  ;;  %7647 = vmatprep.subr.bf16.mxu1 %v10277_v13  ;;  %v10359_v12 = vld [vmem:[%s11417_s7 + $0x1268] ss:$16 sps:$4 sm:$0xff]   ;;  %v10364_v13 = vld [vmem:[%s11417_s7 + $0x1284] ss:$16 sps:$4 sm:$0xff]  }
 0x289   : > { %6992 = vmatpush1.bf16.msra.mxu0 %v10272_v15  ;;  %7648 = vmatpush1.bf16.msra.mxu1 %v10275_v17  ;;  %v10367_v15 = vld [vmem:[%s11417_s7 + $0x128c] ss:$16 sps:$4 sm:$0xff]   ;;  %v10362_v17 = vld [vmem:[%s11417_s7 + $0x1280] ss:$16 sps:$4 sm:$0xff]  }
 0x28a   : > { %6993 = vmatprep.subr.bf16.mxu0 %v10280_v53  ;;  %7649 = vmatprep.subr.bf16.mxu1 %v10283_v18  ;;  %v10365_v53 = vld [vmem:[%s11417_s7 + $0x1288] ss:$16 sps:$4 sm:$0xff]   ;;  %v10370_v18 = vld [vmem:[%s11417_s7 + $0x12a4] ss:$16 sps:$4 sm:$0xff]  }
 0x28d   : > { %6994 = vmatpush1.bf16.msra.mxu0 %v10278_v19  ;;  %7650 = vmatpush1.bf16.msra.mxu1 %v10281_v20  ;;  %v10373_v19 = vld [vmem:[%s11417_s7 + $0x12ac] ss:$16 sps:$4 sm:$0xff]   ;;  %v10368_v20 = vld [vmem:[%s11417_s7 + $0x12a0] ss:$16 sps:$4 sm:$0xff]  }
 0x28e   : > { %6995 = vmatprep.subr.bf16.mxu0 %v10286_v21  ;;  %7651 = vmatprep.subr.bf16.mxu1 %v10289_v23  ;;  %v10371_v21 = vld [vmem:[%s11417_s7 + $0x12a8] ss:$16 sps:$4 sm:$0xff]   ;;  %v10376_v23 = vld [vmem:[%s11417_s7 + $0x12c4] ss:$16 sps:$4 sm:$0xff]  }
 0x291   : > { %6996 = vmatpush1.bf16.msra.mxu0 %v10284_v24  ;;  %7652 = vmatpush1.bf16.msra.mxu1 %v10287_v25  ;;  %v10379_v24 = vld [vmem:[%s11417_s7 + $0x12cc] ss:$16 sps:$4 sm:$0xff]   ;;  %v10374_v25 = vld [vmem:[%s11417_s7 + $0x12c0] ss:$16 sps:$4 sm:$0xff]  }
 0x292   : > { %6997 = vmatprep.subr.bf16.mxu0 %v10292_v27  ;;  %7653 = vmatprep.subr.bf16.mxu1 %v10295_v28  ;;  %v10377_v27 = vld [vmem:[%s11417_s7 + $0x12c8] ss:$16 sps:$4 sm:$0xff]   ;;  %v10382_v28 = vld [vmem:[%s11417_s7 + $0x12e4] ss:$16 sps:$4 sm:$0xff]  }
 0x295   : > { %6998 = vmatpush1.bf16.msra.mxu0 %v10290_v29  ;;  %7654 = vmatpush1.bf16.msra.mxu1 %v10293_v30  ;;  %v10385_v29 = vld [vmem:[%s11417_s7 + $0x12ec] ss:$16 sps:$4 sm:$0xff]   ;;  %v10380_v30 = vld [vmem:[%s11417_s7 + $0x12e0] ss:$16 sps:$4 sm:$0xff]  }
 0x296   : > { %6999 = vmatprep.subr.bf16.mxu0 %v10298_v31  ;;  %7655 = vmatprep.subr.bf16.mxu1 %v10301_v16  ;;  %v10383_v31 = vld [vmem:[%s11417_s7 + $0x12e8] ss:$16 sps:$4 sm:$0xff]   ;;  %v10388_v16 = vld [vmem:[%s11417_s7 + $0x1304] ss:$16 sps:$4 sm:$0xff]  }
 0x299   : > { %7000 = vmatpush1.bf16.msra.mxu0 %v10296_v32  ;;  %7656 = vmatpush1.bf16.msra.mxu1 %v10299_v33  ;;  %v10391_v32 = vld [vmem:[%s11417_s7 + $0x130c] ss:$16 sps:$4 sm:$0xff]   ;;  %v10386_v33 = vld [vmem:[%s11417_s7 + $0x1300] ss:$16 sps:$4 sm:$0xff]  }
 0x29a   : > { %7001 = vmatprep.subr.bf16.mxu0 %v10304_v34  ;;  %7657 = vmatprep.subr.bf16.mxu1 %v10307_v26  ;;  %v10389_v34 = vld [vmem:[%s11417_s7 + $0x1308] ss:$16 sps:$4 sm:$0xff]   ;;  %v10394_v26 = vld [vmem:[%s11417_s7 + $0x1324] ss:$16 sps:$4 sm:$0xff]  }
 0x29d   : > { %7002 = vmatpush1.bf16.msra.mxu0 %v10302_v35  ;;  %7658 = vmatpush1.bf16.msra.mxu1 %v10305_v37  ;;  %v10397_v35 = vld [vmem:[%s11417_s7 + $0x132c] ss:$16 sps:$4 sm:$0xff]   ;;  %v10392_v37 = vld [vmem:[%s11417_s7 + $0x1320] ss:$16 sps:$4 sm:$0xff]  }
 0x29e   : > { %7003 = vmatprep.subr.bf16.mxu0 %v10310_v38  ;;  %7659 = vmatprep.subr.bf16.mxu1 %v10313_v40  ;;  %v10395_v38 = vld [vmem:[%s11417_s7 + $0x1328] ss:$16 sps:$4 sm:$0xff]   ;;  %v10400_v40 = vld [vmem:[%s11417_s7 + $0x1344] ss:$16 sps:$4 sm:$0xff]  }
 0x2a1   : > { %7004 = vmatpush1.bf16.msra.mxu0 %v10308_v41  ;;  %7660 = vmatpush1.bf16.msra.mxu1 %v10311_v22  ;;  %v10403_v41 = vld [vmem:[%s11417_s7 + $0x134c] ss:$16 sps:$4 sm:$0xff]   ;;  %v10398_v22 = vld [vmem:[%s11417_s7 + $0x1340] ss:$16 sps:$4 sm:$0xff]  }
 0x2a2   : > { %7005 = vmatprep.subr.bf16.mxu0 %v10316_v42  ;;  %7661 = vmatprep.subr.bf16.mxu1 %v10319_v43  ;;  %v10401_v42 = vld [vmem:[%s11417_s7 + $0x1348] ss:$16 sps:$4 sm:$0xff]   ;;  %v10406_v43 = vld [vmem:[%s11417_s7 + $0x1364] ss:$16 sps:$4 sm:$0xff]  }
 0x2a5   : > { %7006 = vmatpush1.bf16.msra.mxu0 %v10314_v45  ;;  %7662 = vmatpush1.bf16.msra.mxu1 %v10317_v46  ;;  %v10409_v45 = vld [vmem:[%s11417_s7 + $0x136c] ss:$16 sps:$4 sm:$0xff]   ;;  %v10404_v46 = vld [vmem:[%s11417_s7 + $0x1360] ss:$16 sps:$4 sm:$0xff]  }
 0x2a6   : > { %7007 = vmatprep.subr.bf16.mxu0 %v10322_v47  ;;  %7663 = vmatprep.subr.bf16.mxu1 %v10325_v48  ;;  %v10407_v47 = vld [vmem:[%s11417_s7 + $0x1368] ss:$16 sps:$4 sm:$0xff]   ;;  %v10412_v48 = vld [vmem:[%s11417_s7 + $0x1384] ss:$16 sps:$4 sm:$0xff]  }
 0x2a9   : > { %7008 = vmatpush1.bf16.msra.mxu0 %v10320_v51  ;;  %7664 = vmatpush1.bf16.msra.mxu1 %v10323_v54  ;;  %v10415_v51 = vld [vmem:[%s11417_s7 + $0x138c] ss:$16 sps:$4 sm:$0xff]   ;;  %v10410_v54 = vld [vmem:[%s11417_s7 + $0x1380] ss:$16 sps:$4 sm:$0xff]  }
 0x2aa   : > { %7009 = vmatprep.subr.bf16.mxu0 %v10328_v55  ;;  %7665 = vmatprep.subr.bf16.mxu1 %v10331_v56  ;;  %v10413_v55 = vld [vmem:[%s11417_s7 + $0x1388] ss:$16 sps:$4 sm:$0xff]   ;;  %v10418_v56 = vld [vmem:[%s11417_s7 + $0x13a4] ss:$16 sps:$4 sm:$0xff]  }
 0x2ad   : > { %7010 = vmatpush1.bf16.msra.mxu0 %v10326_v39  ;;  %7666 = vmatpush1.bf16.msra.mxu1 %v10329_v57  ;;  %v10421_v39 = vld [vmem:[%s11417_s7 + $0x13ac] ss:$16 sps:$4 sm:$0xff]   ;;  %v10416_v57 = vld [vmem:[%s11417_s7 + $0x13a0] ss:$16 sps:$4 sm:$0xff]  }
 0x2ae   : > { %7011 = vmatprep.subr.bf16.mxu0 %v10334_v58  ;;  %7667 = vmatprep.subr.bf16.mxu1 %v10337_v59  ;;  %v10419_v58 = vld [vmem:[%s11417_s7 + $0x13a8] ss:$16 sps:$4 sm:$0xff]   ;;  %v10424_v59 = vld [vmem:[%s11417_s7 + $0x13c4] ss:$16 sps:$4 sm:$0xff]  }
 0x2b1   : > { %7012 = vmatpush1.bf16.msra.mxu0 %v10332_v49  ;;  %7668 = vmatpush1.bf16.msra.mxu1 %v10335_v60  ;;  %v10427_v49 = vld [vmem:[%s11417_s7 + $0x13cc] ss:$16 sps:$4 sm:$0xff]   ;;  %v1403_v60 = vcombine.high %v12031_v36, %v12031_v36  ;;  %v10428_v36 = vld [vmem:[%s11417_s7 + $0x13e0] ss:$16 sps:$4 sm:$0xff]  }
 0x2b2   : > { %7022 = vmatprep.subr.bf16.mxu0 %v10340_v61  ;;  %7678 = vmatprep.subr.bf16.mxu1 %v10343_v14  ;;  %v10422_v61 = vld [vmem:[%s11417_s7 + $0x13c0] ss:$16 sps:$4 sm:$0xff]   ;;  %v10425_v14 = vld [vmem:[%s11417_s7 + $0x13c8] ss:$16 sps:$4 sm:$0xff]  }
 0x2b4   : > { %7014 = vmatmul.mubr.bf16.vlgmr.msra.gmra.mrb[0].mxu0 %v12120_v63  ;;  %7670 = vmatmul.mubr.bf16.vlgmr.msra.gmra.mrb[0].mxu1 %v12120_v63 }
 0x2b5   : > { %7023 = vmatpush1.bf16.msra.mxu0 %v10338_v0  ;;  %7679 = vmatpush1.bf16.msra.mxu1 %v10341_v1  ;;  %v10430_v0 = vld [vmem:[%s11417_s7 + $0x13e4] ss:$16 sps:$4 sm:$0xff]   ;;  %v10433_v1 = vld [vmem:[%s11417_s7 + $0x13ec] ss:$16 sps:$4 sm:$0xff]  }
 0x2b6   : > { %7024 = vmatprep.subr.bf16.mxu0 %v10346_v2  ;;  %7680 = vmatprep.subr.bf16.mxu1 %v10349_v3  ;;  %v12189_v2 = vrot.slane %v1403_v60, %v11492_v50  ;;  %v10431_v3 = vld [vmem:[%s11417_s7 + $0x13e8] ss:$16 sps:$4 sm:$0xff]  }
 0x2b7   : > { %7054 = vmatprep.mubr.bf16.mxu0 %v1450_v4  ;;  %7710 = vmatprep.mubr.bf16.mxu1 %v1450_v4  ;;  %v10436_v4 = vld [vmem:[%s11417_s7 + $0x1404] ss:$16 sps:$4 sm:$0xff]   ;;  %v10509_v60 = vld [vmem:[%s11417_s7 + $0x1588] ss:$16 sps:$4 sm:$0xff]  }
 0x2b9   : > { %7025 = vmatpush1.bf16.msra.mxu0 %v10344_v52  ;;  %7681 = vmatpush1.bf16.msra.mxu1 %v10347_v5  ;;  %v10439_v52 = vld [vmem:[%s11417_s7 + $0x140c] ss:$16 sps:$4 sm:$0xff]   ;;  %v1419_v5 = vcombine.high %v12189_v2, %v12189_v2 }
 0x2ba   : > { %7026 = vmatprep.subr.bf16.mxu0 %v10352_v6  ;;  %7682 = vmatprep.subr.bf16.mxu1 %v10355_v7  ;;  %v1448_v6 = vcombine.high %v12120_v63, %v12120_v63  ;;  %v10434_v7 = vld [vmem:[%s11417_s7 + $0x1400] ss:$16 sps:$4 sm:$0xff]  }
 0x2bb   : > { %v10440_v63 = vld [vmem:[%s11417_s7 + $0x1420] ss:$16 sps:$4 sm:$0xff]  }
 0x2bd   : > { %7027 = vmatpush1.bf16.msra.mxu0 %v10350_v62  ;;  %7683 = vmatpush1.bf16.msra.mxu1 %v10353_v8  ;;  %v10437_v62 = vld [vmem:[%s11417_s7 + $0x1408] ss:$16 sps:$4 sm:$0xff]   ;;  %v10442_v8 = vld [vmem:[%s11417_s7 + $0x1424] ss:$16 sps:$4 sm:$0xff]  }
 0x2be   : > { %7028 = vmatprep.subr.bf16.mxu0 %v10358_v9  ;;  %7684 = vmatprep.subr.bf16.mxu1 %v10361_v10  ;;  %v10445_v9 = vld [vmem:[%s11417_s7 + $0x142c] ss:$16 sps:$4 sm:$0xff]   ;;  %v12204_v10 = vrot.slane %v1419_v5, %v11492_v50  ;;  %v10526_v5 = vld [vmem:[%s11417_s7 + $0x15e4] ss:$16 sps:$4 sm:$0xff]  }
 0x2c1   : > { %7029 = vmatpush1.bf16.msra.mxu0 %v10356_v11  ;;  %7685 = vmatpush1.bf16.msra.mxu1 %v10359_v12  ;;  %v10443_v11 = vld [vmem:[%s11417_s7 + $0x1428] ss:$16 sps:$4 sm:$0xff]   ;;  %v10448_v12 = vld [vmem:[%s11417_s7 + $0x1444] ss:$16 sps:$4 sm:$0xff]  }
 0x2c2   : > { %7030 = vmatprep.subr.bf16.mxu0 %v10364_v13  ;;  %7686 = vmatprep.subr.bf16.mxu1 %v10367_v15  ;;  %v10451_v13 = vld [vmem:[%s11417_s7 + $0x144c] ss:$16 sps:$4 sm:$0xff]   ;;  %v10446_v15 = vld [vmem:[%s11417_s7 + $0x1440] ss:$16 sps:$4 sm:$0xff]  }
 0x2c5   : > { %7031 = vmatpush1.bf16.msra.mxu0 %v10362_v17  ;;  %7687 = vmatpush1.bf16.msra.mxu1 %v10365_v53  ;;  %v10449_v17 = vld [vmem:[%s11417_s7 + $0x1448] ss:$16 sps:$4 sm:$0xff]   ;;  %v10454_v53 = vld [vmem:[%s11417_s7 + $0x1464] ss:$16 sps:$4 sm:$0xff]  }
 0x2c6   : > { %7032 = vmatprep.subr.bf16.mxu0 %v10370_v18  ;;  %7688 = vmatprep.subr.bf16.mxu1 %v10373_v19  ;;  %v10457_v18 = vld [vmem:[%s11417_s7 + $0x146c] ss:$16 sps:$4 sm:$0xff]   ;;  %v10452_v19 = vld [vmem:[%s11417_s7 + $0x1460] ss:$16 sps:$4 sm:$0xff]  }
 0x2c9   : > { %7033 = vmatpush1.bf16.msra.mxu0 %v10368_v20  ;;  %7689 = vmatpush1.bf16.msra.mxu1 %v10371_v21  ;;  %v10455_v20 = vld [vmem:[%s11417_s7 + $0x1468] ss:$16 sps:$4 sm:$0xff]   ;;  %v10460_v21 = vld [vmem:[%s11417_s7 + $0x1484] ss:$16 sps:$4 sm:$0xff]  }
 0x2ca   : > { %7034 = vmatprep.subr.bf16.mxu0 %v10376_v23  ;;  %7690 = vmatprep.subr.bf16.mxu1 %v10379_v24  ;;  %v10463_v23 = vld [vmem:[%s11417_s7 + $0x148c] ss:$16 sps:$4 sm:$0xff]   ;;  %v10458_v24 = vld [vmem:[%s11417_s7 + $0x1480] ss:$16 sps:$4 sm:$0xff]  }
 0x2cd   : > { %7035 = vmatpush1.bf16.msra.mxu0 %v10374_v25  ;;  %7691 = vmatpush1.bf16.msra.mxu1 %v10377_v27  ;;  %v10461_v25 = vld [vmem:[%s11417_s7 + $0x1488] ss:$16 sps:$4 sm:$0xff]   ;;  %v10466_v27 = vld [vmem:[%s11417_s7 + $0x14a4] ss:$16 sps:$4 sm:$0xff]  }
 0x2ce   : > { %7036 = vmatprep.subr.bf16.mxu0 %v10382_v28  ;;  %7692 = vmatprep.subr.bf16.mxu1 %v10385_v29  ;;  %v10469_v28 = vld [vmem:[%s11417_s7 + $0x14ac] ss:$16 sps:$4 sm:$0xff]   ;;  %v10464_v29 = vld [vmem:[%s11417_s7 + $0x14a0] ss:$16 sps:$4 sm:$0xff]  }
 0x2d1   : > { %7037 = vmatpush1.bf16.msra.mxu0 %v10380_v30  ;;  %7693 = vmatpush1.bf16.msra.mxu1 %v10383_v31  ;;  %v10467_v30 = vld [vmem:[%s11417_s7 + $0x14a8] ss:$16 sps:$4 sm:$0xff]   ;;  %v10472_v31 = vld [vmem:[%s11417_s7 + $0x14c4] ss:$16 sps:$4 sm:$0xff]  }
 0x2d2   : > { %7038 = vmatprep.subr.bf16.mxu0 %v10388_v16  ;;  %7694 = vmatprep.subr.bf16.mxu1 %v10391_v32  ;;  %v10475_v16 = vld [vmem:[%s11417_s7 + $0x14cc] ss:$16 sps:$4 sm:$0xff]   ;;  %v10470_v32 = vld [vmem:[%s11417_s7 + $0x14c0] ss:$16 sps:$4 sm:$0xff]  }
 0x2d5   : > { %7039 = vmatpush1.bf16.msra.mxu0 %v10386_v33  ;;  %7695 = vmatpush1.bf16.msra.mxu1 %v10389_v34  ;;  %v10473_v33 = vld [vmem:[%s11417_s7 + $0x14c8] ss:$16 sps:$4 sm:$0xff]   ;;  %v10478_v34 = vld [vmem:[%s11417_s7 + $0x14e4] ss:$16 sps:$4 sm:$0xff]  }
 0x2d6   : > { %7040 = vmatprep.subr.bf16.mxu0 %v10394_v26  ;;  %7696 = vmatprep.subr.bf16.mxu1 %v10397_v35  ;;  %v10481_v26 = vld [vmem:[%s11417_s7 + $0x14ec] ss:$16 sps:$4 sm:$0xff]   ;;  %v10476_v35 = vld [vmem:[%s11417_s7 + $0x14e0] ss:$16 sps:$4 sm:$0xff]  }
 0x2d9   : > { %7041 = vmatpush1.bf16.msra.mxu0 %v10392_v37  ;;  %7697 = vmatpush1.bf16.msra.mxu1 %v10395_v38  ;;  %v10479_v37 = vld [vmem:[%s11417_s7 + $0x14e8] ss:$16 sps:$4 sm:$0xff]   ;;  %v10484_v38 = vld [vmem:[%s11417_s7 + $0x1504] ss:$16 sps:$4 sm:$0xff]  }
 0x2da   : > { %7042 = vmatprep.subr.bf16.mxu0 %v10400_v40  ;;  %7698 = vmatprep.subr.bf16.mxu1 %v10403_v41  ;;  %v10487_v40 = vld [vmem:[%s11417_s7 + $0x150c] ss:$16 sps:$4 sm:$0xff]   ;;  %v10482_v41 = vld [vmem:[%s11417_s7 + $0x1500] ss:$16 sps:$4 sm:$0xff]  }
 0x2dd   : > { %7043 = vmatpush1.bf16.msra.mxu0 %v10398_v22  ;;  %7699 = vmatpush1.bf16.msra.mxu1 %v10401_v42  ;;  %v10485_v22 = vld [vmem:[%s11417_s7 + $0x1508] ss:$16 sps:$4 sm:$0xff]   ;;  %v10490_v42 = vld [vmem:[%s11417_s7 + $0x1524] ss:$16 sps:$4 sm:$0xff]  }
 0x2de   : > { %7044 = vmatprep.subr.bf16.mxu0 %v10406_v43  ;;  %7700 = vmatprep.subr.bf16.mxu1 %v10409_v45  ;;  %v10493_v43 = vld [vmem:[%s11417_s7 + $0x152c] ss:$16 sps:$4 sm:$0xff]   ;;  %v10488_v45 = vld [vmem:[%s11417_s7 + $0x1520] ss:$16 sps:$4 sm:$0xff]  }
 0x2e1   : > { %7045 = vmatpush1.bf16.msra.mxu0 %v10404_v46  ;;  %7701 = vmatpush1.bf16.msra.mxu1 %v10407_v47  ;;  %v10491_v46 = vld [vmem:[%s11417_s7 + $0x1528] ss:$16 sps:$4 sm:$0xff]   ;;  %v10496_v47 = vld [vmem:[%s11417_s7 + $0x1544] ss:$16 sps:$4 sm:$0xff]  }
 0x2e2   : > { %7046 = vmatprep.subr.bf16.mxu0 %v10412_v48  ;;  %7702 = vmatprep.subr.bf16.mxu1 %v10415_v51  ;;  %v10499_v48 = vld [vmem:[%s11417_s7 + $0x154c] ss:$16 sps:$4 sm:$0xff]   ;;  %v10494_v51 = vld [vmem:[%s11417_s7 + $0x1540] ss:$16 sps:$4 sm:$0xff]  }
 0x2e5   : > { %7047 = vmatpush1.bf16.msra.mxu0 %v10410_v54  ;;  %7703 = vmatpush1.bf16.msra.mxu1 %v10413_v55  ;;  %v10497_v54 = vld [vmem:[%s11417_s7 + $0x1548] ss:$16 sps:$4 sm:$0xff]   ;;  %v10502_v55 = vld [vmem:[%s11417_s7 + $0x1564] ss:$16 sps:$4 sm:$0xff]  }
 0x2e6   : > { %7048 = vmatprep.subr.bf16.mxu0 %v10418_v56  ;;  %7704 = vmatprep.subr.bf16.mxu1 %v10421_v39  ;;  %v10505_v56 = vld [vmem:[%s11417_s7 + $0x156c] ss:$16 sps:$4 sm:$0xff]   ;;  %v10500_v39 = vld [vmem:[%s11417_s7 + $0x1560] ss:$16 sps:$4 sm:$0xff]  }
 0x2e9   : > { %7049 = vmatpush1.bf16.msra.mxu0 %v10416_v57  ;;  %7705 = vmatpush1.bf16.msra.mxu1 %v10419_v58  ;;  %v10503_v57 = vld [vmem:[%s11417_s7 + $0x1568] ss:$16 sps:$4 sm:$0xff]   ;;  %v10508_v58 = vld [vmem:[%s11417_s7 + $0x1584] ss:$16 sps:$4 sm:$0xff]  }
 0x2ea   : > { %7050 = vmatprep.subr.bf16.mxu0 %v10424_v59  ;;  %7706 = vmatprep.subr.bf16.mxu1 %v10427_v49  ;;  %v10511_v59 = vld [vmem:[%s11417_s7 + $0x158c] ss:$16 sps:$4 sm:$0xff]   ;;  %v10506_v49 = vld [vmem:[%s11417_s7 + $0x1580] ss:$16 sps:$4 sm:$0xff]  }
 0x2ed   : > { %7051 = vmatpush1.bf16.msra.mxu0 %v10422_v61  ;;  %7707 = vmatpush1.bf16.msra.mxu1 %v10425_v14  ;;  %v10514_v61 = vld [vmem:[%s11417_s7 + $0x15a4] ss:$16 sps:$4 sm:$0xff]   ;;  %v10517_v14 = vld [vmem:[%s11417_s7 + $0x15ac] ss:$16 sps:$4 sm:$0xff]  }
 0x2ee   : > { %7052 = vmatprep.subr.bf16.mxu0 %v10430_v0  ;;  %7708 = vmatprep.subr.bf16.mxu1 %v10433_v1  ;;  %v10512_v0 = vld [vmem:[%s11417_s7 + $0x15a0] ss:$16 sps:$4 sm:$0xff]   ;;  %v10515_v1 = vld [vmem:[%s11417_s7 + $0x15a8] ss:$16 sps:$4 sm:$0xff]  }
 0x2f1   : > { %7053 = vmatpush1.bf16.msra.mxu0 %v10428_v36  ;;  %7709 = vmatpush1.bf16.msra.mxu1 %v10431_v3  ;;  %v10520_v36 = vld [vmem:[%s11417_s7 + $0x15c4] ss:$16 sps:$4 sm:$0xff]   ;;  %v10523_v3 = vld [vmem:[%s11417_s7 + $0x15cc] ss:$16 sps:$4 sm:$0xff]  }
 0x2f2   : > { %7063 = vmatprep.subr.bf16.mxu0 %v10436_v4  ;;  %7719 = vmatprep.subr.bf16.mxu1 %v10439_v52  ;;  %v10518_v4 = vld [vmem:[%s11417_s7 + $0x15c0] ss:$16 sps:$4 sm:$0xff]   ;;  %v10521_v52 = vld [vmem:[%s11417_s7 + $0x15c8] ss:$16 sps:$4 sm:$0xff]  }
 0x2f4   : > { %7055 = vmatmul.mubr.bf16.vlgmr.msra.gmra.mrb[0].mxu0 %v1448_v6  ;;  %7711 = vmatmul.mubr.bf16.vlgmr.msra.gmra.mrb[0].mxu1 %v1448_v6  ;;  %v10529_v6 = vld [vmem:[%s11417_s7 + $0x15ec] ss:$16 sps:$4 sm:$0xff]  }
 0x2f5   : > { %7064 = vmatpush1.bf16.msra.mxu0 %v10434_v7  ;;  %7720 = vmatpush1.bf16.msra.mxu1 %v10437_v62  ;;  %v10524_v7 = vld [vmem:[%s11417_s7 + $0x15e0] ss:$16 sps:$4 sm:$0xff]   ;;  %v10527_v62 = vld [vmem:[%s11417_s7 + $0x15e8] ss:$16 sps:$4 sm:$0xff]  }
 0x2f6   : > { %7065 = vmatprep.subr.bf16.mxu0 %v10442_v8  ;;  %7721 = vmatprep.subr.bf16.mxu1 %v10445_v9  ;;  %v10533_v8 = vld [vmem:[%s11417_s7 + $0x1604] ss:$16 sps:$4 sm:$0xff]   ;;  %v10536_v9 = vld [vmem:[%s11417_s7 + $0x160c] ss:$16 sps:$4 sm:$0xff]  }
 0x2f7   : > { %7095 = vmatprep.mubr.bf16.mxu0 %v12204_v10  ;;  %7751 = vmatprep.mubr.bf16.mxu1 %v12204_v10 }
 0x2f9   : > { %7066 = vmatpush1.bf16.msra.mxu0 %v10440_v63  ;;  %7722 = vmatpush1.bf16.msra.mxu1 %v10443_v11  ;;  %v12270_v63 = vrot.slane %v12189_v2, %v11492_v50  ;;  %v10531_v11 = vld [vmem:[%s11417_s7 + $0x1600] ss:$16 sps:$4 sm:$0xff]  }
 0x2fa   : > { %7067 = vmatprep.subr.bf16.mxu0 %v10448_v12  ;;  %7723 = vmatprep.subr.bf16.mxu1 %v10451_v13  ;;  %v10534_v12 = vld [vmem:[%s11417_s7 + $0x1608] ss:$16 sps:$4 sm:$0xff]   ;;  %v10539_v13 = vld [vmem:[%s11417_s7 + $0x1624] ss:$16 sps:$4 sm:$0xff]   ;;  %v10537_v2 = vld [vmem:[%s11417_s7 + $0x1620] ss:$16 sps:$4 sm:$0xff]  }
 0x2fd   : > { %7068 = vmatpush1.bf16.msra.mxu0 %v10446_v15  ;;  %7724 = vmatpush1.bf16.msra.mxu1 %v10449_v17  ;;  %v10542_v15 = vld [vmem:[%s11417_s7 + $0x162c] ss:$16 sps:$4 sm:$0xff]   ;;  %v1451_v17 = vcombine.high %v12204_v10, %v12204_v10  ;;  %v10543_v10 = vld [vmem:[%s11417_s7 + $0x1640] ss:$16 sps:$4 sm:$0xff]  }
 0x2fe   : > { %7069 = vmatprep.subr.bf16.mxu0 %v10454_v53  ;;  %7725 = vmatprep.subr.bf16.mxu1 %v10457_v18  ;;  %v10540_v53 = vld [vmem:[%s11417_s7 + $0x1628] ss:$16 sps:$4 sm:$0xff]   ;;  %v10545_v18 = vld [vmem:[%s11417_s7 + $0x1644] ss:$16 sps:$4 sm:$0xff]  }
 0x301   : > { %7070 = vmatpush1.bf16.msra.mxu0 %v10452_v19  ;;  %7726 = vmatpush1.bf16.msra.mxu1 %v10455_v20  ;;  %v10548_v19 = vld [vmem:[%s11417_s7 + $0x164c] ss:$16 sps:$4 sm:$0xff]   ;;  %v10546_v20 = vld [vmem:[%s11417_s7 + $0x1648] ss:$16 sps:$4 sm:$0xff]  }
 0x302   : > { %7071 = vmatprep.subr.bf16.mxu0 %v10460_v21  ;;  %7727 = vmatprep.subr.bf16.mxu1 %v10463_v23  ;;  %v10551_v21 = vld [vmem:[%s11417_s7 + $0x1664] ss:$16 sps:$4 sm:$0xff]   ;;  %v10554_v23 = vld [vmem:[%s11417_s7 + $0x166c] ss:$16 sps:$4 sm:$0xff]  }
 0x305   : > { %7072 = vmatpush1.bf16.msra.mxu0 %v10458_v24  ;;  %7728 = vmatpush1.bf16.msra.mxu1 %v10461_v25  ;;  %v10549_v24 = vld [vmem:[%s11417_s7 + $0x1660] ss:$16 sps:$4 sm:$0xff]   ;;  %v10552_v25 = vld [vmem:[%s11417_s7 + $0x1668] ss:$16 sps:$4 sm:$0xff]  }
 0x306   : > { %7073 = vmatprep.subr.bf16.mxu0 %v10466_v27  ;;  %7729 = vmatprep.subr.bf16.mxu1 %v10469_v28  ;;  %v10557_v27 = vld [vmem:[%s11417_s7 + $0x1684] ss:$16 sps:$4 sm:$0xff]   ;;  %v10560_v28 = vld [vmem:[%s11417_s7 + $0x168c] ss:$16 sps:$4 sm:$0xff]  }
 0x309   : > { %7074 = vmatpush1.bf16.msra.mxu0 %v10464_v29  ;;  %7730 = vmatpush1.bf16.msra.mxu1 %v10467_v30  ;;  %v10555_v29 = vld [vmem:[%s11417_s7 + $0x1680] ss:$16 sps:$4 sm:$0xff]   ;;  %v10558_v30 = vld [vmem:[%s11417_s7 + $0x1688] ss:$16 sps:$4 sm:$0xff]  }
 0x30a   : > { %7075 = vmatprep.subr.bf16.mxu0 %v10472_v31  ;;  %7731 = vmatprep.subr.bf16.mxu1 %v10475_v16  ;;  %v10563_v31 = vld [vmem:[%s11417_s7 + $0x16a4] ss:$16 sps:$4 sm:$0xff]   ;;  %v10566_v16 = vld [vmem:[%s11417_s7 + $0x16ac] ss:$16 sps:$4 sm:$0xff]  }
 0x30d   : > { %7076 = vmatpush1.bf16.msra.mxu0 %v10470_v32  ;;  %7732 = vmatpush1.bf16.msra.mxu1 %v10473_v33  ;;  %v10561_v32 = vld [vmem:[%s11417_s7 + $0x16a0] ss:$16 sps:$4 sm:$0xff]   ;;  %v10564_v33 = vld [vmem:[%s11417_s7 + $0x16a8] ss:$16 sps:$4 sm:$0xff]  }
 0x30e   : > { %7077 = vmatprep.subr.bf16.mxu0 %v10478_v34  ;;  %7733 = vmatprep.subr.bf16.mxu1 %v10481_v26  ;;  %v10569_v34 = vld [vmem:[%s11417_s7 + $0x16c4] ss:$16 sps:$4 sm:$0xff]   ;;  %v10572_v26 = vld [vmem:[%s11417_s7 + $0x16cc] ss:$16 sps:$4 sm:$0xff]  }
 0x311   : > { %7078 = vmatpush1.bf16.msra.mxu0 %v10476_v35  ;;  %7734 = vmatpush1.bf16.msra.mxu1 %v10479_v37  ;;  %v10567_v35 = vld [vmem:[%s11417_s7 + $0x16c0] ss:$16 sps:$4 sm:$0xff]   ;;  %v10570_v37 = vld [vmem:[%s11417_s7 + $0x16c8] ss:$16 sps:$4 sm:$0xff]  }
 0x312   : > { %7079 = vmatprep.subr.bf16.mxu0 %v10484_v38  ;;  %7735 = vmatprep.subr.bf16.mxu1 %v10487_v40  ;;  %v10575_v38 = vld [vmem:[%s11417_s7 + $0x16e4] ss:$16 sps:$4 sm:$0xff]   ;;  %v10578_v40 = vld [vmem:[%s11417_s7 + $0x16ec] ss:$16 sps:$4 sm:$0xff]  }
 0x315   : > { %7080 = vmatpush1.bf16.msra.mxu0 %v10482_v41  ;;  %7736 = vmatpush1.bf16.msra.mxu1 %v10485_v22  ;;  %v10573_v41 = vld [vmem:[%s11417_s7 + $0x16e0] ss:$16 sps:$4 sm:$0xff]   ;;  %v10576_v22 = vld [vmem:[%s11417_s7 + $0x16e8] ss:$16 sps:$4 sm:$0xff]  }
 0x316   : > { %7081 = vmatprep.subr.bf16.mxu0 %v10490_v42  ;;  %7737 = vmatprep.subr.bf16.mxu1 %v10493_v43  ;;  %v10581_v42 = vld [vmem:[%s11417_s7 + $0x1704] ss:$16 sps:$4 sm:$0xff]   ;;  %v10584_v43 = vld [vmem:[%s11417_s7 + $0x170c] ss:$16 sps:$4 sm:$0xff]  }
 0x319   : > { %7082 = vmatpush1.bf16.msra.mxu0 %v10488_v45  ;;  %7738 = vmatpush1.bf16.msra.mxu1 %v10491_v46  ;;  %v10579_v45 = vld [vmem:[%s11417_s7 + $0x1700] ss:$16 sps:$4 sm:$0xff]   ;;  %v10582_v46 = vld [vmem:[%s11417_s7 + $0x1708] ss:$16 sps:$4 sm:$0xff]  }
 0x31a   : > { %7083 = vmatprep.subr.bf16.mxu0 %v10496_v47  ;;  %7739 = vmatprep.subr.bf16.mxu1 %v10499_v48  ;;  %v10587_v47 = vld [vmem:[%s11417_s7 + $0x1724] ss:$16 sps:$4 sm:$0xff]   ;;  %v10590_v48 = vld [vmem:[%s11417_s7 + $0x172c] ss:$16 sps:$4 sm:$0xff]  }
 0x31d   : > { %7084 = vmatpush1.bf16.msra.mxu0 %v10494_v51  ;;  %7740 = vmatpush1.bf16.msra.mxu1 %v10497_v54  ;;  %v10585_v51 = vld [vmem:[%s11417_s7 + $0x1720] ss:$16 sps:$4 sm:$0xff]   ;;  %v10588_v54 = vld [vmem:[%s11417_s7 + $0x1728] ss:$16 sps:$4 sm:$0xff]  }
 0x31e   : > { %7085 = vmatprep.subr.bf16.mxu0 %v10502_v55  ;;  %7741 = vmatprep.subr.bf16.mxu1 %v10505_v56  ;;  %v10593_v55 = vld [vmem:[%s11417_s7 + $0x1744] ss:$16 sps:$4 sm:$0xff]   ;;  %v10596_v56 = vld [vmem:[%s11417_s7 + $0x174c] ss:$16 sps:$4 sm:$0xff]  }
 0x321   : > { %7086 = vmatpush1.bf16.msra.mxu0 %v10500_v39  ;;  %7742 = vmatpush1.bf16.msra.mxu1 %v10503_v57  ;;  %v10591_v39 = vld [vmem:[%s11417_s7 + $0x1740] ss:$16 sps:$4 sm:$0xff]   ;;  %v10594_v57 = vld [vmem:[%s11417_s7 + $0x1748] ss:$16 sps:$4 sm:$0xff]  }
 0x322   : > { %7087 = vmatprep.subr.bf16.mxu0 %v10508_v58  ;;  %7743 = vmatprep.subr.bf16.mxu1 %v10511_v59  ;;  %v10599_v58 = vld [vmem:[%s11417_s7 + $0x1764] ss:$16 sps:$4 sm:$0xff]   ;;  %v10602_v59 = vld [vmem:[%s11417_s7 + $0x176c] ss:$16 sps:$4 sm:$0xff]  }
 0x325   : > { %7088 = vmatpush1.bf16.msra.mxu0 %v10506_v49  ;;  %7744 = vmatpush1.bf16.msra.mxu1 %v10509_v60  ;;  %v10597_v49 = vld [vmem:[%s11417_s7 + $0x1760] ss:$16 sps:$4 sm:$0xff]   ;;  %v10600_v60 = vld [vmem:[%s11417_s7 + $0x1768] ss:$16 sps:$4 sm:$0xff]  }
 0x326   : > { %7089 = vmatprep.subr.bf16.mxu0 %v10514_v61  ;;  %7745 = vmatprep.subr.bf16.mxu1 %v10517_v14  ;;  %v10605_v61 = vld [vmem:[%s11417_s7 + $0x1784] ss:$16 sps:$4 sm:$0xff]   ;;  %v10608_v14 = vld [vmem:[%s11417_s7 + $0x178c] ss:$16 sps:$4 sm:$0xff]  }
 0x329   : > { %7090 = vmatpush1.bf16.msra.mxu0 %v10512_v0  ;;  %7746 = vmatpush1.bf16.msra.mxu1 %v10515_v1  ;;  %v10603_v0 = vld [vmem:[%s11417_s7 + $0x1780] ss:$16 sps:$4 sm:$0xff]   ;;  %v10606_v1 = vld [vmem:[%s11417_s7 + $0x1788] ss:$16 sps:$4 sm:$0xff]  }
 0x32a   : > { %7091 = vmatprep.subr.bf16.mxu0 %v10520_v36  ;;  %7747 = vmatprep.subr.bf16.mxu1 %v10523_v3  ;;  %v10611_v36 = vld [vmem:[%s11417_s7 + $0x17a4] ss:$16 sps:$4 sm:$0xff]   ;;  %v10614_v3 = vld [vmem:[%s11417_s7 + $0x17ac] ss:$16 sps:$4 sm:$0xff]  }
 0x32d   : > { %7092 = vmatpush1.bf16.msra.mxu0 %v10518_v4  ;;  %7748 = vmatpush1.bf16.msra.mxu1 %v10521_v52  ;;  %v10609_v4 = vld [vmem:[%s11417_s7 + $0x17a0] ss:$16 sps:$4 sm:$0xff]   ;;  %v10612_v52 = vld [vmem:[%s11417_s7 + $0x17a8] ss:$16 sps:$4 sm:$0xff]  }
 0x32e   : > { %7093 = vmatprep.subr.bf16.mxu0 %v10526_v5  ;;  %7749 = vmatprep.subr.bf16.mxu1 %v10529_v6  ;;  %v10617_v5 = vld [vmem:[%s11417_s7 + $0x17c4] ss:$16 sps:$4 sm:$0xff]   ;;  %v10620_v6 = vld [vmem:[%s11417_s7 + $0x17cc] ss:$16 sps:$4 sm:$0xff]  }
 0x331   : > { %7094 = vmatpush1.bf16.msra.mxu0 %v10524_v7  ;;  %7750 = vmatpush1.bf16.msra.mxu1 %v10527_v62  ;;  %v12333_v7 = vld [vmem:[%s11438_s12 + $0x18] sm:$0xff] }
 0x332   : > { %7104 = vmatprep.subr.bf16.mxu0 %v10533_v8  ;;  %7760 = vmatprep.subr.bf16.mxu1 %v10536_v9  ;;  %v10615_v62 = vld [vmem:[%s11417_s7 + $0x17c0] ss:$16 sps:$4 sm:$0xff]   ;;  %v10618_v8 = vld [vmem:[%s11417_s7 + $0x17c8] ss:$16 sps:$4 sm:$0xff]   ;;  %v10623_v9 = vld [vmem:[%s11417_s7 + $0x17e4] ss:$16 sps:$4 sm:$0xff]  }
 0x334   : > { %7096 = vmatmul.mubr.bf16.vlgmr.msra.gmra.mrb[0].mxu0 %v12270_v63  ;;  %7752 = vmatmul.mubr.bf16.vlgmr.msra.gmra.mrb[0].mxu1 %v12270_v63 }
 0x335   : > { %7105 = vmatpush1.bf16.msra.mxu0 %v10531_v11  ;;  %7761 = vmatpush1.bf16.msra.mxu1 %v10534_v12  ;;  %v10626_v11 = vld [vmem:[%s11417_s7 + $0x17ec] ss:$16 sps:$4 sm:$0xff]   ;;  %v12341_v12 = vrot.slane %v12333_v7, %v11492_v50 }
 0x336   : > { %7106 = vmatprep.subr.bf16.mxu0 %v10539_v13  ;;  %7762 = vmatprep.subr.bf16.mxu1 %v10542_v15  ;;  %v10621_v13 = vld [vmem:[%s11417_s7 + $0x17e0] ss:$16 sps:$4 sm:$0xff]   ;;  %v10624_v15 = vld [vmem:[%s11417_s7 + $0x17e8] ss:$16 sps:$4 sm:$0xff]  }
 0x337   : > { %7136 = vmatprep.mubr.bf16.mxu0 %v1451_v17  ;;  %7792 = vmatprep.mubr.bf16.mxu1 %v1451_v17  ;;  %v10629_v17 = vld [vmem:[%s11417_s7 + $0x1804] ss:$16 sps:$4 sm:$0xff]  }
 0x339   : > { %7107 = vmatpush1.bf16.msra.mxu0 %v10537_v2  ;;  %7763 = vmatpush1.bf16.msra.mxu1 %v10540_v53  ;;  %v10632_v2 = vld [vmem:[%s11417_s7 + $0x180c] ss:$16 sps:$4 sm:$0xff]   ;;  %v1467_v53 = vcombine.high %v12341_v12, %v12341_v12 }
 0x33a   : > { %7108 = vmatprep.subr.bf16.mxu0 %v10545_v18  ;;  %7764 = vmatprep.subr.bf16.mxu1 %v10548_v19  ;;  %v1449_v18 = vcombine.high %v12270_v63, %v12270_v63  ;;  %v10627_v19 = vld [vmem:[%s11417_s7 + $0x1800] ss:$16 sps:$4 sm:$0xff]  }
 0x33b   : > { %v10633_v63 = vld [vmem:[%s11417_s7 + $0x1820] ss:$16 sps:$4 sm:$0xff]  }
 0x33d   : > { %7109 = vmatpush1.bf16.msra.mxu0 %v10543_v10  ;;  %7765 = vmatpush1.bf16.msra.mxu1 %v10546_v20  ;;  %v10630_v10 = vld [vmem:[%s11417_s7 + $0x1808] ss:$16 sps:$4 sm:$0xff]   ;;  %v10635_v20 = vld [vmem:[%s11417_s7 + $0x1824] ss:$16 sps:$4 sm:$0xff]  }
 0x33e   : > { %7110 = vmatprep.subr.bf16.mxu0 %v10551_v21  ;;  %7766 = vmatprep.subr.bf16.mxu1 %v10554_v23  ;;  %v10638_v21 = vld [vmem:[%s11417_s7 + $0x182c] ss:$16 sps:$4 sm:$0xff]   ;;  %v12356_v23 = vrot.slane %v1467_v53, %v11492_v50  ;;  %v10714_v53 = vld [vmem:[%s11417_s7 + $0x19c8] ss:$16 sps:$4 sm:$0xff]  }
 0x341   : > { %7111 = vmatpush1.bf16.msra.mxu0 %v10549_v24  ;;  %7767 = vmatpush1.bf16.msra.mxu1 %v10552_v25  ;;  %v10636_v24 = vld [vmem:[%s11417_s7 + $0x1828] ss:$16 sps:$4 sm:$0xff]   ;;  %v10641_v25 = vld [vmem:[%s11417_s7 + $0x1844] ss:$16 sps:$4 sm:$0xff]  }
 0x342   : > { %7112 = vmatprep.subr.bf16.mxu0 %v10557_v27  ;;  %7768 = vmatprep.subr.bf16.mxu1 %v10560_v28  ;;  %v10644_v27 = vld [vmem:[%s11417_s7 + $0x184c] ss:$16 sps:$4 sm:$0xff]   ;;  %v10639_v28 = vld [vmem:[%s11417_s7 + $0x1840] ss:$16 sps:$4 sm:$0xff]  }
 0x345   : > { %7113 = vmatpush1.bf16.msra.mxu0 %v10555_v29  ;;  %7769 = vmatpush1.bf16.msra.mxu1 %v10558_v30  ;;  %v10642_v29 = vld [vmem:[%s11417_s7 + $0x1848] ss:$16 sps:$4 sm:$0xff]   ;;  %v10647_v30 = vld [vmem:[%s11417_s7 + $0x1864] ss:$16 sps:$4 sm:$0xff]  }
 0x346   : > { %7114 = vmatprep.subr.bf16.mxu0 %v10563_v31  ;;  %7770 = vmatprep.subr.bf16.mxu1 %v10566_v16  ;;  %v10650_v31 = vld [vmem:[%s11417_s7 + $0x186c] ss:$16 sps:$4 sm:$0xff]   ;;  %v10645_v16 = vld [vmem:[%s11417_s7 + $0x1860] ss:$16 sps:$4 sm:$0xff]  }
 0x349   : > { %7115 = vmatpush1.bf16.msra.mxu0 %v10561_v32  ;;  %7771 = vmatpush1.bf16.msra.mxu1 %v10564_v33  ;;  %v10648_v32 = vld [vmem:[%s11417_s7 + $0x1868] ss:$16 sps:$4 sm:$0xff]   ;;  %v10653_v33 = vld [vmem:[%s11417_s7 + $0x1884] ss:$16 sps:$4 sm:$0xff]  }
 0x34a   : > { %7116 = vmatprep.subr.bf16.mxu0 %v10569_v34  ;;  %7772 = vmatprep.subr.bf16.mxu1 %v10572_v26  ;;  %v10656_v34 = vld [vmem:[%s11417_s7 + $0x188c] ss:$16 sps:$4 sm:$0xff]   ;;  %v10651_v26 = vld [vmem:[%s11417_s7 + $0x1880] ss:$16 sps:$4 sm:$0xff]  }
 0x34d   : > { %7117 = vmatpush1.bf16.msra.mxu0 %v10567_v35  ;;  %7773 = vmatpush1.bf16.msra.mxu1 %v10570_v37  ;;  %v10654_v35 = vld [vmem:[%s11417_s7 + $0x1888] ss:$16 sps:$4 sm:$0xff]   ;;  %v10659_v37 = vld [vmem:[%s11417_s7 + $0x18a4] ss:$16 sps:$4 sm:$0xff]  }
 0x34e   : > { %7118 = vmatprep.subr.bf16.mxu0 %v10575_v38  ;;  %7774 = vmatprep.subr.bf16.mxu1 %v10578_v40  ;;  %v10662_v38 = vld [vmem:[%s11417_s7 + $0x18ac] ss:$16 sps:$4 sm:$0xff]   ;;  %v10657_v40 = vld [vmem:[%s11417_s7 + $0x18a0] ss:$16 sps:$4 sm:$0xff]  }
 0x351   : > { %7119 = vmatpush1.bf16.msra.mxu0 %v10573_v41  ;;  %7775 = vmatpush1.bf16.msra.mxu1 %v10576_v22  ;;  %v10660_v41 = vld [vmem:[%s11417_s7 + $0x18a8] ss:$16 sps:$4 sm:$0xff]   ;;  %v10665_v22 = vld [vmem:[%s11417_s7 + $0x18c4] ss:$16 sps:$4 sm:$0xff]  }
 0x352   : > { %7120 = vmatprep.subr.bf16.mxu0 %v10581_v42  ;;  %7776 = vmatprep.subr.bf16.mxu1 %v10584_v43  ;;  %v10668_v42 = vld [vmem:[%s11417_s7 + $0x18cc] ss:$16 sps:$4 sm:$0xff]   ;;  %v10663_v43 = vld [vmem:[%s11417_s7 + $0x18c0] ss:$16 sps:$4 sm:$0xff]  }
 0x355   : > { %7121 = vmatpush1.bf16.msra.mxu0 %v10579_v45  ;;  %7777 = vmatpush1.bf16.msra.mxu1 %v10582_v46  ;;  %v10666_v45 = vld [vmem:[%s11417_s7 + $0x18c8] ss:$16 sps:$4 sm:$0xff]   ;;  %v10671_v46 = vld [vmem:[%s11417_s7 + $0x18e4] ss:$16 sps:$4 sm:$0xff]  }
 0x356   : > { %7122 = vmatprep.subr.bf16.mxu0 %v10587_v47  ;;  %7778 = vmatprep.subr.bf16.mxu1 %v10590_v48  ;;  %v10674_v47 = vld [vmem:[%s11417_s7 + $0x18ec] ss:$16 sps:$4 sm:$0xff]   ;;  %v10669_v48 = vld [vmem:[%s11417_s7 + $0x18e0] ss:$16 sps:$4 sm:$0xff]  }
 0x359   : > { %7123 = vmatpush1.bf16.msra.mxu0 %v10585_v51  ;;  %7779 = vmatpush1.bf16.msra.mxu1 %v10588_v54  ;;  %v10672_v51 = vld [vmem:[%s11417_s7 + $0x18e8] ss:$16 sps:$4 sm:$0xff]   ;;  %v10677_v54 = vld [vmem:[%s11417_s7 + $0x1904] ss:$16 sps:$4 sm:$0xff]  }
 0x35a   : > { %7124 = vmatprep.subr.bf16.mxu0 %v10593_v55  ;;  %7780 = vmatprep.subr.bf16.mxu1 %v10596_v56  ;;  %v10680_v55 = vld [vmem:[%s11417_s7 + $0x190c] ss:$16 sps:$4 sm:$0xff]   ;;  %v10675_v56 = vld [vmem:[%s11417_s7 + $0x1900] ss:$16 sps:$4 sm:$0xff]  }
 0x35d   : > { %7125 = vmatpush1.bf16.msra.mxu0 %v10591_v39  ;;  %7781 = vmatpush1.bf16.msra.mxu1 %v10594_v57  ;;  %v10678_v39 = vld [vmem:[%s11417_s7 + $0x1908] ss:$16 sps:$4 sm:$0xff]   ;;  %v10683_v57 = vld [vmem:[%s11417_s7 + $0x1924] ss:$16 sps:$4 sm:$0xff]  }
 0x35e   : > { %7126 = vmatprep.subr.bf16.mxu0 %v10599_v58  ;;  %7782 = vmatprep.subr.bf16.mxu1 %v10602_v59  ;;  %v10686_v58 = vld [vmem:[%s11417_s7 + $0x192c] ss:$16 sps:$4 sm:$0xff]   ;;  %v10681_v59 = vld [vmem:[%s11417_s7 + $0x1920] ss:$16 sps:$4 sm:$0xff]  }
 0x361   : > { %7127 = vmatpush1.bf16.msra.mxu0 %v10597_v49  ;;  %7783 = vmatpush1.bf16.msra.mxu1 %v10600_v60  ;;  %v10684_v49 = vld [vmem:[%s11417_s7 + $0x1928] ss:$16 sps:$4 sm:$0xff]   ;;  %v10689_v60 = vld [vmem:[%s11417_s7 + $0x1944] ss:$16 sps:$4 sm:$0xff]  }
 0x362   : > { %7128 = vmatprep.subr.bf16.mxu0 %v10605_v61  ;;  %7784 = vmatprep.subr.bf16.mxu1 %v10608_v14  ;;  %v10692_v61 = vld [vmem:[%s11417_s7 + $0x194c] ss:$16 sps:$4 sm:$0xff]   ;;  %v10687_v14 = vld [vmem:[%s11417_s7 + $0x1940] ss:$16 sps:$4 sm:$0xff]  }
 0x365   : > { %7129 = vmatpush1.bf16.msra.mxu0 %v10603_v0  ;;  %7785 = vmatpush1.bf16.msra.mxu1 %v10606_v1  ;;  %v10690_v0 = vld [vmem:[%s11417_s7 + $0x1948] ss:$16 sps:$4 sm:$0xff]   ;;  %v10695_v1 = vld [vmem:[%s11417_s7 + $0x1964] ss:$16 sps:$4 sm:$0xff]  }
 0x366   : > { %7130 = vmatprep.subr.bf16.mxu0 %v10611_v36  ;;  %7786 = vmatprep.subr.bf16.mxu1 %v10614_v3  ;;  %v10698_v36 = vld [vmem:[%s11417_s7 + $0x196c] ss:$16 sps:$4 sm:$0xff]   ;;  %v10693_v3 = vld [vmem:[%s11417_s7 + $0x1960] ss:$16 sps:$4 sm:$0xff]  }
 0x369   : > { %7131 = vmatpush1.bf16.msra.mxu0 %v10609_v4  ;;  %7787 = vmatpush1.bf16.msra.mxu1 %v10612_v52  ;;  %v10696_v4 = vld [vmem:[%s11417_s7 + $0x1968] ss:$16 sps:$4 sm:$0xff]   ;;  %v10701_v52 = vld [vmem:[%s11417_s7 + $0x1984] ss:$16 sps:$4 sm:$0xff]  }
 0x36a   : > { %7132 = vmatprep.subr.bf16.mxu0 %v10617_v5  ;;  %7788 = vmatprep.subr.bf16.mxu1 %v10620_v6  ;;  %v10704_v5 = vld [vmem:[%s11417_s7 + $0x198c] ss:$16 sps:$4 sm:$0xff]   ;;  %v10699_v6 = vld [vmem:[%s11417_s7 + $0x1980] ss:$16 sps:$4 sm:$0xff]  }
 0x36d   : > { %7133 = vmatpush1.bf16.msra.mxu0 %v10615_v62  ;;  %7789 = vmatpush1.bf16.msra.mxu1 %v10618_v8  ;;  %v10702_v62 = vld [vmem:[%s11417_s7 + $0x1988] ss:$16 sps:$4 sm:$0xff]   ;;  %v10707_v8 = vld [vmem:[%s11417_s7 + $0x19a4] ss:$16 sps:$4 sm:$0xff]  }
 0x36e   : > { %7134 = vmatprep.subr.bf16.mxu0 %v10623_v9  ;;  %7790 = vmatprep.subr.bf16.mxu1 %v10626_v11  ;;  %v10710_v9 = vld [vmem:[%s11417_s7 + $0x19ac] ss:$16 sps:$4 sm:$0xff]   ;;  %v10705_v11 = vld [vmem:[%s11417_s7 + $0x19a0] ss:$16 sps:$4 sm:$0xff]  }
 0x371   : > { %7135 = vmatpush1.bf16.msra.mxu0 %v10621_v13  ;;  %7791 = vmatpush1.bf16.msra.mxu1 %v10624_v15  ;;  %v10708_v13 = vld [vmem:[%s11417_s7 + $0x19a8] ss:$16 sps:$4 sm:$0xff]   ;;  %v10713_v15 = vld [vmem:[%s11417_s7 + $0x19c4] ss:$16 sps:$4 sm:$0xff]  }
 0x372   : > { %7145 = vmatprep.subr.bf16.mxu0 %v10629_v17  ;;  %7801 = vmatprep.subr.bf16.mxu1 %v10632_v2  ;;  %v10716_v17 = vld [vmem:[%s11417_s7 + $0x19cc] ss:$16 sps:$4 sm:$0xff]   ;;  %v10711_v2 = vld [vmem:[%s11417_s7 + $0x19c0] ss:$16 sps:$4 sm:$0xff]  }
 0x374   : > { %7137 = vmatmul.mubr.bf16.vlgmr.msra.gmra.mrb[0].mxu0 %v1449_v18  ;;  %7793 = vmatmul.mubr.bf16.vlgmr.msra.gmra.mrb[0].mxu1 %v1449_v18  ;;  %v10719_v18 = vld [vmem:[%s11417_s7 + $0x19e4] ss:$16 sps:$4 sm:$0xff]  }
 0x375   : > { %7146 = vmatpush1.bf16.msra.mxu0 %v10627_v19  ;;  %7802 = vmatpush1.bf16.msra.mxu1 %v10630_v10  ;;  %v10722_v19 = vld [vmem:[%s11417_s7 + $0x19ec] ss:$16 sps:$4 sm:$0xff]   ;;  %v10717_v10 = vld [vmem:[%s11417_s7 + $0x19e0] ss:$16 sps:$4 sm:$0xff]  }
 0x376   : > { %7147 = vmatprep.subr.bf16.mxu0 %v10635_v20  ;;  %7803 = vmatprep.subr.bf16.mxu1 %v10638_v21  ;;  %v10720_v20 = vld [vmem:[%s11417_s7 + $0x19e8] ss:$16 sps:$4 sm:$0xff]   ;;  %v10725_v21 = vld [vmem:[%s11417_s7 + $0x1a04] ss:$16 sps:$4 sm:$0xff]  }
 0x377   : > { %7177 = vmatprep.mubr.bf16.mxu0 %v12356_v23  ;;  %7833 = vmatprep.mubr.bf16.mxu1 %v12356_v23 }
 0x379   : > { %7148 = vmatpush1.bf16.msra.mxu0 %v10633_v63  ;;  %7804 = vmatpush1.bf16.msra.mxu1 %v10636_v24  ;;  %v10728_v63 = vld [vmem:[%s11417_s7 + $0x1a0c] ss:$16 sps:$4 sm:$0xff]   ;;  %v12422_v24 = vrot.slane %v12341_v12, %v11492_v50  ;;  %v10729_v12 = vld [vmem:[%s11417_s7 + $0x1a20] ss:$16 sps:$4 sm:$0xff]  }
 0x37a   : > { %7149 = vmatprep.subr.bf16.mxu0 %v10641_v25  ;;  %7805 = vmatprep.subr.bf16.mxu1 %v10644_v27  ;;  %v10723_v25 = vld [vmem:[%s11417_s7 + $0x1a00] ss:$16 sps:$4 sm:$0xff]   ;;  %v10726_v27 = vld [vmem:[%s11417_s7 + $0x1a08] ss:$16 sps:$4 sm:$0xff]  }
 0x37d   : > { %7150 = vmatpush1.bf16.msra.mxu0 %v10639_v28  ;;  %7806 = vmatpush1.bf16.msra.mxu1 %v10642_v29  ;;  %v10731_v28 = vld [vmem:[%s11417_s7 + $0x1a24] ss:$16 sps:$4 sm:$0xff]   ;;  %v10734_v29 = vld [vmem:[%s11417_s7 + $0x1a2c] ss:$16 sps:$4 sm:$0xff]  }
 0x37e   : > { %7151 = vmatprep.subr.bf16.mxu0 %v10647_v30  ;;  %7807 = vmatprep.subr.bf16.mxu1 %v10650_v31  ;;  %v1499_v30 = vcombine.high %v12356_v23, %v12356_v23  ;;  %v10732_v31 = vld [vmem:[%s11417_s7 + $0x1a28] ss:$16 sps:$4 sm:$0xff]   ;;  %v10735_v23 = vld [vmem:[%s11417_s7 + $0x1a40] ss:$16 sps:$4 sm:$0xff]  }
 0x381   : > { %7152 = vmatpush1.bf16.msra.mxu0 %v10645_v16  ;;  %7808 = vmatpush1.bf16.msra.mxu1 %v10648_v32  ;;  %v10737_v16 = vld [vmem:[%s11417_s7 + $0x1a44] ss:$16 sps:$4 sm:$0xff]   ;;  %v10740_v32 = vld [vmem:[%s11417_s7 + $0x1a4c] ss:$16 sps:$4 sm:$0xff]  }
 0x382   : > { %7153 = vmatprep.subr.bf16.mxu0 %v10653_v33  ;;  %7809 = vmatprep.subr.bf16.mxu1 %v10656_v34  ;;  %v10738_v33 = vld [vmem:[%s11417_s7 + $0x1a48] ss:$16 sps:$4 sm:$0xff]   ;;  %v10743_v34 = vld [vmem:[%s11417_s7 + $0x1a64] ss:$16 sps:$4 sm:$0xff]  }
 0x385   : > { %7154 = vmatpush1.bf16.msra.mxu0 %v10651_v26  ;;  %7810 = vmatpush1.bf16.msra.mxu1 %v10654_v35  ;;  %v10746_v26 = vld [vmem:[%s11417_s7 + $0x1a6c] ss:$16 sps:$4 sm:$0xff]   ;;  %v10741_v35 = vld [vmem:[%s11417_s7 + $0x1a60] ss:$16 sps:$4 sm:$0xff]  }
 0x386   : > { %7155 = vmatprep.subr.bf16.mxu0 %v10659_v37  ;;  %7811 = vmatprep.subr.bf16.mxu1 %v10662_v38  ;;  %v10744_v37 = vld [vmem:[%s11417_s7 + $0x1a68] ss:$16 sps:$4 sm:$0xff]   ;;  %v10749_v38 = vld [vmem:[%s11417_s7 + $0x1a84] ss:$16 sps:$4 sm:$0xff]  }
 0x389   : > { %7156 = vmatpush1.bf16.msra.mxu0 %v10657_v40  ;;  %7812 = vmatpush1.bf16.msra.mxu1 %v10660_v41  ;;  %v10752_v40 = vld [vmem:[%s11417_s7 + $0x1a8c] ss:$16 sps:$4 sm:$0xff]   ;;  %v10747_v41 = vld [vmem:[%s11417_s7 + $0x1a80] ss:$16 sps:$4 sm:$0xff]  }
 0x38a   : > { %7157 = vmatprep.subr.bf16.mxu0 %v10665_v22  ;;  %7813 = vmatprep.subr.bf16.mxu1 %v10668_v42  ;;  %v10750_v22 = vld [vmem:[%s11417_s7 + $0x1a88] ss:$16 sps:$4 sm:$0xff]   ;;  %v10755_v42 = vld [vmem:[%s11417_s7 + $0x1aa4] ss:$16 sps:$4 sm:$0xff]  }
 0x38d   : > { %7158 = vmatpush1.bf16.msra.mxu0 %v10663_v43  ;;  %7814 = vmatpush1.bf16.msra.mxu1 %v10666_v45  ;;  %v10758_v43 = vld [vmem:[%s11417_s7 + $0x1aac] ss:$16 sps:$4 sm:$0xff]   ;;  %v10753_v45 = vld [vmem:[%s11417_s7 + $0x1aa0] ss:$16 sps:$4 sm:$0xff]  }
 0x38e   : > { %7159 = vmatprep.subr.bf16.mxu0 %v10671_v46  ;;  %7815 = vmatprep.subr.bf16.mxu1 %v10674_v47  ;;  %v10756_v46 = vld [vmem:[%s11417_s7 + $0x1aa8] ss:$16 sps:$4 sm:$0xff]   ;;  %v10761_v47 = vld [vmem:[%s11417_s7 + $0x1ac4] ss:$16 sps:$4 sm:$0xff]  }
 0x391   : > { %7160 = vmatpush1.bf16.msra.mxu0 %v10669_v48  ;;  %7816 = vmatpush1.bf16.msra.mxu1 %v10672_v51  ;;  %v10764_v48 = vld [vmem:[%s11417_s7 + $0x1acc] ss:$16 sps:$4 sm:$0xff]   ;;  %v10759_v51 = vld [vmem:[%s11417_s7 + $0x1ac0] ss:$16 sps:$4 sm:$0xff]  }
 0x392   : > { %7161 = vmatprep.subr.bf16.mxu0 %v10677_v54  ;;  %7817 = vmatprep.subr.bf16.mxu1 %v10680_v55  ;;  %v10762_v54 = vld [vmem:[%s11417_s7 + $0x1ac8] ss:$16 sps:$4 sm:$0xff]   ;;  %v10767_v55 = vld [vmem:[%s11417_s7 + $0x1ae4] ss:$16 sps:$4 sm:$0xff]  }
 0x395   : > { %7162 = vmatpush1.bf16.msra.mxu0 %v10675_v56  ;;  %7818 = vmatpush1.bf16.msra.mxu1 %v10678_v39  ;;  %v10770_v56 = vld [vmem:[%s11417_s7 + $0x1aec] ss:$16 sps:$4 sm:$0xff]   ;;  %v10765_v39 = vld [vmem:[%s11417_s7 + $0x1ae0] ss:$16 sps:$4 sm:$0xff]  }
 0x396   : > { %7163 = vmatprep.subr.bf16.mxu0 %v10683_v57  ;;  %7819 = vmatprep.subr.bf16.mxu1 %v10686_v58  ;;  %v10768_v57 = vld [vmem:[%s11417_s7 + $0x1ae8] ss:$16 sps:$4 sm:$0xff]   ;;  %v10773_v58 = vld [vmem:[%s11417_s7 + $0x1b04] ss:$16 sps:$4 sm:$0xff]  }
 0x399   : > { %7164 = vmatpush1.bf16.msra.mxu0 %v10681_v59  ;;  %7820 = vmatpush1.bf16.msra.mxu1 %v10684_v49  ;;  %v10776_v59 = vld [vmem:[%s11417_s7 + $0x1b0c] ss:$16 sps:$4 sm:$0xff]   ;;  %v10771_v49 = vld [vmem:[%s11417_s7 + $0x1b00] ss:$16 sps:$4 sm:$0xff]  }
 0x39a   : > { %7165 = vmatprep.subr.bf16.mxu0 %v10689_v60  ;;  %7821 = vmatprep.subr.bf16.mxu1 %v10692_v61  ;;  %v10774_v60 = vld [vmem:[%s11417_s7 + $0x1b08] ss:$16 sps:$4 sm:$0xff]   ;;  %v10779_v61 = vld [vmem:[%s11417_s7 + $0x1b24] ss:$16 sps:$4 sm:$0xff]  }
 0x39d   : > { %7166 = vmatpush1.bf16.msra.mxu0 %v10687_v14  ;;  %7822 = vmatpush1.bf16.msra.mxu1 %v10690_v0  ;;  %v10782_v14 = vld [vmem:[%s11417_s7 + $0x1b2c] ss:$16 sps:$4 sm:$0xff]   ;;  %v10777_v0 = vld [vmem:[%s11417_s7 + $0x1b20] ss:$16 sps:$4 sm:$0xff]  }
 0x39e   : > { %7167 = vmatprep.subr.bf16.mxu0 %v10695_v1  ;;  %7823 = vmatprep.subr.bf16.mxu1 %v10698_v36  ;;  %v10780_v1 = vld [vmem:[%s11417_s7 + $0x1b28] ss:$16 sps:$4 sm:$0xff]   ;;  %v10785_v36 = vld [vmem:[%s11417_s7 + $0x1b44] ss:$16 sps:$4 sm:$0xff]  }
 0x3a1   : > { %7168 = vmatpush1.bf16.msra.mxu0 %v10693_v3  ;;  %7824 = vmatpush1.bf16.msra.mxu1 %v10696_v4  ;;  %v10788_v3 = vld [vmem:[%s11417_s7 + $0x1b4c] ss:$16 sps:$4 sm:$0xff]   ;;  %v10783_v4 = vld [vmem:[%s11417_s7 + $0x1b40] ss:$16 sps:$4 sm:$0xff]  }
 0x3a2   : > { %7169 = vmatprep.subr.bf16.mxu0 %v10701_v52  ;;  %7825 = vmatprep.subr.bf16.mxu1 %v10704_v5  ;;  %v10786_v52 = vld [vmem:[%s11417_s7 + $0x1b48] ss:$16 sps:$4 sm:$0xff]   ;;  %v10791_v5 = vld [vmem:[%s11417_s7 + $0x1b64] ss:$16 sps:$4 sm:$0xff]  }
 0x3a5   : > { %7170 = vmatpush1.bf16.msra.mxu0 %v10699_v6  ;;  %7826 = vmatpush1.bf16.msra.mxu1 %v10702_v62  ;;  %v10794_v6 = vld [vmem:[%s11417_s7 + $0x1b6c] ss:$16 sps:$4 sm:$0xff]   ;;  %v10789_v62 = vld [vmem:[%s11417_s7 + $0x1b60] ss:$16 sps:$4 sm:$0xff]  }
 0x3a6   : > { %7171 = vmatprep.subr.bf16.mxu0 %v10707_v8  ;;  %7827 = vmatprep.subr.bf16.mxu1 %v10710_v9  ;;  %v10792_v8 = vld [vmem:[%s11417_s7 + $0x1b68] ss:$16 sps:$4 sm:$0xff]   ;;  %v10797_v9 = vld [vmem:[%s11417_s7 + $0x1b84] ss:$16 sps:$4 sm:$0xff]  }
 0x3a9   : > { %7172 = vmatpush1.bf16.msra.mxu0 %v10705_v11  ;;  %7828 = vmatpush1.bf16.msra.mxu1 %v10708_v13  ;;  %v10800_v11 = vld [vmem:[%s11417_s7 + $0x1b8c] ss:$16 sps:$4 sm:$0xff]   ;;  %v10795_v13 = vld [vmem:[%s11417_s7 + $0x1b80] ss:$16 sps:$4 sm:$0xff]  }
 0x3aa   : > { %7173 = vmatprep.subr.bf16.mxu0 %v10713_v15  ;;  %7829 = vmatprep.subr.bf16.mxu1 %v10716_v17  ;;  %v10798_v15 = vld [vmem:[%s11417_s7 + $0x1b88] ss:$16 sps:$4 sm:$0xff]   ;;  %v10803_v17 = vld [vmem:[%s11417_s7 + $0x1ba4] ss:$16 sps:$4 sm:$0xff]  }
 0x3ad   : > { %7174 = vmatpush1.bf16.msra.mxu0 %v10711_v2  ;;  %7830 = vmatpush1.bf16.msra.mxu1 %v10714_v53  ;;  %v10806_v2 = vld [vmem:[%s11417_s7 + $0x1bac] ss:$16 sps:$4 sm:$0xff]   ;;  %v10801_v53 = vld [vmem:[%s11417_s7 + $0x1ba0] ss:$16 sps:$4 sm:$0xff]  }
 0x3ae   : > { %7175 = vmatprep.subr.bf16.mxu0 %v10719_v18  ;;  %7831 = vmatprep.subr.bf16.mxu1 %v10722_v19  ;;  %v10804_v18 = vld [vmem:[%s11417_s7 + $0x1ba8] ss:$16 sps:$4 sm:$0xff]   ;;  %v10809_v19 = vld [vmem:[%s11417_s7 + $0x1bc4] ss:$16 sps:$4 sm:$0xff]  }
 0x3b1   : > { %7176 = vmatpush1.bf16.msra.mxu0 %v10717_v10  ;;  %7832 = vmatpush1.bf16.msra.mxu1 %v10720_v20  ;;  %v10812_v10 = vld [vmem:[%s11417_s7 + $0x1bcc] ss:$16 sps:$4 sm:$0xff]   ;;  %v1452_v20 = vcombine.high %v12333_v7, %v12333_v7  ;;  %v10813_v7 = vld [vmem:[%s11417_s7 + $0x1be0] ss:$16 sps:$4 sm:$0xff]  }
 0x3b2   : > { %7186 = vmatprep.subr.bf16.mxu0 %v10725_v21  ;;  %7842 = vmatprep.subr.bf16.mxu1 %v10728_v63  ;;  %v10807_v21 = vld [vmem:[%s11417_s7 + $0x1bc0] ss:$16 sps:$4 sm:$0xff]   ;;  %v10810_v63 = vld [vmem:[%s11417_s7 + $0x1bc8] ss:$16 sps:$4 sm:$0xff]  }
 0x3b4   : > { %7178 = vmatmul.mubr.bf16.vlgmr.msra.gmra.mrb[0].mxu0 %v12422_v24  ;;  %7834 = vmatmul.mubr.bf16.vlgmr.msra.gmra.mrb[0].mxu1 %v12422_v24 }
 0x3b5   : > { %7187 = vmatpush1.bf16.msra.mxu0 %v10723_v25  ;;  %7843 = vmatpush1.bf16.msra.mxu1 %v10726_v27  ;;  %v10815_v25 = vld [vmem:[%s11417_s7 + $0x1be4] ss:$16 sps:$4 sm:$0xff]   ;;  %v10818_v27 = vld [vmem:[%s11417_s7 + $0x1bec] ss:$16 sps:$4 sm:$0xff]  }
 0x3b6   : > { %7188 = vmatprep.subr.bf16.mxu0 %v10731_v28  ;;  %7844 = vmatprep.subr.bf16.mxu1 %v10734_v29  ;;  %v12491_v28 = vrot.slane %v1452_v20, %v11492_v50  ;;  %v10816_v29 = vld [vmem:[%s11417_s7 + $0x1be8] ss:$16 sps:$4 sm:$0xff]  }
 0x3b7   : > { %7218 = vmatprep.mubr.bf16.mxu0 %v1499_v30  ;;  %7874 = vmatprep.mubr.bf16.mxu1 %v1499_v30  ;;  %v10821_v30 = vld [vmem:[%s11417_s7 + $0x1c04] ss:$16 sps:$4 sm:$0xff]   ;;  %v10894_v20 = vld [vmem:[%s11417_s7 + $0x1d88] ss:$16 sps:$4 sm:$0xff]  }
 0x3b9   : > { %7189 = vmatpush1.bf16.msra.mxu0 %v10729_v12  ;;  %7845 = vmatpush1.bf16.msra.mxu1 %v10732_v31  ;;  %v10824_v12 = vld [vmem:[%s11417_s7 + $0x1c0c] ss:$16 sps:$4 sm:$0xff]   ;;  %v1468_v31 = vcombine.high %v12491_v28, %v12491_v28 }
 0x3ba   : > { %7190 = vmatprep.subr.bf16.mxu0 %v10737_v16  ;;  %7846 = vmatprep.subr.bf16.mxu1 %v10740_v32  ;;  %v1497_v16 = vcombine.high %v12422_v24, %v12422_v24  ;;  %v10819_v32 = vld [vmem:[%s11417_s7 + $0x1c00] ss:$16 sps:$4 sm:$0xff]  }
 0x3bb   : > { %v10825_v24 = vld [vmem:[%s11417_s7 + $0x1c20] ss:$16 sps:$4 sm:$0xff]  }
 0x3bd   : > { %7191 = vmatpush1.bf16.msra.mxu0 %v10735_v23  ;;  %7847 = vmatpush1.bf16.msra.mxu1 %v10738_v33  ;;  %v10822_v23 = vld [vmem:[%s11417_s7 + $0x1c08] ss:$16 sps:$4 sm:$0xff]   ;;  %v10827_v33 = vld [vmem:[%s11417_s7 + $0x1c24] ss:$16 sps:$4 sm:$0xff]  }
 0x3be   : > { %7192 = vmatprep.subr.bf16.mxu0 %v10743_v34  ;;  %7848 = vmatprep.subr.bf16.mxu1 %v10746_v26  ;;  %v10830_v34 = vld [vmem:[%s11417_s7 + $0x1c2c] ss:$16 sps:$4 sm:$0xff]   ;;  %v12506_v26 = vrot.slane %v1468_v31, %v11492_v50  ;;  %v10911_v31 = vld [vmem:[%s11417_s7 + $0x1de4] ss:$16 sps:$4 sm:$0xff]  }
 0x3c1   : > { %7193 = vmatpush1.bf16.msra.mxu0 %v10741_v35  ;;  %7849 = vmatpush1.bf16.msra.mxu1 %v10744_v37  ;;  %v10828_v35 = vld [vmem:[%s11417_s7 + $0x1c28] ss:$16 sps:$4 sm:$0xff]   ;;  %v10833_v37 = vld [vmem:[%s11417_s7 + $0x1c44] ss:$16 sps:$4 sm:$0xff]  }
 0x3c2   : > { %7194 = vmatprep.subr.bf16.mxu0 %v10749_v38  ;;  %7850 = vmatprep.subr.bf16.mxu1 %v10752_v40  ;;  %v10836_v38 = vld [vmem:[%s11417_s7 + $0x1c4c] ss:$16 sps:$4 sm:$0xff]   ;;  %v10831_v40 = vld [vmem:[%s11417_s7 + $0x1c40] ss:$16 sps:$4 sm:$0xff]  }
 0x3c5   : > { %7195 = vmatpush1.bf16.msra.mxu0 %v10747_v41  ;;  %7851 = vmatpush1.bf16.msra.mxu1 %v10750_v22  ;;  %v10834_v41 = vld [vmem:[%s11417_s7 + $0x1c48] ss:$16 sps:$4 sm:$0xff]   ;;  %v10839_v22 = vld [vmem:[%s11417_s7 + $0x1c64] ss:$16 sps:$4 sm:$0xff]  }
 0x3c6   : > { %7196 = vmatprep.subr.bf16.mxu0 %v10755_v42  ;;  %7852 = vmatprep.subr.bf16.mxu1 %v10758_v43  ;;  %v10842_v42 = vld [vmem:[%s11417_s7 + $0x1c6c] ss:$16 sps:$4 sm:$0xff]   ;;  %v10837_v43 = vld [vmem:[%s11417_s7 + $0x1c60] ss:$16 sps:$4 sm:$0xff]  }
 0x3c9   : > { %7197 = vmatpush1.bf16.msra.mxu0 %v10753_v45  ;;  %7853 = vmatpush1.bf16.msra.mxu1 %v10756_v46  ;;  %v10840_v45 = vld [vmem:[%s11417_s7 + $0x1c68] ss:$16 sps:$4 sm:$0xff]   ;;  %v10845_v46 = vld [vmem:[%s11417_s7 + $0x1c84] ss:$16 sps:$4 sm:$0xff]  }
 0x3ca   : > { %7198 = vmatprep.subr.bf16.mxu0 %v10761_v47  ;;  %7854 = vmatprep.subr.bf16.mxu1 %v10764_v48  ;;  %v10848_v47 = vld [vmem:[%s11417_s7 + $0x1c8c] ss:$16 sps:$4 sm:$0xff]   ;;  %v10843_v48 = vld [vmem:[%s11417_s7 + $0x1c80] ss:$16 sps:$4 sm:$0xff]  }
 0x3cd   : > { %7199 = vmatpush1.bf16.msra.mxu0 %v10759_v51  ;;  %7855 = vmatpush1.bf16.msra.mxu1 %v10762_v54  ;;  %v10846_v51 = vld [vmem:[%s11417_s7 + $0x1c88] ss:$16 sps:$4 sm:$0xff]   ;;  %v10851_v54 = vld [vmem:[%s11417_s7 + $0x1ca4] ss:$16 sps:$4 sm:$0xff]  }
 0x3ce   : > { %7200 = vmatprep.subr.bf16.mxu0 %v10767_v55  ;;  %7856 = vmatprep.subr.bf16.mxu1 %v10770_v56  ;;  %v10854_v55 = vld [vmem:[%s11417_s7 + $0x1cac] ss:$16 sps:$4 sm:$0xff]   ;;  %v10849_v56 = vld [vmem:[%s11417_s7 + $0x1ca0] ss:$16 sps:$4 sm:$0xff]  }
 0x3d1   : > { %7201 = vmatpush1.bf16.msra.mxu0 %v10765_v39  ;;  %7857 = vmatpush1.bf16.msra.mxu1 %v10768_v57  ;;  %v10852_v39 = vld [vmem:[%s11417_s7 + $0x1ca8] ss:$16 sps:$4 sm:$0xff]   ;;  %v10857_v57 = vld [vmem:[%s11417_s7 + $0x1cc4] ss:$16 sps:$4 sm:$0xff]  }
 0x3d2   : > { %7202 = vmatprep.subr.bf16.mxu0 %v10773_v58  ;;  %7858 = vmatprep.subr.bf16.mxu1 %v10776_v59  ;;  %v10860_v58 = vld [vmem:[%s11417_s7 + $0x1ccc] ss:$16 sps:$4 sm:$0xff]   ;;  %v10855_v59 = vld [vmem:[%s11417_s7 + $0x1cc0] ss:$16 sps:$4 sm:$0xff]  }
 0x3d5   : > { %7203 = vmatpush1.bf16.msra.mxu0 %v10771_v49  ;;  %7859 = vmatpush1.bf16.msra.mxu1 %v10774_v60  ;;  %v10858_v49 = vld [vmem:[%s11417_s7 + $0x1cc8] ss:$16 sps:$4 sm:$0xff]   ;;  %v10863_v60 = vld [vmem:[%s11417_s7 + $0x1ce4] ss:$16 sps:$4 sm:$0xff]  }
 0x3d6   : > { %7204 = vmatprep.subr.bf16.mxu0 %v10779_v61  ;;  %7860 = vmatprep.subr.bf16.mxu1 %v10782_v14  ;;  %v10866_v61 = vld [vmem:[%s11417_s7 + $0x1cec] ss:$16 sps:$4 sm:$0xff]   ;;  %v10861_v14 = vld [vmem:[%s11417_s7 + $0x1ce0] ss:$16 sps:$4 sm:$0xff]  }
 0x3d9   : > { %7205 = vmatpush1.bf16.msra.mxu0 %v10777_v0  ;;  %7861 = vmatpush1.bf16.msra.mxu1 %v10780_v1  ;;  %v10864_v0 = vld [vmem:[%s11417_s7 + $0x1ce8] ss:$16 sps:$4 sm:$0xff]   ;;  %v10869_v1 = vld [vmem:[%s11417_s7 + $0x1d04] ss:$16 sps:$4 sm:$0xff]  }
 0x3da   : > { %7206 = vmatprep.subr.bf16.mxu0 %v10785_v36  ;;  %7862 = vmatprep.subr.bf16.mxu1 %v10788_v3  ;;  %v10872_v36 = vld [vmem:[%s11417_s7 + $0x1d0c] ss:$16 sps:$4 sm:$0xff]   ;;  %v10867_v3 = vld [vmem:[%s11417_s7 + $0x1d00] ss:$16 sps:$4 sm:$0xff]  }
 0x3dd   : > { %7207 = vmatpush1.bf16.msra.mxu0 %v10783_v4  ;;  %7863 = vmatpush1.bf16.msra.mxu1 %v10786_v52  ;;  %v10870_v4 = vld [vmem:[%s11417_s7 + $0x1d08] ss:$16 sps:$4 sm:$0xff]   ;;  %v10875_v52 = vld [vmem:[%s11417_s7 + $0x1d24] ss:$16 sps:$4 sm:$0xff]  }
 0x3de   : > { %7208 = vmatprep.subr.bf16.mxu0 %v10791_v5  ;;  %7864 = vmatprep.subr.bf16.mxu1 %v10794_v6  ;;  %v10878_v5 = vld [vmem:[%s11417_s7 + $0x1d2c] ss:$16 sps:$4 sm:$0xff]   ;;  %v10873_v6 = vld [vmem:[%s11417_s7 + $0x1d20] ss:$16 sps:$4 sm:$0xff]  }
 0x3e1   : > { %7209 = vmatpush1.bf16.msra.mxu0 %v10789_v62  ;;  %7865 = vmatpush1.bf16.msra.mxu1 %v10792_v8  ;;  %v10876_v62 = vld [vmem:[%s11417_s7 + $0x1d28] ss:$16 sps:$4 sm:$0xff]   ;;  %v10881_v8 = vld [vmem:[%s11417_s7 + $0x1d44] ss:$16 sps:$4 sm:$0xff]  }
 0x3e2   : > { %7210 = vmatprep.subr.bf16.mxu0 %v10797_v9  ;;  %7866 = vmatprep.subr.bf16.mxu1 %v10800_v11  ;;  %v10884_v9 = vld [vmem:[%s11417_s7 + $0x1d4c] ss:$16 sps:$4 sm:$0xff]   ;;  %v10879_v11 = vld [vmem:[%s11417_s7 + $0x1d40] ss:$16 sps:$4 sm:$0xff]  }
 0x3e5   : > { %7211 = vmatpush1.bf16.msra.mxu0 %v10795_v13  ;;  %7867 = vmatpush1.bf16.msra.mxu1 %v10798_v15  ;;  %v10882_v13 = vld [vmem:[%s11417_s7 + $0x1d48] ss:$16 sps:$4 sm:$0xff]   ;;  %v10887_v15 = vld [vmem:[%s11417_s7 + $0x1d64] ss:$16 sps:$4 sm:$0xff]  }
 0x3e6   : > { %7212 = vmatprep.subr.bf16.mxu0 %v10803_v17  ;;  %7868 = vmatprep.subr.bf16.mxu1 %v10806_v2  ;;  %v10890_v17 = vld [vmem:[%s11417_s7 + $0x1d6c] ss:$16 sps:$4 sm:$0xff]   ;;  %v10885_v2 = vld [vmem:[%s11417_s7 + $0x1d60] ss:$16 sps:$4 sm:$0xff]  }
 0x3e9   : > { %7213 = vmatpush1.bf16.msra.mxu0 %v10801_v53  ;;  %7869 = vmatpush1.bf16.msra.mxu1 %v10804_v18  ;;  %v10888_v53 = vld [vmem:[%s11417_s7 + $0x1d68] ss:$16 sps:$4 sm:$0xff]   ;;  %v10893_v18 = vld [vmem:[%s11417_s7 + $0x1d84] ss:$16 sps:$4 sm:$0xff]  }
 0x3ea   : > { %7214 = vmatprep.subr.bf16.mxu0 %v10809_v19  ;;  %7870 = vmatprep.subr.bf16.mxu1 %v10812_v10  ;;  %v10896_v19 = vld [vmem:[%s11417_s7 + $0x1d8c] ss:$16 sps:$4 sm:$0xff]   ;;  %v10891_v10 = vld [vmem:[%s11417_s7 + $0x1d80] ss:$16 sps:$4 sm:$0xff]  }
 0x3ed   : > { %7215 = vmatpush1.bf16.msra.mxu0 %v10807_v21  ;;  %7871 = vmatpush1.bf16.msra.mxu1 %v10810_v63  ;;  %v10899_v21 = vld [vmem:[%s11417_s7 + $0x1da4] ss:$16 sps:$4 sm:$0xff]   ;;  %v10902_v63 = vld [vmem:[%s11417_s7 + $0x1dac] ss:$16 sps:$4 sm:$0xff]  }
 0x3ee   : > { %7216 = vmatprep.subr.bf16.mxu0 %v10815_v25  ;;  %7872 = vmatprep.subr.bf16.mxu1 %v10818_v27  ;;  %v10897_v25 = vld [vmem:[%s11417_s7 + $0x1da0] ss:$16 sps:$4 sm:$0xff]   ;;  %v10900_v27 = vld [vmem:[%s11417_s7 + $0x1da8] ss:$16 sps:$4 sm:$0xff]  }
 0x3f1   : > { %7217 = vmatpush1.bf16.msra.mxu0 %v10813_v7  ;;  %7873 = vmatpush1.bf16.msra.mxu1 %v10816_v29  ;;  %v10905_v7 = vld [vmem:[%s11417_s7 + $0x1dc4] ss:$16 sps:$4 sm:$0xff]   ;;  %v10908_v29 = vld [vmem:[%s11417_s7 + $0x1dcc] ss:$16 sps:$4 sm:$0xff]  }
 0x3f2   : > { %7227 = vmatprep.subr.bf16.mxu0 %v10821_v30  ;;  %7883 = vmatprep.subr.bf16.mxu1 %v10824_v12  ;;  %v10903_v30 = vld [vmem:[%s11417_s7 + $0x1dc0] ss:$16 sps:$4 sm:$0xff]   ;;  %v10906_v12 = vld [vmem:[%s11417_s7 + $0x1dc8] ss:$16 sps:$4 sm:$0xff]  }
 0x3f4   : > { %7219 = vmatmul.mubr.bf16.vlgmr.msra.gmra.mrb[0].mxu0 %v1497_v16  ;;  %7875 = vmatmul.mubr.bf16.vlgmr.msra.gmra.mrb[0].mxu1 %v1497_v16  ;;  %v10914_v16 = vld [vmem:[%s11417_s7 + $0x1dec] ss:$16 sps:$4 sm:$0xff]  }
 0x3f5   : > { %7228 = vmatpush1.bf16.msra.mxu0 %v10819_v32  ;;  %7884 = vmatpush1.bf16.msra.mxu1 %v10822_v23  ;;  %v10909_v32 = vld [vmem:[%s11417_s7 + $0x1de0] ss:$16 sps:$4 sm:$0xff]   ;;  %v10912_v23 = vld [vmem:[%s11417_s7 + $0x1de8] ss:$16 sps:$4 sm:$0xff]  }
 0x3f6   : > { %7229 = vmatprep.subr.bf16.mxu0 %v10827_v33  ;;  %7885 = vmatprep.subr.bf16.mxu1 %v10830_v34  ;;  %v10918_v33 = vld [vmem:[%s11417_s7 + $0x1e04] ss:$16 sps:$4 sm:$0xff]   ;;  %v10921_v34 = vld [vmem:[%s11417_s7 + $0x1e0c] ss:$16 sps:$4 sm:$0xff]  }
 0x3f7   : > { %7259 = vmatprep.mubr.bf16.mxu0 %v12506_v26  ;;  %7915 = vmatprep.mubr.bf16.mxu1 %v12506_v26 }
 0x3f9   : > { %7230 = vmatpush1.bf16.msra.mxu0 %v10825_v24  ;;  %7886 = vmatpush1.bf16.msra.mxu1 %v10828_v35  ;;  %v12572_v24 = vrot.slane %v12491_v28, %v11492_v50  ;;  %v10916_v35 = vld [vmem:[%s11417_s7 + $0x1e00] ss:$16 sps:$4 sm:$0xff]  }
 0x3fa   : > { %7231 = vmatprep.subr.bf16.mxu0 %v10833_v37  ;;  %7887 = vmatprep.subr.bf16.mxu1 %v10836_v38  ;;  %v10919_v37 = vld [vmem:[%s11417_s7 + $0x1e08] ss:$16 sps:$4 sm:$0xff]   ;;  %v10924_v38 = vld [vmem:[%s11417_s7 + $0x1e24] ss:$16 sps:$4 sm:$0xff]   ;;  %v10922_v28 = vld [vmem:[%s11417_s7 + $0x1e20] ss:$16 sps:$4 sm:$0xff]  }
 0x3fd   : > { %7232 = vmatpush1.bf16.msra.mxu0 %v10831_v40  ;;  %7888 = vmatpush1.bf16.msra.mxu1 %v10834_v41  ;;  %v10927_v40 = vld [vmem:[%s11417_s7 + $0x1e2c] ss:$16 sps:$4 sm:$0xff]   ;;  %v1500_v41 = vcombine.high %v12506_v26, %v12506_v26  ;;  %v10928_v26 = vld [vmem:[%s11417_s7 + $0x1e40] ss:$16 sps:$4 sm:$0xff]  }
 0x3fe   : > { %7233 = vmatprep.subr.bf16.mxu0 %v10839_v22  ;;  %7889 = vmatprep.subr.bf16.mxu1 %v10842_v42  ;;  %v10925_v22 = vld [vmem:[%s11417_s7 + $0x1e28] ss:$16 sps:$4 sm:$0xff]   ;;  %v10930_v42 = vld [vmem:[%s11417_s7 + $0x1e44] ss:$16 sps:$4 sm:$0xff]  }
 0x401   : > { %7234 = vmatpush1.bf16.msra.mxu0 %v10837_v43  ;;  %7890 = vmatpush1.bf16.msra.mxu1 %v10840_v45  ;;  %v10933_v43 = vld [vmem:[%s11417_s7 + $0x1e4c] ss:$16 sps:$4 sm:$0xff]   ;;  %v10931_v45 = vld [vmem:[%s11417_s7 + $0x1e48] ss:$16 sps:$4 sm:$0xff]  }
 0x402   : > { %7235 = vmatprep.subr.bf16.mxu0 %v10845_v46  ;;  %7891 = vmatprep.subr.bf16.mxu1 %v10848_v47  ;;  %v10936_v46 = vld [vmem:[%s11417_s7 + $0x1e64] ss:$16 sps:$4 sm:$0xff]   ;;  %v10939_v47 = vld [vmem:[%s11417_s7 + $0x1e6c] ss:$16 sps:$4 sm:$0xff]  }
 0x405   : > { %7236 = vmatpush1.bf16.msra.mxu0 %v10843_v48  ;;  %7892 = vmatpush1.bf16.msra.mxu1 %v10846_v51  ;;  %v10934_v48 = vld [vmem:[%s11417_s7 + $0x1e60] ss:$16 sps:$4 sm:$0xff]   ;;  %v10937_v51 = vld [vmem:[%s11417_s7 + $0x1e68] ss:$16 sps:$4 sm:$0xff]  }
 0x406   : > { %7237 = vmatprep.subr.bf16.mxu0 %v10851_v54  ;;  %7893 = vmatprep.subr.bf16.mxu1 %v10854_v55  ;;  %v10942_v54 = vld [vmem:[%s11417_s7 + $0x1e84] ss:$16 sps:$4 sm:$0xff]   ;;  %v10945_v55 = vld [vmem:[%s11417_s7 + $0x1e8c] ss:$16 sps:$4 sm:$0xff]  }
 0x409   : > { %7238 = vmatpush1.bf16.msra.mxu0 %v10849_v56  ;;  %7894 = vmatpush1.bf16.msra.mxu1 %v10852_v39  ;;  %v10940_v56 = vld [vmem:[%s11417_s7 + $0x1e80] ss:$16 sps:$4 sm:$0xff]   ;;  %v10943_v39 = vld [vmem:[%s11417_s7 + $0x1e88] ss:$16 sps:$4 sm:$0xff]  }
 0x40a   : > { %7239 = vmatprep.subr.bf16.mxu0 %v10857_v57  ;;  %7895 = vmatprep.subr.bf16.mxu1 %v10860_v58  ;;  %v10948_v57 = vld [vmem:[%s11417_s7 + $0x1ea4] ss:$16 sps:$4 sm:$0xff]   ;;  %v10951_v58 = vld [vmem:[%s11417_s7 + $0x1eac] ss:$16 sps:$4 sm:$0xff]  }
 0x40d   : > { %7240 = vmatpush1.bf16.msra.mxu0 %v10855_v59  ;;  %7896 = vmatpush1.bf16.msra.mxu1 %v10858_v49  ;;  %v10946_v59 = vld [vmem:[%s11417_s7 + $0x1ea0] ss:$16 sps:$4 sm:$0xff]   ;;  %v10949_v49 = vld [vmem:[%s11417_s7 + $0x1ea8] ss:$16 sps:$4 sm:$0xff]  }
 0x40e   : > { %7241 = vmatprep.subr.bf16.mxu0 %v10863_v60  ;;  %7897 = vmatprep.subr.bf16.mxu1 %v10866_v61  ;;  %v10954_v60 = vld [vmem:[%s11417_s7 + $0x1ec4] ss:$16 sps:$4 sm:$0xff]   ;;  %v10957_v61 = vld [vmem:[%s11417_s7 + $0x1ecc] ss:$16 sps:$4 sm:$0xff]  }
 0x411   : > { %7242 = vmatpush1.bf16.msra.mxu0 %v10861_v14  ;;  %7898 = vmatpush1.bf16.msra.mxu1 %v10864_v0  ;;  %v10952_v14 = vld [vmem:[%s11417_s7 + $0x1ec0] ss:$16 sps:$4 sm:$0xff]   ;;  %v10955_v0 = vld [vmem:[%s11417_s7 + $0x1ec8] ss:$16 sps:$4 sm:$0xff]  }
 0x412   : > { %7243 = vmatprep.subr.bf16.mxu0 %v10869_v1  ;;  %7899 = vmatprep.subr.bf16.mxu1 %v10872_v36  ;;  %v10960_v1 = vld [vmem:[%s11417_s7 + $0x1ee4] ss:$16 sps:$4 sm:$0xff]   ;;  %v10963_v36 = vld [vmem:[%s11417_s7 + $0x1eec] ss:$16 sps:$4 sm:$0xff]  }
 0x415   : > { %7244 = vmatpush1.bf16.msra.mxu0 %v10867_v3  ;;  %7900 = vmatpush1.bf16.msra.mxu1 %v10870_v4  ;;  %v10958_v3 = vld [vmem:[%s11417_s7 + $0x1ee0] ss:$16 sps:$4 sm:$0xff]   ;;  %v10961_v4 = vld [vmem:[%s11417_s7 + $0x1ee8] ss:$16 sps:$4 sm:$0xff]  }
 0x416   : > { %7245 = vmatprep.subr.bf16.mxu0 %v10875_v52  ;;  %7901 = vmatprep.subr.bf16.mxu1 %v10878_v5  ;;  %v10966_v52 = vld [vmem:[%s11417_s7 + $0x1f04] ss:$16 sps:$4 sm:$0xff]   ;;  %v10969_v5 = vld [vmem:[%s11417_s7 + $0x1f0c] ss:$16 sps:$4 sm:$0xff]  }
 0x419   : > { %7246 = vmatpush1.bf16.msra.mxu0 %v10873_v6  ;;  %7902 = vmatpush1.bf16.msra.mxu1 %v10876_v62  ;;  %v10964_v6 = vld [vmem:[%s11417_s7 + $0x1f00] ss:$16 sps:$4 sm:$0xff]   ;;  %v10967_v62 = vld [vmem:[%s11417_s7 + $0x1f08] ss:$16 sps:$4 sm:$0xff]  }
 0x41a   : > { %7247 = vmatprep.subr.bf16.mxu0 %v10881_v8  ;;  %7903 = vmatprep.subr.bf16.mxu1 %v10884_v9  ;;  %v10972_v8 = vld [vmem:[%s11417_s7 + $0x1f24] ss:$16 sps:$4 sm:$0xff]   ;;  %v10975_v9 = vld [vmem:[%s11417_s7 + $0x1f2c] ss:$16 sps:$4 sm:$0xff]  }
 0x41d   : > { %7248 = vmatpush1.bf16.msra.mxu0 %v10879_v11  ;;  %7904 = vmatpush1.bf16.msra.mxu1 %v10882_v13  ;;  %v10970_v11 = vld [vmem:[%s11417_s7 + $0x1f20] ss:$16 sps:$4 sm:$0xff]   ;;  %v10973_v13 = vld [vmem:[%s11417_s7 + $0x1f28] ss:$16 sps:$4 sm:$0xff]  }
 0x41e   : > { %7249 = vmatprep.subr.bf16.mxu0 %v10887_v15  ;;  %7905 = vmatprep.subr.bf16.mxu1 %v10890_v17  ;;  %v10978_v15 = vld [vmem:[%s11417_s7 + $0x1f44] ss:$16 sps:$4 sm:$0xff]   ;;  %v10981_v17 = vld [vmem:[%s11417_s7 + $0x1f4c] ss:$16 sps:$4 sm:$0xff]  }
 0x421   : > { %7250 = vmatpush1.bf16.msra.mxu0 %v10885_v2  ;;  %7906 = vmatpush1.bf16.msra.mxu1 %v10888_v53  ;;  %v10976_v2 = vld [vmem:[%s11417_s7 + $0x1f40] ss:$16 sps:$4 sm:$0xff]   ;;  %v10979_v53 = vld [vmem:[%s11417_s7 + $0x1f48] ss:$16 sps:$4 sm:$0xff]  }
 0x422   : > { %7251 = vmatprep.subr.bf16.mxu0 %v10893_v18  ;;  %7907 = vmatprep.subr.bf16.mxu1 %v10896_v19  ;;  %v10984_v18 = vld [vmem:[%s11417_s7 + $0x1f64] ss:$16 sps:$4 sm:$0xff]   ;;  %v10987_v19 = vld [vmem:[%s11417_s7 + $0x1f6c] ss:$16 sps:$4 sm:$0xff]  }
 0x425   : > { %7252 = vmatpush1.bf16.msra.mxu0 %v10891_v10  ;;  %7908 = vmatpush1.bf16.msra.mxu1 %v10894_v20  ;;  %v10982_v10 = vld [vmem:[%s11417_s7 + $0x1f60] ss:$16 sps:$4 sm:$0xff]   ;;  %v10985_v20 = vld [vmem:[%s11417_s7 + $0x1f68] ss:$16 sps:$4 sm:$0xff]  }
 0x426   : > { %7253 = vmatprep.subr.bf16.mxu0 %v10899_v21  ;;  %7909 = vmatprep.subr.bf16.mxu1 %v10902_v63  ;;  %v10990_v21 = vld [vmem:[%s11417_s7 + $0x1f84] ss:$16 sps:$4 sm:$0xff]   ;;  %v10993_v63 = vld [vmem:[%s11417_s7 + $0x1f8c] ss:$16 sps:$4 sm:$0xff]  }
 0x429   : > { %7254 = vmatpush1.bf16.msra.mxu0 %v10897_v25  ;;  %7910 = vmatpush1.bf16.msra.mxu1 %v10900_v27  ;;  %v10988_v25 = vld [vmem:[%s11417_s7 + $0x1f80] ss:$16 sps:$4 sm:$0xff]   ;;  %v10991_v27 = vld [vmem:[%s11417_s7 + $0x1f88] ss:$16 sps:$4 sm:$0xff]  }
 0x42a   : > { %7255 = vmatprep.subr.bf16.mxu0 %v10905_v7  ;;  %7911 = vmatprep.subr.bf16.mxu1 %v10908_v29  ;;  %v10996_v7 = vld [vmem:[%s11417_s7 + $0x1fa4] ss:$16 sps:$4 sm:$0xff]   ;;  %v10999_v29 = vld [vmem:[%s11417_s7 + $0x1fac] ss:$16 sps:$4 sm:$0xff]  }
 0x42d   : > { %7256 = vmatpush1.bf16.msra.mxu0 %v10903_v30  ;;  %7912 = vmatpush1.bf16.msra.mxu1 %v10906_v12  ;;  %v10994_v30 = vld [vmem:[%s11417_s7 + $0x1fa0] ss:$16 sps:$4 sm:$0xff]   ;;  %v10997_v12 = vld [vmem:[%s11417_s7 + $0x1fa8] ss:$16 sps:$4 sm:$0xff]  }
 0x42e   : > { %7257 = vmatprep.subr.bf16.mxu0 %v10911_v31  ;;  %7913 = vmatprep.subr.bf16.mxu1 %v10914_v16  ;;  %v11002_v31 = vld [vmem:[%s11417_s7 + $0x1fc4] ss:$16 sps:$4 sm:$0xff]   ;;  %v11005_v16 = vld [vmem:[%s11417_s7 + $0x1fcc] ss:$16 sps:$4 sm:$0xff]  }
 0x431   : > { %7258 = vmatpush1.bf16.msra.mxu0 %v10909_v32  ;;  %7914 = vmatpush1.bf16.msra.mxu1 %v10912_v23  ;;  %v11000_v32 = vld [vmem:[%s11417_s7 + $0x1fc0] ss:$16 sps:$4 sm:$0xff]   ;;  %v11003_v23 = vld [vmem:[%s11417_s7 + $0x1fc8] ss:$16 sps:$4 sm:$0xff]  }
 0x432   : > { %7268 = vmatprep.subr.bf16.mxu0 %v10918_v33  ;;  %7924 = vmatprep.subr.bf16.mxu1 %v10921_v34  ;;  %v11008_v33 = vld [vmem:[%s11417_s7 + $0x1fe4] ss:$16 sps:$4 sm:$0xff]   ;;  %v11011_v34 = vld [vmem:[%s11417_s7 + $0x1fec] ss:$16 sps:$4 sm:$0xff]  }
 0x434   : > { %7260 = vmatmul.mubr.bf16.vlgmr.msra.gmra.mrb[0].mxu0 %v12572_v24  ;;  %7916 = vmatmul.mubr.bf16.vlgmr.msra.gmra.mrb[0].mxu1 %v12572_v24 }
 0x435   : > { %7269 = vmatpush1.bf16.msra.mxu0 %v10916_v35  ;;  %7925 = vmatpush1.bf16.msra.mxu1 %v10919_v37  ;;  %v11006_v35 = vld [vmem:[%s11417_s7 + $0x1fe0] ss:$16 sps:$4 sm:$0xff]   ;;  %v11009_v37 = vld [vmem:[%s11417_s7 + $0x1fe8] ss:$16 sps:$4 sm:$0xff]  }
 0x436   : > { %7270 = vmatprep.subr.bf16.mxu0 %v10924_v38  ;;  %7926 = vmatprep.subr.bf16.mxu1 %v10927_v40  ;;  %v1498_v38 = vcombine.high %v12572_v24, %v12572_v24  ;;  %v11177_v40 = vmov 1983009808  }
 0x437   : > { %7300 = vmatprep.mubr.bf16.mxu0 %v1500_v41  ;;  %7956 = vmatprep.mubr.bf16.mxu1 %v1500_v41  ;;  %v7972_v41 = vunpack.c.l.s4 %v11177_v40 }
 0x439   : > { %7271 = vmatpush1.bf16.msra.mxu0 %v10922_v28  ;;  %7927 = vmatpush1.bf16.msra.mxu1 %v10925_v22  ;;  %v7973_v28 = vunpack.c.0.s8 %v7972_v41 }
 0x43a   : > { %7272 = vmatprep.subr.bf16.mxu0 %v10930_v42  ;;  %7928 = vmatprep.subr.bf16.mxu1 %v10933_v43 }
 0x43b   : > { %v7976_v43 = vsub.s32 %v7973_v28, %v11484_v44 }
 0x43d   : > { %7273 = vmatpush1.bf16.msra.mxu0 %v10928_v26  ;;  %7929 = vmatpush1.bf16.msra.mxu1 %v10931_v45 }
 0x43e   : > { %7274 = vmatprep.subr.bf16.mxu0 %v10936_v46  ;;  %7930 = vmatprep.subr.bf16.mxu1 %v10939_v47 }
 0x441   : > { %7275 = vmatpush1.bf16.msra.mxu0 %v10934_v48  ;;  %7931 = vmatpush1.bf16.msra.mxu1 %v10937_v51 }
 0x442   : > { %7276 = vmatprep.subr.bf16.mxu0 %v10942_v54  ;;  %7932 = vmatprep.subr.bf16.mxu1 %v10945_v55 }
 0x445   : > { %7277 = vmatpush1.bf16.msra.mxu0 %v10940_v56  ;;  %7933 = vmatpush1.bf16.msra.mxu1 %v10943_v39  ;;  %v272_v39 = vld [vmem:[#allocation2] sm:$0xff] }
 0x446   : > { %7278 = vmatprep.subr.bf16.mxu0 %v10948_v57  ;;  %7934 = vmatprep.subr.bf16.mxu1 %v10951_v58 }
 0x449   : > { %7279 = vmatpush1.bf16.msra.mxu0 %v10946_v59  ;;  %7935 = vmatpush1.bf16.msra.mxu1 %v10949_v49  ;;  %v7994_v59 = vld [vmem:[%s223_s10] sm:$0xf] (!%p9238_p3)  ;;  %v7998_v49 = vsub.s32 (!%p9238_p3), 0, %v11484_v44 }
 0x44a   : > { %7280 = vmatprep.subr.bf16.mxu0 %v10954_v60  ;;  %7936 = vmatprep.subr.bf16.mxu1 %v10957_v61  ;;  %v8002_v60 = vsub.s32 (!%p9238_p3), 1, %v11484_v44  ;;  %v8006_v61 = vsub.s32 (!%p9238_p3), 2, %v11484_v44 }
 0x44d   : > { %7281 = vmatpush1.bf16.msra.mxu0 %v10952_v14  ;;  %7937 = vmatpush1.bf16.msra.mxu1 %v10955_v0  ;;  %v8010_v14 = vsub.s32 (!%p9238_p3), 3, %v11484_v44  ;;  %v7999_v0 = vrot.slane (!%p9238_p3), %v7994_v59, %v7998_v49 }
 0x44e   : > { %7282 = vmatprep.subr.bf16.mxu0 %v10960_v1  ;;  %7938 = vmatprep.subr.bf16.mxu1 %v10963_v36  ;;  %v8003_v1 = vrot.slane (!%p9238_p3), %v7994_v59, %v8002_v60  ;;  %v8007_v36 = vrot.slane (!%p9238_p3), %v7994_v59, %v8006_v61 }
 0x451   : > { %7283 = vmatpush1.bf16.msra.mxu0 %v10958_v3  ;;  %7939 = vmatpush1.bf16.msra.mxu1 %v10961_v4  ;;  %v8011_v3 = vrot.slane (!%p9238_p3), %v7994_v59, %v8010_v14  ;;  %v8012_v4 = vcombine.low (!%p9238_p3), %v7999_v0, %v8003_v1 }
 0x452   : > { %7284 = vmatprep.subr.bf16.mxu0 %v10966_v52  ;;  %7940 = vmatprep.subr.bf16.mxu1 %v10969_v5 }
 0x453   : > { %v8013_v52 = vcombine.low (!%p9238_p3), %v8007_v36, %v8011_v3  ;;  %v8020_v5 = vrot.slane (!%p9238_p3), %v8012_v4, %v7976_v43 }
 0x455   : > { %7285 = vmatpush1.bf16.msra.mxu0 %v10964_v6  ;;  %7941 = vmatpush1.bf16.msra.mxu1 %v10967_v62  ;;  %v8027_v6 = vrot.slane (!%p9238_p3), %v8013_v52, %v7976_v43 }
 0x456   : > { %7286 = vmatprep.subr.bf16.mxu0 %v10972_v8  ;;  %7942 = vmatprep.subr.bf16.mxu1 %v10975_v9 }
 0x457   : > { %v8028_v8 = vcombine.low (!%p9238_p3), %v8020_v5, %v8027_v6 }
 0x459   : > { %7287 = vmatpush1.bf16.msra.mxu0 %v10970_v11  ;;  %7943 = vmatpush1.bf16.msra.mxu1 %v10973_v13 }
 0x45a   : > { %7288 = vmatprep.subr.bf16.mxu0 %v10978_v15  ;;  %7944 = vmatprep.subr.bf16.mxu1 %v10981_v17 }
 0x45d   : > { %7289 = vmatpush1.bf16.msra.mxu0 %v10976_v2  ;;  %7945 = vmatpush1.bf16.msra.mxu1 %v10979_v53 }
 0x45e   : > { %7290 = vmatprep.subr.bf16.mxu0 %v10984_v18  ;;  %7946 = vmatprep.subr.bf16.mxu1 %v10987_v19 }
 0x461   : > { %7291 = vmatpush1.bf16.msra.mxu0 %v10982_v10  ;;  %7947 = vmatpush1.bf16.msra.mxu1 %v10985_v20 }
 0x462   : > { %7292 = vmatprep.subr.bf16.mxu0 %v10990_v21  ;;  %7948 = vmatprep.subr.bf16.mxu1 %v10993_v63 }
 0x465   : > { %7293 = vmatpush1.bf16.msra.mxu0 %v10988_v25  ;;  %7949 = vmatpush1.bf16.msra.mxu1 %v10991_v27 }
 0x466   : > { %7294 = vmatprep.subr.bf16.mxu0 %v10996_v7  ;;  %7950 = vmatprep.subr.bf16.mxu1 %v10999_v29 }
 0x469   : > { %7295 = vmatpush1.bf16.msra.mxu0 %v10994_v30  ;;  %7951 = vmatpush1.bf16.msra.mxu1 %v10997_v12 }
 0x46a   : > { %7296 = vmatprep.subr.bf16.mxu0 %v11002_v31  ;;  %7952 = vmatprep.subr.bf16.mxu1 %v11005_v16 }
 0x46d   : > { %7297 = vmatpush1.bf16.msra.mxu0 %v11000_v32  ;;  %7953 = vmatpush1.bf16.msra.mxu1 %v11003_v23 }
 0x46e   : > { %7298 = vmatprep.subr.bf16.mxu0 %v11008_v33  ;;  %7954 = vmatprep.subr.bf16.mxu1 %v11011_v34 }
 0x471   : > { %7299 = vmatpush1.bf16.msra.mxu0 %v11006_v35  ;;  %7955 = vmatpush1.bf16.msra.mxu1 %v11009_v37 }
 0x474   : > { %7301 = vmatmul.mubr.bf16.vlgmr.msra.gmra.mrb[0].mxu0 %v1498_v38  ;;  %7957 = vmatmul.mubr.bf16.vlgmr.msra.gmra.mrb[0].mxu1 %v1498_v38 }
 0x547   : > { %v7302_v22 = vpop.f32.mrb[0].mxu0  ;;  %v7958_v42 = vpop.f32.mrb[0].mxu1 }
 0x548   : > { %v7304_v26 = vpop.f32.mrb[1].mxu0  ;;  %v7960_v45 = vpop.f32.mrb[1].mxu1 }
 0x549   : > { %v7969_v46 = vcombine.low %v7302_v22, %v7304_v26  ;;  %v7970_v47 = vcombine.low %v7958_v42, %v7960_v45  ;;  %v7306_v48 = vpop.f32.mrb[2].mxu0  ;;  %v7962_v51 = vpop.f32.mrb[2].mxu1 }
 0x54a   : > { %v7307_v54 = vpop.f32.mrb[3].mxu0  ;;  %v7963_v55 = vpop.f32.mrb[3].mxu1 }
 0x54b   : > { %v7977_v24 = vrot.slane %v7969_v46, %v7976_v43  ;;  %v7984_v56 = vrot.slane %v7970_v47, %v7976_v43  ;;  %7992 = sbr.rel (%p9238_p3) target bundleno = 1386 (0x56a), region = 48 }
 0x54d   : > { %v7985_v57 = vcombine.low %v7977_v24, %v7984_v56 }
 0x54f   : > { %v7987_v58 = vadd.f32 %v7985_v57, %v272_v39 }
 0x551   : > { %7988 = vst [vmem:[#allocation2] sm:$0xff] %v7987_v58 }
 0x558   : > { %v7993_v62 = vld [vmem:[#allocation2] sm:$0xff] }
 0x559   : > { %v8030_v9 = vadd.f32 %v8028_v8, %v7993_v62 }
 0x55b   : > { %v8031_v11 = vmax.f32 %v8030_v9, 0.0 }
 0x55d   : > { %v8033_v13 = vcombine.high %v8031_v11, %v8031_v11  ;;  %v8040_v15 = vrot.slane %v8031_v11, %v7976_v43 }
 0x55f   : > { %v8047_v17 = vrot.slane %v8033_v13, %v7976_v43  ;;  %v8048_v2 = vcombine.high %v8040_v15, %v8040_v15 }
 0x561   : > { %v8049_v53 = vcombine.high %v8047_v17, %v8047_v17  ;;  %v9239_v18 = vpack.c.bf16 %v8048_v2, %v8040_v15 }
 0x563   : > { %v9240_v44 = vpack.c.bf16 %v8049_v53, %v8047_v17  ;;  %v8070_v19 = vrot.slane %v9239_v18, %v11492_v50 }
 0x565   : > { %v8077_v10 = vrot.slane %v9240_v44, %v11492_v50 }
 0x567   : > { %v8078_v20 = vcombine.low %v8070_v19, %v8077_v10 }
 0x569   : > { %9241 = vst.sshfl [vmem:[%s265_s4] sm:$0x55 pattern:$0x73625140] %v8078_v20 }
 0x56a PF: > { %s19_s22 = sadd.s32 1, %s11168_s22   ;;  %s12715_s1 = sld [smem:[#allocation9_spill]] }
 0x56b   : > { %p16_p11 = scmp.ge.s32.totalorder %s19_s22, 10   ;;  %s12716_s12 = smov %s11132_s13 }
 0x56c   : > { %s12717_s13 = smov %s11136_s14  ;;  %s12718_s14 = smov %s11366_s29 }
 0x56d   : > { %s12719_s15 = smov %s11144_s16  ;;  %s12720_s16 = smov %s11148_s17 }
 0x56e   : > { %s12721_s17 = smov %s11371_s6  ;;  %s12722_s18 = smov %s11160_s20 }
 0x56f   : > { %s12723_s19 = smov %s11164_s21  ;;  %s12724_s20 = smov %s12727_s23 }
 0x570   : > { %s12725_s21 = smov %s12715_s1  ;;  %18 = sbr.rel (!%p16_p11) target bundleno = 11 (0xb), region = 96 }
 0x577   :  { %8108 = vsyncpa [#allocation4], 1 }
 0x578   :  { %8110 = vsyncpa [#allocation4 + $0x1], 1 }
 0x579   :  { %8111 = vsyncpa [#allocation6], 1 }
 0x57a   :  { %8113 = vsyncpa [#allocation6 + $0x1], 1 }

</bundles_post_ra>
